<compile_context>
chip_gen: v5e
topology: v5e:2x2
jax: 0.10.0
libtpu: 0.0.40
codegen_flags: <defaults>
</compile_context>

<pallas_src>
import numpy as np

import jax
import jax.numpy as jnp
from jax import lax
from jax.experimental import pallas as pl
from jax.experimental.pallas import tpu as pltpu

EPS = 1e-5
LANE = 128
MXU_DTYPE = jnp.bfloat16  # MXU contraction dtype (f32 accumulation)


# ----------------------------------------------------------------------------
# Small helpers
# ----------------------------------------------------------------------------
def _full_spec(shape):
    zeros = (0,) * len(shape)
    return pl.BlockSpec(shape, lambda i, z=zeros: z)


def _ceil_to(x, m):
    return ((x + m - 1) // m) * m


def _segment_layout(widths):
    """128-aligned lane offsets for concatenated channel pieces."""
    offs, off = [], 0
    for w in widths:
        offs.append(off)
        off += _ceil_to(w, LANE)
    return offs, off


def _upsample_matrix(lin):
    """[2*lin, lin] interpolation matrix: Upsample(scale=2, linear,
    align_corners=True). Static, built with numpy."""
    lo_len = 2 * lin
    if lin == 1:
        return jnp.ones((lo_len, 1), jnp.float32)
    pos = np.arange(lo_len, dtype=np.float64) * (lin - 1) / (lo_len - 1)
    low = np.minimum(np.floor(pos).astype(np.int64), lin - 1)
    high = np.minimum(low + 1, lin - 1)
    w = pos - low
    m = np.zeros((lo_len, lin), dtype=np.float64)
    m[np.arange(lo_len), low] += 1.0 - w
    m[np.arange(lo_len), high] += w
    return jnp.asarray(m, dtype=jnp.float32)


# ----------------------------------------------------------------------------
# In-kernel building blocks
# ----------------------------------------------------------------------------
def _conv_bn_relu(pad_ref, B, L, C, w, b, g, be):
    """Conv1d(k=3, pad=1) + BatchNorm1d(train-mode batch stats) + ReLU.

    pad_ref: [B, L+2, C] f32 scratch; rows 1..L hold the stage input, rows 0
             and L+1 are zero (the conv zero padding).
    w:       [3*C, Co] bf16 im2col weight (tap-major).
    b/g/be:  [1, Co] f32 conv bias / BN gamma / BN beta.
    Returns  [B*L, Co] f32.
    """
    xl = pad_ref[:, pl.ds(0, L), :]      # x[l-1]
    xc = pad_ref[:, pl.ds(1, L), :]      # x[l]
    xr = pad_ref[:, pl.ds(2, L), :]      # x[l+1]
    col = jnp.concatenate([xl, xc, xr], axis=-1)          # [B, L, 3C]
    col = col.reshape(B * L, 3 * C).astype(MXU_DTYPE)
    y = jnp.dot(col, w, preferred_element_type=jnp.float32) + b
    mean = jnp.mean(y, axis=0, keepdims=True)
    var = jnp.mean(jnp.square(y - mean), axis=0, keepdims=True)   # biased var
    y = (y - mean) * lax.rsqrt(var + EPS)
    y = y * g + be
    return jnp.maximum(y, 0.0)


def _block_tail(h1, B, L, Co, c2_pad, w2, b2, g2, be2, o_ref, pad2, final=None):
    """Second conv stage (+ optional fused 1x1 final conv) and output store."""
    pad2[...] = jnp.zeros_like(pad2)
    pad2[:, pl.ds(1, L), pl.ds(0, Co)] = h1.reshape(B, L, Co)
    h2 = _conv_bn_relu(pad2, B, L, c2_pad, w2, b2, g2, be2)       # [B*L, Co]
    if final is None:
        o_ref[...] = h2.reshape(B, L, Co).astype(o_ref.dtype)
        return
    fw, fb, cf = final
    if cf == 1:
        # fused 1x1 conv -> lane-dense [B, L] output (no Co=1 masked stores)
        y = jnp.sum(h2.reshape(B, L, Co) * fw[None], axis=-1) + fb
        o_ref[...] = y.astype(o_ref.dtype)
    else:
        y = jnp.dot(h2, fw, preferred_element_type=jnp.float32) + fb
        o_ref[...] = y.reshape(B, L, cf).astype(o_ref.dtype)


# ----------------------------------------------------------------------------
# Kernel factories (one fused kernel per UNet level)
# ----------------------------------------------------------------------------
def _make_enc1_kernel(B, L, Cx, D, offs, c1_pad, Co, c2_pad):
    """[x | broadcast(t_emb)] assembly + two (conv3+BN+ReLU) stages."""

    def kernel(x_ref, t_ref, w1, b1, g1, be1, w2, b2, g2, be2,
               o_ref, pad1, pad2):
        pad1[...] = jnp.zeros_like(pad1)
        pad1[:, pl.ds(1, L), pl.ds(offs[0], Cx)] = x_ref[...]
        pad1[:, pl.ds(1, L), pl.ds(offs[1], D)] = jnp.broadcast_to(
            t_ref[...][:, None, :], (B, L, D))
        h = _conv_bn_relu(pad1, B, L, c1_pad,
                          w1[...], b1[...], g1[...], be1[...])
        _block_tail(h, B, L, Co, c2_pad,
                    w2[...], b2[...], g2[...], be2[...], o_ref, pad2)

    return kernel


def _make_pool_kernel(B, L, Cin, c1_pad, Co, c2_pad):
    """MaxPool1d(2) fused with two (conv3+BN+ReLU) stages. x: [B, 2L, Cin]."""

    def kernel(x_ref, w1, b1, g1, be1, w2, b2, g2, be2, o_ref, pad1, pad2):
        pad1[...] = jnp.zeros_like(pad1)
        even = x_ref[:, pl.ds(0, L, stride=2), :]
        odd = x_ref[:, pl.ds(1, L, stride=2), :]
        pad1[:, pl.ds(1, L), pl.ds(0, Cin)] = jnp.maximum(even, odd)
        h = _conv_bn_relu(pad1, B, L, c1_pad,
                          w1[...], b1[...], g1[...], be1[...])
        _block_tail(h, B, L, Co, c2_pad,
                    w2[...], b2[...], g2[...], be2[...], o_ref, pad2)

    return kernel


def _make_dec_kernel(B, Lo, Cd, Ce, skip_off, c1_pad, Co, c2_pad,
                     final_co=None):
    """Upsample(x2, linear, align_corners=True) + skip concat + two conv
    stages (+ optional fused 1x1 final conv for the last decoder)."""

    def kernel(*refs):
        if final_co is None:
            (d_ref, e_ref, m_ref, w1, b1, g1, be1, w2, b2, g2, be2,
             o_ref, pad1, pad2) = refs
            final = None
        else:
            (d_ref, e_ref, m_ref, w1, b1, g1, be1, w2, b2, g2, be2,
             fw_ref, fb_ref, o_ref, pad1, pad2) = refs
            final = (fw_ref[...], fb_ref[...], final_co)
        pad1[...] = jnp.zeros_like(pad1)
        m = m_ref[...]                                        # [Lo, Lo//2] f32
        for bi in range(B):                                   # static unroll
            up = jnp.dot(m, d_ref[bi], preferred_element_type=jnp.float32)
            pad1[bi, pl.ds(1, Lo), pl.ds(0, Cd)] = up
            pad1[bi, pl.ds(1, Lo), pl.ds(skip_off, Ce)] = e_ref[bi]
        h = _conv_bn_relu(pad1, B, Lo, c1_pad,
                          w1[...], b1[...], g1[...], be1[...])
        _block_tail(h, B, Lo, Co, c2_pad,
                    w2[...], b2[...], g2[...], be2[...], o_ref, pad2,
                    final=final)

    return kernel


# ----------------------------------------------------------------------------
# pallas_call wrappers
# ----------------------------------------------------------------------------
def enc1_block(x, temb, p):
    """x: [B, L, Cx], temb: [B, D] -> [B, L, 32]."""
    w1, b1, g1, be1, w2, b2, g2, be2 = p
    B, L, Cx = x.shape
    D = temb.shape[1]
    offs, c1_pad = _segment_layout([Cx, D])
    Co = w1.shape[1]
    _, c2_pad = _segment_layout([Co])
    assert w1.shape[0] == 3 * c1_pad and w2.shape[0] == 3 * c2_pad
    args = (x, temb, w1, b1, g1, be1, w2, b2, g2, be2)
    return pl.pallas_call(
        _make_enc1_kernel(B, L, Cx, D, offs, c1_pad, Co, c2_pad),
        out_shape=jax.ShapeDtypeStruct((B, L, Co), jnp.float32),
        grid=(1,),
        in_specs=[_full_spec(a.shape) for a in args],
        out_specs=_full_spec((B, L, Co)),
        scratch_shapes=[pltpu.VMEM((B, L + 2, c1_pad), jnp.float32),
                        pltpu.VMEM((B, L + 2, c2_pad), jnp.float32)],
    )(*args)


def pool_conv_block(x, p):
    """x: [B, 2L, Cin] -> MaxPool1d(2) + conv block -> [B, L, Co]."""
    w1, b1, g1, be1, w2, b2, g2, be2 = p
    B, L2, Cin = x.shape
    L = L2 // 2
    _, c1_pad = _segment_layout([Cin])
    Co = w1.shape[1]
    _, c2_pad = _segment_layout([Co])
    assert w1.shape[0] == 3 * c1_pad and w2.shape[0] == 3 * c2_pad
    args = (x, w1, b1, g1, be1, w2, b2, g2, be2)
    return pl.pallas_call(
        _make_pool_kernel(B, L, Cin, c1_pad, Co, c2_pad),
        out_shape=jax.ShapeDtypeStruct((B, L, Co), jnp.float32),
        grid=(1,),
        in_specs=[_full_spec(a.shape) for a in args],
        out_specs=_full_spec((B, L, Co)),
        scratch_shapes=[pltpu.VMEM((B, L + 2, c1_pad), jnp.float32),
                        pltpu.VMEM((B, L + 2, c2_pad), jnp.float32)],
    )(*args)


def up_conv_block(d, skip, p, final=None):
    """Upsample(d, x2) + concat(skip) + conv block (+ optional fused final)."""
    w1, b1, g1, be1, w2, b2, g2, be2 = p
    B, Lin, Cd = d.shape
    _, Lo, Ce = skip.shape
    assert Lo == 2 * Lin
    offs, c1_pad = _segment_layout([Cd, Ce])
    Co = w1.shape[1]
    _, c2_pad = _segment_layout([Co])
    assert w1.shape[0] == 3 * c1_pad and w2.shape[0] == 3 * c2_pad
    m = _upsample_matrix(Lin)

    if final is None:
        args = (d, skip, m, w1, b1, g1, be1, w2, b2, g2, be2)
        out_shape = jax.ShapeDtypeStruct((B, Lo, Co), jnp.float32)
        kernel = _make_dec_kernel(B, Lo, Cd, Ce, offs[1], c1_pad, Co, c2_pad)
    else:
        fw, fb = final
        cf = fb.shape[-1]
        if cf == 1:
            fw_arg = fw.T                      # [1, Co] (lane-dense reduction)
            out_shape = jax.ShapeDtypeStruct((B, Lo), jnp.float32)
        else:
            fw_arg = fw                        # [Co, cf]
            out_shape = jax.ShapeDtypeStruct((B, Lo, cf), jnp.float32)
        args = (d, skip, m, w1, b1, g1, be1, w2, b2, g2, be2, fw_arg, fb)
        kernel = _make_dec_kernel(B, Lo, Cd, Ce, offs[1], c1_pad, Co, c2_pad,
                                  final_co=cf)

    return pl.pallas_call(
        kernel,
        out_shape=out_shape,
        grid=(1,),
        in_specs=[_full_spec(a.shape) for a in args],
        out_specs=_full_spec(out_shape.shape),
        scratch_shapes=[pltpu.VMEM((B, Lo + 2, c1_pad), jnp.float32),
                        pltpu.VMEM((B, Lo + 2, c2_pad), jnp.float32)],
    )(*args)


def time_mlp(t, w1, b1, w2, b2):
    """Linear(1, D) -> SiLU -> Linear(D, D); plain JAX (K=1 matmul: a Pallas
    call here is pure launch/DMA overhead)."""
    h = t.reshape(-1, 1).astype(jnp.float32) @ w1 + b1
    h = h * jax.nn.sigmoid(h)
    return h @ w2 + b2


# ----------------------------------------------------------------------------
# Parameters (deterministic synthetic init, kernel-ready layouts)
# ----------------------------------------------------------------------------
def _conv_stage_weight(key, widths, co):
    """Conv1d(k=3) weight as an im2col matrix [3*c_pad, co] (bf16), with the
    true channel pieces placed at 128-aligned offsets and zero rows between.
    (PyTorch layout [Co, Cin, 3] would need a transpose/re-pack here.)"""
    offs, c_pad = _segment_layout(widths)
    w = jnp.zeros((3, c_pad, co), jnp.float32)
    keys = jax.random.split(key, len(widths))
    for k, wd, ofs in zip(keys, widths, offs):
        piece = jax.random.normal(k, (3, wd, co), jnp.float32) * 0.1
        w = w.at[:, ofs:ofs + wd, :].set(piece)
    return w.reshape(3 * c_pad, co).astype(MXU_DTYPE)


def _conv_block_params(key, widths, co):
    k = jax.random.split(key, 4)
    w1 = _conv_stage_weight(k[0], widths, co)
    b1 = jax.random.normal(k[1], (1, co), jnp.float32) * 0.01
    g1 = jnp.ones((1, co), jnp.float32)
    be1 = jnp.zeros((1, co), jnp.float32)
    w2 = _conv_stage_weight(k[2], [co], co)
    b2 = jax.random.normal(k[3], (1, co), jnp.float32) * 0.01
    g2 = jnp.ones((1, co), jnp.float32)
    be2 = jnp.zeros((1, co), jnp.float32)
    return (w1, b1, g1, be1, w2, b2, g2, be2)


def init_params(key, in_channels=2, out_channels=1, time_emb_dim=32):
    ks = jax.random.split(key, 16)
    p = {}
    p["time_w1"] = jax.random.normal(ks[0], (1, time_emb_dim), jnp.float32) * 0.1
    p["time_b1"] = jax.random.normal(ks[1], (1, time_emb_dim), jnp.float32) * 0.01
    p["time_w2"] = jax.random.normal(ks[2], (time_emb_dim, time_emb_dim),
                                     jnp.float32) * 0.1
    p["time_b2"] = jax.random.normal(ks[3], (1, time_emb_dim), jnp.float32) * 0.01
    p["enc1"] = _conv_block_params(ks[4], [in_channels, time_emb_dim], 32)
    p["enc2"] = _conv_block_params(ks[5], [32], 64)
    p["enc3"] = _conv_block_params(ks[6], [64], 128)
    p["bottleneck"] = _conv_block_params(ks[7], [128], 256)
    p["dec3"] = _conv_block_params(ks[8], [256, 128], 128)
    p["dec2"] = _conv_block_params(ks[9], [128, 64], 64)
    p["dec1"] = _conv_block_params(ks[10], [64, 32], 32)
    p["final_w"] = jax.random.normal(ks[11], (32, out_channels), jnp.float32) * 0.1
    p["final_b"] = jax.random.normal(ks[12], (1, out_channels), jnp.float32) * 0.01
    return p


# ----------------------------------------------------------------------------
# Forward pass (matches DiffusionUNet.forward)
# ----------------------------------------------------------------------------
def diffusion_unet_forward(params, x_ncl, t, mask=None):
    # x_ncl: [B, C, L] (PyTorch NCL), t: [B], mask: [B, 1, L] (unused, as in
    # the reference forward()).
    del mask
    x = jnp.transpose(x_ncl, (0, 2, 1))                     # [B, L, C]

    temb = time_mlp(t, params["time_w1"], params["time_b1"],
                    params["time_w2"], params["time_b2"])   # [B, D]

    e1 = enc1_block(x, temb, params["enc1"])                # [B, L,   32]
    e2 = pool_conv_block(e1, params["enc2"])                # [B, L/2, 64]
    e3 = pool_conv_block(e2, params["enc3"])                # [B, L/4, 128]
    bt = pool_conv_block(e3, params["bottleneck"])          # [B, L/8, 256]

    d3 = up_conv_block(bt, e3, params["dec3"])              # [B, L/4, 128]
    d2 = up_conv_block(d3, e2, params["dec2"])              # [B, L/2, 64]
    out = up_conv_block(d2, e1, params["dec1"],
                        final=(params["final_w"], params["final_b"]))

    if out.ndim == 2:                                       # out_channels == 1
        return out[:, None, :]                              # [B, 1, L]
    return jnp.transpose(out, (0, 2, 1))                    # [B, Cout, L]


# ----------------------------------------------------------------------------
# Demo
# ----------------------------------------------------------------------------
if __name__ == "__main__":
    B, Cin, L = 2, 2, 16  # L must be divisible by 8 (three MaxPool1d(2) stages)

    key = jax.random.PRNGKey(0)
    kx, kt, km = jax.random.split(key, 3)
    x = jax.random.normal(kx, (B, Cin, L), jnp.float32)            # [B, C, L]
    t = jax.random.uniform(kt, (B,), jnp.float32)                  # [B]
    mask = (jax.random.uniform(km, (B, 1, L)) > 0.5).astype(jnp.float32)

    params = init_params(jax.random.PRNGKey(1), in_channels=Cin,
                         out_channels=1, time_emb_dim=32)

    fwd = jax.jit(diffusion_unet_forward)
    out = jax.block_until_ready(fwd(params, x, t, mask))
    assert out.shape == (B, 1, L), out.shape
    assert bool(jnp.all(jnp.isfinite(out)))
    print("KERNEL_OK")
</pallas_src>

<mosaic_0001>
module attributes {stable_mosaic.version = 11 : i64} {
  func.func @kernel(%arg0: i32, %arg1: memref<2x16x2xf32, #tpu.memory_space<vmem>>, %arg2: memref<2x32xf32, #tpu.memory_space<vmem>>, %arg3: memref<768x32xbf16, #tpu.memory_space<vmem>>, %arg4: memref<1x32xf32, #tpu.memory_space<vmem>>, %arg5: memref<1x32xf32, #tpu.memory_space<vmem>>, %arg6: memref<1x32xf32, #tpu.memory_space<vmem>>, %arg7: memref<384x32xbf16, #tpu.memory_space<vmem>>, %arg8: memref<1x32xf32, #tpu.memory_space<vmem>>, %arg9: memref<1x32xf32, #tpu.memory_space<vmem>>, %arg10: memref<1x32xf32, #tpu.memory_space<vmem>>, %arg11: memref<2x16x32xf32, #tpu.memory_space<vmem>>, %arg12: memref<2x18x256xf32, #tpu.memory_space<vmem>>, %arg13: memref<2x18x128xf32, #tpu.memory_space<vmem>>) attributes {dimension_semantics = [#tpu.dimension_semantics<arbitrary>], iteration_bounds = array<i64: 1>, scalar_prefetch = 0 : i64, scratch_operands = 2 : i64, tpu.core_type = #tpu.core_type<tc>, window_params = [{pipeline_mode = #tpu.pipeline_mode<synchronous>, transform_indices = @transform_0, window_bounds = array<i64: 2, 16, 2>}, {pipeline_mode = #tpu.pipeline_mode<synchronous>, transform_indices = @transform_1, window_bounds = array<i64: 2, 32>}, {pipeline_mode = #tpu.pipeline_mode<synchronous>, transform_indices = @transform_2, window_bounds = array<i64: 768, 32>}, {pipeline_mode = #tpu.pipeline_mode<synchronous>, transform_indices = @transform_3, window_bounds = array<i64: 1, 32>}, {pipeline_mode = #tpu.pipeline_mode<synchronous>, transform_indices = @transform_4, window_bounds = array<i64: 1, 32>}, {pipeline_mode = #tpu.pipeline_mode<synchronous>, transform_indices = @transform_5, window_bounds = array<i64: 1, 32>}, {pipeline_mode = #tpu.pipeline_mode<synchronous>, transform_indices = @transform_6, window_bounds = array<i64: 384, 32>}, {pipeline_mode = #tpu.pipeline_mode<synchronous>, transform_indices = @transform_7, window_bounds = array<i64: 1, 32>}, {pipeline_mode = #tpu.pipeline_mode<synchronous>, transform_indices = @transform_8, window_bounds = array<i64: 1, 32>}, {pipeline_mode = #tpu.pipeline_mode<synchronous>, transform_indices = @transform_9, window_bounds = array<i64: 1, 32>}, {pipeline_mode = #tpu.pipeline_mode<synchronous>, transform_indices = @transform_10, window_bounds = array<i64: 2, 16, 32>}]} {
    %cst = arith.constant 0.000000e+00 : f32
    %0 = vector.broadcast %cst : f32 to vector<2x18x256xf32>
    %c0 = arith.constant 0 : index
    %c0_0 = arith.constant 0 : index
    %c0_1 = arith.constant 0 : index
    %1 = vector.load %arg12[%c0, %c0_0, %c0_1] : memref<2x18x256xf32, #tpu.memory_space<vmem>>, vector<2x18x256xf32>
    tpu.vector_store %arg12[%c0, %c0_0, %c0_1], %0 {strides = array<i32>} : memref<2x18x256xf32, #tpu.memory_space<vmem>>, vector<2x18x256xf32>,
    %c0_2 = arith.constant 0 : index
    %c0_3 = arith.constant 0 : index
    %c0_4 = arith.constant 0 : index
    %2 = vector.load %arg1[%c0_2, %c0_3, %c0_4] : memref<2x16x2xf32, #tpu.memory_space<vmem>>, vector<2x16x2xf32>
    %c0_5 = arith.constant 0 : index
    %c1 = arith.constant 1 : index
    %c0_6 = arith.constant 0 : index
    %3 = vector.load %arg12[%c0_5, %c1, %c0_6] : memref<2x18x256xf32, #tpu.memory_space<vmem>>, vector<2x16x2xf32>
    tpu.vector_store %arg12[%c0_5, %c1, %c0_6], %2 {strides = array<i32>} : memref<2x18x256xf32, #tpu.memory_space<vmem>>, vector<2x16x2xf32>,
    %c0_7 = arith.constant 0 : index
    %c0_8 = arith.constant 0 : index
    %4 = vector.load %arg2[%c0_7, %c0_8] : memref<2x32xf32, #tpu.memory_space<vmem>>, vector<2x32xf32>
    %5 = vector.shape_cast %4 : vector<2x32xf32> to vector<2x1x32xf32>
    %6 = vector.shape_cast %5 : vector<2x1x32xf32> to vector<2x1x32xf32>
    %7 = vector.broadcast %6 : vector<2x1x32xf32> to vector<2x16x32xf32>
    %c0_9 = arith.constant 0 : index
    %c1_10 = arith.constant 1 : index
    %c128 = arith.constant 128 : index
    %8 = vector.load %arg12[%c0_9, %c1_10, %c128] : memref<2x18x256xf32, #tpu.memory_space<vmem>>, vector<2x16x32xf32>
    tpu.vector_store %arg12[%c0_9, %c1_10, %c128], %7 {strides = array<i32>} : memref<2x18x256xf32, #tpu.memory_space<vmem>>, vector<2x16x32xf32>,
    %c0_11 = arith.constant 0 : index
    %c0_12 = arith.constant 0 : index
    %9 = vector.load %arg3[%c0_11, %c0_12] : memref<768x32xbf16, #tpu.memory_space<vmem>>, vector<768x32xbf16>
    %c0_13 = arith.constant 0 : index
    %c0_14 = arith.constant 0 : index
    %10 = vector.load %arg4[%c0_13, %c0_14] : memref<1x32xf32, #tpu.memory_space<vmem>>, vector<1x32xf32>
    %c0_15 = arith.constant 0 : index
    %c0_16 = arith.constant 0 : index
    %11 = vector.load %arg5[%c0_15, %c0_16] : memref<1x32xf32, #tpu.memory_space<vmem>>, vector<1x32xf32>
    %c0_17 = arith.constant 0 : index
    %c0_18 = arith.constant 0 : index
    %12 = vector.load %arg6[%c0_17, %c0_18] : memref<1x32xf32, #tpu.memory_space<vmem>>, vector<1x32xf32>
    %c0_19 = arith.constant 0 : index
    %c0_20 = arith.constant 0 : index
    %c0_21 = arith.constant 0 : index
    %13 = vector.load %arg12[%c0_19, %c0_20, %c0_21] : memref<2x18x256xf32, #tpu.memory_space<vmem>>, vector<2x16x256xf32>
    %c0_22 = arith.constant 0 : index
    %c1_23 = arith.constant 1 : index
    %c0_24 = arith.constant 0 : index
    %14 = vector.load %arg12[%c0_22, %c1_23, %c0_24] : memref<2x18x256xf32, #tpu.memory_space<vmem>>, vector<2x16x256xf32>
    %c0_25 = arith.constant 0 : index
    %c2 = arith.constant 2 : index
    %c0_26 = arith.constant 0 : index
    %15 = vector.load %arg12[%c0_25, %c2, %c0_26] : memref<2x18x256xf32, #tpu.memory_space<vmem>>, vector<2x16x256xf32>
    %16 = tpu.concatenate %13, %14, %15 in 2 : vector<2x16x256xf32>, vector<2x16x256xf32>, vector<2x16x256xf32> -> vector<2x16x768xf32>
    %17 = vector.shape_cast %16 : vector<2x16x768xf32> to vector<32x768xf32>
    %18 = arith.truncf %17 : vector<32x768xf32> to vector<32x768xbf16>
    %cst_27 = arith.constant dense<0.000000e+00> : vector<32x32xf32>
    %19 = tpu.matmul %18, %9, %cst_27 {dimension_numbers = #tpu.dot_dimension_numbers<[1], [0], [0], [1], [0, 0, 1, 1], [], []>} : vector<32x768xbf16>, vector<768x32xbf16>, vector<32x32xf32> -> vector<32x32xf32>
    %20 = vector.broadcast %10 : vector<1x32xf32> to vector<32x32xf32>
    %21 = arith.addf %19, %20 : vector<32x32xf32>
    %cst_28 = arith.constant dense<0.000000e+00> : vector<32xf32>
    %22 = vector.multi_reduction <add>, %21, %cst_28 [0] : vector<32x32xf32> to vector<32xf32>
    %23 = vector.shape_cast %22 : vector<32xf32> to vector<1x32xf32>
    %cst_29 = arith.constant 3.200000e+01 : f32
    %24 = vector.broadcast %cst_29 : f32 to vector<1x32xf32>
    %25 = arith.divf %23, %24 : vector<1x32xf32>
    %26 = vector.broadcast %25 : vector<1x32xf32> to vector<32x32xf32>
    %27 = arith.subf %21, %26 : vector<32x32xf32>
    %28 = arith.mulf %27, %27 : vector<32x32xf32>
    %cst_30 = arith.constant dense<0.000000e+00> : vector<32xf32>
    %29 = vector.multi_reduction <add>, %28, %cst_30 [0] : vector<32x32xf32> to vector<32xf32>
    %30 = vector.shape_cast %29 : vector<32xf32> to vector<1x32xf32>
    %cst_31 = arith.constant 3.200000e+01 : f32
    %31 = vector.broadcast %cst_31 : f32 to vector<1x32xf32>
    %32 = arith.divf %30, %31 : vector<1x32xf32>
    %33 = vector.broadcast %25 : vector<1x32xf32> to vector<32x32xf32>
    %34 = arith.subf %21, %33 : vector<32x32xf32>
    %cst_32 = arith.constant 9.99999974E-6 : f32
    %35 = vector.broadcast %cst_32 : f32 to vector<1x32xf32>
    %36 = arith.addf %32, %35 : vector<1x32xf32>
    %37 = math.rsqrt %36 : vector<1x32xf32>
    %38 = vector.broadcast %37 : vector<1x32xf32> to vector<32x32xf32>
    %39 = arith.mulf %34, %38 : vector<32x32xf32>
    %40 = vector.broadcast %11 : vector<1x32xf32> to vector<32x32xf32>
    %41 = arith.mulf %39, %40 : vector<32x32xf32>
    %42 = vector.broadcast %12 : vector<1x32xf32> to vector<32x32xf32>
    %43 = arith.addf %41, %42 : vector<32x32xf32>
    %cst_33 = arith.constant 0.000000e+00 : f32
    %44 = vector.broadcast %cst_33 : f32 to vector<32x32xf32>
    %45 = arith.maximumf %43, %44 : vector<32x32xf32>
    %c0_34 = arith.constant 0 : index
    %c0_35 = arith.constant 0 : index
    %46 = vector.load %arg7[%c0_34, %c0_35] : memref<384x32xbf16, #tpu.memory_space<vmem>>, vector<384x32xbf16>
    %c0_36 = arith.constant 0 : index
    %c0_37 = arith.constant 0 : index
    %47 = vector.load %arg8[%c0_36, %c0_37] : memref<1x32xf32, #tpu.memory_space<vmem>>, vector<1x32xf32>
    %c0_38 = arith.constant 0 : index
    %c0_39 = arith.constant 0 : index
    %48 = vector.load %arg9[%c0_38, %c0_39] : memref<1x32xf32, #tpu.memory_space<vmem>>, vector<1x32xf32>
    %c0_40 = arith.constant 0 : index
    %c0_41 = arith.constant 0 : index
    %49 = vector.load %arg10[%c0_40, %c0_41] : memref<1x32xf32, #tpu.memory_space<vmem>>, vector<1x32xf32>
    %cst_42 = arith.constant 0.000000e+00 : f32
    %50 = vector.broadcast %cst_42 : f32 to vector<2x18x128xf32>
    %c0_43 = arith.constant 0 : index
    %c0_44 = arith.constant 0 : index
    %c0_45 = arith.constant 0 : index
    %51 = vector.load %arg13[%c0_43, %c0_44, %c0_45] : memref<2x18x128xf32, #tpu.memory_space<vmem>>, vector<2x18x128xf32>
    tpu.vector_store %arg13[%c0_43, %c0_44, %c0_45], %50 {strides = array<i32>} : memref<2x18x128xf32, #tpu.memory_space<vmem>>, vector<2x18x128xf32>,
    %52 = vector.shape_cast %45 : vector<32x32xf32> to vector<2x16x32xf32>
    %c0_46 = arith.constant 0 : index
    %c1_47 = arith.constant 1 : index
    %c0_48 = arith.constant 0 : index
    %53 = vector.load %arg13[%c0_46, %c1_47, %c0_48] : memref<2x18x128xf32, #tpu.memory_space<vmem>>, vector<2x16x32xf32>
    tpu.vector_store %arg13[%c0_46, %c1_47, %c0_48], %52 {strides = array<i32>} : memref<2x18x128xf32, #tpu.memory_space<vmem>>, vector<2x16x32xf32>,
    %c0_49 = arith.constant 0 : index
    %c0_50 = arith.constant 0 : index
    %c0_51 = arith.constant 0 : index
    %54 = vector.load %arg13[%c0_49, %c0_50, %c0_51] : memref<2x18x128xf32, #tpu.memory_space<vmem>>, vector<2x16x128xf32>
    %c0_52 = arith.constant 0 : index
    %c1_53 = arith.constant 1 : index
    %c0_54 = arith.constant 0 : index
    %55 = vector.load %arg13[%c0_52, %c1_53, %c0_54] : memref<2x18x128xf32, #tpu.memory_space<vmem>>, vector<2x16x128xf32>
    %c0_55 = arith.constant 0 : index
    %c2_56 = arith.constant 2 : index
    %c0_57 = arith.constant 0 : index
    %56 = vector.load %arg13[%c0_55, %c2_56, %c0_57] : memref<2x18x128xf32, #tpu.memory_space<vmem>>, vector<2x16x128xf32>
    %57 = tpu.concatenate %54, %55, %56 in 2 : vector<2x16x128xf32>, vector<2x16x128xf32>, vector<2x16x128xf32> -> vector<2x16x384xf32>
    %58 = vector.shape_cast %57 : vector<2x16x384xf32> to vector<32x384xf32>
    %59 = arith.truncf %58 : vector<32x384xf32> to vector<32x384xbf16>
    %cst_58 = arith.constant dense<0.000000e+00> : vector<32x32xf32>
    %60 = tpu.matmul %59, %46, %cst_58 {dimension_numbers = #tpu.dot_dimension_numbers<[1], [0], [0], [1], [0, 0, 1, 1], [], []>} : vector<32x384xbf16>, vector<384x32xbf16>, vector<32x32xf32> -> vector<32x32xf32>
    %61 = vector.broadcast %47 : vector<1x32xf32> to vector<32x32xf32>
    %62 = arith.addf %60, %61 : vector<32x32xf32>
    %cst_59 = arith.constant dense<0.000000e+00> : vector<32xf32>
    %63 = vector.multi_reduction <add>, %62, %cst_59 [0] : vector<32x32xf32> to vector<32xf32>
    %64 = vector.shape_cast %63 : vector<32xf32> to vector<1x32xf32>
    %cst_60 = arith.constant 3.200000e+01 : f32
    %65 = vector.broadcast %cst_60 : f32 to vector<1x32xf32>
    %66 = arith.divf %64, %65 : vector<1x32xf32>
    %67 = vector.broadcast %66 : vector<1x32xf32> to vector<32x32xf32>
    %68 = arith.subf %62, %67 : vector<32x32xf32>
    %69 = arith.mulf %68, %68 : vector<32x32xf32>
    %cst_61 = arith.constant dense<0.000000e+00> : vector<32xf32>
    %70 = vector.multi_reduction <add>, %69, %cst_61 [0] : vector<32x32xf32> to vector<32xf32>
    %71 = vector.shape_cast %70 : vector<32xf32> to vector<1x32xf32>
    %cst_62 = arith.constant 3.200000e+01 : f32
    %72 = vector.broadcast %cst_62 : f32 to vector<1x32xf32>
    %73 = arith.divf %71, %72 : vector<1x32xf32>
    %74 = vector.broadcast %66 : vector<1x32xf32> to vector<32x32xf32>
    %75 = arith.subf %62, %74 : vector<32x32xf32>
    %cst_63 = arith.constant 9.99999974E-6 : f32
    %76 = vector.broadcast %cst_63 : f32 to vector<1x32xf32>
    %77 = arith.addf %73, %76 : vector<1x32xf32>
    %78 = math.rsqrt %77 : vector<1x32xf32>
    %79 = vector.broadcast %78 : vector<1x32xf32> to vector<32x32xf32>
    %80 = arith.mulf %75, %79 : vector<32x32xf32>
    %81 = vector.broadcast %48 : vector<1x32xf32> to vector<32x32xf32>
    %82 = arith.mulf %80, %81 : vector<32x32xf32>
    %83 = vector.broadcast %49 : vector<1x32xf32> to vector<32x32xf32>
    %84 = arith.addf %82, %83 : vector<32x32xf32>
    %cst_64 = arith.constant 0.000000e+00 : f32
    %85 = vector.broadcast %cst_64 : f32 to vector<32x32xf32>
    %86 = arith.maximumf %84, %85 : vector<32x32xf32>
    %87 = vector.shape_cast %86 : vector<32x32xf32> to vector<2x16x32xf32>
    %c0_65 = arith.constant 0 : index
    %c0_66 = arith.constant 0 : index
    %c0_67 = arith.constant 0 : index
    %88 = vector.load %arg11[%c0_65, %c0_66, %c0_67] : memref<2x16x32xf32, #tpu.memory_space<vmem>>, vector<2x16x32xf32>
    tpu.vector_store %arg11[%c0_65, %c0_66, %c0_67], %87 {strides = array<i32>} : memref<2x16x32xf32, #tpu.memory_space<vmem>>, vector<2x16x32xf32>,
    return
  }
  func.func @transform_0(%arg0: i32) -> (i32, i32, i32) {
    %c0_i32 = arith.constant 0 : i32
    %c0_i32_0 = arith.constant 0 : i32
    %c0_i32_1 = arith.constant 0 : i32
    %c0_i32_2 = arith.constant 0 : i32
    return %c0_i32, %c0_i32_0, %c0_i32_1 : i32, i32, i32
  }
  func.func @transform_1(%arg0: i32) -> (i32, i32) {
    %c0_i32 = arith.constant 0 : i32
    %c0_i32_0 = arith.constant 0 : i32
    %c0_i32_1 = arith.constant 0 : i32
    return %c0_i32, %c0_i32_0 : i32, i32
  }
  func.func @transform_2(%arg0: i32) -> (i32, i32) {
    %c0_i32 = arith.constant 0 : i32
    %c0_i32_0 = arith.constant 0 : i32
    %c0_i32_1 = arith.constant 0 : i32
    return %c0_i32, %c0_i32_0 : i32, i32
  }
  func.func @transform_3(%arg0: i32) -> (i32, i32) {
    %c0_i32 = arith.constant 0 : i32
    %c0_i32_0 = arith.constant 0 : i32
    %c0_i32_1 = arith.constant 0 : i32
    return %c0_i32, %c0_i32_0 : i32, i32
  }
  func.func @transform_4(%arg0: i32) -> (i32, i32) {
    %c0_i32 = arith.constant 0 : i32
    %c0_i32_0 = arith.constant 0 : i32
    %c0_i32_1 = arith.constant 0 : i32
    return %c0_i32, %c0_i32_0 : i32, i32
  }
  func.func @transform_5(%arg0: i32) -> (i32, i32) {
    %c0_i32 = arith.constant 0 : i32
    %c0_i32_0 = arith.constant 0 : i32
    %c0_i32_1 = arith.constant 0 : i32
    return %c0_i32, %c0_i32_0 : i32, i32
  }
  func.func @transform_6(%arg0: i32) -> (i32, i32) {
    %c0_i32 = arith.constant 0 : i32
    %c0_i32_0 = arith.constant 0 : i32
    %c0_i32_1 = arith.constant 0 : i32
    return %c0_i32, %c0_i32_0 : i32, i32
  }
  func.func @transform_7(%arg0: i32) -> (i32, i32) {
    %c0_i32 = arith.constant 0 : i32
    %c0_i32_0 = arith.constant 0 : i32
    %c0_i32_1 = arith.constant 0 : i32
    return %c0_i32, %c0_i32_0 : i32, i32
  }
  func.func @transform_8(%arg0: i32) -> (i32, i32) {
    %c0_i32 = arith.constant 0 : i32
    %c0_i32_0 = arith.constant 0 : i32
    %c0_i32_1 = arith.constant 0 : i32
    return %c0_i32, %c0_i32_0 : i32, i32
  }
  func.func @transform_9(%arg0: i32) -> (i32, i32) {
    %c0_i32 = arith.constant 0 : i32
    %c0_i32_0 = arith.constant 0 : i32
    %c0_i32_1 = arith.constant 0 : i32
    return %c0_i32, %c0_i32_0 : i32, i32
  }
  func.func @transform_10(%arg0: i32) -> (i32, i32, i32) {
    %c0_i32 = arith.constant 0 : i32
    %c0_i32_0 = arith.constant 0 : i32
    %c0_i32_1 = arith.constant 0 : i32
    %c0_i32_2 = arith.constant 0 : i32
    return %c0_i32, %c0_i32_0, %c0_i32_1 : i32, i32, i32
  }
}

module attributes {stable_mosaic.version = 11 : i64} {
  func.func @kernel(%arg0: i32, %arg1: memref<2x4x128xf32, #tpu.memory_space<vmem>>, %arg2: memref<384x256xbf16, #tpu.memory_space<vmem>>, %arg3: memref<1x256xf32, #tpu.memory_space<vmem>>, %arg4: memref<1x256xf32, #tpu.memory_space<vmem>>, %arg5: memref<1x256xf32, #tpu.memory_space<vmem>>, %arg6: memref<768x256xbf16, #tpu.memory_space<vmem>>, %arg7: memref<1x256xf32, #tpu.memory_space<vmem>>, %arg8: memref<1x256xf32, #tpu.memory_space<vmem>>, %arg9: memref<1x256xf32, #tpu.memory_space<vmem>>, %arg10: memref<2x2x256xf32, #tpu.memory_space<vmem>>, %arg11: memref<2x4x128xf32, #tpu.memory_space<vmem>>, %arg12: memref<2x4x256xf32, #tpu.memory_space<vmem>>) attributes {dimension_semantics = [#tpu.dimension_semantics<arbitrary>], iteration_bounds = array<i64: 1>, scalar_prefetch = 0 : i64, scratch_operands = 2 : i64, tpu.core_type = #tpu.core_type<tc>, window_params = [{pipeline_mode = #tpu.pipeline_mode<synchronous>, transform_indices = @transform_0, window_bounds = array<i64: 2, 4, 128>}, {pipeline_mode = #tpu.pipeline_mode<synchronous>, transform_indices = @transform_1, window_bounds = array<i64: 384, 256>}, {pipeline_mode = #tpu.pipeline_mode<synchronous>, transform_indices = @transform_2, window_bounds = array<i64: 1, 256>}, {pipeline_mode = #tpu.pipeline_mode<synchronous>, transform_indices = @transform_3, window_bounds = array<i64: 1, 256>}, {pipeline_mode = #tpu.pipeline_mode<synchronous>, transform_indices = @transform_4, window_bounds = array<i64: 1, 256>}, {pipeline_mode = #tpu.pipeline_mode<synchronous>, transform_indices = @transform_5, window_bounds = array<i64: 768, 256>}, {pipeline_mode = #tpu.pipeline_mode<synchronous>, transform_indices = @transform_6, window_bounds = array<i64: 1, 256>}, {pipeline_mode = #tpu.pipeline_mode<synchronous>, transform_indices = @transform_7, window_bounds = array<i64: 1, 256>}, {pipeline_mode = #tpu.pipeline_mode<synchronous>, transform_indices = @transform_8, window_bounds = array<i64: 1, 256>}, {pipeline_mode = #tpu.pipeline_mode<synchronous>, transform_indices = @transform_9, window_bounds = array<i64: 2, 2, 256>}]} {
    %cst = arith.constant 0.000000e+00 : f32
    %0 = vector.broadcast %cst : f32 to vector<2x4x128xf32>
    %c0 = arith.constant 0 : index
    %c0_0 = arith.constant 0 : index
    %c0_1 = arith.constant 0 : index
    %1 = vector.load %arg11[%c0, %c0_0, %c0_1] : memref<2x4x128xf32, #tpu.memory_space<vmem>>, vector<2x4x128xf32>
    tpu.vector_store %arg11[%c0, %c0_0, %c0_1], %0 {strides = array<i32>} : memref<2x4x128xf32, #tpu.memory_space<vmem>>, vector<2x4x128xf32>,
    %c0_2 = arith.constant 0 : index
    %c0_3 = arith.constant 0 : index
    %c0_4 = arith.constant 0 : index
    %2 = tpu.strided_load %arg1[%c0_2, %c0_3, %c0_4] {strides = array<i32: 1, 2, 1>} : memref<2x4x128xf32, #tpu.memory_space<vmem>>, vector<2x2x128xf32>
    %c0_5 = arith.constant 0 : index
    %c1 = arith.constant 1 : index
    %c0_6 = arith.constant 0 : index
    %3 = tpu.strided_load %arg1[%c0_5, %c1, %c0_6] {strides = array<i32: 1, 2, 1>} : memref<2x4x128xf32, #tpu.memory_space<vmem>>, vector<2x2x128xf32>
    %4 = arith.maximumf %2, %3 : vector<2x2x128xf32>
    %c0_7 = arith.constant 0 : index
    %c1_8 = arith.constant 1 : index
    %c0_9 = arith.constant 0 : index
    %5 = vector.load %arg11[%c0_7, %c1_8, %c0_9] : memref<2x4x128xf32, #tpu.memory_space<vmem>>, vector<2x2x128xf32>
    tpu.vector_store %arg11[%c0_7, %c1_8, %c0_9], %4 {strides = array<i32>} : memref<2x4x128xf32, #tpu.memory_space<vmem>>, vector<2x2x128xf32>,
    %c0_10 = arith.constant 0 : index
    %c0_11 = arith.constant 0 : index
    %6 = vector.load %arg2[%c0_10, %c0_11] : memref<384x256xbf16, #tpu.memory_space<vmem>>, vector<384x256xbf16>
    %c0_12 = arith.constant 0 : index
    %c0_13 = arith.constant 0 : index
    %7 = vector.load %arg3[%c0_12, %c0_13] : memref<1x256xf32, #tpu.memory_space<vmem>>, vector<1x256xf32>
    %c0_14 = arith.constant 0 : index
    %c0_15 = arith.constant 0 : index
    %8 = vector.load %arg4[%c0_14, %c0_15] : memref<1x256xf32, #tpu.memory_space<vmem>>, vector<1x256xf32>
    %c0_16 = arith.constant 0 : index
    %c0_17 = arith.constant 0 : index
    %9 = vector.load %arg5[%c0_16, %c0_17] : memref<1x256xf32, #tpu.memory_space<vmem>>, vector<1x256xf32>
    %c0_18 = arith.constant 0 : index
    %c0_19 = arith.constant 0 : index
    %c0_20 = arith.constant 0 : index
    %10 = vector.load %arg11[%c0_18, %c0_19, %c0_20] : memref<2x4x128xf32, #tpu.memory_space<vmem>>, vector<2x2x128xf32>
    %c0_21 = arith.constant 0 : index
    %c1_22 = arith.constant 1 : index
    %c0_23 = arith.constant 0 : index
    %11 = vector.load %arg11[%c0_21, %c1_22, %c0_23] : memref<2x4x128xf32, #tpu.memory_space<vmem>>, vector<2x2x128xf32>
    %c0_24 = arith.constant 0 : index
    %c2 = arith.constant 2 : index
    %c0_25 = arith.constant 0 : index
    %12 = vector.load %arg11[%c0_24, %c2, %c0_25] : memref<2x4x128xf32, #tpu.memory_space<vmem>>, vector<2x2x128xf32>
    %13 = tpu.concatenate %10, %11, %12 in 2 : vector<2x2x128xf32>, vector<2x2x128xf32>, vector<2x2x128xf32> -> vector<2x2x384xf32>
    %14 = vector.shape_cast %13 : vector<2x2x384xf32> to vector<4x384xf32>
    %15 = arith.truncf %14 : vector<4x384xf32> to vector<4x384xbf16>
    %cst_26 = arith.constant dense<0.000000e+00> : vector<4x256xf32>
    %16 = tpu.matmul %15, %6, %cst_26 {dimension_numbers = #tpu.dot_dimension_numbers<[1], [0], [0], [1], [0, 0, 1, 1], [], []>} : vector<4x384xbf16>, vector<384x256xbf16>, vector<4x256xf32> -> vector<4x256xf32>
    %17 = vector.broadcast %7 : vector<1x256xf32> to vector<4x256xf32>
    %18 = arith.addf %16, %17 : vector<4x256xf32>
    %cst_27 = arith.constant dense<0.000000e+00> : vector<256xf32>
    %19 = vector.multi_reduction <add>, %18, %cst_27 [0] : vector<4x256xf32> to vector<256xf32>
    %20 = vector.shape_cast %19 : vector<256xf32> to vector<1x256xf32>
    %cst_28 = arith.constant 4.000000e+00 : f32
    %21 = vector.broadcast %cst_28 : f32 to vector<1x256xf32>
    %22 = arith.divf %20, %21 : vector<1x256xf32>
    %23 = vector.broadcast %22 : vector<1x256xf32> to vector<4x256xf32>
    %24 = arith.subf %18, %23 : vector<4x256xf32>
    %25 = arith.mulf %24, %24 : vector<4x256xf32>
    %cst_29 = arith.constant dense<0.000000e+00> : vector<256xf32>
    %26 = vector.multi_reduction <add>, %25, %cst_29 [0] : vector<4x256xf32> to vector<256xf32>
    %27 = vector.shape_cast %26 : vector<256xf32> to vector<1x256xf32>
    %cst_30 = arith.constant 4.000000e+00 : f32
    %28 = vector.broadcast %cst_30 : f32 to vector<1x256xf32>
    %29 = arith.divf %27, %28 : vector<1x256xf32>
    %30 = vector.broadcast %22 : vector<1x256xf32> to vector<4x256xf32>
    %31 = arith.subf %18, %30 : vector<4x256xf32>
    %cst_31 = arith.constant 9.99999974E-6 : f32
    %32 = vector.broadcast %cst_31 : f32 to vector<1x256xf32>
    %33 = arith.addf %29, %32 : vector<1x256xf32>
    %34 = math.rsqrt %33 : vector<1x256xf32>
    %35 = vector.broadcast %34 : vector<1x256xf32> to vector<4x256xf32>
    %36 = arith.mulf %31, %35 : vector<4x256xf32>
    %37 = vector.broadcast %8 : vector<1x256xf32> to vector<4x256xf32>
    %38 = arith.mulf %36, %37 : vector<4x256xf32>
    %39 = vector.broadcast %9 : vector<1x256xf32> to vector<4x256xf32>
    %40 = arith.addf %38, %39 : vector<4x256xf32>
    %cst_32 = arith.constant 0.000000e+00 : f32
    %41 = vector.broadcast %cst_32 : f32 to vector<4x256xf32>
    %42 = arith.maximumf %40, %41 : vector<4x256xf32>
    %c0_33 = arith.constant 0 : index
    %c0_34 = arith.constant 0 : index
    %43 = vector.load %arg6[%c0_33, %c0_34] : memref<768x256xbf16, #tpu.memory_space<vmem>>, vector<768x256xbf16>
    %c0_35 = arith.constant 0 : index
    %c0_36 = arith.constant 0 : index
    %44 = vector.load %arg7[%c0_35, %c0_36] : memref<1x256xf32, #tpu.memory_space<vmem>>, vector<1x256xf32>
    %c0_37 = arith.constant 0 : index
    %c0_38 = arith.constant 0 : index
    %45 = vector.load %arg8[%c0_37, %c0_38] : memref<1x256xf32, #tpu.memory_space<vmem>>, vector<1x256xf32>
    %c0_39 = arith.constant 0 : index
    %c0_40 = arith.constant 0 : index
    %46 = vector.load %arg9[%c0_39, %c0_40] : memref<1x256xf32, #tpu.memory_space<vmem>>, vector<1x256xf32>
    %cst_41 = arith.constant 0.000000e+00 : f32
    %47 = vector.broadcast %cst_41 : f32 to vector<2x4x256xf32>
    %c0_42 = arith.constant 0 : index
    %c0_43 = arith.constant 0 : index
    %c0_44 = arith.constant 0 : index
    %48 = vector.load %arg12[%c0_42, %c0_43, %c0_44] : memref<2x4x256xf32, #tpu.memory_space<vmem>>, vector<2x4x256xf32>
    tpu.vector_store %arg12[%c0_42, %c0_43, %c0_44], %47 {strides = array<i32>} : memref<2x4x256xf32, #tpu.memory_space<vmem>>, vector<2x4x256xf32>,
    %49 = vector.shape_cast %42 : vector<4x256xf32> to vector<2x2x256xf32>
    %c0_45 = arith.constant 0 : index
    %c1_46 = arith.constant 1 : index
    %c0_47 = arith.constant 0 : index
    %50 = vector.load %arg12[%c0_45, %c1_46, %c0_47] : memref<2x4x256xf32, #tpu.memory_space<vmem>>, vector<2x2x256xf32>
    tpu.vector_store %arg12[%c0_45, %c1_46, %c0_47], %49 {strides = array<i32>} : memref<2x4x256xf32, #tpu.memory_space<vmem>>, vector<2x2x256xf32>,
    %c0_48 = arith.constant 0 : index
    %c0_49 = arith.constant 0 : index
    %c0_50 = arith.constant 0 : index
    %51 = vector.load %arg12[%c0_48, %c0_49, %c0_50] : memref<2x4x256xf32, #tpu.memory_space<vmem>>, vector<2x2x256xf32>
    %c0_51 = arith.constant 0 : index
    %c1_52 = arith.constant 1 : index
    %c0_53 = arith.constant 0 : index
    %52 = vector.load %arg12[%c0_51, %c1_52, %c0_53] : memref<2x4x256xf32, #tpu.memory_space<vmem>>, vector<2x2x256xf32>
    %c0_54 = arith.constant 0 : index
    %c2_55 = arith.constant 2 : index
    %c0_56 = arith.constant 0 : index
    %53 = vector.load %arg12[%c0_54, %c2_55, %c0_56] : memref<2x4x256xf32, #tpu.memory_space<vmem>>, vector<2x2x256xf32>
    %54 = tpu.concatenate %51, %52, %53 in 2 : vector<2x2x256xf32>, vector<2x2x256xf32>, vector<2x2x256xf32> -> vector<2x2x768xf32>
    %55 = vector.shape_cast %54 : vector<2x2x768xf32> to vector<4x768xf32>
    %56 = arith.truncf %55 : vector<4x768xf32> to vector<4x768xbf16>
    %cst_57 = arith.constant dense<0.000000e+00> : vector<4x256xf32>
    %57 = tpu.matmul %56, %43, %cst_57 {dimension_numbers = #tpu.dot_dimension_numbers<[1], [0], [0], [1], [0, 0, 1, 1], [], []>} : vector<4x768xbf16>, vector<768x256xbf16>, vector<4x256xf32> -> vector<4x256xf32>
    %58 = vector.broadcast %44 : vector<1x256xf32> to vector<4x256xf32>
    %59 = arith.addf %57, %58 : vector<4x256xf32>
    %cst_58 = arith.constant dense<0.000000e+00> : vector<256xf32>
    %60 = vector.multi_reduction <add>, %59, %cst_58 [0] : vector<4x256xf32> to vector<256xf32>
    %61 = vector.shape_cast %60 : vector<256xf32> to vector<1x256xf32>
    %cst_59 = arith.constant 4.000000e+00 : f32
    %62 = vector.broadcast %cst_59 : f32 to vector<1x256xf32>
    %63 = arith.divf %61, %62 : vector<1x256xf32>
    %64 = vector.broadcast %63 : vector<1x256xf32> to vector<4x256xf32>
    %65 = arith.subf %59, %64 : vector<4x256xf32>
    %66 = arith.mulf %65, %65 : vector<4x256xf32>
    %cst_60 = arith.constant dense<0.000000e+00> : vector<256xf32>
    %67 = vector.multi_reduction <add>, %66, %cst_60 [0] : vector<4x256xf32> to vector<256xf32>
    %68 = vector.shape_cast %67 : vector<256xf32> to vector<1x256xf32>
    %cst_61 = arith.constant 4.000000e+00 : f32
    %69 = vector.broadcast %cst_61 : f32 to vector<1x256xf32>
    %70 = arith.divf %68, %69 : vector<1x256xf32>
    %71 = vector.broadcast %63 : vector<1x256xf32> to vector<4x256xf32>
    %72 = arith.subf %59, %71 : vector<4x256xf32>
    %cst_62 = arith.constant 9.99999974E-6 : f32
    %73 = vector.broadcast %cst_62 : f32 to vector<1x256xf32>
    %74 = arith.addf %70, %73 : vector<1x256xf32>
    %75 = math.rsqrt %74 : vector<1x256xf32>
    %76 = vector.broadcast %75 : vector<1x256xf32> to vector<4x256xf32>
    %77 = arith.mulf %72, %76 : vector<4x256xf32>
    %78 = vector.broadcast %45 : vector<1x256xf32> to vector<4x256xf32>
    %79 = arith.mulf %77, %78 : vector<4x256xf32>
    %80 = vector.broadcast %46 : vector<1x256xf32> to vector<4x256xf32>
    %81 = arith.addf %79, %80 : vector<4x256xf32>
    %cst_63 = arith.constant 0.000000e+00 : f32
    %82 = vector.broadcast %cst_63 : f32 to vector<4x256xf32>
    %83 = arith.maximumf %81, %82 : vector<4x256xf32>
    %84 = vector.shape_cast %83 : vector<4x256xf32> to vector<2x2x256xf32>
    %c0_64 = arith.constant 0 : index
    %c0_65 = arith.constant 0 : index
    %c0_66 = arith.constant 0 : index
    %85 = vector.load %arg10[%c0_64, %c0_65, %c0_66] : memref<2x2x256xf32, #tpu.memory_space<vmem>>, vector<2x2x256xf32>
    tpu.vector_store %arg10[%c0_64, %c0_65, %c0_66], %84 {strides = array<i32>} : memref<2x2x256xf32, #tpu.memory_space<vmem>>, vector<2x2x256xf32>,
    return
  }
  func.func @transform_0(%arg0: i32) -> (i32, i32, i32) {
    %c0_i32 = arith.constant 0 : i32
    %c0_i32_0 = arith.constant 0 : i32
    %c0_i32_1 = arith.constant 0 : i32
    %c0_i32_2 = arith.constant 0 : i32
    return %c0_i32, %c0_i32_0, %c0_i32_1 : i32, i32, i32
  }
  func.func @transform_1(%arg0: i32) -> (i32, i32) {
    %c0_i32 = arith.constant 0 : i32
    %c0_i32_0 = arith.constant 0 : i32
    %c0_i32_1 = arith.constant 0 : i32
    return %c0_i32, %c0_i32_0 : i32, i32
  }
  func.func @transform_2(%arg0: i32) -> (i32, i32) {
    %c0_i32 = arith.constant 0 : i32
    %c0_i32_0 = arith.constant 0 : i32
    %c0_i32_1 = arith.constant 0 : i32
    return %c0_i32, %c0_i32_0 : i32, i32
  }
  func.func @transform_3(%arg0: i32) -> (i32, i32) {
    %c0_i32 = arith.constant 0 : i32
    %c0_i32_0 = arith.constant 0 : i32
    %c0_i32_1 = arith.constant 0 : i32
    return %c0_i32, %c0_i32_0 : i32, i32
  }
  func.func @transform_4(%arg0: i32) -> (i32, i32) {
    %c0_i32 = arith.constant 0 : i32
    %c0_i32_0 = arith.constant 0 : i32
    %c0_i32_1 = arith.constant 0 : i32
    return %c0_i32, %c0_i32_0 : i32, i32
  }
  func.func @transform_5(%arg0: i32) -> (i32, i32) {
    %c0_i32 = arith.constant 0 : i32
    %c0_i32_0 = arith.constant 0 : i32
    %c0_i32_1 = arith.constant 0 : i32
    return %c0_i32, %c0_i32_0 : i32, i32
  }
  func.func @transform_6(%arg0: i32) -> (i32, i32) {
    %c0_i32 = arith.constant 0 : i32
    %c0_i32_0 = arith.constant 0 : i32
    %c0_i32_1 = arith.constant 0 : i32
    return %c0_i32, %c0_i32_0 : i32, i32
  }
  func.func @transform_7(%arg0: i32) -> (i32, i32) {
    %c0_i32 = arith.constant 0 : i32
    %c0_i32_0 = arith.constant 0 : i32
    %c0_i32_1 = arith.constant 0 : i32
    return %c0_i32, %c0_i32_0 : i32, i32
  }
  func.func @transform_8(%arg0: i32) -> (i32, i32) {
    %c0_i32 = arith.constant 0 : i32
    %c0_i32_0 = arith.constant 0 : i32
    %c0_i32_1 = arith.constant 0 : i32
    return %c0_i32, %c0_i32_0 : i32, i32
  }
  func.func @transform_9(%arg0: i32) -> (i32, i32, i32) {
    %c0_i32 = arith.constant 0 : i32
    %c0_i32_0 = arith.constant 0 : i32
    %c0_i32_1 = arith.constant 0 : i32
    %c0_i32_2 = arith.constant 0 : i32
    return %c0_i32, %c0_i32_0, %c0_i32_1 : i32, i32, i32
  }
}

module attributes {stable_mosaic.version = 11 : i64} {
  func.func @kernel(%arg0: i32, %arg1: memref<2x8x64xf32, #tpu.memory_space<vmem>>, %arg2: memref<384x128xbf16, #tpu.memory_space<vmem>>, %arg3: memref<1x128xf32, #tpu.memory_space<vmem>>, %arg4: memref<1x128xf32, #tpu.memory_space<vmem>>, %arg5: memref<1x128xf32, #tpu.memory_space<vmem>>, %arg6: memref<384x128xbf16, #tpu.memory_space<vmem>>, %arg7: memref<1x128xf32, #tpu.memory_space<vmem>>, %arg8: memref<1x128xf32, #tpu.memory_space<vmem>>, %arg9: memref<1x128xf32, #tpu.memory_space<vmem>>, %arg10: memref<2x4x128xf32, #tpu.memory_space<vmem>>, %arg11: memref<2x6x128xf32, #tpu.memory_space<vmem>>, %arg12: memref<2x6x128xf32, #tpu.memory_space<vmem>>) attributes {dimension_semantics = [#tpu.dimension_semantics<arbitrary>], iteration_bounds = array<i64: 1>, scalar_prefetch = 0 : i64, scratch_operands = 2 : i64, tpu.core_type = #tpu.core_type<tc>, window_params = [{pipeline_mode = #tpu.pipeline_mode<synchronous>, transform_indices = @transform_0, window_bounds = array<i64: 2, 8, 64>}, {pipeline_mode = #tpu.pipeline_mode<synchronous>, transform_indices = @transform_1, window_bounds = array<i64: 384, 128>}, {pipeline_mode = #tpu.pipeline_mode<synchronous>, transform_indices = @transform_2, window_bounds = array<i64: 1, 128>}, {pipeline_mode = #tpu.pipeline_mode<synchronous>, transform_indices = @transform_3, window_bounds = array<i64: 1, 128>}, {pipeline_mode = #tpu.pipeline_mode<synchronous>, transform_indices = @transform_4, window_bounds = array<i64: 1, 128>}, {pipeline_mode = #tpu.pipeline_mode<synchronous>, transform_indices = @transform_5, window_bounds = array<i64: 384, 128>}, {pipeline_mode = #tpu.pipeline_mode<synchronous>, transform_indices = @transform_6, window_bounds = array<i64: 1, 128>}, {pipeline_mode = #tpu.pipeline_mode<synchronous>, transform_indices = @transform_7, window_bounds = array<i64: 1, 128>}, {pipeline_mode = #tpu.pipeline_mode<synchronous>, transform_indices = @transform_8, window_bounds = array<i64: 1, 128>}, {pipeline_mode = #tpu.pipeline_mode<synchronous>, transform_indices = @transform_9, window_bounds = array<i64: 2, 4, 128>}]} {
    %cst = arith.constant 0.000000e+00 : f32
    %0 = vector.broadcast %cst : f32 to vector<2x6x128xf32>
    %c0 = arith.constant 0 : index
    %c0_0 = arith.constant 0 : index
    %c0_1 = arith.constant 0 : index
    %1 = vector.load %arg11[%c0, %c0_0, %c0_1] : memref<2x6x128xf32, #tpu.memory_space<vmem>>, vector<2x6x128xf32>
    tpu.vector_store %arg11[%c0, %c0_0, %c0_1], %0 {strides = array<i32>} : memref<2x6x128xf32, #tpu.memory_space<vmem>>, vector<2x6x128xf32>,
    %c0_2 = arith.constant 0 : index
    %c0_3 = arith.constant 0 : index
    %c0_4 = arith.constant 0 : index
    %2 = tpu.strided_load %arg1[%c0_2, %c0_3, %c0_4] {strides = array<i32: 1, 2, 1>} : memref<2x8x64xf32, #tpu.memory_space<vmem>>, vector<2x4x64xf32>
    %c0_5 = arith.constant 0 : index
    %c1 = arith.constant 1 : index
    %c0_6 = arith.constant 0 : index
    %3 = tpu.strided_load %arg1[%c0_5, %c1, %c0_6] {strides = array<i32: 1, 2, 1>} : memref<2x8x64xf32, #tpu.memory_space<vmem>>, vector<2x4x64xf32>
    %4 = arith.maximumf %2, %3 : vector<2x4x64xf32>
    %c0_7 = arith.constant 0 : index
    %c1_8 = arith.constant 1 : index
    %c0_9 = arith.constant 0 : index
    %5 = vector.load %arg11[%c0_7, %c1_8, %c0_9] : memref<2x6x128xf32, #tpu.memory_space<vmem>>, vector<2x4x64xf32>
    tpu.vector_store %arg11[%c0_7, %c1_8, %c0_9], %4 {strides = array<i32>} : memref<2x6x128xf32, #tpu.memory_space<vmem>>, vector<2x4x64xf32>,
    %c0_10 = arith.constant 0 : index
    %c0_11 = arith.constant 0 : index
    %6 = vector.load %arg2[%c0_10, %c0_11] : memref<384x128xbf16, #tpu.memory_space<vmem>>, vector<384x128xbf16>
    %c0_12 = arith.constant 0 : index
    %c0_13 = arith.constant 0 : index
    %7 = vector.load %arg3[%c0_12, %c0_13] : memref<1x128xf32, #tpu.memory_space<vmem>>, vector<1x128xf32>
    %c0_14 = arith.constant 0 : index
    %c0_15 = arith.constant 0 : index
    %8 = vector.load %arg4[%c0_14, %c0_15] : memref<1x128xf32, #tpu.memory_space<vmem>>, vector<1x128xf32>
    %c0_16 = arith.constant 0 : index
    %c0_17 = arith.constant 0 : index
    %9 = vector.load %arg5[%c0_16, %c0_17] : memref<1x128xf32, #tpu.memory_space<vmem>>, vector<1x128xf32>
    %c0_18 = arith.constant 0 : index
    %c0_19 = arith.constant 0 : index
    %c0_20 = arith.constant 0 : index
    %10 = vector.load %arg11[%c0_18, %c0_19, %c0_20] : memref<2x6x128xf32, #tpu.memory_space<vmem>>, vector<2x4x128xf32>
    %c0_21 = arith.constant 0 : index
    %c1_22 = arith.constant 1 : index
    %c0_23 = arith.constant 0 : index
    %11 = vector.load %arg11[%c0_21, %c1_22, %c0_23] : memref<2x6x128xf32, #tpu.memory_space<vmem>>, vector<2x4x128xf32>
    %c0_24 = arith.constant 0 : index
    %c2 = arith.constant 2 : index
    %c0_25 = arith.constant 0 : index
    %12 = vector.load %arg11[%c0_24, %c2, %c0_25] : memref<2x6x128xf32, #tpu.memory_space<vmem>>, vector<2x4x128xf32>
    %13 = tpu.concatenate %10, %11, %12 in 2 : vector<2x4x128xf32>, vector<2x4x128xf32>, vector<2x4x128xf32> -> vector<2x4x384xf32>
    %14 = vector.shape_cast %13 : vector<2x4x384xf32> to vector<8x384xf32>
    %15 = arith.truncf %14 : vector<8x384xf32> to vector<8x384xbf16>
    %cst_26 = arith.constant dense<0.000000e+00> : vector<8x128xf32>
    %16 = tpu.matmul %15, %6, %cst_26 {dimension_numbers = #tpu.dot_dimension_numbers<[1], [0], [0], [1], [0, 0, 1, 1], [], []>} : vector<8x384xbf16>, vector<384x128xbf16>, vector<8x128xf32> -> vector<8x128xf32>
    %17 = vector.broadcast %7 : vector<1x128xf32> to vector<8x128xf32>
    %18 = arith.addf %16, %17 : vector<8x128xf32>
    %cst_27 = arith.constant dense<0.000000e+00> : vector<128xf32>
    %19 = vector.multi_reduction <add>, %18, %cst_27 [0] : vector<8x128xf32> to vector<128xf32>
    %20 = vector.shape_cast %19 : vector<128xf32> to vector<1x128xf32>
    %cst_28 = arith.constant 8.000000e+00 : f32
    %21 = vector.broadcast %cst_28 : f32 to vector<1x128xf32>
    %22 = arith.divf %20, %21 : vector<1x128xf32>
    %23 = vector.broadcast %22 : vector<1x128xf32> to vector<8x128xf32>
    %24 = arith.subf %18, %23 : vector<8x128xf32>
    %25 = arith.mulf %24, %24 : vector<8x128xf32>
    %cst_29 = arith.constant dense<0.000000e+00> : vector<128xf32>
    %26 = vector.multi_reduction <add>, %25, %cst_29 [0] : vector<8x128xf32> to vector<128xf32>
    %27 = vector.shape_cast %26 : vector<128xf32> to vector<1x128xf32>
    %cst_30 = arith.constant 8.000000e+00 : f32
    %28 = vector.broadcast %cst_30 : f32 to vector<1x128xf32>
    %29 = arith.divf %27, %28 : vector<1x128xf32>
    %30 = vector.broadcast %22 : vector<1x128xf32> to vector<8x128xf32>
    %31 = arith.subf %18, %30 : vector<8x128xf32>
    %cst_31 = arith.constant 9.99999974E-6 : f32
    %32 = vector.broadcast %cst_31 : f32 to vector<1x128xf32>
    %33 = arith.addf %29, %32 : vector<1x128xf32>
    %34 = math.rsqrt %33 : vector<1x128xf32>
    %35 = vector.broadcast %34 : vector<1x128xf32> to vector<8x128xf32>
    %36 = arith.mulf %31, %35 : vector<8x128xf32>
    %37 = vector.broadcast %8 : vector<1x128xf32> to vector<8x128xf32>
    %38 = arith.mulf %36, %37 : vector<8x128xf32>
    %39 = vector.broadcast %9 : vector<1x128xf32> to vector<8x128xf32>
    %40 = arith.addf %38, %39 : vector<8x128xf32>
    %cst_32 = arith.constant 0.000000e+00 : f32
    %41 = vector.broadcast %cst_32 : f32 to vector<8x128xf32>
    %42 = arith.maximumf %40, %41 : vector<8x128xf32>
    %c0_33 = arith.constant 0 : index
    %c0_34 = arith.constant 0 : index
    %43 = vector.load %arg6[%c0_33, %c0_34] : memref<384x128xbf16, #tpu.memory_space<vmem>>, vector<384x128xbf16>
    %c0_35 = arith.constant 0 : index
    %c0_36 = arith.constant 0 : index
    %44 = vector.load %arg7[%c0_35, %c0_36] : memref<1x128xf32, #tpu.memory_space<vmem>>, vector<1x128xf32>
    %c0_37 = arith.constant 0 : index
    %c0_38 = arith.constant 0 : index
    %45 = vector.load %arg8[%c0_37, %c0_38] : memref<1x128xf32, #tpu.memory_space<vmem>>, vector<1x128xf32>
    %c0_39 = arith.constant 0 : index
    %c0_40 = arith.constant 0 : index
    %46 = vector.load %arg9[%c0_39, %c0_40] : memref<1x128xf32, #tpu.memory_space<vmem>>, vector<1x128xf32>
    %cst_41 = arith.constant 0.000000e+00 : f32
    %47 = vector.broadcast %cst_41 : f32 to vector<2x6x128xf32>
    %c0_42 = arith.constant 0 : index
    %c0_43 = arith.constant 0 : index
    %c0_44 = arith.constant 0 : index
    %48 = vector.load %arg12[%c0_42, %c0_43, %c0_44] : memref<2x6x128xf32, #tpu.memory_space<vmem>>, vector<2x6x128xf32>
    tpu.vector_store %arg12[%c0_42, %c0_43, %c0_44], %47 {strides = array<i32>} : memref<2x6x128xf32, #tpu.memory_space<vmem>>, vector<2x6x128xf32>,
    %49 = vector.shape_cast %42 : vector<8x128xf32> to vector<2x4x128xf32>
    %c0_45 = arith.constant 0 : index
    %c1_46 = arith.constant 1 : index
    %c0_47 = arith.constant 0 : index
    %50 = vector.load %arg12[%c0_45, %c1_46, %c0_47] : memref<2x6x128xf32, #tpu.memory_space<vmem>>, vector<2x4x128xf32>
    tpu.vector_store %arg12[%c0_45, %c1_46, %c0_47], %49 {strides = array<i32>} : memref<2x6x128xf32, #tpu.memory_space<vmem>>, vector<2x4x128xf32>,
    %c0_48 = arith.constant 0 : index
    %c0_49 = arith.constant 0 : index
    %c0_50 = arith.constant 0 : index
    %51 = vector.load %arg12[%c0_48, %c0_49, %c0_50] : memref<2x6x128xf32, #tpu.memory_space<vmem>>, vector<2x4x128xf32>
    %c0_51 = arith.constant 0 : index
    %c1_52 = arith.constant 1 : index
    %c0_53 = arith.constant 0 : index
    %52 = vector.load %arg12[%c0_51, %c1_52, %c0_53] : memref<2x6x128xf32, #tpu.memory_space<vmem>>, vector<2x4x128xf32>
    %c0_54 = arith.constant 0 : index
    %c2_55 = arith.constant 2 : index
    %c0_56 = arith.constant 0 : index
    %53 = vector.load %arg12[%c0_54, %c2_55, %c0_56] : memref<2x6x128xf32, #tpu.memory_space<vmem>>, vector<2x4x128xf32>
    %54 = tpu.concatenate %51, %52, %53 in 2 : vector<2x4x128xf32>, vector<2x4x128xf32>, vector<2x4x128xf32> -> vector<2x4x384xf32>
    %55 = vector.shape_cast %54 : vector<2x4x384xf32> to vector<8x384xf32>
    %56 = arith.truncf %55 : vector<8x384xf32> to vector<8x384xbf16>
    %cst_57 = arith.constant dense<0.000000e+00> : vector<8x128xf32>
    %57 = tpu.matmul %56, %43, %cst_57 {dimension_numbers = #tpu.dot_dimension_numbers<[1], [0], [0], [1], [0, 0, 1, 1], [], []>} : vector<8x384xbf16>, vector<384x128xbf16>, vector<8x128xf32> -> vector<8x128xf32>
    %58 = vector.broadcast %44 : vector<1x128xf32> to vector<8x128xf32>
    %59 = arith.addf %57, %58 : vector<8x128xf32>
    %cst_58 = arith.constant dense<0.000000e+00> : vector<128xf32>
    %60 = vector.multi_reduction <add>, %59, %cst_58 [0] : vector<8x128xf32> to vector<128xf32>
    %61 = vector.shape_cast %60 : vector<128xf32> to vector<1x128xf32>
    %cst_59 = arith.constant 8.000000e+00 : f32
    %62 = vector.broadcast %cst_59 : f32 to vector<1x128xf32>
    %63 = arith.divf %61, %62 : vector<1x128xf32>
    %64 = vector.broadcast %63 : vector<1x128xf32> to vector<8x128xf32>
    %65 = arith.subf %59, %64 : vector<8x128xf32>
    %66 = arith.mulf %65, %65 : vector<8x128xf32>
    %cst_60 = arith.constant dense<0.000000e+00> : vector<128xf32>
    %67 = vector.multi_reduction <add>, %66, %cst_60 [0] : vector<8x128xf32> to vector<128xf32>
    %68 = vector.shape_cast %67 : vector<128xf32> to vector<1x128xf32>
    %cst_61 = arith.constant 8.000000e+00 : f32
    %69 = vector.broadcast %cst_61 : f32 to vector<1x128xf32>
    %70 = arith.divf %68, %69 : vector<1x128xf32>
    %71 = vector.broadcast %63 : vector<1x128xf32> to vector<8x128xf32>
    %72 = arith.subf %59, %71 : vector<8x128xf32>
    %cst_62 = arith.constant 9.99999974E-6 : f32
    %73 = vector.broadcast %cst_62 : f32 to vector<1x128xf32>
    %74 = arith.addf %70, %73 : vector<1x128xf32>
    %75 = math.rsqrt %74 : vector<1x128xf32>
    %76 = vector.broadcast %75 : vector<1x128xf32> to vector<8x128xf32>
    %77 = arith.mulf %72, %76 : vector<8x128xf32>
    %78 = vector.broadcast %45 : vector<1x128xf32> to vector<8x128xf32>
    %79 = arith.mulf %77, %78 : vector<8x128xf32>
    %80 = vector.broadcast %46 : vector<1x128xf32> to vector<8x128xf32>
    %81 = arith.addf %79, %80 : vector<8x128xf32>
    %cst_63 = arith.constant 0.000000e+00 : f32
    %82 = vector.broadcast %cst_63 : f32 to vector<8x128xf32>
    %83 = arith.maximumf %81, %82 : vector<8x128xf32>
    %84 = vector.shape_cast %83 : vector<8x128xf32> to vector<2x4x128xf32>
    %c0_64 = arith.constant 0 : index
    %c0_65 = arith.constant 0 : index
    %c0_66 = arith.constant 0 : index
    %85 = vector.load %arg10[%c0_64, %c0_65, %c0_66] : memref<2x4x128xf32, #tpu.memory_space<vmem>>, vector<2x4x128xf32>
    tpu.vector_store %arg10[%c0_64, %c0_65, %c0_66], %84 {strides = array<i32>} : memref<2x4x128xf32, #tpu.memory_space<vmem>>, vector<2x4x128xf32>,
    return
  }
  func.func @transform_0(%arg0: i32) -> (i32, i32, i32) {
    %c0_i32 = arith.constant 0 : i32
    %c0_i32_0 = arith.constant 0 : i32
    %c0_i32_1 = arith.constant 0 : i32
    %c0_i32_2 = arith.constant 0 : i32
    return %c0_i32, %c0_i32_0, %c0_i32_1 : i32, i32, i32
  }
  func.func @transform_1(%arg0: i32) -> (i32, i32) {
    %c0_i32 = arith.constant 0 : i32
    %c0_i32_0 = arith.constant 0 : i32
    %c0_i32_1 = arith.constant 0 : i32
    return %c0_i32, %c0_i32_0 : i32, i32
  }
  func.func @transform_2(%arg0: i32) -> (i32, i32) {
    %c0_i32 = arith.constant 0 : i32
    %c0_i32_0 = arith.constant 0 : i32
    %c0_i32_1 = arith.constant 0 : i32
    return %c0_i32, %c0_i32_0 : i32, i32
  }
  func.func @transform_3(%arg0: i32) -> (i32, i32) {
    %c0_i32 = arith.constant 0 : i32
    %c0_i32_0 = arith.constant 0 : i32
    %c0_i32_1 = arith.constant 0 : i32
    return %c0_i32, %c0_i32_0 : i32, i32
  }
  func.func @transform_4(%arg0: i32) -> (i32, i32) {
    %c0_i32 = arith.constant 0 : i32
    %c0_i32_0 = arith.constant 0 : i32
    %c0_i32_1 = arith.constant 0 : i32
    return %c0_i32, %c0_i32_0 : i32, i32
  }
  func.func @transform_5(%arg0: i32) -> (i32, i32) {
    %c0_i32 = arith.constant 0 : i32
    %c0_i32_0 = arith.constant 0 : i32
    %c0_i32_1 = arith.constant 0 : i32
    return %c0_i32, %c0_i32_0 : i32, i32
  }
  func.func @transform_6(%arg0: i32) -> (i32, i32) {
    %c0_i32 = arith.constant 0 : i32
    %c0_i32_0 = arith.constant 0 : i32
    %c0_i32_1 = arith.constant 0 : i32
    return %c0_i32, %c0_i32_0 : i32, i32
  }
  func.func @transform_7(%arg0: i32) -> (i32, i32) {
    %c0_i32 = arith.constant 0 : i32
    %c0_i32_0 = arith.constant 0 : i32
    %c0_i32_1 = arith.constant 0 : i32
    return %c0_i32, %c0_i32_0 : i32, i32
  }
  func.func @transform_8(%arg0: i32) -> (i32, i32) {
    %c0_i32 = arith.constant 0 : i32
    %c0_i32_0 = arith.constant 0 : i32
    %c0_i32_1 = arith.constant 0 : i32
    return %c0_i32, %c0_i32_0 : i32, i32
  }
  func.func @transform_9(%arg0: i32) -> (i32, i32, i32) {
    %c0_i32 = arith.constant 0 : i32
    %c0_i32_0 = arith.constant 0 : i32
    %c0_i32_1 = arith.constant 0 : i32
    %c0_i32_2 = arith.constant 0 : i32
    return %c0_i32, %c0_i32_0, %c0_i32_1 : i32, i32, i32
  }
}

module attributes {stable_mosaic.version = 11 : i64} {
  func.func @kernel(%arg0: i32, %arg1: memref<2x16x32xf32, #tpu.memory_space<vmem>>, %arg2: memref<384x64xbf16, #tpu.memory_space<vmem>>, %arg3: memref<1x64xf32, #tpu.memory_space<vmem>>, %arg4: memref<1x64xf32, #tpu.memory_space<vmem>>, %arg5: memref<1x64xf32, #tpu.memory_space<vmem>>, %arg6: memref<384x64xbf16, #tpu.memory_space<vmem>>, %arg7: memref<1x64xf32, #tpu.memory_space<vmem>>, %arg8: memref<1x64xf32, #tpu.memory_space<vmem>>, %arg9: memref<1x64xf32, #tpu.memory_space<vmem>>, %arg10: memref<2x8x64xf32, #tpu.memory_space<vmem>>, %arg11: memref<2x10x128xf32, #tpu.memory_space<vmem>>, %arg12: memref<2x10x128xf32, #tpu.memory_space<vmem>>) attributes {dimension_semantics = [#tpu.dimension_semantics<arbitrary>], iteration_bounds = array<i64: 1>, scalar_prefetch = 0 : i64, scratch_operands = 2 : i64, tpu.core_type = #tpu.core_type<tc>, window_params = [{pipeline_mode = #tpu.pipeline_mode<synchronous>, transform_indices = @transform_0, window_bounds = array<i64: 2, 16, 32>}, {pipeline_mode = #tpu.pipeline_mode<synchronous>, transform_indices = @transform_1, window_bounds = array<i64: 384, 64>}, {pipeline_mode = #tpu.pipeline_mode<synchronous>, transform_indices = @transform_2, window_bounds = array<i64: 1, 64>}, {pipeline_mode = #tpu.pipeline_mode<synchronous>, transform_indices = @transform_3, window_bounds = array<i64: 1, 64>}, {pipeline_mode = #tpu.pipeline_mode<synchronous>, transform_indices = @transform_4, window_bounds = array<i64: 1, 64>}, {pipeline_mode = #tpu.pipeline_mode<synchronous>, transform_indices = @transform_5, window_bounds = array<i64: 384, 64>}, {pipeline_mode = #tpu.pipeline_mode<synchronous>, transform_indices = @transform_6, window_bounds = array<i64: 1, 64>}, {pipeline_mode = #tpu.pipeline_mode<synchronous>, transform_indices = @transform_7, window_bounds = array<i64: 1, 64>}, {pipeline_mode = #tpu.pipeline_mode<synchronous>, transform_indices = @transform_8, window_bounds = array<i64: 1, 64>}, {pipeline_mode = #tpu.pipeline_mode<synchronous>, transform_indices = @transform_9, window_bounds = array<i64: 2, 8, 64>}]} {
    %cst = arith.constant 0.000000e+00 : f32
    %0 = vector.broadcast %cst : f32 to vector<2x10x128xf32>
    %c0 = arith.constant 0 : index
    %c0_0 = arith.constant 0 : index
    %c0_1 = arith.constant 0 : index
    %1 = vector.load %arg11[%c0, %c0_0, %c0_1] : memref<2x10x128xf32, #tpu.memory_space<vmem>>, vector<2x10x128xf32>
    tpu.vector_store %arg11[%c0, %c0_0, %c0_1], %0 {strides = array<i32>} : memref<2x10x128xf32, #tpu.memory_space<vmem>>, vector<2x10x128xf32>,
    %c0_2 = arith.constant 0 : index
    %c0_3 = arith.constant 0 : index
    %c0_4 = arith.constant 0 : index
    %2 = tpu.strided_load %arg1[%c0_2, %c0_3, %c0_4] {strides = array<i32: 1, 2, 1>} : memref<2x16x32xf32, #tpu.memory_space<vmem>>, vector<2x8x32xf32>
    %c0_5 = arith.constant 0 : index
    %c1 = arith.constant 1 : index
    %c0_6 = arith.constant 0 : index
    %3 = tpu.strided_load %arg1[%c0_5, %c1, %c0_6] {strides = array<i32: 1, 2, 1>} : memref<2x16x32xf32, #tpu.memory_space<vmem>>, vector<2x8x32xf32>
    %4 = arith.maximumf %2, %3 : vector<2x8x32xf32>
    %c0_7 = arith.constant 0 : index
    %c1_8 = arith.constant 1 : index
    %c0_9 = arith.constant 0 : index
    %5 = vector.load %arg11[%c0_7, %c1_8, %c0_9] : memref<2x10x128xf32, #tpu.memory_space<vmem>>, vector<2x8x32xf32>
    tpu.vector_store %arg11[%c0_7, %c1_8, %c0_9], %4 {strides = array<i32>} : memref<2x10x128xf32, #tpu.memory_space<vmem>>, vector<2x8x32xf32>,
    %c0_10 = arith.constant 0 : index
    %c0_11 = arith.constant 0 : index
    %6 = vector.load %arg2[%c0_10, %c0_11] : memref<384x64xbf16, #tpu.memory_space<vmem>>, vector<384x64xbf16>
    %c0_12 = arith.constant 0 : index
    %c0_13 = arith.constant 0 : index
    %7 = vector.load %arg3[%c0_12, %c0_13] : memref<1x64xf32, #tpu.memory_space<vmem>>, vector<1x64xf32>
    %c0_14 = arith.constant 0 : index
    %c0_15 = arith.constant 0 : index
    %8 = vector.load %arg4[%c0_14, %c0_15] : memref<1x64xf32, #tpu.memory_space<vmem>>, vector<1x64xf32>
    %c0_16 = arith.constant 0 : index
    %c0_17 = arith.constant 0 : index
    %9 = vector.load %arg5[%c0_16, %c0_17] : memref<1x64xf32, #tpu.memory_space<vmem>>, vector<1x64xf32>
    %c0_18 = arith.constant 0 : index
    %c0_19 = arith.constant 0 : index
    %c0_20 = arith.constant 0 : index
    %10 = vector.load %arg11[%c0_18, %c0_19, %c0_20] : memref<2x10x128xf32, #tpu.memory_space<vmem>>, vector<2x8x128xf32>
    %c0_21 = arith.constant 0 : index
    %c1_22 = arith.constant 1 : index
    %c0_23 = arith.constant 0 : index
    %11 = vector.load %arg11[%c0_21, %c1_22, %c0_23] : memref<2x10x128xf32, #tpu.memory_space<vmem>>, vector<2x8x128xf32>
    %c0_24 = arith.constant 0 : index
    %c2 = arith.constant 2 : index
    %c0_25 = arith.constant 0 : index
    %12 = vector.load %arg11[%c0_24, %c2, %c0_25] : memref<2x10x128xf32, #tpu.memory_space<vmem>>, vector<2x8x128xf32>
    %13 = tpu.concatenate %10, %11, %12 in 2 : vector<2x8x128xf32>, vector<2x8x128xf32>, vector<2x8x128xf32> -> vector<2x8x384xf32>
    %14 = vector.shape_cast %13 : vector<2x8x384xf32> to vector<16x384xf32>
    %15 = arith.truncf %14 : vector<16x384xf32> to vector<16x384xbf16>
    %cst_26 = arith.constant dense<0.000000e+00> : vector<16x64xf32>
    %16 = tpu.matmul %15, %6, %cst_26 {dimension_numbers = #tpu.dot_dimension_numbers<[1], [0], [0], [1], [0, 0, 1, 1], [], []>} : vector<16x384xbf16>, vector<384x64xbf16>, vector<16x64xf32> -> vector<16x64xf32>
    %17 = vector.broadcast %7 : vector<1x64xf32> to vector<16x64xf32>
    %18 = arith.addf %16, %17 : vector<16x64xf32>
    %cst_27 = arith.constant dense<0.000000e+00> : vector<64xf32>
    %19 = vector.multi_reduction <add>, %18, %cst_27 [0] : vector<16x64xf32> to vector<64xf32>
    %20 = vector.shape_cast %19 : vector<64xf32> to vector<1x64xf32>
    %cst_28 = arith.constant 1.600000e+01 : f32
    %21 = vector.broadcast %cst_28 : f32 to vector<1x64xf32>
    %22 = arith.divf %20, %21 : vector<1x64xf32>
    %23 = vector.broadcast %22 : vector<1x64xf32> to vector<16x64xf32>
    %24 = arith.subf %18, %23 : vector<16x64xf32>
    %25 = arith.mulf %24, %24 : vector<16x64xf32>
    %cst_29 = arith.constant dense<0.000000e+00> : vector<64xf32>
    %26 = vector.multi_reduction <add>, %25, %cst_29 [0] : vector<16x64xf32> to vector<64xf32>
    %27 = vector.shape_cast %26 : vector<64xf32> to vector<1x64xf32>
    %cst_30 = arith.constant 1.600000e+01 : f32
    %28 = vector.broadcast %cst_30 : f32 to vector<1x64xf32>
    %29 = arith.divf %27, %28 : vector<1x64xf32>
    %30 = vector.broadcast %22 : vector<1x64xf32> to vector<16x64xf32>
    %31 = arith.subf %18, %30 : vector<16x64xf32>
    %cst_31 = arith.constant 9.99999974E-6 : f32
    %32 = vector.broadcast %cst_31 : f32 to vector<1x64xf32>
    %33 = arith.addf %29, %32 : vector<1x64xf32>
    %34 = math.rsqrt %33 : vector<1x64xf32>
    %35 = vector.broadcast %34 : vector<1x64xf32> to vector<16x64xf32>
    %36 = arith.mulf %31, %35 : vector<16x64xf32>
    %37 = vector.broadcast %8 : vector<1x64xf32> to vector<16x64xf32>
    %38 = arith.mulf %36, %37 : vector<16x64xf32>
    %39 = vector.broadcast %9 : vector<1x64xf32> to vector<16x64xf32>
    %40 = arith.addf %38, %39 : vector<16x64xf32>
    %cst_32 = arith.constant 0.000000e+00 : f32
    %41 = vector.broadcast %cst_32 : f32 to vector<16x64xf32>
    %42 = arith.maximumf %40, %41 : vector<16x64xf32>
    %c0_33 = arith.constant 0 : index
    %c0_34 = arith.constant 0 : index
    %43 = vector.load %arg6[%c0_33, %c0_34] : memref<384x64xbf16, #tpu.memory_space<vmem>>, vector<384x64xbf16>
    %c0_35 = arith.constant 0 : index
    %c0_36 = arith.constant 0 : index
    %44 = vector.load %arg7[%c0_35, %c0_36] : memref<1x64xf32, #tpu.memory_space<vmem>>, vector<1x64xf32>
    %c0_37 = arith.constant 0 : index
    %c0_38 = arith.constant 0 : index
    %45 = vector.load %arg8[%c0_37, %c0_38] : memref<1x64xf32, #tpu.memory_space<vmem>>, vector<1x64xf32>
    %c0_39 = arith.constant 0 : index
    %c0_40 = arith.constant 0 : index
    %46 = vector.load %arg9[%c0_39, %c0_40] : memref<1x64xf32, #tpu.memory_space<vmem>>, vector<1x64xf32>
    %cst_41 = arith.constant 0.000000e+00 : f32
    %47 = vector.broadcast %cst_41 : f32 to vector<2x10x128xf32>
    %c0_42 = arith.constant 0 : index
    %c0_43 = arith.constant 0 : index
    %c0_44 = arith.constant 0 : index
    %48 = vector.load %arg12[%c0_42, %c0_43, %c0_44] : memref<2x10x128xf32, #tpu.memory_space<vmem>>, vector<2x10x128xf32>
    tpu.vector_store %arg12[%c0_42, %c0_43, %c0_44], %47 {strides = array<i32>} : memref<2x10x128xf32, #tpu.memory_space<vmem>>, vector<2x10x128xf32>,
    %49 = vector.shape_cast %42 : vector<16x64xf32> to vector<2x8x64xf32>
    %c0_45 = arith.constant 0 : index
    %c1_46 = arith.constant 1 : index
    %c0_47 = arith.constant 0 : index
    %50 = vector.load %arg12[%c0_45, %c1_46, %c0_47] : memref<2x10x128xf32, #tpu.memory_space<vmem>>, vector<2x8x64xf32>
    tpu.vector_store %arg12[%c0_45, %c1_46, %c0_47], %49 {strides = array<i32>} : memref<2x10x128xf32, #tpu.memory_space<vmem>>, vector<2x8x64xf32>,
    %c0_48 = arith.constant 0 : index
    %c0_49 = arith.constant 0 : index
    %c0_50 = arith.constant 0 : index
    %51 = vector.load %arg12[%c0_48, %c0_49, %c0_50] : memref<2x10x128xf32, #tpu.memory_space<vmem>>, vector<2x8x128xf32>
    %c0_51 = arith.constant 0 : index
    %c1_52 = arith.constant 1 : index
    %c0_53 = arith.constant 0 : index
    %52 = vector.load %arg12[%c0_51, %c1_52, %c0_53] : memref<2x10x128xf32, #tpu.memory_space<vmem>>, vector<2x8x128xf32>
    %c0_54 = arith.constant 0 : index
    %c2_55 = arith.constant 2 : index
    %c0_56 = arith.constant 0 : index
    %53 = vector.load %arg12[%c0_54, %c2_55, %c0_56] : memref<2x10x128xf32, #tpu.memory_space<vmem>>, vector<2x8x128xf32>
    %54 = tpu.concatenate %51, %52, %53 in 2 : vector<2x8x128xf32>, vector<2x8x128xf32>, vector<2x8x128xf32> -> vector<2x8x384xf32>
    %55 = vector.shape_cast %54 : vector<2x8x384xf32> to vector<16x384xf32>
    %56 = arith.truncf %55 : vector<16x384xf32> to vector<16x384xbf16>
    %cst_57 = arith.constant dense<0.000000e+00> : vector<16x64xf32>
    %57 = tpu.matmul %56, %43, %cst_57 {dimension_numbers = #tpu.dot_dimension_numbers<[1], [0], [0], [1], [0, 0, 1, 1], [], []>} : vector<16x384xbf16>, vector<384x64xbf16>, vector<16x64xf32> -> vector<16x64xf32>
    %58 = vector.broadcast %44 : vector<1x64xf32> to vector<16x64xf32>
    %59 = arith.addf %57, %58 : vector<16x64xf32>
    %cst_58 = arith.constant dense<0.000000e+00> : vector<64xf32>
    %60 = vector.multi_reduction <add>, %59, %cst_58 [0] : vector<16x64xf32> to vector<64xf32>
    %61 = vector.shape_cast %60 : vector<64xf32> to vector<1x64xf32>
    %cst_59 = arith.constant 1.600000e+01 : f32
    %62 = vector.broadcast %cst_59 : f32 to vector<1x64xf32>
    %63 = arith.divf %61, %62 : vector<1x64xf32>
    %64 = vector.broadcast %63 : vector<1x64xf32> to vector<16x64xf32>
    %65 = arith.subf %59, %64 : vector<16x64xf32>
    %66 = arith.mulf %65, %65 : vector<16x64xf32>
    %cst_60 = arith.constant dense<0.000000e+00> : vector<64xf32>
    %67 = vector.multi_reduction <add>, %66, %cst_60 [0] : vector<16x64xf32> to vector<64xf32>
    %68 = vector.shape_cast %67 : vector<64xf32> to vector<1x64xf32>
    %cst_61 = arith.constant 1.600000e+01 : f32
    %69 = vector.broadcast %cst_61 : f32 to vector<1x64xf32>
    %70 = arith.divf %68, %69 : vector<1x64xf32>
    %71 = vector.broadcast %63 : vector<1x64xf32> to vector<16x64xf32>
    %72 = arith.subf %59, %71 : vector<16x64xf32>
    %cst_62 = arith.constant 9.99999974E-6 : f32
    %73 = vector.broadcast %cst_62 : f32 to vector<1x64xf32>
    %74 = arith.addf %70, %73 : vector<1x64xf32>
    %75 = math.rsqrt %74 : vector<1x64xf32>
    %76 = vector.broadcast %75 : vector<1x64xf32> to vector<16x64xf32>
    %77 = arith.mulf %72, %76 : vector<16x64xf32>
    %78 = vector.broadcast %45 : vector<1x64xf32> to vector<16x64xf32>
    %79 = arith.mulf %77, %78 : vector<16x64xf32>
    %80 = vector.broadcast %46 : vector<1x64xf32> to vector<16x64xf32>
    %81 = arith.addf %79, %80 : vector<16x64xf32>
    %cst_63 = arith.constant 0.000000e+00 : f32
    %82 = vector.broadcast %cst_63 : f32 to vector<16x64xf32>
    %83 = arith.maximumf %81, %82 : vector<16x64xf32>
    %84 = vector.shape_cast %83 : vector<16x64xf32> to vector<2x8x64xf32>
    %c0_64 = arith.constant 0 : index
    %c0_65 = arith.constant 0 : index
    %c0_66 = arith.constant 0 : index
    %85 = vector.load %arg10[%c0_64, %c0_65, %c0_66] : memref<2x8x64xf32, #tpu.memory_space<vmem>>, vector<2x8x64xf32>
    tpu.vector_store %arg10[%c0_64, %c0_65, %c0_66], %84 {strides = array<i32>} : memref<2x8x64xf32, #tpu.memory_space<vmem>>, vector<2x8x64xf32>,
    return
  }
  func.func @transform_0(%arg0: i32) -> (i32, i32, i32) {
    %c0_i32 = arith.constant 0 : i32
    %c0_i32_0 = arith.constant 0 : i32
    %c0_i32_1 = arith.constant 0 : i32
    %c0_i32_2 = arith.constant 0 : i32
    return %c0_i32, %c0_i32_0, %c0_i32_1 : i32, i32, i32
  }
  func.func @transform_1(%arg0: i32) -> (i32, i32) {
    %c0_i32 = arith.constant 0 : i32
    %c0_i32_0 = arith.constant 0 : i32
    %c0_i32_1 = arith.constant 0 : i32
    return %c0_i32, %c0_i32_0 : i32, i32
  }
  func.func @transform_2(%arg0: i32) -> (i32, i32) {
    %c0_i32 = arith.constant 0 : i32
    %c0_i32_0 = arith.constant 0 : i32
    %c0_i32_1 = arith.constant 0 : i32
    return %c0_i32, %c0_i32_0 : i32, i32
  }
  func.func @transform_3(%arg0: i32) -> (i32, i32) {
    %c0_i32 = arith.constant 0 : i32
    %c0_i32_0 = arith.constant 0 : i32
    %c0_i32_1 = arith.constant 0 : i32
    return %c0_i32, %c0_i32_0 : i32, i32
  }
  func.func @transform_4(%arg0: i32) -> (i32, i32) {
    %c0_i32 = arith.constant 0 : i32
    %c0_i32_0 = arith.constant 0 : i32
    %c0_i32_1 = arith.constant 0 : i32
    return %c0_i32, %c0_i32_0 : i32, i32
  }
  func.func @transform_5(%arg0: i32) -> (i32, i32) {
    %c0_i32 = arith.constant 0 : i32
    %c0_i32_0 = arith.constant 0 : i32
    %c0_i32_1 = arith.constant 0 : i32
    return %c0_i32, %c0_i32_0 : i32, i32
  }
  func.func @transform_6(%arg0: i32) -> (i32, i32) {
    %c0_i32 = arith.constant 0 : i32
    %c0_i32_0 = arith.constant 0 : i32
    %c0_i32_1 = arith.constant 0 : i32
    return %c0_i32, %c0_i32_0 : i32, i32
  }
  func.func @transform_7(%arg0: i32) -> (i32, i32) {
    %c0_i32 = arith.constant 0 : i32
    %c0_i32_0 = arith.constant 0 : i32
    %c0_i32_1 = arith.constant 0 : i32
    return %c0_i32, %c0_i32_0 : i32, i32
  }
  func.func @transform_8(%arg0: i32) -> (i32, i32) {
    %c0_i32 = arith.constant 0 : i32
    %c0_i32_0 = arith.constant 0 : i32
    %c0_i32_1 = arith.constant 0 : i32
    return %c0_i32, %c0_i32_0 : i32, i32
  }
  func.func @transform_9(%arg0: i32) -> (i32, i32, i32) {
    %c0_i32 = arith.constant 0 : i32
    %c0_i32_0 = arith.constant 0 : i32
    %c0_i32_1 = arith.constant 0 : i32
    %c0_i32_2 = arith.constant 0 : i32
    return %c0_i32, %c0_i32_0, %c0_i32_1 : i32, i32, i32
  }
}

module attributes {stable_mosaic.version = 11 : i64} {
  func.func @kernel(%arg0: i32, %arg1: memref<2x2x256xf32, #tpu.memory_space<vmem>>, %arg2: memref<2x4x128xf32, #tpu.memory_space<vmem>>, %arg3: memref<4x2xf32, #tpu.memory_space<vmem>>, %arg4: memref<1152x128xbf16, #tpu.memory_space<vmem>>, %arg5: memref<1x128xf32, #tpu.memory_space<vmem>>, %arg6: memref<1x128xf32, #tpu.memory_space<vmem>>, %arg7: memref<1x128xf32, #tpu.memory_space<vmem>>, %arg8: memref<384x128xbf16, #tpu.memory_space<vmem>>, %arg9: memref<1x128xf32, #tpu.memory_space<vmem>>, %arg10: memref<1x128xf32, #tpu.memory_space<vmem>>, %arg11: memref<1x128xf32, #tpu.memory_space<vmem>>, %arg12: memref<2x4x128xf32, #tpu.memory_space<vmem>>, %arg13: memref<2x6x384xf32, #tpu.memory_space<vmem>>, %arg14: memref<2x6x128xf32, #tpu.memory_space<vmem>>) attributes {dimension_semantics = [#tpu.dimension_semantics<arbitrary>], iteration_bounds = array<i64: 1>, scalar_prefetch = 0 : i64, scratch_operands = 2 : i64, tpu.core_type = #tpu.core_type<tc>, window_params = [{pipeline_mode = #tpu.pipeline_mode<synchronous>, transform_indices = @transform_0, window_bounds = array<i64: 2, 2, 256>}, {pipeline_mode = #tpu.pipeline_mode<synchronous>, transform_indices = @transform_1, window_bounds = array<i64: 2, 4, 128>}, {pipeline_mode = #tpu.pipeline_mode<synchronous>, transform_indices = @transform_2, window_bounds = array<i64: 4, 2>}, {pipeline_mode = #tpu.pipeline_mode<synchronous>, transform_indices = @transform_3, window_bounds = array<i64: 1152, 128>}, {pipeline_mode = #tpu.pipeline_mode<synchronous>, transform_indices = @transform_4, window_bounds = array<i64: 1, 128>}, {pipeline_mode = #tpu.pipeline_mode<synchronous>, transform_indices = @transform_5, window_bounds = array<i64: 1, 128>}, {pipeline_mode = #tpu.pipeline_mode<synchronous>, transform_indices = @transform_6, window_bounds = array<i64: 1, 128>}, {pipeline_mode = #tpu.pipeline_mode<synchronous>, transform_indices = @transform_7, window_bounds = array<i64: 384, 128>}, {pipeline_mode = #tpu.pipeline_mode<synchronous>, transform_indices = @transform_8, window_bounds = array<i64: 1, 128>}, {pipeline_mode = #tpu.pipeline_mode<synchronous>, transform_indices = @transform_9, window_bounds = array<i64: 1, 128>}, {pipeline_mode = #tpu.pipeline_mode<synchronous>, transform_indices = @transform_10, window_bounds = array<i64: 1, 128>}, {pipeline_mode = #tpu.pipeline_mode<synchronous>, transform_indices = @transform_11, window_bounds = array<i64: 2, 4, 128>}]} {
    %cst = arith.constant 0.000000e+00 : f32
    %0 = vector.broadcast %cst : f32 to vector<2x6x384xf32>
    %c0 = arith.constant 0 : index
    %c0_0 = arith.constant 0 : index
    %c0_1 = arith.constant 0 : index
    %1 = vector.load %arg13[%c0, %c0_0, %c0_1] : memref<2x6x384xf32, #tpu.memory_space<vmem>>, vector<2x6x384xf32>
    tpu.vector_store %arg13[%c0, %c0_0, %c0_1], %0 {strides = array<i32>} : memref<2x6x384xf32, #tpu.memory_space<vmem>>, vector<2x6x384xf32>,
    %c0_2 = arith.constant 0 : index
    %c0_3 = arith.constant 0 : index
    %2 = vector.load %arg3[%c0_2, %c0_3] : memref<4x2xf32, #tpu.memory_space<vmem>>, vector<4x2xf32>
    %c0_4 = arith.constant 0 : index
    %c0_5 = arith.constant 0 : index
    %c0_6 = arith.constant 0 : index
    %3 = vector.load %arg1[%c0_4, %c0_5, %c0_6] : memref<2x2x256xf32, #tpu.memory_space<vmem>>, vector<1x2x256xf32>
    %4 = vector.shape_cast %3 : vector<1x2x256xf32> to vector<2x256xf32>
    %cst_7 = arith.constant dense<0.000000e+00> : vector<4x256xf32>
    %5 = tpu.matmul %2, %4, %cst_7 {dimension_numbers = #tpu.dot_dimension_numbers<[1], [0], [0], [1], [0, 0, 1, 1], [], []>} : vector<4x2xf32>, vector<2x256xf32>, vector<4x256xf32> -> vector<4x256xf32>
    %c0_8 = arith.constant 0 : index
    %c1 = arith.constant 1 : index
    %c0_9 = arith.constant 0 : index
    %6 = vector.load %arg13[%c0_8, %c1, %c0_9] : memref<2x6x384xf32, #tpu.memory_space<vmem>>, vector<1x4x256xf32>
    %7 = vector.shape_cast %6 : vector<1x4x256xf32> to vector<4x256xf32>
    %8 = vector.shape_cast %5 : vector<4x256xf32> to vector<1x4x256xf32>
    tpu.vector_store %arg13[%c0_8, %c1, %c0_9], %8 {strides = array<i32>} : memref<2x6x384xf32, #tpu.memory_space<vmem>>, vector<1x4x256xf32>,
    %c0_10 = arith.constant 0 : index
    %c0_11 = arith.constant 0 : index
    %c0_12 = arith.constant 0 : index
    %9 = vector.load %arg2[%c0_10, %c0_11, %c0_12] : memref<2x4x128xf32, #tpu.memory_space<vmem>>, vector<1x4x128xf32>
    %10 = vector.shape_cast %9 : vector<1x4x128xf32> to vector<4x128xf32>
    %c0_13 = arith.constant 0 : index
    %c1_14 = arith.constant 1 : index
    %c256 = arith.constant 256 : index
    %11 = vector.load %arg13[%c0_13, %c1_14, %c256] : memref<2x6x384xf32, #tpu.memory_space<vmem>>, vector<1x4x128xf32>
    %12 = vector.shape_cast %11 : vector<1x4x128xf32> to vector<4x128xf32>
    %13 = vector.shape_cast %10 : vector<4x128xf32> to vector<1x4x128xf32>
    tpu.vector_store %arg13[%c0_13, %c1_14, %c256], %13 {strides = array<i32>} : memref<2x6x384xf32, #tpu.memory_space<vmem>>, vector<1x4x128xf32>,
    %c1_15 = arith.constant 1 : index
    %c0_16 = arith.constant 0 : index
    %c0_17 = arith.constant 0 : index
    %14 = vector.load %arg1[%c1_15, %c0_16, %c0_17] : memref<2x2x256xf32, #tpu.memory_space<vmem>>, vector<1x2x256xf32>
    %15 = vector.shape_cast %14 : vector<1x2x256xf32> to vector<2x256xf32>
    %cst_18 = arith.constant dense<0.000000e+00> : vector<4x256xf32>
    %16 = tpu.matmul %2, %15, %cst_18 {dimension_numbers = #tpu.dot_dimension_numbers<[1], [0], [0], [1], [0, 0, 1, 1], [], []>} : vector<4x2xf32>, vector<2x256xf32>, vector<4x256xf32> -> vector<4x256xf32>
    %c1_19 = arith.constant 1 : index
    %c1_20 = arith.constant 1 : index
    %c0_21 = arith.constant 0 : index
    %17 = vector.load %arg13[%c1_19, %c1_20, %c0_21] : memref<2x6x384xf32, #tpu.memory_space<vmem>>, vector<1x4x256xf32>
    %18 = vector.shape_cast %17 : vector<1x4x256xf32> to vector<4x256xf32>
    %19 = vector.shape_cast %16 : vector<4x256xf32> to vector<1x4x256xf32>
    tpu.vector_store %arg13[%c1_19, %c1_20, %c0_21], %19 {strides = array<i32>} : memref<2x6x384xf32, #tpu.memory_space<vmem>>, vector<1x4x256xf32>,
    %c1_22 = arith.constant 1 : index
    %c0_23 = arith.constant 0 : index
    %c0_24 = arith.constant 0 : index
    %20 = vector.load %arg2[%c1_22, %c0_23, %c0_24] : memref<2x4x128xf32, #tpu.memory_space<vmem>>, vector<1x4x128xf32>
    %21 = vector.shape_cast %20 : vector<1x4x128xf32> to vector<4x128xf32>
    %c1_25 = arith.constant 1 : index
    %c1_26 = arith.constant 1 : index
    %c256_27 = arith.constant 256 : index
    %22 = vector.load %arg13[%c1_25, %c1_26, %c256_27] : memref<2x6x384xf32, #tpu.memory_space<vmem>>, vector<1x4x128xf32>
    %23 = vector.shape_cast %22 : vector<1x4x128xf32> to vector<4x128xf32>
    %24 = vector.shape_cast %21 : vector<4x128xf32> to vector<1x4x128xf32>
    tpu.vector_store %arg13[%c1_25, %c1_26, %c256_27], %24 {strides = array<i32>} : memref<2x6x384xf32, #tpu.memory_space<vmem>>, vector<1x4x128xf32>,
    %c0_28 = arith.constant 0 : index
    %c0_29 = arith.constant 0 : index
    %25 = vector.load %arg4[%c0_28, %c0_29] : memref<1152x128xbf16, #tpu.memory_space<vmem>>, vector<1152x128xbf16>
    %c0_30 = arith.constant 0 : index
    %c0_31 = arith.constant 0 : index
    %26 = vector.load %arg5[%c0_30, %c0_31] : memref<1x128xf32, #tpu.memory_space<vmem>>, vector<1x128xf32>
    %c0_32 = arith.constant 0 : index
    %c0_33 = arith.constant 0 : index
    %27 = vector.load %arg6[%c0_32, %c0_33] : memref<1x128xf32, #tpu.memory_space<vmem>>, vector<1x128xf32>
    %c0_34 = arith.constant 0 : index
    %c0_35 = arith.constant 0 : index
    %28 = vector.load %arg7[%c0_34, %c0_35] : memref<1x128xf32, #tpu.memory_space<vmem>>, vector<1x128xf32>
    %c0_36 = arith.constant 0 : index
    %c0_37 = arith.constant 0 : index
    %c0_38 = arith.constant 0 : index
    %29 = vector.load %arg13[%c0_36, %c0_37, %c0_38] : memref<2x6x384xf32, #tpu.memory_space<vmem>>, vector<2x4x384xf32>
    %c0_39 = arith.constant 0 : index
    %c1_40 = arith.constant 1 : index
    %c0_41 = arith.constant 0 : index
    %30 = vector.load %arg13[%c0_39, %c1_40, %c0_41] : memref<2x6x384xf32, #tpu.memory_space<vmem>>, vector<2x4x384xf32>
    %c0_42 = arith.constant 0 : index
    %c2 = arith.constant 2 : index
    %c0_43 = arith.constant 0 : index
    %31 = vector.load %arg13[%c0_42, %c2, %c0_43] : memref<2x6x384xf32, #tpu.memory_space<vmem>>, vector<2x4x384xf32>
    %32 = tpu.concatenate %29, %30, %31 in 2 : vector<2x4x384xf32>, vector<2x4x384xf32>, vector<2x4x384xf32> -> vector<2x4x1152xf32>
    %33 = vector.shape_cast %32 : vector<2x4x1152xf32> to vector<8x1152xf32>
    %34 = arith.truncf %33 : vector<8x1152xf32> to vector<8x1152xbf16>
    %cst_44 = arith.constant dense<0.000000e+00> : vector<8x128xf32>
    %35 = tpu.matmul %34, %25, %cst_44 {dimension_numbers = #tpu.dot_dimension_numbers<[1], [0], [0], [1], [0, 0, 1, 1], [], []>} : vector<8x1152xbf16>, vector<1152x128xbf16>, vector<8x128xf32> -> vector<8x128xf32>
    %36 = vector.broadcast %26 : vector<1x128xf32> to vector<8x128xf32>
    %37 = arith.addf %35, %36 : vector<8x128xf32>
    %cst_45 = arith.constant dense<0.000000e+00> : vector<128xf32>
    %38 = vector.multi_reduction <add>, %37, %cst_45 [0] : vector<8x128xf32> to vector<128xf32>
    %39 = vector.shape_cast %38 : vector<128xf32> to vector<1x128xf32>
    %cst_46 = arith.constant 8.000000e+00 : f32
    %40 = vector.broadcast %cst_46 : f32 to vector<1x128xf32>
    %41 = arith.divf %39, %40 : vector<1x128xf32>
    %42 = vector.broadcast %41 : vector<1x128xf32> to vector<8x128xf32>
    %43 = arith.subf %37, %42 : vector<8x128xf32>
    %44 = arith.mulf %43, %43 : vector<8x128xf32>
    %cst_47 = arith.constant dense<0.000000e+00> : vector<128xf32>
    %45 = vector.multi_reduction <add>, %44, %cst_47 [0] : vector<8x128xf32> to vector<128xf32>
    %46 = vector.shape_cast %45 : vector<128xf32> to vector<1x128xf32>
    %cst_48 = arith.constant 8.000000e+00 : f32
    %47 = vector.broadcast %cst_48 : f32 to vector<1x128xf32>
    %48 = arith.divf %46, %47 : vector<1x128xf32>
    %49 = vector.broadcast %41 : vector<1x128xf32> to vector<8x128xf32>
    %50 = arith.subf %37, %49 : vector<8x128xf32>
    %cst_49 = arith.constant 9.99999974E-6 : f32
    %51 = vector.broadcast %cst_49 : f32 to vector<1x128xf32>
    %52 = arith.addf %48, %51 : vector<1x128xf32>
    %53 = math.rsqrt %52 : vector<1x128xf32>
    %54 = vector.broadcast %53 : vector<1x128xf32> to vector<8x128xf32>
    %55 = arith.mulf %50, %54 : vector<8x128xf32>
    %56 = vector.broadcast %27 : vector<1x128xf32> to vector<8x128xf32>
    %57 = arith.mulf %55, %56 : vector<8x128xf32>
    %58 = vector.broadcast %28 : vector<1x128xf32> to vector<8x128xf32>
    %59 = arith.addf %57, %58 : vector<8x128xf32>
    %cst_50 = arith.constant 0.000000e+00 : f32
    %60 = vector.broadcast %cst_50 : f32 to vector<8x128xf32>
    %61 = arith.maximumf %59, %60 : vector<8x128xf32>
    %c0_51 = arith.constant 0 : index
    %c0_52 = arith.constant 0 : index
    %62 = vector.load %arg8[%c0_51, %c0_52] : memref<384x128xbf16, #tpu.memory_space<vmem>>, vector<384x128xbf16>
    %c0_53 = arith.constant 0 : index
    %c0_54 = arith.constant 0 : index
    %63 = vector.load %arg9[%c0_53, %c0_54] : memref<1x128xf32, #tpu.memory_space<vmem>>, vector<1x128xf32>
    %c0_55 = arith.constant 0 : index
    %c0_56 = arith.constant 0 : index
    %64 = vector.load %arg10[%c0_55, %c0_56] : memref<1x128xf32, #tpu.memory_space<vmem>>, vector<1x128xf32>
    %c0_57 = arith.constant 0 : index
    %c0_58 = arith.constant 0 : index
    %65 = vector.load %arg11[%c0_57, %c0_58] : memref<1x128xf32, #tpu.memory_space<vmem>>, vector<1x128xf32>
    %cst_59 = arith.constant 0.000000e+00 : f32
    %66 = vector.broadcast %cst_59 : f32 to vector<2x6x128xf32>
    %c0_60 = arith.constant 0 : index
    %c0_61 = arith.constant 0 : index
    %c0_62 = arith.constant 0 : index
    %67 = vector.load %arg14[%c0_60, %c0_61, %c0_62] : memref<2x6x128xf32, #tpu.memory_space<vmem>>, vector<2x6x128xf32>
    tpu.vector_store %arg14[%c0_60, %c0_61, %c0_62], %66 {strides = array<i32>} : memref<2x6x128xf32, #tpu.memory_space<vmem>>, vector<2x6x128xf32>,
    %68 = vector.shape_cast %61 : vector<8x128xf32> to vector<2x4x128xf32>
    %c0_63 = arith.constant 0 : index
    %c1_64 = arith.constant 1 : index
    %c0_65 = arith.constant 0 : index
    %69 = vector.load %arg14[%c0_63, %c1_64, %c0_65] : memref<2x6x128xf32, #tpu.memory_space<vmem>>, vector<2x4x128xf32>
    tpu.vector_store %arg14[%c0_63, %c1_64, %c0_65], %68 {strides = array<i32>} : memref<2x6x128xf32, #tpu.memory_space<vmem>>, vector<2x4x128xf32>,
    %c0_66 = arith.constant 0 : index
    %c0_67 = arith.constant 0 : index
    %c0_68 = arith.constant 0 : index
    %70 = vector.load %arg14[%c0_66, %c0_67, %c0_68] : memref<2x6x128xf32, #tpu.memory_space<vmem>>, vector<2x4x128xf32>
    %c0_69 = arith.constant 0 : index
    %c1_70 = arith.constant 1 : index
    %c0_71 = arith.constant 0 : index
    %71 = vector.load %arg14[%c0_69, %c1_70, %c0_71] : memref<2x6x128xf32, #tpu.memory_space<vmem>>, vector<2x4x128xf32>
    %c0_72 = arith.constant 0 : index
    %c2_73 = arith.constant 2 : index
    %c0_74 = arith.constant 0 : index
    %72 = vector.load %arg14[%c0_72, %c2_73, %c0_74] : memref<2x6x128xf32, #tpu.memory_space<vmem>>, vector<2x4x128xf32>
    %73 = tpu.concatenate %70, %71, %72 in 2 : vector<2x4x128xf32>, vector<2x4x128xf32>, vector<2x4x128xf32> -> vector<2x4x384xf32>
    %74 = vector.shape_cast %73 : vector<2x4x384xf32> to vector<8x384xf32>
    %75 = arith.truncf %74 : vector<8x384xf32> to vector<8x384xbf16>
    %cst_75 = arith.constant dense<0.000000e+00> : vector<8x128xf32>
    %76 = tpu.matmul %75, %62, %cst_75 {dimension_numbers = #tpu.dot_dimension_numbers<[1], [0], [0], [1], [0, 0, 1, 1], [], []>} : vector<8x384xbf16>, vector<384x128xbf16>, vector<8x128xf32> -> vector<8x128xf32>
    %77 = vector.broadcast %63 : vector<1x128xf32> to vector<8x128xf32>
    %78 = arith.addf %76, %77 : vector<8x128xf32>
    %cst_76 = arith.constant dense<0.000000e+00> : vector<128xf32>
    %79 = vector.multi_reduction <add>, %78, %cst_76 [0] : vector<8x128xf32> to vector<128xf32>
    %80 = vector.shape_cast %79 : vector<128xf32> to vector<1x128xf32>
    %cst_77 = arith.constant 8.000000e+00 : f32
    %81 = vector.broadcast %cst_77 : f32 to vector<1x128xf32>
    %82 = arith.divf %80, %81 : vector<1x128xf32>
    %83 = vector.broadcast %82 : vector<1x128xf32> to vector<8x128xf32>
    %84 = arith.subf %78, %83 : vector<8x128xf32>
    %85 = arith.mulf %84, %84 : vector<8x128xf32>
    %cst_78 = arith.constant dense<0.000000e+00> : vector<128xf32>
    %86 = vector.multi_reduction <add>, %85, %cst_78 [0] : vector<8x128xf32> to vector<128xf32>
    %87 = vector.shape_cast %86 : vector<128xf32> to vector<1x128xf32>
    %cst_79 = arith.constant 8.000000e+00 : f32
    %88 = vector.broadcast %cst_79 : f32 to vector<1x128xf32>
    %89 = arith.divf %87, %88 : vector<1x128xf32>
    %90 = vector.broadcast %82 : vector<1x128xf32> to vector<8x128xf32>
    %91 = arith.subf %78, %90 : vector<8x128xf32>
    %cst_80 = arith.constant 9.99999974E-6 : f32
    %92 = vector.broadcast %cst_80 : f32 to vector<1x128xf32>
    %93 = arith.addf %89, %92 : vector<1x128xf32>
    %94 = math.rsqrt %93 : vector<1x128xf32>
    %95 = vector.broadcast %94 : vector<1x128xf32> to vector<8x128xf32>
    %96 = arith.mulf %91, %95 : vector<8x128xf32>
    %97 = vector.broadcast %64 : vector<1x128xf32> to vector<8x128xf32>
    %98 = arith.mulf %96, %97 : vector<8x128xf32>
    %99 = vector.broadcast %65 : vector<1x128xf32> to vector<8x128xf32>
    %100 = arith.addf %98, %99 : vector<8x128xf32>
    %cst_81 = arith.constant 0.000000e+00 : f32
    %101 = vector.broadcast %cst_81 : f32 to vector<8x128xf32>
    %102 = arith.maximumf %100, %101 : vector<8x128xf32>
    %103 = vector.shape_cast %102 : vector<8x128xf32> to vector<2x4x128xf32>
    %c0_82 = arith.constant 0 : index
    %c0_83 = arith.constant 0 : index
    %c0_84 = arith.constant 0 : index
    %104 = vector.load %arg12[%c0_82, %c0_83, %c0_84] : memref<2x4x128xf32, #tpu.memory_space<vmem>>, vector<2x4x128xf32>
    tpu.vector_store %arg12[%c0_82, %c0_83, %c0_84], %103 {strides = array<i32>} : memref<2x4x128xf32, #tpu.memory_space<vmem>>, vector<2x4x128xf32>,
    return
  }
  func.func @transform_0(%arg0: i32) -> (i32, i32, i32) {
    %c0_i32 = arith.constant 0 : i32
    %c0_i32_0 = arith.constant 0 : i32
    %c0_i32_1 = arith.constant 0 : i32
    %c0_i32_2 = arith.constant 0 : i32
    return %c0_i32, %c0_i32_0, %c0_i32_1 : i32, i32, i32
  }
  func.func @transform_1(%arg0: i32) -> (i32, i32, i32) {
    %c0_i32 = arith.constant 0 : i32
    %c0_i32_0 = arith.constant 0 : i32
    %c0_i32_1 = arith.constant 0 : i32
    %c0_i32_2 = arith.constant 0 : i32
    return %c0_i32, %c0_i32_0, %c0_i32_1 : i32, i32, i32
  }
  func.func @transform_2(%arg0: i32) -> (i32, i32) {
    %c0_i32 = arith.constant 0 : i32
    %c0_i32_0 = arith.constant 0 : i32
    %c0_i32_1 = arith.constant 0 : i32
    return %c0_i32, %c0_i32_0 : i32, i32
  }
  func.func @transform_3(%arg0: i32) -> (i32, i32) {
    %c0_i32 = arith.constant 0 : i32
    %c0_i32_0 = arith.constant 0 : i32
    %c0_i32_1 = arith.constant 0 : i32
    return %c0_i32, %c0_i32_0 : i32, i32
  }
  func.func @transform_4(%arg0: i32) -> (i32, i32) {
    %c0_i32 = arith.constant 0 : i32
    %c0_i32_0 = arith.constant 0 : i32
    %c0_i32_1 = arith.constant 0 : i32
    return %c0_i32, %c0_i32_0 : i32, i32
  }
  func.func @transform_5(%arg0: i32) -> (i32, i32) {
    %c0_i32 = arith.constant 0 : i32
    %c0_i32_0 = arith.constant 0 : i32
    %c0_i32_1 = arith.constant 0 : i32
    return %c0_i32, %c0_i32_0 : i32, i32
  }
  func.func @transform_6(%arg0: i32) -> (i32, i32) {
    %c0_i32 = arith.constant 0 : i32
    %c0_i32_0 = arith.constant 0 : i32
    %c0_i32_1 = arith.constant 0 : i32
    return %c0_i32, %c0_i32_0 : i32, i32
  }
  func.func @transform_7(%arg0: i32) -> (i32, i32) {
    %c0_i32 = arith.constant 0 : i32
    %c0_i32_0 = arith.constant 0 : i32
    %c0_i32_1 = arith.constant 0 : i32
    return %c0_i32, %c0_i32_0 : i32, i32
  }
  func.func @transform_8(%arg0: i32) -> (i32, i32) {
    %c0_i32 = arith.constant 0 : i32
    %c0_i32_0 = arith.constant 0 : i32
    %c0_i32_1 = arith.constant 0 : i32
    return %c0_i32, %c0_i32_0 : i32, i32
  }
  func.func @transform_9(%arg0: i32) -> (i32, i32) {
    %c0_i32 = arith.constant 0 : i32
    %c0_i32_0 = arith.constant 0 : i32
    %c0_i32_1 = arith.constant 0 : i32
    return %c0_i32, %c0_i32_0 : i32, i32
  }
  func.func @transform_10(%arg0: i32) -> (i32, i32) {
    %c0_i32 = arith.constant 0 : i32
    %c0_i32_0 = arith.constant 0 : i32
    %c0_i32_1 = arith.constant 0 : i32
    return %c0_i32, %c0_i32_0 : i32, i32
  }
  func.func @transform_11(%arg0: i32) -> (i32, i32, i32) {
    %c0_i32 = arith.constant 0 : i32
    %c0_i32_0 = arith.constant 0 : i32
    %c0_i32_1 = arith.constant 0 : i32
    %c0_i32_2 = arith.constant 0 : i32
    return %c0_i32, %c0_i32_0, %c0_i32_1 : i32, i32, i32
  }
}

module attributes {stable_mosaic.version = 11 : i64} {
  func.func @kernel(%arg0: i32, %arg1: memref<2x4x128xf32, #tpu.memory_space<vmem>>, %arg2: memref<2x8x64xf32, #tpu.memory_space<vmem>>, %arg3: memref<8x4xf32, #tpu.memory_space<vmem>>, %arg4: memref<768x64xbf16, #tpu.memory_space<vmem>>, %arg5: memref<1x64xf32, #tpu.memory_space<vmem>>, %arg6: memref<1x64xf32, #tpu.memory_space<vmem>>, %arg7: memref<1x64xf32, #tpu.memory_space<vmem>>, %arg8: memref<384x64xbf16, #tpu.memory_space<vmem>>, %arg9: memref<1x64xf32, #tpu.memory_space<vmem>>, %arg10: memref<1x64xf32, #tpu.memory_space<vmem>>, %arg11: memref<1x64xf32, #tpu.memory_space<vmem>>, %arg12: memref<2x8x64xf32, #tpu.memory_space<vmem>>, %arg13: memref<2x10x256xf32, #tpu.memory_space<vmem>>, %arg14: memref<2x10x128xf32, #tpu.memory_space<vmem>>) attributes {dimension_semantics = [#tpu.dimension_semantics<arbitrary>], iteration_bounds = array<i64: 1>, scalar_prefetch = 0 : i64, scratch_operands = 2 : i64, tpu.core_type = #tpu.core_type<tc>, window_params = [{pipeline_mode = #tpu.pipeline_mode<synchronous>, transform_indices = @transform_0, window_bounds = array<i64: 2, 4, 128>}, {pipeline_mode = #tpu.pipeline_mode<synchronous>, transform_indices = @transform_1, window_bounds = array<i64: 2, 8, 64>}, {pipeline_mode = #tpu.pipeline_mode<synchronous>, transform_indices = @transform_2, window_bounds = array<i64: 8, 4>}, {pipeline_mode = #tpu.pipeline_mode<synchronous>, transform_indices = @transform_3, window_bounds = array<i64: 768, 64>}, {pipeline_mode = #tpu.pipeline_mode<synchronous>, transform_indices = @transform_4, window_bounds = array<i64: 1, 64>}, {pipeline_mode = #tpu.pipeline_mode<synchronous>, transform_indices = @transform_5, window_bounds = array<i64: 1, 64>}, {pipeline_mode = #tpu.pipeline_mode<synchronous>, transform_indices = @transform_6, window_bounds = array<i64: 1, 64>}, {pipeline_mode = #tpu.pipeline_mode<synchronous>, transform_indices = @transform_7, window_bounds = array<i64: 384, 64>}, {pipeline_mode = #tpu.pipeline_mode<synchronous>, transform_indices = @transform_8, window_bounds = array<i64: 1, 64>}, {pipeline_mode = #tpu.pipeline_mode<synchronous>, transform_indices = @transform_9, window_bounds = array<i64: 1, 64>}, {pipeline_mode = #tpu.pipeline_mode<synchronous>, transform_indices = @transform_10, window_bounds = array<i64: 1, 64>}, {pipeline_mode = #tpu.pipeline_mode<synchronous>, transform_indices = @transform_11, window_bounds = array<i64: 2, 8, 64>}]} {
    %cst = arith.constant 0.000000e+00 : f32
    %0 = vector.broadcast %cst : f32 to vector<2x10x256xf32>
    %c0 = arith.constant 0 : index
    %c0_0 = arith.constant 0 : index
    %c0_1 = arith.constant 0 : index
    %1 = vector.load %arg13[%c0, %c0_0, %c0_1] : memref<2x10x256xf32, #tpu.memory_space<vmem>>, vector<2x10x256xf32>
    tpu.vector_store %arg13[%c0, %c0_0, %c0_1], %0 {strides = array<i32>} : memref<2x10x256xf32, #tpu.memory_space<vmem>>, vector<2x10x256xf32>,
    %c0_2 = arith.constant 0 : index
    %c0_3 = arith.constant 0 : index
    %2 = vector.load %arg3[%c0_2, %c0_3] : memref<8x4xf32, #tpu.memory_space<vmem>>, vector<8x4xf32>
    %c0_4 = arith.constant 0 : index
    %c0_5 = arith.constant 0 : index
    %c0_6 = arith.constant 0 : index
    %3 = vector.load %arg1[%c0_4, %c0_5, %c0_6] : memref<2x4x128xf32, #tpu.memory_space<vmem>>, vector<1x4x128xf32>
    %4 = vector.shape_cast %3 : vector<1x4x128xf32> to vector<4x128xf32>
    %cst_7 = arith.constant dense<0.000000e+00> : vector<8x128xf32>
    %5 = tpu.matmul %2, %4, %cst_7 {dimension_numbers = #tpu.dot_dimension_numbers<[1], [0], [0], [1], [0, 0, 1, 1], [], []>} : vector<8x4xf32>, vector<4x128xf32>, vector<8x128xf32> -> vector<8x128xf32>
    %c0_8 = arith.constant 0 : index
    %c1 = arith.constant 1 : index
    %c0_9 = arith.constant 0 : index
    %6 = vector.load %arg13[%c0_8, %c1, %c0_9] : memref<2x10x256xf32, #tpu.memory_space<vmem>>, vector<1x8x128xf32>
    %7 = vector.shape_cast %6 : vector<1x8x128xf32> to vector<8x128xf32>
    %8 = vector.shape_cast %5 : vector<8x128xf32> to vector<1x8x128xf32>
    tpu.vector_store %arg13[%c0_8, %c1, %c0_9], %8 {strides = array<i32>} : memref<2x10x256xf32, #tpu.memory_space<vmem>>, vector<1x8x128xf32>,
    %c0_10 = arith.constant 0 : index
    %c0_11 = arith.constant 0 : index
    %c0_12 = arith.constant 0 : index
    %9 = vector.load %arg2[%c0_10, %c0_11, %c0_12] : memref<2x8x64xf32, #tpu.memory_space<vmem>>, vector<1x8x64xf32>
    %10 = vector.shape_cast %9 : vector<1x8x64xf32> to vector<8x64xf32>
    %c0_13 = arith.constant 0 : index
    %c1_14 = arith.constant 1 : index
    %c128 = arith.constant 128 : index
    %11 = vector.load %arg13[%c0_13, %c1_14, %c128] : memref<2x10x256xf32, #tpu.memory_space<vmem>>, vector<1x8x64xf32>
    %12 = vector.shape_cast %11 : vector<1x8x64xf32> to vector<8x64xf32>
    %13 = vector.shape_cast %10 : vector<8x64xf32> to vector<1x8x64xf32>
    tpu.vector_store %arg13[%c0_13, %c1_14, %c128], %13 {strides = array<i32>} : memref<2x10x256xf32, #tpu.memory_space<vmem>>, vector<1x8x64xf32>,
    %c1_15 = arith.constant 1 : index
    %c0_16 = arith.constant 0 : index
    %c0_17 = arith.constant 0 : index
    %14 = vector.load %arg1[%c1_15, %c0_16, %c0_17] : memref<2x4x128xf32, #tpu.memory_space<vmem>>, vector<1x4x128xf32>
    %15 = vector.shape_cast %14 : vector<1x4x128xf32> to vector<4x128xf32>
    %cst_18 = arith.constant dense<0.000000e+00> : vector<8x128xf32>
    %16 = tpu.matmul %2, %15, %cst_18 {dimension_numbers = #tpu.dot_dimension_numbers<[1], [0], [0], [1], [0, 0, 1, 1], [], []>} : vector<8x4xf32>, vector<4x128xf32>, vector<8x128xf32> -> vector<8x128xf32>
    %c1_19 = arith.constant 1 : index
    %c1_20 = arith.constant 1 : index
    %c0_21 = arith.constant 0 : index
    %17 = vector.load %arg13[%c1_19, %c1_20, %c0_21] : memref<2x10x256xf32, #tpu.memory_space<vmem>>, vector<1x8x128xf32>
    %18 = vector.shape_cast %17 : vector<1x8x128xf32> to vector<8x128xf32>
    %19 = vector.shape_cast %16 : vector<8x128xf32> to vector<1x8x128xf32>
    tpu.vector_store %arg13[%c1_19, %c1_20, %c0_21], %19 {strides = array<i32>} : memref<2x10x256xf32, #tpu.memory_space<vmem>>, vector<1x8x128xf32>,
    %c1_22 = arith.constant 1 : index
    %c0_23 = arith.constant 0 : index
    %c0_24 = arith.constant 0 : index
    %20 = vector.load %arg2[%c1_22, %c0_23, %c0_24] : memref<2x8x64xf32, #tpu.memory_space<vmem>>, vector<1x8x64xf32>
    %21 = vector.shape_cast %20 : vector<1x8x64xf32> to vector<8x64xf32>
    %c1_25 = arith.constant 1 : index
    %c1_26 = arith.constant 1 : index
    %c128_27 = arith.constant 128 : index
    %22 = vector.load %arg13[%c1_25, %c1_26, %c128_27] : memref<2x10x256xf32, #tpu.memory_space<vmem>>, vector<1x8x64xf32>
    %23 = vector.shape_cast %22 : vector<1x8x64xf32> to vector<8x64xf32>
    %24 = vector.shape_cast %21 : vector<8x64xf32> to vector<1x8x64xf32>
    tpu.vector_store %arg13[%c1_25, %c1_26, %c128_27], %24 {strides = array<i32>} : memref<2x10x256xf32, #tpu.memory_space<vmem>>, vector<1x8x64xf32>,
    %c0_28 = arith.constant 0 : index
    %c0_29 = arith.constant 0 : index
    %25 = vector.load %arg4[%c0_28, %c0_29] : memref<768x64xbf16, #tpu.memory_space<vmem>>, vector<768x64xbf16>
    %c0_30 = arith.constant 0 : index
    %c0_31 = arith.constant 0 : index
    %26 = vector.load %arg5[%c0_30, %c0_31] : memref<1x64xf32, #tpu.memory_space<vmem>>, vector<1x64xf32>
    %c0_32 = arith.constant 0 : index
    %c0_33 = arith.constant 0 : index
    %27 = vector.load %arg6[%c0_32, %c0_33] : memref<1x64xf32, #tpu.memory_space<vmem>>, vector<1x64xf32>
    %c0_34 = arith.constant 0 : index
    %c0_35 = arith.constant 0 : index
    %28 = vector.load %arg7[%c0_34, %c0_35] : memref<1x64xf32, #tpu.memory_space<vmem>>, vector<1x64xf32>
    %c0_36 = arith.constant 0 : index
    %c0_37 = arith.constant 0 : index
    %c0_38 = arith.constant 0 : index
    %29 = vector.load %arg13[%c0_36, %c0_37, %c0_38] : memref<2x10x256xf32, #tpu.memory_space<vmem>>, vector<2x8x256xf32>
    %c0_39 = arith.constant 0 : index
    %c1_40 = arith.constant 1 : index
    %c0_41 = arith.constant 0 : index
    %30 = vector.load %arg13[%c0_39, %c1_40, %c0_41] : memref<2x10x256xf32, #tpu.memory_space<vmem>>, vector<2x8x256xf32>
    %c0_42 = arith.constant 0 : index
    %c2 = arith.constant 2 : index
    %c0_43 = arith.constant 0 : index
    %31 = vector.load %arg13[%c0_42, %c2, %c0_43] : memref<2x10x256xf32, #tpu.memory_space<vmem>>, vector<2x8x256xf32>
    %32 = tpu.concatenate %29, %30, %31 in 2 : vector<2x8x256xf32>, vector<2x8x256xf32>, vector<2x8x256xf32> -> vector<2x8x768xf32>
    %33 = vector.shape_cast %32 : vector<2x8x768xf32> to vector<16x768xf32>
    %34 = arith.truncf %33 : vector<16x768xf32> to vector<16x768xbf16>
    %cst_44 = arith.constant dense<0.000000e+00> : vector<16x64xf32>
    %35 = tpu.matmul %34, %25, %cst_44 {dimension_numbers = #tpu.dot_dimension_numbers<[1], [0], [0], [1], [0, 0, 1, 1], [], []>} : vector<16x768xbf16>, vector<768x64xbf16>, vector<16x64xf32> -> vector<16x64xf32>
    %36 = vector.broadcast %26 : vector<1x64xf32> to vector<16x64xf32>
    %37 = arith.addf %35, %36 : vector<16x64xf32>
    %cst_45 = arith.constant dense<0.000000e+00> : vector<64xf32>
    %38 = vector.multi_reduction <add>, %37, %cst_45 [0] : vector<16x64xf32> to vector<64xf32>
    %39 = vector.shape_cast %38 : vector<64xf32> to vector<1x64xf32>
    %cst_46 = arith.constant 1.600000e+01 : f32
    %40 = vector.broadcast %cst_46 : f32 to vector<1x64xf32>
    %41 = arith.divf %39, %40 : vector<1x64xf32>
    %42 = vector.broadcast %41 : vector<1x64xf32> to vector<16x64xf32>
    %43 = arith.subf %37, %42 : vector<16x64xf32>
    %44 = arith.mulf %43, %43 : vector<16x64xf32>
    %cst_47 = arith.constant dense<0.000000e+00> : vector<64xf32>
    %45 = vector.multi_reduction <add>, %44, %cst_47 [0] : vector<16x64xf32> to vector<64xf32>
    %46 = vector.shape_cast %45 : vector<64xf32> to vector<1x64xf32>
    %cst_48 = arith.constant 1.600000e+01 : f32
    %47 = vector.broadcast %cst_48 : f32 to vector<1x64xf32>
    %48 = arith.divf %46, %47 : vector<1x64xf32>
    %49 = vector.broadcast %41 : vector<1x64xf32> to vector<16x64xf32>
    %50 = arith.subf %37, %49 : vector<16x64xf32>
    %cst_49 = arith.constant 9.99999974E-6 : f32
    %51 = vector.broadcast %cst_49 : f32 to vector<1x64xf32>
    %52 = arith.addf %48, %51 : vector<1x64xf32>
    %53 = math.rsqrt %52 : vector<1x64xf32>
    %54 = vector.broadcast %53 : vector<1x64xf32> to vector<16x64xf32>
    %55 = arith.mulf %50, %54 : vector<16x64xf32>
    %56 = vector.broadcast %27 : vector<1x64xf32> to vector<16x64xf32>
    %57 = arith.mulf %55, %56 : vector<16x64xf32>
    %58 = vector.broadcast %28 : vector<1x64xf32> to vector<16x64xf32>
    %59 = arith.addf %57, %58 : vector<16x64xf32>
    %cst_50 = arith.constant 0.000000e+00 : f32
    %60 = vector.broadcast %cst_50 : f32 to vector<16x64xf32>
    %61 = arith.maximumf %59, %60 : vector<16x64xf32>
    %c0_51 = arith.constant 0 : index
    %c0_52 = arith.constant 0 : index
    %62 = vector.load %arg8[%c0_51, %c0_52] : memref<384x64xbf16, #tpu.memory_space<vmem>>, vector<384x64xbf16>
    %c0_53 = arith.constant 0 : index
    %c0_54 = arith.constant 0 : index
    %63 = vector.load %arg9[%c0_53, %c0_54] : memref<1x64xf32, #tpu.memory_space<vmem>>, vector<1x64xf32>
    %c0_55 = arith.constant 0 : index
    %c0_56 = arith.constant 0 : index
    %64 = vector.load %arg10[%c0_55, %c0_56] : memref<1x64xf32, #tpu.memory_space<vmem>>, vector<1x64xf32>
    %c0_57 = arith.constant 0 : index
    %c0_58 = arith.constant 0 : index
    %65 = vector.load %arg11[%c0_57, %c0_58] : memref<1x64xf32, #tpu.memory_space<vmem>>, vector<1x64xf32>
    %cst_59 = arith.constant 0.000000e+00 : f32
    %66 = vector.broadcast %cst_59 : f32 to vector<2x10x128xf32>
    %c0_60 = arith.constant 0 : index
    %c0_61 = arith.constant 0 : index
    %c0_62 = arith.constant 0 : index
    %67 = vector.load %arg14[%c0_60, %c0_61, %c0_62] : memref<2x10x128xf32, #tpu.memory_space<vmem>>, vector<2x10x128xf32>
    tpu.vector_store %arg14[%c0_60, %c0_61, %c0_62], %66 {strides = array<i32>} : memref<2x10x128xf32, #tpu.memory_space<vmem>>, vector<2x10x128xf32>,
    %68 = vector.shape_cast %61 : vector<16x64xf32> to vector<2x8x64xf32>
    %c0_63 = arith.constant 0 : index
    %c1_64 = arith.constant 1 : index
    %c0_65 = arith.constant 0 : index
    %69 = vector.load %arg14[%c0_63, %c1_64, %c0_65] : memref<2x10x128xf32, #tpu.memory_space<vmem>>, vector<2x8x64xf32>
    tpu.vector_store %arg14[%c0_63, %c1_64, %c0_65], %68 {strides = array<i32>} : memref<2x10x128xf32, #tpu.memory_space<vmem>>, vector<2x8x64xf32>,
    %c0_66 = arith.constant 0 : index
    %c0_67 = arith.constant 0 : index
    %c0_68 = arith.constant 0 : index
    %70 = vector.load %arg14[%c0_66, %c0_67, %c0_68] : memref<2x10x128xf32, #tpu.memory_space<vmem>>, vector<2x8x128xf32>
    %c0_69 = arith.constant 0 : index
    %c1_70 = arith.constant 1 : index
    %c0_71 = arith.constant 0 : index
    %71 = vector.load %arg14[%c0_69, %c1_70, %c0_71] : memref<2x10x128xf32, #tpu.memory_space<vmem>>, vector<2x8x128xf32>
    %c0_72 = arith.constant 0 : index
    %c2_73 = arith.constant 2 : index
    %c0_74 = arith.constant 0 : index
    %72 = vector.load %arg14[%c0_72, %c2_73, %c0_74] : memref<2x10x128xf32, #tpu.memory_space<vmem>>, vector<2x8x128xf32>
    %73 = tpu.concatenate %70, %71, %72 in 2 : vector<2x8x128xf32>, vector<2x8x128xf32>, vector<2x8x128xf32> -> vector<2x8x384xf32>
    %74 = vector.shape_cast %73 : vector<2x8x384xf32> to vector<16x384xf32>
    %75 = arith.truncf %74 : vector<16x384xf32> to vector<16x384xbf16>
    %cst_75 = arith.constant dense<0.000000e+00> : vector<16x64xf32>
    %76 = tpu.matmul %75, %62, %cst_75 {dimension_numbers = #tpu.dot_dimension_numbers<[1], [0], [0], [1], [0, 0, 1, 1], [], []>} : vector<16x384xbf16>, vector<384x64xbf16>, vector<16x64xf32> -> vector<16x64xf32>
    %77 = vector.broadcast %63 : vector<1x64xf32> to vector<16x64xf32>
    %78 = arith.addf %76, %77 : vector<16x64xf32>
    %cst_76 = arith.constant dense<0.000000e+00> : vector<64xf32>
    %79 = vector.multi_reduction <add>, %78, %cst_76 [0] : vector<16x64xf32> to vector<64xf32>
    %80 = vector.shape_cast %79 : vector<64xf32> to vector<1x64xf32>
    %cst_77 = arith.constant 1.600000e+01 : f32
    %81 = vector.broadcast %cst_77 : f32 to vector<1x64xf32>
    %82 = arith.divf %80, %81 : vector<1x64xf32>
    %83 = vector.broadcast %82 : vector<1x64xf32> to vector<16x64xf32>
    %84 = arith.subf %78, %83 : vector<16x64xf32>
    %85 = arith.mulf %84, %84 : vector<16x64xf32>
    %cst_78 = arith.constant dense<0.000000e+00> : vector<64xf32>
    %86 = vector.multi_reduction <add>, %85, %cst_78 [0] : vector<16x64xf32> to vector<64xf32>
    %87 = vector.shape_cast %86 : vector<64xf32> to vector<1x64xf32>
    %cst_79 = arith.constant 1.600000e+01 : f32
    %88 = vector.broadcast %cst_79 : f32 to vector<1x64xf32>
    %89 = arith.divf %87, %88 : vector<1x64xf32>
    %90 = vector.broadcast %82 : vector<1x64xf32> to vector<16x64xf32>
    %91 = arith.subf %78, %90 : vector<16x64xf32>
    %cst_80 = arith.constant 9.99999974E-6 : f32
    %92 = vector.broadcast %cst_80 : f32 to vector<1x64xf32>
    %93 = arith.addf %89, %92 : vector<1x64xf32>
    %94 = math.rsqrt %93 : vector<1x64xf32>
    %95 = vector.broadcast %94 : vector<1x64xf32> to vector<16x64xf32>
    %96 = arith.mulf %91, %95 : vector<16x64xf32>
    %97 = vector.broadcast %64 : vector<1x64xf32> to vector<16x64xf32>
    %98 = arith.mulf %96, %97 : vector<16x64xf32>
    %99 = vector.broadcast %65 : vector<1x64xf32> to vector<16x64xf32>
    %100 = arith.addf %98, %99 : vector<16x64xf32>
    %cst_81 = arith.constant 0.000000e+00 : f32
    %101 = vector.broadcast %cst_81 : f32 to vector<16x64xf32>
    %102 = arith.maximumf %100, %101 : vector<16x64xf32>
    %103 = vector.shape_cast %102 : vector<16x64xf32> to vector<2x8x64xf32>
    %c0_82 = arith.constant 0 : index
    %c0_83 = arith.constant 0 : index
    %c0_84 = arith.constant 0 : index
    %104 = vector.load %arg12[%c0_82, %c0_83, %c0_84] : memref<2x8x64xf32, #tpu.memory_space<vmem>>, vector<2x8x64xf32>
    tpu.vector_store %arg12[%c0_82, %c0_83, %c0_84], %103 {strides = array<i32>} : memref<2x8x64xf32, #tpu.memory_space<vmem>>, vector<2x8x64xf32>,
    return
  }
  func.func @transform_0(%arg0: i32) -> (i32, i32, i32) {
    %c0_i32 = arith.constant 0 : i32
    %c0_i32_0 = arith.constant 0 : i32
    %c0_i32_1 = arith.constant 0 : i32
    %c0_i32_2 = arith.constant 0 : i32
    return %c0_i32, %c0_i32_0, %c0_i32_1 : i32, i32, i32
  }
  func.func @transform_1(%arg0: i32) -> (i32, i32, i32) {
    %c0_i32 = arith.constant 0 : i32
    %c0_i32_0 = arith.constant 0 : i32
    %c0_i32_1 = arith.constant 0 : i32
    %c0_i32_2 = arith.constant 0 : i32
    return %c0_i32, %c0_i32_0, %c0_i32_1 : i32, i32, i32
  }
  func.func @transform_2(%arg0: i32) -> (i32, i32) {
    %c0_i32 = arith.constant 0 : i32
    %c0_i32_0 = arith.constant 0 : i32
    %c0_i32_1 = arith.constant 0 : i32
    return %c0_i32, %c0_i32_0 : i32, i32
  }
  func.func @transform_3(%arg0: i32) -> (i32, i32) {
    %c0_i32 = arith.constant 0 : i32
    %c0_i32_0 = arith.constant 0 : i32
    %c0_i32_1 = arith.constant 0 : i32
    return %c0_i32, %c0_i32_0 : i32, i32
  }
  func.func @transform_4(%arg0: i32) -> (i32, i32) {
    %c0_i32 = arith.constant 0 : i32
    %c0_i32_0 = arith.constant 0 : i32
    %c0_i32_1 = arith.constant 0 : i32
    return %c0_i32, %c0_i32_0 : i32, i32
  }
  func.func @transform_5(%arg0: i32) -> (i32, i32) {
    %c0_i32 = arith.constant 0 : i32
    %c0_i32_0 = arith.constant 0 : i32
    %c0_i32_1 = arith.constant 0 : i32
    return %c0_i32, %c0_i32_0 : i32, i32
  }
  func.func @transform_6(%arg0: i32) -> (i32, i32) {
    %c0_i32 = arith.constant 0 : i32
    %c0_i32_0 = arith.constant 0 : i32
    %c0_i32_1 = arith.constant 0 : i32
    return %c0_i32, %c0_i32_0 : i32, i32
  }
  func.func @transform_7(%arg0: i32) -> (i32, i32) {
    %c0_i32 = arith.constant 0 : i32
    %c0_i32_0 = arith.constant 0 : i32
    %c0_i32_1 = arith.constant 0 : i32
    return %c0_i32, %c0_i32_0 : i32, i32
  }
  func.func @transform_8(%arg0: i32) -> (i32, i32) {
    %c0_i32 = arith.constant 0 : i32
    %c0_i32_0 = arith.constant 0 : i32
    %c0_i32_1 = arith.constant 0 : i32
    return %c0_i32, %c0_i32_0 : i32, i32
  }
  func.func @transform_9(%arg0: i32) -> (i32, i32) {
    %c0_i32 = arith.constant 0 : i32
    %c0_i32_0 = arith.constant 0 : i32
    %c0_i32_1 = arith.constant 0 : i32
    return %c0_i32, %c0_i32_0 : i32, i32
  }
  func.func @transform_10(%arg0: i32) -> (i32, i32) {
    %c0_i32 = arith.constant 0 : i32
    %c0_i32_0 = arith.constant 0 : i32
    %c0_i32_1 = arith.constant 0 : i32
    return %c0_i32, %c0_i32_0 : i32, i32
  }
  func.func @transform_11(%arg0: i32) -> (i32, i32, i32) {
    %c0_i32 = arith.constant 0 : i32
    %c0_i32_0 = arith.constant 0 : i32
    %c0_i32_1 = arith.constant 0 : i32
    %c0_i32_2 = arith.constant 0 : i32
    return %c0_i32, %c0_i32_0, %c0_i32_1 : i32, i32, i32
  }
}

module attributes {stable_mosaic.version = 11 : i64} {
  func.func @kernel(%arg0: i32, %arg1: memref<2x8x64xf32, #tpu.memory_space<vmem>>, %arg2: memref<2x16x32xf32, #tpu.memory_space<vmem>>, %arg3: memref<16x8xf32, #tpu.memory_space<vmem>>, %arg4: memref<768x32xbf16, #tpu.memory_space<vmem>>, %arg5: memref<1x32xf32, #tpu.memory_space<vmem>>, %arg6: memref<1x32xf32, #tpu.memory_space<vmem>>, %arg7: memref<1x32xf32, #tpu.memory_space<vmem>>, %arg8: memref<384x32xbf16, #tpu.memory_space<vmem>>, %arg9: memref<1x32xf32, #tpu.memory_space<vmem>>, %arg10: memref<1x32xf32, #tpu.memory_space<vmem>>, %arg11: memref<1x32xf32, #tpu.memory_space<vmem>>, %arg12: memref<1x32xf32, #tpu.memory_space<vmem>>, %arg13: memref<1x1xf32, #tpu.memory_space<vmem>>, %arg14: memref<2x16xf32, #tpu.memory_space<vmem>>, %arg15: memref<2x18x256xf32, #tpu.memory_space<vmem>>, %arg16: memref<2x18x128xf32, #tpu.memory_space<vmem>>) attributes {dimension_semantics = [#tpu.dimension_semantics<arbitrary>], iteration_bounds = array<i64: 1>, scalar_prefetch = 0 : i64, scratch_operands = 2 : i64, tpu.core_type = #tpu.core_type<tc>, window_params = [{pipeline_mode = #tpu.pipeline_mode<synchronous>, transform_indices = @transform_0, window_bounds = array<i64: 2, 8, 64>}, {pipeline_mode = #tpu.pipeline_mode<synchronous>, transform_indices = @transform_1, window_bounds = array<i64: 2, 16, 32>}, {pipeline_mode = #tpu.pipeline_mode<synchronous>, transform_indices = @transform_2, window_bounds = array<i64: 16, 8>}, {pipeline_mode = #tpu.pipeline_mode<synchronous>, transform_indices = @transform_3, window_bounds = array<i64: 768, 32>}, {pipeline_mode = #tpu.pipeline_mode<synchronous>, transform_indices = @transform_4, window_bounds = array<i64: 1, 32>}, {pipeline_mode = #tpu.pipeline_mode<synchronous>, transform_indices = @transform_5, window_bounds = array<i64: 1, 32>}, {pipeline_mode = #tpu.pipeline_mode<synchronous>, transform_indices = @transform_6, window_bounds = array<i64: 1, 32>}, {pipeline_mode = #tpu.pipeline_mode<synchronous>, transform_indices = @transform_7, window_bounds = array<i64: 384, 32>}, {pipeline_mode = #tpu.pipeline_mode<synchronous>, transform_indices = @transform_8, window_bounds = array<i64: 1, 32>}, {pipeline_mode = #tpu.pipeline_mode<synchronous>, transform_indices = @transform_9, window_bounds = array<i64: 1, 32>}, {pipeline_mode = #tpu.pipeline_mode<synchronous>, transform_indices = @transform_10, window_bounds = array<i64: 1, 32>}, {pipeline_mode = #tpu.pipeline_mode<synchronous>, transform_indices = @transform_11, window_bounds = array<i64: 1, 32>}, {pipeline_mode = #tpu.pipeline_mode<synchronous>, transform_indices = @transform_12, window_bounds = array<i64: 1, 1>}, {pipeline_mode = #tpu.pipeline_mode<synchronous>, transform_indices = @transform_13, window_bounds = array<i64: 2, 16>}]} {
    %c0 = arith.constant 0 : index
    %c0_0 = arith.constant 0 : index
    %0 = vector.load %arg12[%c0, %c0_0] : memref<1x32xf32, #tpu.memory_space<vmem>>, vector<1x32xf32>
    %c0_1 = arith.constant 0 : index
    %c0_2 = arith.constant 0 : index
    %1 = vector.load %arg13[%c0_1, %c0_2] : memref<1x1xf32, #tpu.memory_space<vmem>>, vector<1x1xf32>
    %cst = arith.constant 0.000000e+00 : f32
    %2 = vector.broadcast %cst : f32 to vector<2x18x256xf32>
    %c0_3 = arith.constant 0 : index
    %c0_4 = arith.constant 0 : index
    %c0_5 = arith.constant 0 : index
    %3 = vector.load %arg15[%c0_3, %c0_4, %c0_5] : memref<2x18x256xf32, #tpu.memory_space<vmem>>, vector<2x18x256xf32>
    tpu.vector_store %arg15[%c0_3, %c0_4, %c0_5], %2 {strides = array<i32>} : memref<2x18x256xf32, #tpu.memory_space<vmem>>, vector<2x18x256xf32>,
    %c0_6 = arith.constant 0 : index
    %c0_7 = arith.constant 0 : index
    %4 = vector.load %arg3[%c0_6, %c0_7] : memref<16x8xf32, #tpu.memory_space<vmem>>, vector<16x8xf32>
    %c0_8 = arith.constant 0 : index
    %c0_9 = arith.constant 0 : index
    %c0_10 = arith.constant 0 : index
    %5 = vector.load %arg1[%c0_8, %c0_9, %c0_10] : memref<2x8x64xf32, #tpu.memory_space<vmem>>, vector<1x8x64xf32>
    %6 = vector.shape_cast %5 : vector<1x8x64xf32> to vector<8x64xf32>
    %cst_11 = arith.constant dense<0.000000e+00> : vector<16x64xf32>
    %7 = tpu.matmul %4, %6, %cst_11 {dimension_numbers = #tpu.dot_dimension_numbers<[1], [0], [0], [1], [0, 0, 1, 1], [], []>} : vector<16x8xf32>, vector<8x64xf32>, vector<16x64xf32> -> vector<16x64xf32>
    %c0_12 = arith.constant 0 : index
    %c1 = arith.constant 1 : index
    %c0_13 = arith.constant 0 : index
    %8 = vector.load %arg15[%c0_12, %c1, %c0_13] : memref<2x18x256xf32, #tpu.memory_space<vmem>>, vector<1x16x64xf32>
    %9 = vector.shape_cast %8 : vector<1x16x64xf32> to vector<16x64xf32>
    %10 = vector.shape_cast %7 : vector<16x64xf32> to vector<1x16x64xf32>
    tpu.vector_store %arg15[%c0_12, %c1, %c0_13], %10 {strides = array<i32>} : memref<2x18x256xf32, #tpu.memory_space<vmem>>, vector<1x16x64xf32>,
    %c0_14 = arith.constant 0 : index
    %c0_15 = arith.constant 0 : index
    %c0_16 = arith.constant 0 : index
    %11 = vector.load %arg2[%c0_14, %c0_15, %c0_16] : memref<2x16x32xf32, #tpu.memory_space<vmem>>, vector<1x16x32xf32>
    %12 = vector.shape_cast %11 : vector<1x16x32xf32> to vector<16x32xf32>
    %c0_17 = arith.constant 0 : index
    %c1_18 = arith.constant 1 : index
    %c128 = arith.constant 128 : index
    %13 = vector.load %arg15[%c0_17, %c1_18, %c128] : memref<2x18x256xf32, #tpu.memory_space<vmem>>, vector<1x16x32xf32>
    %14 = vector.shape_cast %13 : vector<1x16x32xf32> to vector<16x32xf32>
    %15 = vector.shape_cast %12 : vector<16x32xf32> to vector<1x16x32xf32>
    tpu.vector_store %arg15[%c0_17, %c1_18, %c128], %15 {strides = array<i32>} : memref<2x18x256xf32, #tpu.memory_space<vmem>>, vector<1x16x32xf32>,
    %c1_19 = arith.constant 1 : index
    %c0_20 = arith.constant 0 : index
    %c0_21 = arith.constant 0 : index
    %16 = vector.load %arg1[%c1_19, %c0_20, %c0_21] : memref<2x8x64xf32, #tpu.memory_space<vmem>>, vector<1x8x64xf32>
    %17 = vector.shape_cast %16 : vector<1x8x64xf32> to vector<8x64xf32>
    %cst_22 = arith.constant dense<0.000000e+00> : vector<16x64xf32>
    %18 = tpu.matmul %4, %17, %cst_22 {dimension_numbers = #tpu.dot_dimension_numbers<[1], [0], [0], [1], [0, 0, 1, 1], [], []>} : vector<16x8xf32>, vector<8x64xf32>, vector<16x64xf32> -> vector<16x64xf32>
    %c1_23 = arith.constant 1 : index
    %c1_24 = arith.constant 1 : index
    %c0_25 = arith.constant 0 : index
    %19 = vector.load %arg15[%c1_23, %c1_24, %c0_25] : memref<2x18x256xf32, #tpu.memory_space<vmem>>, vector<1x16x64xf32>
    %20 = vector.shape_cast %19 : vector<1x16x64xf32> to vector<16x64xf32>
    %21 = vector.shape_cast %18 : vector<16x64xf32> to vector<1x16x64xf32>
    tpu.vector_store %arg15[%c1_23, %c1_24, %c0_25], %21 {strides = array<i32>} : memref<2x18x256xf32, #tpu.memory_space<vmem>>, vector<1x16x64xf32>,
    %c1_26 = arith.constant 1 : index
    %c0_27 = arith.constant 0 : index
    %c0_28 = arith.constant 0 : index
    %22 = vector.load %arg2[%c1_26, %c0_27, %c0_28] : memref<2x16x32xf32, #tpu.memory_space<vmem>>, vector<1x16x32xf32>
    %23 = vector.shape_cast %22 : vector<1x16x32xf32> to vector<16x32xf32>
    %c1_29 = arith.constant 1 : index
    %c1_30 = arith.constant 1 : index
    %c128_31 = arith.constant 128 : index
    %24 = vector.load %arg15[%c1_29, %c1_30, %c128_31] : memref<2x18x256xf32, #tpu.memory_space<vmem>>, vector<1x16x32xf32>
    %25 = vector.shape_cast %24 : vector<1x16x32xf32> to vector<16x32xf32>
    %26 = vector.shape_cast %23 : vector<16x32xf32> to vector<1x16x32xf32>
    tpu.vector_store %arg15[%c1_29, %c1_30, %c128_31], %26 {strides = array<i32>} : memref<2x18x256xf32, #tpu.memory_space<vmem>>, vector<1x16x32xf32>,
    %c0_32 = arith.constant 0 : index
    %c0_33 = arith.constant 0 : index
    %27 = vector.load %arg4[%c0_32, %c0_33] : memref<768x32xbf16, #tpu.memory_space<vmem>>, vector<768x32xbf16>
    %c0_34 = arith.constant 0 : index
    %c0_35 = arith.constant 0 : index
    %28 = vector.load %arg5[%c0_34, %c0_35] : memref<1x32xf32, #tpu.memory_space<vmem>>, vector<1x32xf32>
    %c0_36 = arith.constant 0 : index
    %c0_37 = arith.constant 0 : index
    %29 = vector.load %arg6[%c0_36, %c0_37] : memref<1x32xf32, #tpu.memory_space<vmem>>, vector<1x32xf32>
    %c0_38 = arith.constant 0 : index
    %c0_39 = arith.constant 0 : index
    %30 = vector.load %arg7[%c0_38, %c0_39] : memref<1x32xf32, #tpu.memory_space<vmem>>, vector<1x32xf32>
    %c0_40 = arith.constant 0 : index
    %c0_41 = arith.constant 0 : index
    %c0_42 = arith.constant 0 : index
    %31 = vector.load %arg15[%c0_40, %c0_41, %c0_42] : memref<2x18x256xf32, #tpu.memory_space<vmem>>, vector<2x16x256xf32>
    %c0_43 = arith.constant 0 : index
    %c1_44 = arith.constant 1 : index
    %c0_45 = arith.constant 0 : index
    %32 = vector.load %arg15[%c0_43, %c1_44, %c0_45] : memref<2x18x256xf32, #tpu.memory_space<vmem>>, vector<2x16x256xf32>
    %c0_46 = arith.constant 0 : index
    %c2 = arith.constant 2 : index
    %c0_47 = arith.constant 0 : index
    %33 = vector.load %arg15[%c0_46, %c2, %c0_47] : memref<2x18x256xf32, #tpu.memory_space<vmem>>, vector<2x16x256xf32>
    %34 = tpu.concatenate %31, %32, %33 in 2 : vector<2x16x256xf32>, vector<2x16x256xf32>, vector<2x16x256xf32> -> vector<2x16x768xf32>
    %35 = vector.shape_cast %34 : vector<2x16x768xf32> to vector<32x768xf32>
    %36 = arith.truncf %35 : vector<32x768xf32> to vector<32x768xbf16>
    %cst_48 = arith.constant dense<0.000000e+00> : vector<32x32xf32>
    %37 = tpu.matmul %36, %27, %cst_48 {dimension_numbers = #tpu.dot_dimension_numbers<[1], [0], [0], [1], [0, 0, 1, 1], [], []>} : vector<32x768xbf16>, vector<768x32xbf16>, vector<32x32xf32> -> vector<32x32xf32>
    %38 = vector.broadcast %28 : vector<1x32xf32> to vector<32x32xf32>
    %39 = arith.addf %37, %38 : vector<32x32xf32>
    %cst_49 = arith.constant dense<0.000000e+00> : vector<32xf32>
    %40 = vector.multi_reduction <add>, %39, %cst_49 [0] : vector<32x32xf32> to vector<32xf32>
    %41 = vector.shape_cast %40 : vector<32xf32> to vector<1x32xf32>
    %cst_50 = arith.constant 3.200000e+01 : f32
    %42 = vector.broadcast %cst_50 : f32 to vector<1x32xf32>
    %43 = arith.divf %41, %42 : vector<1x32xf32>
    %44 = vector.broadcast %43 : vector<1x32xf32> to vector<32x32xf32>
    %45 = arith.subf %39, %44 : vector<32x32xf32>
    %46 = arith.mulf %45, %45 : vector<32x32xf32>
    %cst_51 = arith.constant dense<0.000000e+00> : vector<32xf32>
    %47 = vector.multi_reduction <add>, %46, %cst_51 [0] : vector<32x32xf32> to vector<32xf32>
    %48 = vector.shape_cast %47 : vector<32xf32> to vector<1x32xf32>
    %cst_52 = arith.constant 3.200000e+01 : f32
    %49 = vector.broadcast %cst_52 : f32 to vector<1x32xf32>
    %50 = arith.divf %48, %49 : vector<1x32xf32>
    %51 = vector.broadcast %43 : vector<1x32xf32> to vector<32x32xf32>
    %52 = arith.subf %39, %51 : vector<32x32xf32>
    %cst_53 = arith.constant 9.99999974E-6 : f32
    %53 = vector.broadcast %cst_53 : f32 to vector<1x32xf32>
    %54 = arith.addf %50, %53 : vector<1x32xf32>
    %55 = math.rsqrt %54 : vector<1x32xf32>
    %56 = vector.broadcast %55 : vector<1x32xf32> to vector<32x32xf32>
    %57 = arith.mulf %52, %56 : vector<32x32xf32>
    %58 = vector.broadcast %29 : vector<1x32xf32> to vector<32x32xf32>
    %59 = arith.mulf %57, %58 : vector<32x32xf32>
    %60 = vector.broadcast %30 : vector<1x32xf32> to vector<32x32xf32>
    %61 = arith.addf %59, %60 : vector<32x32xf32>
    %cst_54 = arith.constant 0.000000e+00 : f32
    %62 = vector.broadcast %cst_54 : f32 to vector<32x32xf32>
    %63 = arith.maximumf %61, %62 : vector<32x32xf32>
    %c0_55 = arith.constant 0 : index
    %c0_56 = arith.constant 0 : index
    %64 = vector.load %arg8[%c0_55, %c0_56] : memref<384x32xbf16, #tpu.memory_space<vmem>>, vector<384x32xbf16>
    %c0_57 = arith.constant 0 : index
    %c0_58 = arith.constant 0 : index
    %65 = vector.load %arg9[%c0_57, %c0_58] : memref<1x32xf32, #tpu.memory_space<vmem>>, vector<1x32xf32>
    %c0_59 = arith.constant 0 : index
    %c0_60 = arith.constant 0 : index
    %66 = vector.load %arg10[%c0_59, %c0_60] : memref<1x32xf32, #tpu.memory_space<vmem>>, vector<1x32xf32>
    %c0_61 = arith.constant 0 : index
    %c0_62 = arith.constant 0 : index
    %67 = vector.load %arg11[%c0_61, %c0_62] : memref<1x32xf32, #tpu.memory_space<vmem>>, vector<1x32xf32>
    %cst_63 = arith.constant 0.000000e+00 : f32
    %68 = vector.broadcast %cst_63 : f32 to vector<2x18x128xf32>
    %c0_64 = arith.constant 0 : index
    %c0_65 = arith.constant 0 : index
    %c0_66 = arith.constant 0 : index
    %69 = vector.load %arg16[%c0_64, %c0_65, %c0_66] : memref<2x18x128xf32, #tpu.memory_space<vmem>>, vector<2x18x128xf32>
    tpu.vector_store %arg16[%c0_64, %c0_65, %c0_66], %68 {strides = array<i32>} : memref<2x18x128xf32, #tpu.memory_space<vmem>>, vector<2x18x128xf32>,
    %70 = vector.shape_cast %63 : vector<32x32xf32> to vector<2x16x32xf32>
    %c0_67 = arith.constant 0 : index
    %c1_68 = arith.constant 1 : index
    %c0_69 = arith.constant 0 : index
    %71 = vector.load %arg16[%c0_67, %c1_68, %c0_69] : memref<2x18x128xf32, #tpu.memory_space<vmem>>, vector<2x16x32xf32>
    tpu.vector_store %arg16[%c0_67, %c1_68, %c0_69], %70 {strides = array<i32>} : memref<2x18x128xf32, #tpu.memory_space<vmem>>, vector<2x16x32xf32>,
    %c0_70 = arith.constant 0 : index
    %c0_71 = arith.constant 0 : index
    %c0_72 = arith.constant 0 : index
    %72 = vector.load %arg16[%c0_70, %c0_71, %c0_72] : memref<2x18x128xf32, #tpu.memory_space<vmem>>, vector<2x16x128xf32>
    %c0_73 = arith.constant 0 : index
    %c1_74 = arith.constant 1 : index
    %c0_75 = arith.constant 0 : index
    %73 = vector.load %arg16[%c0_73, %c1_74, %c0_75] : memref<2x18x128xf32, #tpu.memory_space<vmem>>, vector<2x16x128xf32>
    %c0_76 = arith.constant 0 : index
    %c2_77 = arith.constant 2 : index
    %c0_78 = arith.constant 0 : index
    %74 = vector.load %arg16[%c0_76, %c2_77, %c0_78] : memref<2x18x128xf32, #tpu.memory_space<vmem>>, vector<2x16x128xf32>
    %75 = tpu.concatenate %72, %73, %74 in 2 : vector<2x16x128xf32>, vector<2x16x128xf32>, vector<2x16x128xf32> -> vector<2x16x384xf32>
    %76 = vector.shape_cast %75 : vector<2x16x384xf32> to vector<32x384xf32>
    %77 = arith.truncf %76 : vector<32x384xf32> to vector<32x384xbf16>
    %cst_79 = arith.constant dense<0.000000e+00> : vector<32x32xf32>
    %78 = tpu.matmul %77, %64, %cst_79 {dimension_numbers = #tpu.dot_dimension_numbers<[1], [0], [0], [1], [0, 0, 1, 1], [], []>} : vector<32x384xbf16>, vector<384x32xbf16>, vector<32x32xf32> -> vector<32x32xf32>
    %79 = vector.broadcast %65 : vector<1x32xf32> to vector<32x32xf32>
    %80 = arith.addf %78, %79 : vector<32x32xf32>
    %cst_80 = arith.constant dense<0.000000e+00> : vector<32xf32>
    %81 = vector.multi_reduction <add>, %80, %cst_80 [0] : vector<32x32xf32> to vector<32xf32>
    %82 = vector.shape_cast %81 : vector<32xf32> to vector<1x32xf32>
    %cst_81 = arith.constant 3.200000e+01 : f32
    %83 = vector.broadcast %cst_81 : f32 to vector<1x32xf32>
    %84 = arith.divf %82, %83 : vector<1x32xf32>
    %85 = vector.broadcast %84 : vector<1x32xf32> to vector<32x32xf32>
    %86 = arith.subf %80, %85 : vector<32x32xf32>
    %87 = arith.mulf %86, %86 : vector<32x32xf32>
    %cst_82 = arith.constant dense<0.000000e+00> : vector<32xf32>
    %88 = vector.multi_reduction <add>, %87, %cst_82 [0] : vector<32x32xf32> to vector<32xf32>
    %89 = vector.shape_cast %88 : vector<32xf32> to vector<1x32xf32>
    %cst_83 = arith.constant 3.200000e+01 : f32
    %90 = vector.broadcast %cst_83 : f32 to vector<1x32xf32>
    %91 = arith.divf %89, %90 : vector<1x32xf32>
    %92 = vector.broadcast %84 : vector<1x32xf32> to vector<32x32xf32>
    %93 = arith.subf %80, %92 : vector<32x32xf32>
    %cst_84 = arith.constant 9.99999974E-6 : f32
    %94 = vector.broadcast %cst_84 : f32 to vector<1x32xf32>
    %95 = arith.addf %91, %94 : vector<1x32xf32>
    %96 = math.rsqrt %95 : vector<1x32xf32>
    %97 = vector.broadcast %96 : vector<1x32xf32> to vector<32x32xf32>
    %98 = arith.mulf %93, %97 : vector<32x32xf32>
    %99 = vector.broadcast %66 : vector<1x32xf32> to vector<32x32xf32>
    %100 = arith.mulf %98, %99 : vector<32x32xf32>
    %101 = vector.broadcast %67 : vector<1x32xf32> to vector<32x32xf32>
    %102 = arith.addf %100, %101 : vector<32x32xf32>
    %cst_85 = arith.constant 0.000000e+00 : f32
    %103 = vector.broadcast %cst_85 : f32 to vector<32x32xf32>
    %104 = arith.maximumf %102, %103 : vector<32x32xf32>
    %105 = vector.shape_cast %104 : vector<32x32xf32> to vector<2x16x32xf32>
    %106 = vector.shape_cast %0 : vector<1x32xf32> to vector<1x1x32xf32>
    %107 = vector.broadcast %106 : vector<1x1x32xf32> to vector<2x16x32xf32>
    %108 = arith.mulf %105, %107 : vector<2x16x32xf32>
    %cst_86 = arith.constant dense<0.000000e+00> : vector<2x16xf32>
    %109 = vector.multi_reduction <add>, %108, %cst_86 [2] : vector<2x16x32xf32> to vector<2x16xf32>
    %110 = vector.broadcast %1 : vector<1x1xf32> to vector<2x16xf32>
    %111 = arith.addf %109, %110 : vector<2x16xf32>
    %c0_87 = arith.constant 0 : index
    %c0_88 = arith.constant 0 : index
    %112 = vector.load %arg14[%c0_87, %c0_88] : memref<2x16xf32, #tpu.memory_space<vmem>>, vector<2x16xf32>
    tpu.vector_store %arg14[%c0_87, %c0_88], %111 {strides = array<i32>} : memref<2x16xf32, #tpu.memory_space<vmem>>, vector<2x16xf32>,
    return
  }
  func.func @transform_0(%arg0: i32) -> (i32, i32, i32) {
    %c0_i32 = arith.constant 0 : i32
    %c0_i32_0 = arith.constant 0 : i32
    %c0_i32_1 = arith.constant 0 : i32
    %c0_i32_2 = arith.constant 0 : i32
    return %c0_i32, %c0_i32_0, %c0_i32_1 : i32, i32, i32
  }
  func.func @transform_1(%arg0: i32) -> (i32, i32, i32) {
    %c0_i32 = arith.constant 0 : i32
    %c0_i32_0 = arith.constant 0 : i32
    %c0_i32_1 = arith.constant 0 : i32
    %c0_i32_2 = arith.constant 0 : i32
    return %c0_i32, %c0_i32_0, %c0_i32_1 : i32, i32, i32
  }
  func.func @transform_2(%arg0: i32) -> (i32, i32) {
    %c0_i32 = arith.constant 0 : i32
    %c0_i32_0 = arith.constant 0 : i32
    %c0_i32_1 = arith.constant 0 : i32
    return %c0_i32, %c0_i32_0 : i32, i32
  }
  func.func @transform_3(%arg0: i32) -> (i32, i32) {
    %c0_i32 = arith.constant 0 : i32
    %c0_i32_0 = arith.constant 0 : i32
    %c0_i32_1 = arith.constant 0 : i32
    return %c0_i32, %c0_i32_0 : i32, i32
  }
  func.func @transform_4(%arg0: i32) -> (i32, i32) {
    %c0_i32 = arith.constant 0 : i32
    %c0_i32_0 = arith.constant 0 : i32
    %c0_i32_1 = arith.constant 0 : i32
    return %c0_i32, %c0_i32_0 : i32, i32
  }
  func.func @transform_5(%arg0: i32) -> (i32, i32) {
    %c0_i32 = arith.constant 0 : i32
    %c0_i32_0 = arith.constant 0 : i32
    %c0_i32_1 = arith.constant 0 : i32
    return %c0_i32, %c0_i32_0 : i32, i32
  }
  func.func @transform_6(%arg0: i32) -> (i32, i32) {
    %c0_i32 = arith.constant 0 : i32
    %c0_i32_0 = arith.constant 0 : i32
    %c0_i32_1 = arith.constant 0 : i32
    return %c0_i32, %c0_i32_0 : i32, i32
  }
  func.func @transform_7(%arg0: i32) -> (i32, i32) {
    %c0_i32 = arith.constant 0 : i32
    %c0_i32_0 = arith.constant 0 : i32
    %c0_i32_1 = arith.constant 0 : i32
    return %c0_i32, %c0_i32_0 : i32, i32
  }
  func.func @transform_8(%arg0: i32) -> (i32, i32) {
    %c0_i32 = arith.constant 0 : i32
    %c0_i32_0 = arith.constant 0 : i32
    %c0_i32_1 = arith.constant 0 : i32
    return %c0_i32, %c0_i32_0 : i32, i32
  }
  func.func @transform_9(%arg0: i32) -> (i32, i32) {
    %c0_i32 = arith.constant 0 : i32
    %c0_i32_0 = arith.constant 0 : i32
    %c0_i32_1 = arith.constant 0 : i32
    return %c0_i32, %c0_i32_0 : i32, i32
  }
  func.func @transform_10(%arg0: i32) -> (i32, i32) {
    %c0_i32 = arith.constant 0 : i32
    %c0_i32_0 = arith.constant 0 : i32
    %c0_i32_1 = arith.constant 0 : i32
    return %c0_i32, %c0_i32_0 : i32, i32
  }
  func.func @transform_11(%arg0: i32) -> (i32, i32) {
    %c0_i32 = arith.constant 0 : i32
    %c0_i32_0 = arith.constant 0 : i32
    %c0_i32_1 = arith.constant 0 : i32
    return %c0_i32, %c0_i32_0 : i32, i32
  }
  func.func @transform_12(%arg0: i32) -> (i32, i32) {
    %c0_i32 = arith.constant 0 : i32
    %c0_i32_0 = arith.constant 0 : i32
    %c0_i32_1 = arith.constant 0 : i32
    return %c0_i32, %c0_i32_0 : i32, i32
  }
  func.func @transform_13(%arg0: i32) -> (i32, i32) {
    %c0_i32 = arith.constant 0 : i32
    %c0_i32_0 = arith.constant 0 : i32
    %c0_i32_1 = arith.constant 0 : i32
    return %c0_i32, %c0_i32_0 : i32, i32
  }
}

</mosaic_0001>

<bundles_post_ra>
// kernel: diffusion_unet_forward.8
= control target key start
LH: loop header
LB: loop body
LE: loop exit
PB: predicated region body
PF: predicated region fallthrough
CT: control target
= control target key end

     0   :  { %v921_v3 = vmov 0.0   ;;  %vm45_vm0 = vcmask 261120   ;;  %v922_v43 = vmov 16.0   ;;  %vm297_vm1 = vcmask 523264   ;;  %s1183_s1 = inlined_call_operand.vmem [shape: bf16[384,64], index: 1, kind: input, shape index: {}]   ;;  %s1184_s0 = inlined_call_operand.vmem [shape: f32[2,16,32], index: 0, kind: input, shape index: {}]   ;;  %s1185_s2 = inlined_call_operand.vmem [shape: f32[1,64], index: 2, kind: input, shape index: {}]   ;;  %s1186_s3 = inlined_call_operand.vmem [shape: f32[1,64], index: 3, kind: input, shape index: {}]   ;;  %s1187_s4 = inlined_call_operand.vmem [shape: f32[1,64], index: 4, kind: input, shape index: {}]   ;;  %s1188_s5 = inlined_call_operand.vmem [shape: bf16[384,64], index: 5, kind: input, shape index: {}]   ;;  %s1189_s6 = inlined_call_operand.vmem [shape: f32[1,64], index: 6, kind: input, shape index: {}]   ;;  %s1190_s7 = inlined_call_operand.vmem [shape: f32[1,64], index: 7, kind: input, shape index: {}]   ;;  %s1191_s8 = inlined_call_operand.vmem [shape: f32[1,64], index: 8, kind: input, shape index: {}]   ;;  %s1192_s9 = inlined_call_operand.vmem [shape: f32[2,8,64], index: 9, kind: output, shape index: {}]  }
   0x1   :  { %v866_v0 = vld [vmem:[%s1183_s1 + $0x38] sm:$0xff]  ;;  %32 = vst [vmem:[#allocation2] sm:$0xff] %v921_v3  ;;  %v865_v4 = vld [vmem:[%s1183_s1 + $0x30] sm:$0xff]  ;;  %v864_v7 = vld [vmem:[%s1183_s1 + $0x28] sm:$0xff]  ;;  %915 = vrcp.f32 %v922_v43 }
   0x2   :  { %v874_v1 = vld [vmem:[%s1183_s1 + $0x78] sm:$0xff]  ;;  %33 = vst [vmem:[#allocation2 + $0x8] sm:$0x3] %v921_v3  ;;  %255 = vmatpush.bf16.msra.mxu0 %v866_v0  ;;  %v873_v5 = vld [vmem:[%s1183_s1 + $0x70] sm:$0xff]  ;;  %v872_v8 = vld [vmem:[%s1183_s1 + $0x68] sm:$0xff] }
   0x3   :  { %v882_v2 = vld [vmem:[%s1183_s1 + $0xb8] sm:$0xff]  ;;  %269 = vmatpush.bf16.msra.mxu1 %v874_v1  ;;  %34 = vst [vmem:[#allocation2 + $0x10] sm:$0xff] %v921_v3  ;;  %v881_v6 = vld [vmem:[%s1183_s1 + $0xb0] sm:$0xff]  ;;  %v880_v9 = vld [vmem:[%s1183_s1 + $0xa8] sm:$0xff] }
   0x4   :  { %283 = vmatpush.bf16.msra.mxu2 %v882_v2  ;;  %35 = vst [vmem:[#allocation2 + $0x18] sm:$0x3] %v921_v3  ;;  %v36_v10 = vld [vmem:[%s1184_s0] ss:$2 sm:$0xff]  ;;  %v664_v11 = vld [vmem:[%s1184_s0 + $0x10] ss:$2 sm:$0xff] }
   0x5   :  { %405 = vst [vmem:[#allocation3] sm:$0xff] %v921_v3  ;;  %v665_v12 = vld [vmem:[%s1184_s0 + $0x1] ss:$2 sm:$0xff]  ;;  %v666_v13 = vld [vmem:[%s1184_s0 + $0x11] ss:$2 sm:$0xff] }
   0x6   :  { %406 = vst [vmem:[#allocation3 + $0x8] sm:$0x3] %v921_v3  ;;  %256 = vmatpush.bf16.msra.mxu0 %v865_v4  ;;  %v43_v14 = vmax.f32 %v36_v10, %v665_v12  ;;  %v863_v15 = vld [vmem:[%s1183_s1 + $0x20] sm:$0xff]  ;;  %v44_v17 = vmax.f32 %v664_v11, %v666_v13  ;;  %v862_v19 = vld [vmem:[%s1183_s1 + $0x18] sm:$0xff]  ;;  %v861_v22 = vld [vmem:[%s1183_s1 + $0x10] sm:$0xff] }
   0x7   :  { %270 = vmatpush.bf16.msra.mxu1 %v873_v5  ;;  %407 = vst [vmem:[#allocation3 + $0x10] sm:$0xff] %v921_v3  ;;  %v871_v16 = vld [vmem:[%s1183_s1 + $0x60] sm:$0xff]  ;;  %v870_v20 = vld [vmem:[%s1183_s1 + $0x58] sm:$0xff]  ;;  %v869_v23 = vld [vmem:[%s1183_s1 + $0x50] sm:$0xff]  ;;  %v916_v49 = vpop.eup %915 }
   0x8   :  { %284 = vmatpush.bf16.msra.mxu2 %v881_v6  ;;  %408 = vst [vmem:[#allocation3 + $0x18] sm:$0x3] %v921_v3  ;;  %v879_v18 = vld [vmem:[%s1183_s1 + $0xa0] sm:$0xff]  ;;  %v878_v21 = vld [vmem:[%s1183_s1 + $0x98] sm:$0xff]  ;;  %v877_v24 = vld [vmem:[%s1183_s1 + $0x90] sm:$0xff]  ;;  %v308_v53 = vmul.f32 16.0, %v916_v49  ;;  %vm312_vm2 = vweird.f32 %v916_v49 }
   0x9   :  { %46 = vst.msk [vmem:[#allocation2 + $0x1] sm:$0xff] %vm45_vm0, %v43_v14  ;;  %v860_v25 = vld [vmem:[%s1183_s1 + $0x8] sm:$0xff]  ;;  %v859_v28 = vld [vmem:[%s1183_s1] sm:$0xff]  ;;  %v890_v4 = vld [vmem:[%s1188_s5 + $0x38] sm:$0xff] }
   0xa   :  { %257 = vmatpush.bf16.msra.mxu0 %v864_v7  ;;  %47 = vst.msk [vmem:[#allocation2 + $0x11] sm:$0xff] %vm45_vm0, %v44_v17  ;;  %v868_v26 = vld [vmem:[%s1183_s1 + $0x48] sm:$0xff]  ;;  %v867_v29 = vld [vmem:[%s1183_s1 + $0x40] sm:$0xff]  ;;  %v309_v58 = vsub.f32 1.0, %v308_v53  ;;  %v898_v5 = vld [vmem:[%s1188_s5 + $0x78] sm:$0xff]  ;;  %567 = vmatpush.bf16.msra.mxu3 %v890_v4 }
   0xb   :  { %271 = vmatpush.bf16.msra.mxu1 %v872_v8  ;;  %v876_v27 = vld [vmem:[%s1183_s1 + $0x88] sm:$0xff]  ;;  %v875_v34 = vld [vmem:[%s1183_s1 + $0x80] sm:$0xff]  ;;  %v906_v6 = vld [vmem:[%s1188_s5 + $0xb8] sm:$0xff] }
   0xc   :  { %285 = vmatpush.bf16.msra.mxu2 %v880_v9  ;;  %v909_v41 = vld [vmem:[%s1185_s2] ss:$0 sm:$0xff]  ;;  %v310_v61 = vmul.f32 %v916_v49, %v309_v58  ;;  %v889_v9 = vld [vmem:[%s1188_s5 + $0x30] sm:$0xff]  ;;  %v896_v17 = vld [vmem:[%s1188_s5 + $0x68] sm:$0xff] }
   0xd   :  { %v897_v10 = vld [vmem:[%s1188_s5 + $0x70] sm:$0xff]  ;;  %v891_v43 = vld [vmem:[%s1188_s5 + $0x40] sm:$0xff] }
   0xe   :  { %258 = vmatpush.bf16.msra.mxu0 %v863_v15  ;;  %v311_v0 = vadd.f32 %v916_v49, %v310_v61  ;;  %v905_v11 = vld [vmem:[%s1188_s5 + $0xb0] sm:$0xff]  ;;  %568 = vmatpush.bf16.msra.mxu3 %v889_v9 }
   0xf   :  { %272 = vmatpush.bf16.msra.mxu1 %v871_v16  ;;  %v888_v16 = vld [vmem:[%s1188_s5 + $0x28] sm:$0xff] }
  0x10   :  { %286 = vmatpush.bf16.msra.mxu2 %v879_v18  ;;  %v99_v30 = vld [vmem:[#allocation2] sm:$0xff]  ;;  %v1064_v3 = vsel %vm312_vm2, %v916_v49, %v311_v0  ;;  %v904_v18 = vld [vmem:[%s1188_s5 + $0xa8] sm:$0xff] }
  0x11   :  { %v100_v31 = vld [vmem:[#allocation2 + $0x10] sm:$0xff]  ;;  %v101_v32 = vld [vmem:[#allocation2 + $0x1] sm:$0xff] }
  0x12   :  { %259 = vmatpush.bf16.msra.mxu0 %v862_v19  ;;  %v102_v33 = vld [vmem:[#allocation2 + $0x11] sm:$0xff]  ;;  %v103_v35 = vld [vmem:[#allocation2 + $0x2] sm:$0xff]  ;;  %v105_v37 = vpack.c.bf16 %v100_v31, %v99_v30  ;;  %569 = vmatpush.bf16.msra.mxu3 %v888_v16 }
  0x13   :  { %273 = vmatpush.bf16.msra.mxu1 %v870_v20  ;;  %v104_v36 = vld [vmem:[#allocation2 + $0x12] sm:$0xff]  ;;  %v106_v38 = vpack.c.bf16 %v102_v33, %v101_v32 }
  0x14   :  { %287 = vmatpush.bf16.msra.mxu2 %v878_v21  ;;  %v107_v39 = vpack.c.bf16 %v104_v36, %v103_v35  ;;  %v902_v30 = vld [vmem:[%s1188_s5 + $0x98] sm:$0xff]  ;;  %v885_v33 = vld [vmem:[%s1188_s5 + $0x10] sm:$0xff] }
  0x15   :  { %v901_v35 = vld [vmem:[%s1188_s5 + $0x90] sm:$0xff] }
  0x16   :  { %260 = vmatpush.bf16.msra.mxu0 %v861_v22 }
  0x17   :  { %274 = vmatpush.bf16.msra.mxu1 %v869_v23  ;;  %v887_v23 = vld [vmem:[%s1188_s5 + $0x20] sm:$0xff] }
  0x18   :  { %288 = vmatpush.bf16.msra.mxu2 %v877_v24  ;;  %v895_v24 = vld [vmem:[%s1188_s5 + $0x60] sm:$0xff]  ;;  %570 = vmatpush.bf16.msra.mxu3 %v887_v23 }
  0x1a   :  { %261 = vmatpush.bf16.msra.mxu0 %v860_v25  ;;  %v903_v25 = vld [vmem:[%s1188_s5 + $0xa0] sm:$0xff] }
  0x1b   :  { %275 = vmatpush.bf16.msra.mxu1 %v868_v26 }
  0x1c   :  { %289 = vmatpush.bf16.msra.mxu2 %v876_v27 }
  0x1e   :  { %262 = vmatpush.bf16.msra.mxu0 %v859_v28  ;;  %v886_v28 = vld [vmem:[%s1188_s5 + $0x18] sm:$0xff] }
  0x1f   :  { %276 = vmatpush.bf16.msra.mxu1 %v867_v29  ;;  %v894_v29 = vld [vmem:[%s1188_s5 + $0x58] sm:$0xff]  ;;  %571 = vmatpush.bf16.msra.mxu3 %v886_v28 }
  0x20   :  { %290 = vmatpush.bf16.msra.mxu2 %v875_v34  ;;  %v893_v34 = vld [vmem:[%s1188_s5 + $0x50] sm:$0xff] }
  0x21   :  { %263 = vmatmul.bf16.vlgmr.msra.gmra.mxu0 %v105_v37  ;;  %v884_v37 = vld [vmem:[%s1188_s5 + $0x8] sm:$0xff] }
  0x22   :  { %277 = vmatmul.bf16.vlgmr.msra.gmra.mxu1 %v106_v38  ;;  %581 = vmatpush.bf16.msrb.mxu0 %v898_v5  ;;  %v892_v38 = vld [vmem:[%s1188_s5 + $0x48] sm:$0xff] }
  0x23   :  { %291 = vmatmul.bf16.vlgmr.msra.gmra.mxu2 %v107_v39  ;;  %595 = vmatpush.bf16.msrb.mxu1 %v906_v6  ;;  %v900_v39 = vld [vmem:[%s1188_s5 + $0x88] sm:$0xff] }
  0x24   :  { %572 = vmatpush.bf16.msra.mxu3 %v885_v33 }
  0x26   :  { %582 = vmatpush.bf16.msrb.mxu0 %v897_v10 }
  0x27   :  { %596 = vmatpush.bf16.msrb.mxu1 %v905_v11 }
  0x28   :  { %573 = vmatpush.bf16.msra.mxu3 %v884_v37 }
  0x2a   :  { %583 = vmatpush.bf16.msrb.mxu0 %v896_v17 }
  0x2b   :  { %597 = vmatpush.bf16.msrb.mxu1 %v904_v18 }
  0x2e   :  { %584 = vmatpush.bf16.msrb.mxu0 %v895_v24 }
  0x2f   :  { %598 = vmatpush.bf16.msrb.mxu1 %v903_v25 }
  0x32   :  { %585 = vmatpush.bf16.msrb.mxu0 %v894_v29 }
  0x33   :  { %599 = vmatpush.bf16.msrb.mxu1 %v902_v30 }
  0x36   :  { %586 = vmatpush.bf16.msrb.mxu0 %v893_v34 }
  0x37   :  { %600 = vmatpush.bf16.msrb.mxu1 %v901_v35 }
  0x3a   :  { %587 = vmatpush.bf16.msrb.mxu0 %v892_v38 }
  0x3b   :  { %601 = vmatpush.bf16.msrb.mxu1 %v900_v39 }
  0x3e   :  { %588 = vmatpush.bf16.msrb.mxu0 %v891_v43 }
  0x9e   :  { %v264_v40 = vpop.f32.mrf.mxu0 }
  0x9f   :  { %v278_v42 = vpop.f32.mrf.mxu1  ;;  %v265_v44 = vadd.f32 %v909_v41, %v264_v40 }
  0xa1   :  { %v279_v47 = vadd.f32 %v278_v42, %v265_v44  ;;  %v883_v42 = vld [vmem:[%s1188_s5] sm:$0xff] }
  0xa2   :  { %v899_v44 = vld [vmem:[%s1188_s5 + $0x80] sm:$0xff]  ;;  %574 = vmatpush.bf16.msra.mxu3 %v883_v42 }
  0xa3   :  { %602 = vmatpush.bf16.msrb.mxu1 %v899_v44 }
  0xa6   :  { %v292_v45 = vpop.f32.mrf.mxu2  ;;  %v266_v46 = vpop.f32.mrf.mxu0 }
  0xa7   :  { %v267_v48 = vadd.f32 %v909_v41, %v266_v46  ;;  %v280_v50 = vpop.f32.mrf.mxu1  ;;  %v293_v51 = vadd.f32 %v292_v45, %v279_v47 }
  0xa9   :  { %v281_v52 = vadd.f32 %v280_v50, %v267_v48  ;;  %v298_v56 = vsel %vm297_vm1, %v293_v51, 0.0 }
  0xae   :  { %v294_v54 = vpop.f32.mrf.mxu2 }
  0xaf   :  { %v295_v55 = vadd.f32 %v294_v54, %v281_v52 }
  0xb1   :  { %v299_v57 = vsel %vm297_vm1, %v295_v55, 0.0 }
  0xb2   :  { %v300_v59 = vadd.f32 %v299_v57, %v298_v56 }
  0xb4   :  { %v301_v60 = vrot.slane %v300_v59, 4 }
  0xb6   :  { %v302_v62 = vadd.f32 %v301_v60, %v300_v59 }
  0xb8   :  { %v303_v63 = vrot.slane %v302_v62, 2 }
  0xba   :  { %v304_v1 = vadd.f32 %v303_v63, %v302_v62 }
  0xbc   :  { %v305_v2 = vrot.slane %v304_v1, 1 }
  0xbe   :  { %v306_v7 = vadd.f32 %v305_v2, %v304_v1 }
  0xc0   :  { %v314_v8 = vmul.f32 %v1064_v3, %v306_v7 }
  0xc2   :  { %v1085_v12 = vsub.f32 %v293_v51, %v314_v8  ;;  %v1087_v13 = vsub.f32 %v295_v55, %v314_v8  ;;  %v910_v51 = vld [vmem:[%s1186_s3] ss:$0 sm:$0xff] }
  0xc3   :  { %v911_v55 = vld [vmem:[%s1187_s4] ss:$0 sm:$0xff] }
  0xc4   :  { %v317_v14 = vmul.f32 %v1085_v12, %v1085_v12  ;;  %v318_v15 = vmul.f32 %v1087_v13, %v1087_v13  ;;  %v912_v8 = vld [vmem:[%s1189_s6] ss:$0 sm:$0xff] }
  0xc6   :  { %v319_v19 = vsel %vm297_vm1, %v317_v14, 0.0  ;;  %v320_v20 = vsel %vm297_vm1, %v318_v15, 0.0 }
  0xc7   :  { %v321_v21 = vadd.f32 %v320_v20, %v319_v19 }
  0xc9   :  { %v322_v22 = vrot.slane %v321_v21, 4 }
  0xcb   :  { %v323_v26 = vadd.f32 %v322_v22, %v321_v21 }
  0xcd   :  { %v324_v27 = vrot.slane %v323_v26, 2 }
  0xcf   :  { %v325_v31 = vadd.f32 %v324_v27, %v323_v26 }
  0xd1   :  { %v326_v32 = vrot.slane %v325_v31, 1 }
  0xd3   :  { %v327_v36 = vadd.f32 %v326_v32, %v325_v31 }
  0xd5   :  { %v328_v40 = vmul.f32 %v327_v36, %v1064_v3 }
  0xd7   :  { %v329_v41 = vadd.f32 1e-05, %v328_v40 }
  0xd9   :  { %917 = vrsqrt.f32 %v329_v41  ;;  %vm336_vm4 = vweird.f32 %v329_v41 }
  0xdf   :  { %v918_v45 = vpop.eup %917 }
  0xe0   :  { %v331_v46 = vmul.f32 %v918_v45, %v329_v41  ;;  %vm337_vm3 = vweird.f32 %v918_v45 }
  0xe1   :  { %vm338_vm5 = vmor %vm336_vm4, %vm337_vm3 }
  0xe2   :  { %v332_v47 = vmul.f32 %v918_v45, %v331_v46 }
  0xe4   :  { %v333_v48 = vmul.f32 0.5, %v332_v47 }
  0xe6   :  { %v334_v49 = vsub.f32 1.5, %v333_v48 }
  0xe8   :  { %v335_v50 = vmul.f32 %v918_v45, %v334_v49 }
  0xea   :  { %v339_v52 = vsel %vm338_vm5, %v918_v45, %v335_v50 }
  0xeb   :  { %v340_v53 = vmul.f32 %v339_v52, %v1085_v12  ;;  %v341_v54 = vmul.f32 %v339_v52, %v1087_v13  ;;  %v913_v52 = vld [vmem:[%s1190_s7] ss:$0 sm:$0xff] }
  0xed   :  { %v345_v56 = vmul.f32 %v910_v51, %v340_v53  ;;  %v346_v57 = vmul.f32 %v910_v51, %v341_v54 }
  0xef   :  { %v350_v58 = vadd.f32 %v911_v55, %v345_v56  ;;  %v351_v59 = vadd.f32 %v911_v55, %v346_v57 }
  0xf1   :  { %v352_v60 = vmax.f32 %v350_v58, 0.0  ;;  %v353_v61 = vmax.f32 %v351_v59, 0.0 }
  0xf3   :  { %409 = vst.msk [vmem:[#allocation3 + $0x1] sm:$0xff] %vm297_vm1, %v352_v60 }
  0xf4   :  { %410 = vst.msk [vmem:[#allocation3 + $0x11] sm:$0xff] %vm297_vm1, %v353_v61 }
  0xfa   :  { %v411_v62 = vld [vmem:[#allocation3] sm:$0xff] }
  0xfb   :  { %v413_v63 = vld [vmem:[#allocation3 + $0x1] sm:$0xff]  ;;  %v412_v1 = vld [vmem:[#allocation3 + $0x10] sm:$0xff] }
  0xfc   :  { %v415_v0 = vld [vmem:[#allocation3 + $0x2] sm:$0xff]  ;;  %v414_v2 = vld [vmem:[#allocation3 + $0x11] sm:$0xff]  ;;  %v417_v5 = vpack.c.bf16 %v412_v1, %v411_v62 }
  0xfd   :  { %v416_v4 = vld [vmem:[#allocation3 + $0x12] sm:$0xff]  ;;  %v418_v6 = vpack.c.bf16 %v414_v2, %v413_v63 }
  0xfe   :  { %v419_v7 = vpack.c.bf16 %v416_v4, %v415_v0  ;;  %575 = vmatmul.bf16.vlgmr.msra.gmra.mxu3 %v417_v5 }
  0xff   :  { %589 = vmatmul.bf16.vlgmr.msrb.gmra.mxu0 %v418_v6 }
 0x100   :  { %603 = vmatmul.bf16.vlgmr.msrb.gmra.mxu1 %v419_v7 }
 0x17c   :  { %v590_v9 = vpop.f32.mrf.mxu0 }
 0x17d   :  { %v604_v11 = vpop.f32.mrf.mxu1 }
 0x181   :  { %v576_v10 = vpop.f32.mrf.mxu3 }
 0x182   :  { %v577_v12 = vadd.f32 %v912_v8, %v576_v10 }
 0x184   :  { %v591_v13 = vadd.f32 %v590_v9, %v577_v12  ;;  %v592_v16 = vpop.f32.mrf.mxu0 }
 0x185   :  { %v606_v19 = vpop.f32.mrf.mxu1 }
 0x186   :  { %v605_v17 = vadd.f32 %v604_v11, %v591_v13 }
 0x188   :  { %v609_v21 = vsel %vm297_vm1, %v605_v17, 0.0 }
 0x189   :  { %v578_v14 = vpop.f32.mrf.mxu3 }
 0x18a   :  { %v579_v15 = vadd.f32 %v912_v8, %v578_v14 }
 0x18c   :  { %v593_v18 = vadd.f32 %v592_v16, %v579_v15 }
 0x18e   :  { %v607_v20 = vadd.f32 %v606_v19, %v593_v18 }
 0x190   :  { %v610_v22 = vsel %vm297_vm1, %v607_v20, 0.0 }
 0x191   :  { %v611_v23 = vadd.f32 %v610_v22, %v609_v21 }
 0x193   :  { %v612_v24 = vrot.slane %v611_v23, 4 }
 0x195   :  { %v613_v25 = vadd.f32 %v612_v24, %v611_v23 }
 0x197   :  { %v614_v26 = vrot.slane %v613_v25, 2 }
 0x199   :  { %v615_v27 = vadd.f32 %v614_v26, %v613_v25 }
 0x19b   :  { %v616_v28 = vrot.slane %v615_v27, 1 }
 0x19d   :  { %v617_v29 = vadd.f32 %v616_v28, %v615_v27 }
 0x19f   :  { %v618_v30 = vmul.f32 %v617_v29, %v1064_v3 }
 0x1a1   :  { %v619_v31 = vsub.f32 %v605_v17, %v618_v30  ;;  %v620_v32 = vsub.f32 %v607_v20, %v618_v30 }
 0x1a3   :  { %v621_v33 = vmul.f32 %v619_v31, %v619_v31  ;;  %v622_v34 = vmul.f32 %v620_v32, %v620_v32 }
 0x1a5   :  { %v623_v35 = vsel %vm297_vm1, %v621_v33, 0.0  ;;  %v624_v36 = vsel %vm297_vm1, %v622_v34, 0.0 }
 0x1a6   :  { %v625_v37 = vadd.f32 %v624_v36, %v623_v35 }
 0x1a8   :  { %v626_v38 = vrot.slane %v625_v37, 4 }
 0x1aa   :  { %v627_v39 = vadd.f32 %v626_v38, %v625_v37 }
 0x1ac   :  { %v628_v40 = vrot.slane %v627_v39, 2 }
 0x1ae   :  { %v629_v41 = vadd.f32 %v628_v40, %v627_v39 }
 0x1b0   :  { %v630_v42 = vrot.slane %v629_v41, 1 }
 0x1b2   :  { %v631_v43 = vadd.f32 %v630_v42, %v629_v41 }
 0x1b4   :  { %v632_v44 = vmul.f32 %v631_v43, %v1064_v3  ;;  %v914_v3 = vld [vmem:[%s1191_s8] ss:$0 sm:$0xff] }
 0x1b6   :  { %v633_v45 = vadd.f32 1e-05, %v632_v44 }
 0x1b8   :  { %919 = vrsqrt.f32 %v633_v45  ;;  %vm640_vm7 = vweird.f32 %v633_v45 }
 0x1be   :  { %v920_v46 = vpop.eup %919 }
 0x1bf   :  { %v635_v47 = vmul.f32 %v920_v46, %v633_v45  ;;  %vm641_vm6 = vweird.f32 %v920_v46 }
 0x1c0   :  { %vm642_vm8 = vmor %vm640_vm7, %vm641_vm6 }
 0x1c1   :  { %v636_v48 = vmul.f32 %v920_v46, %v635_v47 }
 0x1c3   :  { %v637_v49 = vmul.f32 0.5, %v636_v48 }
 0x1c5   :  { %v638_v50 = vsub.f32 1.5, %v637_v49 }
 0x1c7   :  { %v639_v51 = vmul.f32 %v920_v46, %v638_v50 }
 0x1c9   :  { %v643_v53 = vsel %vm642_vm8, %v920_v46, %v639_v51 }
 0x1ca   :  { %v644_v54 = vmul.f32 %v643_v53, %v619_v31  ;;  %v645_v55 = vmul.f32 %v643_v53, %v620_v32 }
 0x1cc   :  { %v649_v56 = vmul.f32 %v913_v52, %v644_v54  ;;  %v650_v57 = vmul.f32 %v913_v52, %v645_v55 }
 0x1ce   :  { %v654_v58 = vadd.f32 %v914_v3, %v649_v56  ;;  %v655_v59 = vadd.f32 %v914_v3, %v650_v57 }
 0x1d0   :  { %v656_v60 = vmax.f32 %v654_v58, 0.0  ;;  %v657_v61 = vmax.f32 %v655_v59, 0.0 }
 0x1d2   :  { %658 = vst.msk [vmem:[%s1192_s9] sm:$0xff] %vm297_vm1, %v656_v60 }
 0x1d3   :  { %659 = vst.msk [vmem:[%s1192_s9 + $0x8] sm:$0xff] %vm297_vm1, %v657_v61 }

// kernel: diffusion_unet_forward.9
= control target key start
LH: loop header
LB: loop body
LE: loop exit
PB: predicated region body
PF: predicated region fallthrough
CT: control target
= control target key end

     0   :  { %v939_v3 = vmov 0.0   ;;  %vm43_vm0 = vcmask 519168   ;;  %vm111_vm1 = vcmask 1043456   ;;  %v940_v47 = vmov 8.0   ;;  %s1186_s1 = inlined_call_operand.vmem [shape: bf16[384,128], index: 1, kind: input, shape index: {}]   ;;  %s1187_s0 = inlined_call_operand.vmem [shape: f32[2,8,64], index: 0, kind: input, shape index: {}]   ;;  %s1188_s2 = inlined_call_operand.vmem [shape: f32[1,128], index: 2, kind: input, shape index: {}]   ;;  %s1189_s3 = inlined_call_operand.vmem [shape: f32[1,128], index: 3, kind: input, shape index: {}]   ;;  %s1190_s4 = inlined_call_operand.vmem [shape: f32[1,128], index: 4, kind: input, shape index: {}]   ;;  %s1191_s5 = inlined_call_operand.vmem [shape: bf16[384,128], index: 5, kind: input, shape index: {}]   ;;  %s1192_s6 = inlined_call_operand.vmem [shape: f32[1,128], index: 6, kind: input, shape index: {}]   ;;  %s1193_s7 = inlined_call_operand.vmem [shape: f32[1,128], index: 7, kind: input, shape index: {}]   ;;  %s1194_s8 = inlined_call_operand.vmem [shape: f32[1,128], index: 8, kind: input, shape index: {}]   ;;  %s1195_s9 = inlined_call_operand.vmem [shape: f32[2,4,128], index: 9, kind: output, shape index: {}]  }
   0x1   :  { %v884_v0 = vld [vmem:[%s1186_s1 + $0x38] sm:$0xff]  ;;  %32 = vst [vmem:[#allocation2] sm:$0x3f] %v939_v3  ;;  %v883_v4 = vld [vmem:[%s1186_s1 + $0x30] sm:$0xff]  ;;  %v882_v7 = vld [vmem:[%s1186_s1 + $0x28] sm:$0xff]  ;;  %933 = vrcp.f32 %v940_v47 }
   0x2   :  { %v892_v1 = vld [vmem:[%s1186_s1 + $0x78] sm:$0xff]  ;;  %33 = vst [vmem:[#allocation2 + $0x8] sm:$0x3f] %v939_v3  ;;  %277 = vmatpush.bf16.msra.mxu0 %v884_v0  ;;  %v891_v5 = vld [vmem:[%s1186_s1 + $0x70] sm:$0xff]  ;;  %v890_v8 = vld [vmem:[%s1186_s1 + $0x68] sm:$0xff] }
   0x3   :  { %v900_v2 = vld [vmem:[%s1186_s1 + $0xb8] sm:$0xff]  ;;  %290 = vmatpush.bf16.msra.mxu1 %v892_v1  ;;  %411 = vst [vmem:[#allocation3] sm:$0x3f] %v939_v3  ;;  %v899_v6 = vld [vmem:[%s1186_s1 + $0xb0] sm:$0xff]  ;;  %v898_v9 = vld [vmem:[%s1186_s1 + $0xa8] sm:$0xff] }
   0x4   :  { %303 = vmatpush.bf16.msra.mxu2 %v900_v2  ;;  %412 = vst [vmem:[#allocation3 + $0x8] sm:$0x3f] %v939_v3  ;;  %v34_v10 = vld [vmem:[%s1187_s0] ss:$2 sm:$0xf]  ;;  %v880_v19 = vld [vmem:[%s1186_s1 + $0x18] sm:$0xff] }
   0x5   :  { %v682_v11 = vld [vmem:[%s1187_s0 + $0x8] ss:$2 sm:$0xf]  ;;  %v683_v12 = vld [vmem:[%s1187_s0 + $0x1] ss:$2 sm:$0xf] }
   0x6   :  { %278 = vmatpush.bf16.msra.mxu0 %v883_v4  ;;  %v684_v13 = vld [vmem:[%s1187_s0 + $0x9] ss:$2 sm:$0xf]  ;;  %v881_v14 = vld [vmem:[%s1186_s1 + $0x20] sm:$0xff]  ;;  %v41_v16 = vmax.f32 %v34_v10, %v683_v12  ;;  %v888_v20 = vld [vmem:[%s1186_s1 + $0x58] sm:$0xff] }
   0x7   :  { %291 = vmatpush.bf16.msra.mxu1 %v891_v5  ;;  %v889_v15 = vld [vmem:[%s1186_s1 + $0x60] sm:$0xff]  ;;  %v42_v17 = vmax.f32 %v682_v11, %v684_v13  ;;  %v896_v21 = vld [vmem:[%s1186_s1 + $0x98] sm:$0xff]  ;;  %v879_v22 = vld [vmem:[%s1186_s1 + $0x10] sm:$0xff]  ;;  %v934_v49 = vpop.eup %933 }
   0x8   :  { %304 = vmatpush.bf16.msra.mxu2 %v899_v6  ;;  %v897_v18 = vld [vmem:[%s1186_s1 + $0xa0] sm:$0xff]  ;;  %44 = vst.msk [vmem:[#allocation2 + $0x1] sm:$0xf] %vm43_vm0, %v41_v16  ;;  %v887_v23 = vld [vmem:[%s1186_s1 + $0x50] sm:$0xff]  ;;  %v878_v33 = vld [vmem:[%s1186_s1 + $0x8] sm:$0xff]  ;;  %v323_v53 = vmul.f32 8.0, %v934_v49  ;;  %vm327_vm2 = vweird.f32 %v934_v49 }
   0x9   :  { %45 = vst.msk [vmem:[#allocation2 + $0x9] sm:$0xf] %vm43_vm0, %v42_v17  ;;  %v895_v24 = vld [vmem:[%s1186_s1 + $0x90] sm:$0xff]  ;;  %v886_v34 = vld [vmem:[%s1186_s1 + $0x48] sm:$0xff]  ;;  %v877_v38 = vld [vmem:[%s1186_s1] sm:$0xff] }
   0xa   :  { %279 = vmatpush.bf16.msra.mxu0 %v882_v7  ;;  %v894_v36 = vld [vmem:[%s1186_s1 + $0x88] sm:$0xff]  ;;  %v885_v39 = vld [vmem:[%s1186_s1 + $0x40] sm:$0xff]  ;;  %v324_v56 = vsub.f32 1.0, %v323_v53  ;;  %v908_v11 = vld [vmem:[%s1191_s5 + $0x38] sm:$0xff] }
   0xb   :  { %292 = vmatpush.bf16.msra.mxu1 %v890_v8  ;;  %v893_v40 = vld [vmem:[%s1186_s1 + $0x80] sm:$0xff]  ;;  %v924_v8 = vld [vmem:[%s1191_s5 + $0xb8] sm:$0xff]  ;;  %v923_v13 = vld [vmem:[%s1191_s5 + $0xb0] sm:$0xff]  ;;  %597 = vmatpush.bf16.msra.mxu3 %v908_v11 }
   0xc   :  { %305 = vmatpush.bf16.msra.mxu2 %v898_v9  ;;  %v927_v48 = vld [vmem:[%s1188_s2] ss:$0 sm:$0xff]  ;;  %v325_v61 = vmul.f32 %v934_v49, %v324_v56  ;;  %v916_v12 = vld [vmem:[%s1191_s5 + $0x78] sm:$0xff]  ;;  %v907_v16 = vld [vmem:[%s1191_s5 + $0x30] sm:$0xff] }
   0xd   :  { %v915_v17 = vld [vmem:[%s1191_s5 + $0x70] sm:$0xff]  ;;  %v928_v47 = vld [vmem:[%s1189_s3] ss:$0 sm:$0xff] }
   0xe   :  { %280 = vmatpush.bf16.msra.mxu0 %v881_v14  ;;  %v326_v0 = vadd.f32 %v934_v49, %v325_v61 }
   0xf   :  { %293 = vmatpush.bf16.msra.mxu1 %v889_v15  ;;  %v97_v25 = vld [vmem:[#allocation2] sm:$0xf]  ;;  %598 = vmatpush.bf16.msra.mxu3 %v907_v16 }
  0x10   :  { %306 = vmatpush.bf16.msra.mxu2 %v897_v18  ;;  %v99_v26 = vld [vmem:[#allocation2 + $0x1] sm:$0xf]  ;;  %v98_v28 = vld [vmem:[#allocation2 + $0x8] sm:$0xf]  ;;  %v1080_v4 = vsel %vm327_vm2, %v934_v49, %v326_v0 }
  0x11   :  { %v101_v27 = vld [vmem:[#allocation2 + $0x2] sm:$0xf]  ;;  %v100_v29 = vld [vmem:[#allocation2 + $0x9] sm:$0xf]  ;;  %v109_v30 = vrot.slane %v99_v26, 4  ;;  %v905_v26 = vld [vmem:[%s1191_s5 + $0x20] sm:$0xff] }
  0x12   :  { %281 = vmatpush.bf16.msra.mxu0 %v880_v19  ;;  %v110_v31 = vrot.slane %v100_v29, 4  ;;  %v102_v32 = vld [vmem:[#allocation2 + $0xa] sm:$0xf]  ;;  %118 = vst [vmem:[#allocation1 + $0x10] ss:$2 sm:$0xff] %v101_v27  ;;  %v922_v18 = vld [vmem:[%s1191_s5 + $0xa8] sm:$0xff] }
  0x13   :  { %294 = vmatpush.bf16.msra.mxu1 %v888_v20  ;;  %v112_v35 = vsel %vm111_vm1, %v97_v25, %v109_v30  ;;  %120 = vst [vmem:[#allocation1 + $0x11] ss:$2 sm:$0xff] %v102_v32  ;;  %v913_v27 = vld [vmem:[%s1191_s5 + $0x60] sm:$0xff]  ;;  %v904_v30 = vld [vmem:[%s1191_s5 + $0x18] sm:$0xff]  ;;  %v919_v32 = vld [vmem:[%s1191_s5 + $0x90] sm:$0xff] }
  0x14   :  { %307 = vmatpush.bf16.msra.mxu2 %v896_v21  ;;  %v113_v37 = vsel %vm111_vm1, %v98_v28, %v110_v31  ;;  %114 = vst [vmem:[#allocation1] ss:$2 sm:$0xff] %v112_v35  ;;  %v906_v21 = vld [vmem:[%s1191_s5 + $0x28] sm:$0xff]  ;;  %v920_v28 = vld [vmem:[%s1191_s5 + $0x98] sm:$0xff] }
  0x15   :  { %116 = vst [vmem:[#allocation1 + $0x1] ss:$2 sm:$0xff] %v113_v37  ;;  %599 = vmatpush.bf16.msra.mxu3 %v906_v21  ;;  %v912_v31 = vld [vmem:[%s1191_s5 + $0x58] sm:$0xff]  ;;  %v918_v35 = vld [vmem:[%s1191_s5 + $0x88] sm:$0xff] }
  0x16   :  { %282 = vmatpush.bf16.msra.mxu0 %v879_v22  ;;  %v914_v22 = vld [vmem:[%s1191_s5 + $0x68] sm:$0xff] }
  0x17   :  { %295 = vmatpush.bf16.msra.mxu1 %v887_v23  ;;  %v921_v23 = vld [vmem:[%s1191_s5 + $0xa0] sm:$0xff]  ;;  %v902_v37 = vld [vmem:[%s1191_s5 + $0x8] sm:$0xff] }
  0x18   :  { %308 = vmatpush.bf16.msra.mxu2 %v895_v24 }
  0x19   :  { %600 = vmatpush.bf16.msra.mxu3 %v905_v26 }
  0x1a   :  { %283 = vmatpush.bf16.msra.mxu0 %v878_v33  ;;  %v123_v41 = vld.sshfl [vmem:[#allocation1 + $0x10] sm:$0xff pattern:$0x75316420] }
  0x1b   :  { %296 = vmatpush.bf16.msra.mxu1 %v886_v34  ;;  %v129_v44 = vpack.c.bf16 %v123_v41, %v123_v41  ;;  %v903_v33 = vld [vmem:[%s1191_s5 + $0x10] sm:$0xff] }
  0x1c   :  { %309 = vmatpush.bf16.msra.mxu2 %v894_v36  ;;  %v121_v42 = vld.sshfl [vmem:[#allocation1] sm:$0xff pattern:$0x75316420]  ;;  %v122_v43 = vld.sshfl [vmem:[#allocation1 + $0x8] sm:$0xff pattern:$0x75316420] }
  0x1d   :  { %v127_v45 = vpack.c.bf16 %v121_v42, %v121_v42  ;;  %v128_v46 = vpack.c.bf16 %v122_v43, %v122_v43  ;;  %601 = vmatpush.bf16.msra.mxu3 %v904_v30  ;;  %v911_v34 = vld [vmem:[%s1191_s5 + $0x50] sm:$0xff]  ;;  %v901_v42 = vld [vmem:[%s1191_s5] sm:$0xff] }
  0x1e   :  { %284 = vmatpush.bf16.msra.mxu0 %v877_v38  ;;  %v910_v38 = vld [vmem:[%s1191_s5 + $0x48] sm:$0xff]  ;;  %v909_v43 = vld [vmem:[%s1191_s5 + $0x40] sm:$0xff] }
  0x1f   :  { %297 = vmatpush.bf16.msra.mxu1 %v885_v39 }
  0x20   :  { %310 = vmatpush.bf16.msra.mxu2 %v893_v40  ;;  %v917_v40 = vld [vmem:[%s1191_s5 + $0x80] sm:$0xff] }
  0x21   :  { %285 = vmatmul.bf16.vlgmr.msra.gmra.mxu0 %v127_v45  ;;  %602 = vmatpush.bf16.msra.mxu3 %v903_v33 }
  0x22   :  { %298 = vmatmul.bf16.vlgmr.msra.gmra.mxu1 %v128_v46  ;;  %610 = vmatpush.bf16.msrb.mxu0 %v916_v12 }
  0x23   :  { %311 = vmatmul.bf16.vlgmr.msra.gmra.mxu2 %v129_v44  ;;  %623 = vmatpush.bf16.msrb.mxu1 %v924_v8 }
  0x25   :  { %603 = vmatpush.bf16.msra.mxu3 %v902_v37 }
  0x26   :  { %611 = vmatpush.bf16.msrb.mxu0 %v915_v17 }
  0x27   :  { %624 = vmatpush.bf16.msrb.mxu1 %v923_v13 }
  0x29   :  { %604 = vmatpush.bf16.msra.mxu3 %v901_v42 }
  0x2a   :  { %612 = vmatpush.bf16.msrb.mxu0 %v914_v22 }
  0x2b   :  { %625 = vmatpush.bf16.msrb.mxu1 %v922_v18 }
  0x2e   :  { %613 = vmatpush.bf16.msrb.mxu0 %v913_v27 }
  0x2f   :  { %626 = vmatpush.bf16.msrb.mxu1 %v921_v23 }
  0x32   :  { %614 = vmatpush.bf16.msrb.mxu0 %v912_v31 }
  0x33   :  { %627 = vmatpush.bf16.msrb.mxu1 %v920_v28 }
  0x36   :  { %615 = vmatpush.bf16.msrb.mxu0 %v911_v34 }
  0x37   :  { %628 = vmatpush.bf16.msrb.mxu1 %v919_v32 }
  0x3a   :  { %616 = vmatpush.bf16.msrb.mxu0 %v910_v38 }
  0x3b   :  { %629 = vmatpush.bf16.msrb.mxu1 %v918_v35 }
  0x3e   :  { %617 = vmatpush.bf16.msrb.mxu0 %v909_v43 }
  0x3f   :  { %630 = vmatpush.bf16.msrb.mxu1 %v917_v40 }
  0x9e   :  { %v286_v50 = vpop.f32.mrf.mxu0 }
  0x9f   :  { %v299_v51 = vpop.f32.mrf.mxu1  ;;  %v287_v52 = vadd.f32 %v927_v48, %v286_v50  ;;  %v929_v50 = vld [vmem:[%s1190_s4] ss:$0 sm:$0xff] }
  0xa1   :  { %v300_v54 = vadd.f32 %v299_v51, %v287_v52 }
  0xa6   :  { %v312_v55 = vpop.f32.mrf.mxu2  ;;  %v288_v58 = vpop.f32.mrf.mxu0 }
  0xa7   :  { %v313_v57 = vadd.f32 %v312_v55, %v300_v54  ;;  %v301_v59 = vpop.f32.mrf.mxu1 }
  0xa9   :  { %v316_v60 = vrot.slane %v313_v57, 4 }
  0xab   :  { %v317_v62 = vadd.f32 %v316_v60, %v313_v57 }
  0xad   :  { %v318_v63 = vrot.slane %v317_v62, 2 }
  0xae   :  { %v314_v1 = vpop.f32.mrf.mxu2 }
  0xaf   :  { %v319_v2 = vadd.f32 %v318_v63, %v317_v62 }
  0xb1   :  { %v320_v3 = vrot.slane %v319_v2, 1 }
  0xb3   :  { %v321_v5 = vadd.f32 %v320_v3, %v319_v2 }
  0xb5   :  { %v329_v6 = vmul.f32 %v1080_v4, %v321_v5 }
  0xb7   :  { %v1083_v7 = vsub.f32 %v313_v57, %v329_v6 }
  0xb9   :  { %v331_v9 = vmul.f32 %v1083_v7, %v1083_v7 }
  0xbb   :  { %v332_v10 = vrot.slane %v331_v9, 4 }
  0xbd   :  { %v333_v14 = vadd.f32 %v332_v10, %v331_v9  ;;  %v930_v10 = vld [vmem:[%s1192_s6] ss:$0 sm:$0xff] }
  0xbf   :  { %v334_v15 = vrot.slane %v333_v14, 2 }
  0xc1   :  { %v335_v19 = vadd.f32 %v334_v15, %v333_v14 }
  0xc3   :  { %v336_v20 = vrot.slane %v335_v19, 1 }
  0xc5   :  { %v337_v24 = vadd.f32 %v336_v20, %v335_v19 }
  0xc7   :  { %v338_v25 = vmul.f32 %v337_v24, %v1080_v4 }
  0xc9   :  { %v339_v29 = vadd.f32 1e-05, %v338_v25 }
  0xcb   :  { %935 = vrsqrt.f32 %v339_v29  ;;  %vm346_vm4 = vweird.f32 %v339_v29 }
  0xd1   :  { %v936_v36 = vpop.eup %935 }
  0xd2   :  { %v341_v39 = vmul.f32 %v936_v36, %v339_v29  ;;  %vm347_vm3 = vweird.f32 %v936_v36 }
  0xd3   :  { %vm348_vm5 = vmor %vm346_vm4, %vm347_vm3 }
  0xd4   :  { %v342_v41 = vmul.f32 %v936_v36, %v341_v39 }
  0xd6   :  { %v343_v44 = vmul.f32 0.5, %v342_v41  ;;  %v931_v41 = vld [vmem:[%s1193_s7] ss:$0 sm:$0xff] }
  0xd8   :  { %v344_v45 = vsub.f32 1.5, %v343_v44 }
  0xda   :  { %v345_v46 = vmul.f32 %v936_v36, %v344_v45 }
  0xdc   :  { %v349_v48 = vsel %vm348_vm5, %v936_v36, %v345_v46 }
  0xdd   :  { %v350_v49 = vmul.f32 %v349_v48, %v1083_v7 }
  0xdf   :  { %v354_v51 = vmul.f32 %v928_v47, %v350_v49 }
  0xe1   :  { %v358_v52 = vadd.f32 %v929_v50, %v354_v51 }
  0xe3   :  { %v359_v53 = vmax.f32 %v358_v52, 0.0 }
  0xe5   :  { %v414_v54 = vrot.slane %v359_v53, 4  ;;  %416 = vst [vmem:[#allocation3 + $0x1] sm:$0xf] %v359_v53 }
  0xe7   :  { %417 = vst [vmem:[#allocation3 + $0x9] sm:$0xf] %v414_v54 }
  0xec   :  { %v422_v55 = vld [vmem:[#allocation3 + $0x2] sm:$0xf] }
  0xed   :  { %v420_v56 = vld [vmem:[#allocation3 + $0x1] sm:$0xf]  ;;  %438 = vst [vmem:[#allocation1 + $0x10] ss:$2 sm:$0xff] %v422_v55 }
  0xee   :  { %v430_v57 = vrot.slane %v420_v56, 4  ;;  %v423_v58 = vld [vmem:[#allocation3 + $0xa] sm:$0xf]  ;;  %v418_v59 = vld [vmem:[#allocation3] sm:$0xf] }
  0xef   :  { %v421_v60 = vld [vmem:[#allocation3 + $0x9] sm:$0xf]  ;;  %440 = vst [vmem:[#allocation1 + $0x11] ss:$2 sm:$0xff] %v423_v58 }
  0xf0   :  { %v431_v61 = vrot.slane %v421_v60, 4  ;;  %v432_v62 = vsel %vm111_vm1, %v418_v59, %v430_v57  ;;  %v419_v63 = vld [vmem:[#allocation3 + $0x8] sm:$0xf] }
  0xf1   :  { %434 = vst [vmem:[#allocation1] ss:$2 sm:$0xff] %v432_v62 }
  0xf2   :  { %v433_v0 = vsel %vm111_vm1, %v419_v63, %v431_v61 }
  0xf3   :  { %436 = vst [vmem:[#allocation1 + $0x1] ss:$2 sm:$0xff] %v433_v0 }
  0xf6   :  { %v443_v1 = vld.sshfl [vmem:[#allocation1 + $0x10] sm:$0xff pattern:$0x75316420] }
  0xf7   :  { %v449_v2 = vpack.c.bf16 %v443_v1, %v443_v1 }
  0xf9   :  { %631 = vmatmul.bf16.vlgmr.msrb.gmra.mxu1 %v449_v2 }
  0xfa   :  { %v441_v3 = vld.sshfl [vmem:[#allocation1] sm:$0xff pattern:$0x75316420]  ;;  %v442_v5 = vld.sshfl [vmem:[#allocation1 + $0x8] sm:$0xff pattern:$0x75316420] }
  0xfb   :  { %v447_v6 = vpack.c.bf16 %v441_v3, %v441_v3  ;;  %v448_v7 = vpack.c.bf16 %v442_v5, %v442_v5 }
  0xfd   :  { %605 = vmatmul.bf16.vlgmr.msra.gmra.mxu3 %v447_v6  ;;  %618 = vmatmul.bf16.vlgmr.msrb.gmra.mxu0 %v448_v7 }
 0x176   :  { %v632_v8 = vpop.f32.mrf.mxu1 }
 0x17a   :  { %v619_v9 = vpop.f32.mrf.mxu0 }
 0x17e   :  { %v634_v11 = vpop.f32.mrf.mxu1 }
 0x180   :  { %v606_v12 = vpop.f32.mrf.mxu3 }
 0x181   :  { %v607_v13 = vadd.f32 %v930_v10, %v606_v12 }
 0x182   :  { %v621_v14 = vpop.f32.mrf.mxu0 }
 0x183   :  { %v620_v15 = vadd.f32 %v619_v9, %v607_v13 }
 0x185   :  { %v633_v16 = vadd.f32 %v632_v8, %v620_v15 }
 0x187   :  { %v636_v17 = vrot.slane %v633_v16, 4 }
 0x188   :  { %v608_v18 = vpop.f32.mrf.mxu3 }
 0x189   :  { %v637_v19 = vadd.f32 %v636_v17, %v633_v16 }
 0x18b   :  { %v638_v20 = vrot.slane %v637_v19, 2 }
 0x18d   :  { %v639_v21 = vadd.f32 %v638_v20, %v637_v19 }
 0x18f   :  { %v640_v22 = vrot.slane %v639_v21, 1 }
 0x191   :  { %v641_v23 = vadd.f32 %v640_v22, %v639_v21 }
 0x193   :  { %v642_v24 = vmul.f32 %v641_v23, %v1080_v4 }
 0x195   :  { %v643_v25 = vsub.f32 %v633_v16, %v642_v24 }
 0x197   :  { %v644_v26 = vmul.f32 %v643_v25, %v643_v25 }
 0x199   :  { %v645_v27 = vrot.slane %v644_v26, 4 }
 0x19b   :  { %v646_v28 = vadd.f32 %v645_v27, %v644_v26 }
 0x19d   :  { %v647_v29 = vrot.slane %v646_v28, 2 }
 0x19f   :  { %v648_v30 = vadd.f32 %v647_v29, %v646_v28 }
 0x1a1   :  { %v649_v31 = vrot.slane %v648_v30, 1 }
 0x1a3   :  { %v650_v32 = vadd.f32 %v649_v31, %v648_v30 }
 0x1a5   :  { %v651_v33 = vmul.f32 %v650_v32, %v1080_v4  ;;  %v932_v4 = vld [vmem:[%s1194_s8] ss:$0 sm:$0xff] }
 0x1a7   :  { %v652_v34 = vadd.f32 1e-05, %v651_v33 }
 0x1a9   :  { %937 = vrsqrt.f32 %v652_v34  ;;  %vm659_vm7 = vweird.f32 %v652_v34 }
 0x1af   :  { %v938_v35 = vpop.eup %937 }
 0x1b0   :  { %v654_v36 = vmul.f32 %v938_v35, %v652_v34  ;;  %vm660_vm6 = vweird.f32 %v938_v35 }
 0x1b1   :  { %vm661_vm8 = vmor %vm659_vm7, %vm660_vm6 }
 0x1b2   :  { %v655_v37 = vmul.f32 %v938_v35, %v654_v36 }
 0x1b4   :  { %v656_v38 = vmul.f32 0.5, %v655_v37 }
 0x1b6   :  { %v657_v39 = vsub.f32 1.5, %v656_v38 }
 0x1b8   :  { %v658_v40 = vmul.f32 %v938_v35, %v657_v39 }
 0x1ba   :  { %v662_v42 = vsel %vm661_vm8, %v938_v35, %v658_v40 }
 0x1bb   :  { %v663_v43 = vmul.f32 %v662_v42, %v643_v25 }
 0x1bd   :  { %v667_v44 = vmul.f32 %v931_v41, %v663_v43 }
 0x1bf   :  { %v671_v45 = vadd.f32 %v932_v4, %v667_v44 }
 0x1c1   :  { %v672_v46 = vmax.f32 %v671_v45, 0.0 }
 0x1c3   :  { %v674_v47 = vrot.slane %v672_v46, 4  ;;  %676 = vst [vmem:[%s1195_s9] sm:$0xf] %v672_v46 }
 0x1c5   :  { %677 = vst [vmem:[%s1195_s9 + $0x4] sm:$0xf] %v674_v47 }

// kernel: diffusion_unet_forward.7
= control target key start
LH: loop header
LB: loop body
LE: loop exit
PB: predicated region body
PF: predicated region fallthrough
CT: control target
= control target key end

     0   :  { %v1529_v3 = vmov 0.0   ;;  %vm55_vm0 = vcmask 1040384   ;;  %vm68_vm1 = vcmask 15361   ;;  %vm70_vm2 = vcmask 15360   ;;  %s1965_s2 = inlined_call_operand.vmem [shape: bf16[768,32], index: 2, kind: input, shape index: {}]   ;;  %s1966_s0 = inlined_call_operand.vmem [shape: f32[2,16,2], index: 0, kind: input, shape index: {}]   ;;  %s1967_s1 = inlined_call_operand.vmem [shape: f32[2,32], index: 1, kind: input, shape index: {}]   ;;  %s1968_s3 = inlined_call_operand.vmem [shape: f32[1,32], index: 3, kind: input, shape index: {}]   ;;  %s1969_s4 = inlined_call_operand.vmem [shape: f32[1,32], index: 4, kind: input, shape index: {}]   ;;  %s1970_s5 = inlined_call_operand.vmem [shape: f32[1,32], index: 5, kind: input, shape index: {}]   ;;  %s1971_s6 = inlined_call_operand.vmem [shape: bf16[384,32], index: 6, kind: input, shape index: {}]   ;;  %s1972_s7 = inlined_call_operand.vmem [shape: f32[1,32], index: 7, kind: input, shape index: {}]   ;;  %s1973_s8 = inlined_call_operand.vmem [shape: f32[1,32], index: 8, kind: input, shape index: {}]   ;;  %s1974_s9 = inlined_call_operand.vmem [shape: f32[1,32], index: 9, kind: input, shape index: {}]   ;;  %s1975_s10 = inlined_call_operand.vmem [shape: f32[2,16,32], index: 10, kind: output, shape index: {}]  }
   0x1   :  { %v1442_v0 = vld [vmem:[%s1965_s2 + $0x38] sm:$0xff]  ;;  %35 = vst [vmem:[#allocation2] sm:$0xff] %v1529_v3  ;;  %v1441_v5 = vld [vmem:[%s1965_s2 + $0x30] sm:$0xff]  ;;  %v1440_v9 = vld [vmem:[%s1965_s2 + $0x28] sm:$0xff]  ;;  %vm84_vm3 = vcmask 261121   ;;  %vm86_vm4 = vcmask 261120  }
   0x2   :  { %v1450_v1 = vld [vmem:[%s1965_s2 + $0x78] sm:$0xff]  ;;  %37 = vst [vmem:[#allocation2 + $0x10] sm:$0xff] %v1529_v3  ;;  %597 = vmatpush.bf16.msra.mxu0 %v1442_v0  ;;  %v1449_v6 = vld [vmem:[%s1965_s2 + $0x70] sm:$0xff]  ;;  %v1448_v10 = vld [vmem:[%s1965_s2 + $0x68] sm:$0xff]  ;;  %vm72_vm5 = vcmask 8192   ;;  %vm88_vm6 = vcmask 253952  }
   0x3   :  { %v1458_v2 = vld [vmem:[%s1965_s2 + $0xb8] sm:$0xff]  ;;  %616 = vmatpush.bf16.msra.mxu1 %v1450_v1  ;;  %36 = vst [vmem:[#allocation2 + $0x8] sm:$0xff] %v1529_v3  ;;  %v1457_v7 = vld [vmem:[%s1965_s2 + $0xb0] sm:$0xff]  ;;  %v1456_v11 = vld [vmem:[%s1965_s2 + $0xa8] sm:$0xff]  ;;  %vm228_vm7 = vcmask 1046528   ;;  %vm265_vm8 = vcmask 1045504  }
   0x4   :  { %v1466_v4 = vld [vmem:[%s1965_s2 + $0xf8] sm:$0xff]  ;;  %635 = vmatpush.bf16.msra.mxu2 %v1458_v2  ;;  %v1465_v8 = vld [vmem:[%s1965_s2 + $0xf0] sm:$0xff]  ;;  %38 = vst [vmem:[#allocation2 + $0x18] sm:$0xff] %v1529_v3  ;;  %v1464_v12 = vld [vmem:[%s1965_s2 + $0xe8] sm:$0xff] }
   0x5   :  { %654 = vmatpush.bf16.msra.mxu3 %v1466_v4  ;;  %39 = vst [vmem:[#allocation2 + $0x20] sm:$0x3] %v1529_v3  ;;  %v1439_v13 = vld [vmem:[%s1965_s2 + $0x20] sm:$0xff]  ;;  %v48_v18 = vld [vmem:[%s1966_s0 + $0x8] sm:$0xff]  ;;  %v1438_v21 = vld [vmem:[%s1965_s2 + $0x18] sm:$0xff] }
   0x6   :  { %40 = vst [vmem:[#allocation2 + $0x28] sm:$0x3] %v1529_v3  ;;  %598 = vmatpush.bf16.msra.mxu0 %v1441_v5  ;;  %v1447_v14 = vld [vmem:[%s1965_s2 + $0x60] sm:$0xff]  ;;  %v57_v20 = vrot.slane %v48_v18, 7  ;;  %v1446_v23 = vld [vmem:[%s1965_s2 + $0x58] sm:$0xff]  ;;  %v49_v27 = vld [vmem:[%s1966_s0 + $0x10] sm:$0xff] }
   0x7   :  { %617 = vmatpush.bf16.msra.mxu1 %v1449_v6  ;;  %41 = vst [vmem:[#allocation2 + $0x30] sm:$0xff] %v1529_v3  ;;  %v47_v15 = vld [vmem:[%s1966_s0] sm:$0xff]  ;;  %v1454_v24 = vld [vmem:[%s1965_s2 + $0x98] sm:$0xff]  ;;  %v1437_v30 = vld [vmem:[%s1965_s2 + $0x10] sm:$0xff]  ;;  %v59_v32 = vrot.slane %v49_v27, 7 }
   0x8   :  { %636 = vmatpush.bf16.msra.mxu2 %v1457_v7  ;;  %42 = vst [vmem:[#allocation2 + $0x38] sm:$0xff] %v1529_v3  ;;  %v1455_v16 = vld [vmem:[%s1965_s2 + $0xa0] sm:$0xff]  ;;  %v56_v19 = vrot.slane %v47_v15, 7  ;;  %v1462_v25 = vld [vmem:[%s1965_s2 + $0xd8] sm:$0xff]  ;;  %v1445_v31 = vld [vmem:[%s1965_s2 + $0x50] sm:$0xff] }
   0x9   :  { %655 = vmatpush.bf16.msra.mxu3 %v1465_v8  ;;  %43 = vst [vmem:[#allocation2 + $0x40] sm:$0xff] %v1529_v3  ;;  %v1463_v17 = vld [vmem:[%s1965_s2 + $0xe0] sm:$0xff]  ;;  %v50_v28 = vld [vmem:[%s1966_s0 + $0x18] sm:$0xff]  ;;  %v1453_v34 = vld [vmem:[%s1965_s2 + $0x90] sm:$0xff] }
   0xa   :  { %44 = vst [vmem:[#allocation2 + $0x48] sm:$0xff] %v1529_v3  ;;  %599 = vmatpush.bf16.msra.mxu0 %v1440_v9  ;;  %v77_v22 = vld [vmem:[%s1967_s1] sm:$0x3]  ;;  %v58_v26 = vsel %vm55_vm0, %v56_v19, %v57_v20  ;;  %v60_v33 = vrot.slane %v50_v28, 7  ;;  %v1461_v35 = vld [vmem:[%s1965_s2 + $0xd0] sm:$0xff]  ;;  %v1436_v37 = vld [vmem:[%s1965_s2 + $0x8] sm:$0xff] }
   0xb   :  { %618 = vmatpush.bf16.msra.mxu1 %v1448_v10  ;;  %45 = vst [vmem:[#allocation2 + $0x50] sm:$0x3] %v1529_v3  ;;  %v80_v29 = vperm.slane %v77_v22, 0  ;;  %v79_v36 = vrot.slane %v77_v22, 1  ;;  %v1444_v38 = vld [vmem:[%s1965_s2 + $0x48] sm:$0xff]  ;;  %v1435_v45 = vld [vmem:[%s1965_s2] sm:$0xff] }
   0xc   :  { %637 = vmatpush.bf16.msra.mxu2 %v1456_v11  ;;  %46 = vst [vmem:[#allocation2 + $0x58] sm:$0x3] %v1529_v3  ;;  %v1452_v39 = vld [vmem:[%s1965_s2 + $0x88] sm:$0xff]  ;;  %v61_v41 = vsel %vm55_vm0, %v59_v32, %v60_v33  ;;  %v1443_v46 = vld [vmem:[%s1965_s2 + $0x40] sm:$0xff]  ;;  %v1474_v55 = vld [vmem:[%s1965_s2 + $0x138] sm:$0xff] }
   0xd   :  { %656 = vmatpush.bf16.msra.mxu3 %v1464_v12  ;;  %838 = vst [vmem:[#allocation3] sm:$0xff] %v1529_v3  ;;  %v1460_v40 = vld [vmem:[%s1965_s2 + $0xc8] sm:$0xff]  ;;  %v81_v44 = vperm.slane %v79_v36, 0  ;;  %v1451_v47 = vld [vmem:[%s1965_s2 + $0x80] sm:$0xff]  ;;  %v1482_v56 = vld [vmem:[%s1965_s2 + $0x178] sm:$0xff] }
   0xe   :  { %69 = vst.msk [vmem:[#allocation2] sm:$0xfe] %vm68_vm1, %v56_v19  ;;  %600 = vmatpush.bf16.msra.mxu0 %v1439_v13  ;;  %v1459_v51 = vld [vmem:[%s1965_s2 + $0xc0] sm:$0xff]  ;;  %v1473_v4 = vld [vmem:[%s1965_s2 + $0x130] sm:$0xff]  ;;  %v1472_v9 = vld [vmem:[%s1965_s2 + $0x128] sm:$0xff] }
   0xf   :  { %619 = vmatpush.bf16.msra.mxu1 %v1447_v14  ;;  %839 = vst [vmem:[#allocation3 + $0x8] sm:$0xff] %v1529_v3  ;;  %v1481_v7 = vld [vmem:[%s1965_s2 + $0x170] sm:$0xff]  ;;  %v1480_v10 = vld [vmem:[%s1965_s2 + $0x168] sm:$0xff] }
  0x10   :  { %638 = vmatpush.bf16.msra.mxu2 %v1455_v16  ;;  %71 = vst.msk [vmem:[#allocation2 + $0x10] sm:$0xff] %vm70_vm2, %v58_v26 }
  0x11   :  { %657 = vmatpush.bf16.msra.mxu3 %v1463_v17  ;;  %840 = vst [vmem:[#allocation3 + $0x10] sm:$0x3] %v1529_v3  ;;  %v1471_v17 = vld [vmem:[%s1965_s2 + $0x120] sm:$0xff] }
  0x12   :  { %841 = vst [vmem:[#allocation3 + $0x18] sm:$0xff] %v1529_v3  ;;  %601 = vmatpush.bf16.msra.mxu0 %v1438_v21  ;;  %v1479_v21 = vld [vmem:[%s1965_s2 + $0x160] sm:$0xff] }
  0x13   :  { %620 = vmatpush.bf16.msra.mxu1 %v1446_v23  ;;  %842 = vst [vmem:[#allocation3 + $0x20] sm:$0xff] %v1529_v3 }
  0x14   :  { %639 = vmatpush.bf16.msra.mxu2 %v1454_v24  ;;  %843 = vst [vmem:[#allocation3 + $0x28] sm:$0x3] %v1529_v3 }
  0x15   :  { %658 = vmatpush.bf16.msra.mxu3 %v1462_v25  ;;  %85 = vst.msk [vmem:[#allocation2 + $0x8] sm:$0xfe] %vm84_vm3, %v80_v29  ;;  %v200_v43 = vld [vmem:[#allocation2] sm:$0xfe] }
  0x16   :  { %87 = vst.msk [vmem:[#allocation2 + $0x18] sm:$0xff] %vm86_vm4, %v80_v29  ;;  %602 = vmatpush.bf16.msra.mxu0 %v1437_v30  ;;  %v192_v48 = vld [vmem:[#allocation2] sm:$0xff]  ;;  %v229_v50 = vrot.slane %v200_v43, 1 }
  0x17   :  { %621 = vmatpush.bf16.msra.mxu1 %v1445_v31  ;;  %73 = vst.msk [vmem:[#allocation2 + $0x20] sm:$0x1] %vm72_vm5, %v57_v20  ;;  %v1710_v42 = vld [vmem:[#allocation2 + $0x10] sm:$0xff] }
  0x18   :  { %640 = vmatpush.bf16.msra.mxu2 %v1453_v34  ;;  %89 = vst.msk [vmem:[#allocation2 + $0x28] sm:$0x1] %vm88_vm6, %v80_v29  ;;  %v230_v49 = vrot.slane %v1710_v42, 1  ;;  %v294_v58 = vpack.c.bf16 %v1710_v42, %v192_v48  ;;  %v1470_v29 = vld [vmem:[%s1965_s2 + $0x118] sm:$0xff] }
  0x19   :  { %659 = vmatpush.bf16.msra.mxu3 %v1461_v35  ;;  %74 = vst.msk [vmem:[#allocation2 + $0x30] sm:$0xfe] %vm68_vm1, %v59_v32  ;;  %v1478_v34 = vld [vmem:[%s1965_s2 + $0x158] sm:$0xff] }
  0x1a   :  { %75 = vst.msk [vmem:[#allocation2 + $0x40] sm:$0xff] %vm70_vm2, %v61_v41  ;;  %603 = vmatpush.bf16.msra.mxu0 %v1436_v37  ;;  %v231_v62 = vsel %vm228_vm7, %v229_v50, %v230_v49  ;;  %v1469_v37 = vld [vmem:[%s1965_s2 + $0x110] sm:$0xff] }
  0x1b   :  { %622 = vmatpush.bf16.msra.mxu1 %v1444_v38  ;;  %76 = vst.msk [vmem:[#allocation2 + $0x50] sm:$0x1] %vm72_vm5, %v60_v33  ;;  %v1477_v38 = vld [vmem:[%s1965_s2 + $0x150] sm:$0xff] }
  0x1c   :  { %641 = vmatpush.bf16.msra.mxu2 %v1452_v39  ;;  %v193_v52 = vld [vmem:[#allocation2 + $0x8] sm:$0xff]  ;;  %90 = vst.msk [vmem:[#allocation2 + $0x38] sm:$0xfe] %vm84_vm3, %v81_v44  ;;  %v208_v39 = vld [vmem:[#allocation2] sm:$0xfc] }
  0x1d   :  { %660 = vmatpush.bf16.msra.mxu3 %v1460_v40  ;;  %v201_v53 = vld [vmem:[#allocation2 + $0x8] sm:$0xfe]  ;;  %v1730_v54 = vld [vmem:[#allocation2 + $0x18] sm:$0xff]  ;;  %91 = vst.msk [vmem:[#allocation2 + $0x48] sm:$0xff] %vm86_vm4, %v81_v44  ;;  %v266_v48 = vrot.slane %v208_v39, 2 }
  0x1e   :  { %v232_v57 = vrot.slane %v201_v53, 1  ;;  %v233_v59 = vrot.slane %v1730_v54, 1  ;;  %v295_v60 = vpack.c.bf16 %v1730_v54, %v193_v52  ;;  %v202_v61 = vld [vmem:[#allocation2 + $0x20] sm:$0x1]  ;;  %92 = vst.msk [vmem:[#allocation2 + $0x58] sm:$0x1] %vm88_vm6, %v81_v44  ;;  %604 = vmatpush.bf16.msra.mxu0 %v1435_v45 }
  0x1f   :  { %623 = vmatpush.bf16.msra.mxu1 %v1443_v46  ;;  %v235_v63 = vrot.slane %v202_v61, 1  ;;  %v203_v0 = vld [vmem:[#allocation2 + $0x28] sm:$0x1]  ;;  %v210_v40 = vld [vmem:[#allocation2 + $0x20] sm:$0x3]  ;;  %v267_v45 = vrot.slane %v1710_v42, 2 }
  0x20   :  { %642 = vmatpush.bf16.msra.mxu2 %v1451_v47  ;;  %v234_v1 = vsel %vm228_vm7, %v232_v57, %v233_v59  ;;  %v237_v2 = vrot.slane %v203_v0, 1  ;;  %v204_v12 = vld [vmem:[#allocation2 + $0x30] sm:$0xfe]  ;;  %v209_v41 = vld [vmem:[#allocation2 + $0x8] sm:$0xfc]  ;;  %v270_v46 = vrot.slane %v1730_v54, 2 }
  0x21   :  { %661 = vmatpush.bf16.msra.mxu3 %v1459_v51  ;;  %v236_v3 = vsel %vm228_vm7, %v230_v49, %v235_v63  ;;  %605 = vmatmul.bf16.vlgmr.msra.gmra.mxu0 %v294_v58  ;;  %v1759_v11 = vld [vmem:[#allocation2 + $0x40] sm:$0xff]  ;;  %v239_v19 = vrot.slane %v204_v12, 1  ;;  %v196_v25 = vld [vmem:[#allocation2 + $0x30] sm:$0xff]  ;;  %v211_v43 = vld [vmem:[#allocation2 + $0x28] sm:$0x3]  ;;  %v272_v49 = vrot.slane %v210_v40, 2  ;;  %v268_v53 = vsel %vm265_vm8, %v266_v48, %v267_v45 }
  0x22   :  { %673 = vmatpush.bf16.msrb.mxu0 %v1474_v55  ;;  %624 = vmatmul.bf16.vlgmr.msra.gmra.mxu1 %v295_v60  ;;  %v296_v5 = vpack.c.bf16 %v236_v3, %v231_v62  ;;  %v238_v6 = vsel %vm228_vm7, %v233_v59, %v237_v2  ;;  %v206_v13 = vld [vmem:[#allocation2 + $0x50] sm:$0x1]  ;;  %v240_v18 = vrot.slane %v1759_v11, 1  ;;  %v300_v30 = vpack.c.bf16 %v1759_v11, %v196_v25  ;;  %v1468_v44 = vld [vmem:[%s1965_s2 + $0x108] sm:$0xff]  ;;  %v1467_v52 = vld [vmem:[%s1965_s2 + $0x100] sm:$0xff] }
  0x23   :  { %692 = vmatpush.bf16.msrb.mxu1 %v1482_v56  ;;  %v297_v8 = vpack.c.bf16 %v238_v6, %v234_v1  ;;  %v205_v15 = vld [vmem:[#allocation2 + $0x38] sm:$0xfe]  ;;  %v245_v20 = vrot.slane %v206_v13, 1  ;;  %v1476_v47 = vld [vmem:[%s1965_s2 + $0x148] sm:$0xff]  ;;  %v269_v50 = vrot.slane %v209_v41, 2  ;;  %v274_v51 = vrot.slane %v211_v43, 2 }
  0x24   :  { %643 = vmatmul.bf16.vlgmr.msra.gmra.mxu2 %v296_v5  ;;  %v1761_v14 = vld [vmem:[#allocation2 + $0x48] sm:$0xff]  ;;  %v242_v23 = vrot.slane %v205_v15, 1  ;;  %v197_v26 = vld [vmem:[#allocation2 + $0x38] sm:$0xff]  ;;  %v241_v27 = vsel %vm228_vm7, %v239_v19, %v240_v18  ;;  %v1475_v42 = vld [vmem:[%s1965_s2 + $0x140] sm:$0xff]  ;;  %v273_v54 = vsel %vm265_vm8, %v267_v45, %v272_v49  ;;  %v277_v63 = vrot.slane %v1759_v11, 2 }
  0x25   :  { %662 = vmatmul.bf16.vlgmr.msra.gmra.mxu3 %v297_v8  ;;  %v207_v16 = vld [vmem:[#allocation2 + $0x58] sm:$0x1]  ;;  %v243_v22 = vrot.slane %v1761_v14, 1  ;;  %v246_v28 = vsel %vm228_vm7, %v240_v18, %v245_v20  ;;  %v301_v31 = vpack.c.bf16 %v1761_v14, %v197_v26  ;;  %v271_v55 = vsel %vm265_vm8, %v269_v50, %v270_v46  ;;  %v212_v59 = vld [vmem:[#allocation2 + $0x30] sm:$0xfc] }
  0x26   :  { %674 = vmatpush.bf16.msrb.mxu0 %v1473_v4  ;;  %v247_v24 = vrot.slane %v207_v16, 1  ;;  %v302_v35 = vpack.c.bf16 %v246_v28, %v241_v27  ;;  %v275_v56 = vsel %vm265_vm8, %v270_v46, %v274_v51  ;;  %v298_v57 = vpack.c.bf16 %v273_v54, %v268_v53  ;;  %v214_v60 = vld [vmem:[#allocation2 + $0x50] sm:$0x3]  ;;  %v213_v61 = vld [vmem:[#allocation2 + $0x38] sm:$0xfc] }
  0x27   :  { %693 = vmatpush.bf16.msrb.mxu1 %v1481_v7  ;;  %v244_v32 = vsel %vm228_vm7, %v242_v23, %v243_v22  ;;  %v299_v58 = vpack.c.bf16 %v275_v56, %v271_v55  ;;  %v215_v62 = vld [vmem:[#allocation2 + $0x58] sm:$0x3]  ;;  %v280_v0 = vrot.slane %v1761_v14, 2  ;;  %v276_v1 = vrot.slane %v212_v59, 2 }
  0x28   :  { %v248_v33 = vsel %vm228_vm7, %v243_v22, %v247_v24  ;;  %v282_v2 = vrot.slane %v214_v60, 2  ;;  %v279_v3 = vrot.slane %v213_v61, 2  ;;  %v284_v4 = vrot.slane %v215_v62, 2  ;;  %v1517_v24 = vld [vmem:[%s1968_s3] ss:$0 sm:$0xff] }
  0x29   :  { %v303_v36 = vpack.c.bf16 %v248_v33, %v244_v32  ;;  %v278_v5 = vsel %vm265_vm8, %v276_v1, %v277_v63 }
  0x2a   :  { %675 = vmatpush.bf16.msrb.mxu0 %v1472_v9  ;;  %v283_v6 = vsel %vm265_vm8, %v277_v63, %v282_v2  ;;  %v281_v7 = vsel %vm265_vm8, %v279_v3, %v280_v0  ;;  %v285_v8 = vsel %vm265_vm8, %v280_v0, %v284_v4 }
  0x2b   :  { %694 = vmatpush.bf16.msrb.mxu1 %v1480_v10  ;;  %v304_v9 = vpack.c.bf16 %v283_v6, %v278_v5  ;;  %v305_v10 = vpack.c.bf16 %v285_v8, %v281_v7 }
  0x2e   :  { %676 = vmatpush.bf16.msrb.mxu0 %v1471_v17 }
  0x2f   :  { %695 = vmatpush.bf16.msrb.mxu1 %v1479_v21 }
  0x31   :  { %610 = vmatmul.bf16.gmra.mxu0 %v300_v30 }
  0x32   :  { %677 = vmatpush.bf16.msrb.mxu0 %v1470_v29  ;;  %629 = vmatmul.bf16.gmra.mxu1 %v301_v31 }
  0x33   :  { %696 = vmatpush.bf16.msrb.mxu1 %v1478_v34 }
  0x34   :  { %648 = vmatmul.bf16.gmra.mxu2 %v302_v35 }
  0x35   :  { %667 = vmatmul.bf16.gmra.mxu3 %v303_v36 }
  0x36   :  { %678 = vmatpush.bf16.msrb.mxu0 %v1469_v37 }
  0x37   :  { %697 = vmatpush.bf16.msrb.mxu1 %v1477_v38 }
  0x3a   :  { %679 = vmatpush.bf16.msrb.mxu0 %v1468_v44 }
  0x3b   :  { %698 = vmatpush.bf16.msrb.mxu1 %v1476_v47  ;;  %v1530_v47 = vmov 32.0  }
  0x3c   :  { %1523 = vrcp.f32 %v1530_v47 }
  0x3e   :  { %680 = vmatpush.bf16.msrb.mxu0 %v1467_v52 }
  0x3f   :  { %699 = vmatpush.bf16.msrb.mxu1 %v1475_v42 }
  0x41   :  { %681 = vmatmul.bf16.vlgmr.msrb.gmra.mxu0 %v298_v57 }
  0x42   :  { %700 = vmatmul.bf16.vlgmr.msrb.gmra.mxu1 %v299_v58  ;;  %v1524_v56 = vpop.eup %1523 }
  0x43   :  { %v725_v63 = vmul.f32 32.0, %v1524_v56  ;;  %vm729_vm9 = vweird.f32 %v1524_v56 }
  0x45   :  { %v726_v5 = vsub.f32 1.0, %v725_v63  ;;  %v1499_v63 = vld [vmem:[%s1971_s6 + $0x80] sm:$0xff] }
  0x47   :  { %v727_v8 = vmul.f32 %v1524_v56, %v726_v5 }
  0x51   :  { %686 = vmatmul.bf16.gmra.mxu0 %v304_v9 }
  0x52   :  { %705 = vmatmul.bf16.gmra.mxu1 %v305_v10 }
  0x9e   :  { %v606_v12 = vpop.f32.mrf.mxu0 }
  0x9f   :  { %v625_v11 = vpop.f32.mrf.mxu1  ;;  %v607_v27 = vadd.f32 %v1517_v24, %v606_v12  ;;  %v728_v12 = vadd.f32 %v1524_v56, %v727_v8 }
  0xa1   :  { %v626_v32 = vadd.f32 %v625_v11, %v607_v27 }
  0xa6   :  { %v608_v13 = vpop.f32.mrf.mxu0 }
  0xa7   :  { %v627_v14 = vpop.f32.mrf.mxu1  ;;  %v644_v17 = vpop.f32.mrf.mxu2  ;;  %v609_v26 = vadd.f32 %v1517_v24, %v608_v13 }
  0xa8   :  { %v663_v18 = vpop.f32.mrf.mxu3  ;;  %v645_v37 = vadd.f32 %v644_v17, %v626_v32  ;;  %v1497_v32 = vld [vmem:[%s1971_s6 + $0x70] sm:$0xff] }
  0xa9   :  { %v628_v30 = vadd.f32 %v627_v14, %v609_v26  ;;  %v1820_v14 = vsel %vm729_vm9, %v1524_v56, %v728_v12 }
  0xaa   :  { %v664_v41 = vadd.f32 %v663_v18, %v645_v37 }
  0xae   :  { %v611_v15 = vpop.f32.mrf.mxu0 }
  0xaf   :  { %v630_v16 = vpop.f32.mrf.mxu1  ;;  %v646_v21 = vpop.f32.mrf.mxu2  ;;  %v612_v28 = vadd.f32 %v1517_v24, %v611_v15 }
  0xb0   :  { %v665_v22 = vpop.f32.mrf.mxu3  ;;  %v647_v33 = vadd.f32 %v646_v21, %v628_v30  ;;  %v1490_v21 = vld [vmem:[%s1971_s6 + $0x38] sm:$0xff] }
  0xb1   :  { %v631_v34 = vadd.f32 %v630_v16, %v612_v28  ;;  %1013 = vmatpush.bf16.msrb.mxu2 %v1490_v21 }
  0xb2   :  { %v666_v39 = vadd.f32 %v665_v22, %v647_v33  ;;  %v1498_v22 = vld [vmem:[%s1971_s6 + $0x78] sm:$0xff]  ;;  %v1505_v33 = vld [vmem:[%s1971_s6 + $0xb0] sm:$0xff] }
  0xb3   :  { %1032 = vmatpush.bf16.msrb.mxu3 %v1498_v22 }
  0xb6   :  { %v613_v19 = vpop.f32.mrf.mxu0 }
  0xb7   :  { %v632_v20 = vpop.f32.mrf.mxu1  ;;  %v649_v29 = vpop.f32.mrf.mxu2  ;;  %v614_v40 = vadd.f32 %v1517_v24, %v613_v19  ;;  %1033 = vmatpush.bf16.msrb.mxu3 %v1497_v32 }
  0xb8   :  { %v668_v36 = vpop.f32.mrf.mxu3  ;;  %v650_v38 = vadd.f32 %v649_v29, %v631_v34 }
  0xb9   :  { %v633_v48 = vadd.f32 %v632_v20, %v614_v40  ;;  %v1504_v40 = vld [vmem:[%s1971_s6 + $0xa8] sm:$0xff] }
  0xba   :  { %v669_v43 = vadd.f32 %v668_v36, %v650_v38  ;;  %v1488_v38 = vld [vmem:[%s1971_s6 + $0x28] sm:$0xff] }
  0xbe   :  { %v682_v23 = vpop.f32.mrf.mxu0 }
  0xbf   :  { %v701_v25 = vpop.f32.mrf.mxu1  ;;  %v651_v45 = vpop.f32.mrf.mxu2  ;;  %v683_v49 = vadd.f32 %v682_v23, %v664_v41  ;;  %v1506_v23 = vld [vmem:[%s1971_s6 + $0xb8] sm:$0xff] }
  0xc0   :  { %v652_v52 = vadd.f32 %v651_v45, %v633_v48  ;;  %v670_v53 = vpop.f32.mrf.mxu3  ;;  %1051 = vmatpush.bf16.msra.mxu0 %v1506_v23  ;;  %1507 = vmatpush.bf16.msra.mxu1 %v1506_v23  ;;  %v1495_v45 = vld [vmem:[%s1971_s6 + $0x60] sm:$0xff] }
  0xc1   :  { %v702_v54 = vadd.f32 %v701_v25, %v683_v49  ;;  %v1486_v49 = vld [vmem:[%s1971_s6 + $0x18] sm:$0xff] }
  0xc2   :  { %v671_v57 = vadd.f32 %v670_v53, %v652_v52  ;;  %v1485_v53 = vld [vmem:[%s1971_s6 + $0x10] sm:$0xff] }
  0xc3   :  { %v711_v60 = vsel %vm86_vm4, %v702_v54, 0.0 }
  0xc4   :  { %1052 = vmatpush.bf16.msra.mxu0 %v1505_v33  ;;  %1508 = vmatpush.bf16.msra.mxu1 %v1505_v33 }
  0xc6   :  { %v684_v31 = vpop.f32.mrf.mxu0 }
  0xc7   :  { %v703_v35 = vpop.f32.mrf.mxu1  ;;  %v685_v44 = vadd.f32 %v684_v31, %v666_v39  ;;  %v1489_v31 = vld [vmem:[%s1971_s6 + $0x30] sm:$0xff]  ;;  %v1496_v39 = vld [vmem:[%s1971_s6 + $0x68] sm:$0xff] }
  0xc8   :  { %1014 = vmatpush.bf16.msrb.mxu2 %v1489_v31  ;;  %1034 = vmatpush.bf16.msrb.mxu3 %v1496_v39 }
  0xc9   :  { %v704_v42 = vadd.f32 %v703_v35, %v685_v44  ;;  %1053 = vmatpush.bf16.msra.mxu0 %v1504_v40  ;;  %1509 = vmatpush.bf16.msra.mxu1 %v1504_v40  ;;  %v1487_v44 = vld [vmem:[%s1971_s6 + $0x20] sm:$0xff] }
  0xcb   :  { %v712_v58 = vsel %vm86_vm4, %v704_v42, 0.0 }
  0xcc   :  { %v713_v0 = vadd.f32 %v712_v58, %v711_v60  ;;  %1015 = vmatpush.bf16.msrb.mxu2 %v1488_v38  ;;  %1035 = vmatpush.bf16.msrb.mxu3 %v1495_v45  ;;  %v1492_v58 = vld [vmem:[%s1971_s6 + $0x48] sm:$0xff] }
  0xce   :  { %v687_v46 = vpop.f32.mrf.mxu0 }
  0xcf   :  { %v688_v50 = vadd.f32 %v687_v46, %v669_v43  ;;  %v706_v51 = vpop.f32.mrf.mxu1  ;;  %v1503_v46 = vld [vmem:[%s1971_s6 + $0xa0] sm:$0xff] }
  0xd0   :  { %1016 = vmatpush.bf16.msrb.mxu2 %v1487_v44  ;;  %1054 = vmatpush.bf16.msra.mxu0 %v1503_v46 }
  0xd1   :  { %v707_v55 = vadd.f32 %v706_v51, %v688_v50  ;;  %1510 = vmatpush.bf16.msra.mxu1 %v1503_v46  ;;  %v1494_v50 = vld [vmem:[%s1971_s6 + $0x58] sm:$0xff] }
  0xd2   :  { %v1502_v51 = vld [vmem:[%s1971_s6 + $0x98] sm:$0xff]  ;;  %1036 = vmatpush.bf16.msrb.mxu3 %v1494_v50  ;;  %v1520_v50 = vld [vmem:[%s1972_s7] ss:$0 sm:$0xff] }
  0xd3   :  { %v714_v61 = vsel %vm86_vm4, %v707_v55, 0.0 }
  0xd4   :  { %v715_v3 = vadd.f32 %v714_v61, %v713_v0  ;;  %1017 = vmatpush.bf16.msrb.mxu2 %v1486_v49  ;;  %1055 = vmatpush.bf16.msra.mxu0 %v1502_v51  ;;  %v1483_v61 = vld [vmem:[%s1971_s6] sm:$0xff] }
  0xd5   :  { %1511 = vmatpush.bf16.msra.mxu1 %v1502_v51 }
  0xd6   :  { %v689_v59 = vpop.f32.mrf.mxu0 }
  0xd7   :  { %v690_v62 = vadd.f32 %v689_v59, %v671_v57  ;;  %v708_v1 = vpop.f32.mrf.mxu1  ;;  %v1484_v57 = vld [vmem:[%s1971_s6 + $0x8] sm:$0xff] }
  0xd8   :  { %1018 = vmatpush.bf16.msrb.mxu2 %v1485_v53  ;;  %v1500_v59 = vld [vmem:[%s1971_s6 + $0x88] sm:$0xff] }
  0xd9   :  { %v709_v2 = vadd.f32 %v708_v1, %v690_v62  ;;  %v1491_v62 = vld [vmem:[%s1971_s6 + $0x40] sm:$0xff] }
  0xdb   :  { %v716_v4 = vsel %vm86_vm4, %v709_v2, 0.0 }
  0xdc   :  { %v717_v6 = vadd.f32 %v716_v4, %v715_v3  ;;  %1019 = vmatpush.bf16.msrb.mxu2 %v1484_v57 }
  0xde   :  { %v718_v7 = vrot.slane %v717_v6, 4 }
  0xe0   :  { %v719_v9 = vadd.f32 %v718_v7, %v717_v6  ;;  %1020 = vmatpush.bf16.msrb.mxu2 %v1483_v61  ;;  %v1518_v6 = vld [vmem:[%s1969_s4] ss:$0 sm:$0xff] }
  0xe2   :  { %v720_v10 = vrot.slane %v719_v9, 2 }
  0xe4   :  { %v721_v11 = vadd.f32 %v720_v10, %v719_v9 }
  0xe6   :  { %v722_v13 = vrot.slane %v721_v11, 1 }
  0xe8   :  { %v723_v15 = vadd.f32 %v722_v13, %v721_v11  ;;  %v1519_v11 = vld [vmem:[%s1970_s5] ss:$0 sm:$0xff] }
  0xea   :  { %v731_v16 = vmul.f32 %v1820_v14, %v723_v15 }
  0xec   :  { %v1823_v17 = vsub.f32 %v702_v54, %v731_v16  ;;  %v1825_v18 = vsub.f32 %v704_v42, %v731_v16  ;;  %v1827_v19 = vsub.f32 %v707_v55, %v731_v16  ;;  %v1829_v20 = vsub.f32 %v709_v2, %v731_v16  ;;  %v1493_v54 = vld [vmem:[%s1971_s6 + $0x50] sm:$0xff] }
  0xed   :  { %v1501_v55 = vld [vmem:[%s1971_s6 + $0x90] sm:$0xff]  ;;  %1037 = vmatpush.bf16.msrb.mxu3 %v1493_v54 }
  0xee   :  { %v736_v24 = vmul.f32 %v1823_v17, %v1823_v17  ;;  %v737_v25 = vmul.f32 %v1825_v18, %v1825_v18  ;;  %v738_v26 = vmul.f32 %v1827_v19, %v1827_v19  ;;  %v739_v27 = vmul.f32 %v1829_v20, %v1829_v20  ;;  %1056 = vmatpush.bf16.msra.mxu0 %v1501_v55 }
  0xef   :  { %1512 = vmatpush.bf16.msra.mxu1 %v1501_v55 }
  0xf0   :  { %v740_v28 = vsel %vm86_vm4, %v736_v24, 0.0  ;;  %v741_v29 = vsel %vm86_vm4, %v737_v25, 0.0  ;;  %v743_v34 = vsel %vm86_vm4, %v738_v26, 0.0  ;;  %v745_v36 = vsel %vm86_vm4, %v739_v27, 0.0 }
  0xf1   :  { %v742_v30 = vadd.f32 %v741_v29, %v740_v28  ;;  %1038 = vmatpush.bf16.msrb.mxu3 %v1492_v58 }
  0xf2   :  { %1057 = vmatpush.bf16.msra.mxu0 %v1500_v59 }
  0xf3   :  { %v744_v35 = vadd.f32 %v743_v34, %v742_v30  ;;  %1513 = vmatpush.bf16.msra.mxu1 %v1500_v59 }
  0xf5   :  { %v746_v37 = vadd.f32 %v745_v36, %v744_v35  ;;  %1039 = vmatpush.bf16.msrb.mxu3 %v1491_v62 }
  0xf6   :  { %1058 = vmatpush.bf16.msra.mxu0 %v1499_v63 }
  0xf7   :  { %v747_v41 = vrot.slane %v746_v37, 4  ;;  %1514 = vmatpush.bf16.msra.mxu1 %v1499_v63 }
  0xf9   :  { %v748_v43 = vadd.f32 %v747_v41, %v746_v37 }
  0xfb   :  { %v749_v47 = vrot.slane %v748_v43, 2 }
  0xfd   :  { %v750_v48 = vadd.f32 %v749_v47, %v748_v43 }
  0xff   :  { %v751_v52 = vrot.slane %v750_v48, 1 }
 0x101   :  { %v752_v42 = vadd.f32 %v751_v52, %v750_v48 }
 0x103   :  { %v753_v56 = vmul.f32 %v752_v42, %v1820_v14 }
 0x105   :  { %v754_v60 = vadd.f32 1e-05, %v753_v56 }
 0x107   :  { %1525 = vrsqrt.f32 %v754_v60  ;;  %vm761_vm11 = vweird.f32 %v754_v60 }
 0x10d   :  { %v1526_v0 = vpop.eup %1525 }
 0x10e   :  { %v756_v1 = vmul.f32 %v1526_v0, %v754_v60  ;;  %vm762_vm10 = vweird.f32 %v1526_v0 }
 0x10f   :  { %vm763_vm12 = vmor %vm761_vm11, %vm762_vm10 }
 0x110   :  { %v757_v2 = vmul.f32 %v1526_v0, %v756_v1 }
 0x112   :  { %v758_v3 = vmul.f32 0.5, %v757_v2 }
 0x114   :  { %v759_v4 = vsub.f32 1.5, %v758_v3 }
 0x116   :  { %v760_v5 = vmul.f32 %v1526_v0, %v759_v4 }
 0x118   :  { %v764_v7 = vsel %vm763_vm12, %v1526_v0, %v760_v5 }
 0x119   :  { %v765_v8 = vmul.f32 %v764_v7, %v1823_v17  ;;  %v766_v9 = vmul.f32 %v764_v7, %v1825_v18  ;;  %v767_v10 = vmul.f32 %v764_v7, %v1827_v19  ;;  %v768_v12 = vmul.f32 %v764_v7, %v1829_v20 }
 0x11b   :  { %v772_v13 = vmul.f32 %v1518_v6, %v765_v8  ;;  %v773_v15 = vmul.f32 %v1518_v6, %v766_v9  ;;  %v774_v16 = vmul.f32 %v1518_v6, %v767_v10  ;;  %v775_v21 = vmul.f32 %v1518_v6, %v768_v12 }
 0x11d   :  { %v779_v22 = vadd.f32 %v1519_v11, %v772_v13  ;;  %v780_v23 = vadd.f32 %v1519_v11, %v773_v15  ;;  %v781_v24 = vadd.f32 %v1519_v11, %v774_v16  ;;  %v782_v25 = vadd.f32 %v1519_v11, %v775_v21 }
 0x11f   :  { %v783_v26 = vmax.f32 %v779_v22, 0.0  ;;  %v784_v17 = vmax.f32 %v780_v23, 0.0  ;;  %v785_v27 = vmax.f32 %v781_v24, 0.0  ;;  %v786_v18 = vmax.f32 %v782_v25, 0.0 }
 0x121   :  { %844 = vst.msk [vmem:[#allocation3 + $0x1] sm:$0xff] %vm86_vm4, %v783_v26 }
 0x122   :  { %845 = vst.msk [vmem:[#allocation3 + $0x9] sm:$0xff] %vm86_vm4, %v784_v17 }
 0x123   :  { %846 = vst.msk [vmem:[#allocation3 + $0x19] sm:$0xff] %vm86_vm4, %v785_v27 }
 0x124   :  { %847 = vst.msk [vmem:[#allocation3 + $0x21] sm:$0xff] %vm86_vm4, %v786_v18 }
 0x128   :  { %v848_v19 = vld [vmem:[#allocation3] sm:$0xff] }
 0x129   :  { %v852_v20 = vld [vmem:[#allocation3 + $0x1] sm:$0xff]  ;;  %v853_v29 = vld [vmem:[#allocation3 + $0x9] sm:$0xff] }
 0x12a   :  { %v849_v28 = vld [vmem:[#allocation3 + $0x8] sm:$0xff]  ;;  %v861_v32 = vpack.c.bf16 %v853_v29, %v852_v20  ;;  %v850_v38 = vld [vmem:[#allocation3 + $0x18] sm:$0xff] }
 0x12b   :  { %v856_v30 = vld [vmem:[#allocation3 + $0x2] sm:$0xff]  ;;  %v860_v31 = vpack.c.bf16 %v849_v28, %v848_v19  ;;  %v857_v33 = vld [vmem:[#allocation3 + $0xa] sm:$0xff]  ;;  %v858_v35 = vld [vmem:[#allocation3 + $0x1a] sm:$0xff] }
 0x12c   :  { %v862_v34 = vpack.c.bf16 %v857_v33, %v856_v30  ;;  %v859_v36 = vld [vmem:[#allocation3 + $0x22] sm:$0xff]  ;;  %1040 = vmatmul.bf16.vlgmr.msrb.gmra.mxu3 %v861_v32  ;;  %v854_v40 = vld [vmem:[#allocation3 + $0x19] sm:$0xff] }
 0x12d   :  { %1021 = vmatmul.bf16.vlgmr.msrb.gmra.mxu2 %v860_v31  ;;  %v865_v37 = vpack.c.bf16 %v859_v36, %v858_v35  ;;  %v851_v39 = vld [vmem:[#allocation3 + $0x20] sm:$0xff] }
 0x12e   :  { %1059 = vmatmul.bf16.vlgmr.msra.gmra.mxu0 %v862_v34  ;;  %v855_v41 = vld [vmem:[#allocation3 + $0x21] sm:$0xff]  ;;  %v863_v43 = vpack.c.bf16 %v851_v39, %v850_v38 }
 0x12f   :  { %1064 = vmatmul.bf16.vlgmr.msra.gmra.mxu1 %v865_v37  ;;  %v864_v44 = vpack.c.bf16 %v855_v41, %v854_v40 }
 0x13c   :  { %1045 = vmatmul.bf16.gmra.mxu3 %v864_v44 }
 0x13d   :  { %1026 = vmatmul.bf16.gmra.mxu2 %v863_v43 }
 0x1ab   :  { %v1060_v49 = vpop.f32.mrf.mxu0 }
 0x1ac   :  { %v1065_v56 = vpop.f32.mrf.mxu1 }
 0x1af   :  { %v1041_v46 = vpop.f32.mrf.mxu3 }
 0x1b0   :  { %v1022_v45 = vpop.f32.mrf.mxu2 }
 0x1b1   :  { %v1023_v52 = vadd.f32 %v1520_v50, %v1022_v45 }
 0x1b3   :  { %v1042_v57 = vadd.f32 %v1041_v46, %v1023_v52  ;;  %v1062_v59 = vpop.f32.mrf.mxu0 }
 0x1b4   :  { %v1067_v6 = vpop.f32.mrf.mxu1 }
 0x1b5   :  { %v1061_v61 = vadd.f32 %v1060_v49, %v1042_v57 }
 0x1b7   :  { %v1043_v48 = vpop.f32.mrf.mxu3  ;;  %v1070_v3 = vsel %vm86_vm4, %v1061_v61, 0.0 }
 0x1b8   :  { %v1024_v47 = vpop.f32.mrf.mxu2 }
 0x1b9   :  { %v1025_v51 = vadd.f32 %v1520_v50, %v1024_v47 }
 0x1bb   :  { %v1044_v54 = vadd.f32 %v1043_v48, %v1025_v51 }
 0x1bd   :  { %v1063_v60 = vadd.f32 %v1062_v59, %v1044_v54  ;;  %v1522_v54 = vld [vmem:[%s1974_s9] ss:$0 sm:$0xff] }
 0x1bf   :  { %v1046_v53 = vpop.f32.mrf.mxu3  ;;  %v1071_v0 = vsel %vm86_vm4, %v1063_v60, 0.0 }
 0x1c0   :  { %v1027_v42 = vpop.f32.mrf.mxu2  ;;  %v1072_v7 = vadd.f32 %v1071_v0, %v1070_v3 }
 0x1c1   :  { %v1028_v55 = vadd.f32 %v1520_v50, %v1027_v42 }
 0x1c3   :  { %v1047_v58 = vadd.f32 %v1046_v53, %v1028_v55 }
 0x1c5   :  { %v1066_v62 = vadd.f32 %v1065_v56, %v1047_v58 }
 0x1c7   :  { %v1048_v2 = vpop.f32.mrf.mxu3  ;;  %v1073_v4 = vsel %vm86_vm4, %v1066_v62, 0.0 }
 0x1c8   :  { %v1029_v63 = vpop.f32.mrf.mxu2  ;;  %v1074_v9 = vadd.f32 %v1073_v4, %v1072_v7 }
 0x1c9   :  { %v1030_v1 = vadd.f32 %v1520_v50, %v1029_v63  ;;  %v1521_v50 = vld [vmem:[%s1973_s8] ss:$0 sm:$0xff] }
 0x1cb   :  { %v1049_v5 = vadd.f32 %v1048_v2, %v1030_v1 }
 0x1cd   :  { %v1068_v8 = vadd.f32 %v1067_v6, %v1049_v5 }
 0x1cf   :  { %v1075_v10 = vsel %vm86_vm4, %v1068_v8, 0.0 }
 0x1d0   :  { %v1076_v12 = vadd.f32 %v1075_v10, %v1074_v9 }
 0x1d2   :  { %v1077_v11 = vrot.slane %v1076_v12, 4 }
 0x1d4   :  { %v1078_v13 = vadd.f32 %v1077_v11, %v1076_v12 }
 0x1d6   :  { %v1079_v15 = vrot.slane %v1078_v13, 2 }
 0x1d8   :  { %v1080_v16 = vadd.f32 %v1079_v15, %v1078_v13 }
 0x1da   :  { %v1081_v21 = vrot.slane %v1080_v16, 1 }
 0x1dc   :  { %v1082_v22 = vadd.f32 %v1081_v21, %v1080_v16 }
 0x1de   :  { %v1083_v23 = vmul.f32 %v1082_v22, %v1820_v14 }
 0x1e0   :  { %v1084_v24 = vsub.f32 %v1061_v61, %v1083_v23  ;;  %v1085_v25 = vsub.f32 %v1063_v60, %v1083_v23  ;;  %v1086_v26 = vsub.f32 %v1066_v62, %v1083_v23  ;;  %v1087_v17 = vsub.f32 %v1068_v8, %v1083_v23 }
 0x1e2   :  { %v1088_v27 = vmul.f32 %v1084_v24, %v1084_v24  ;;  %v1089_v18 = vmul.f32 %v1085_v25, %v1085_v25  ;;  %v1090_v19 = vmul.f32 %v1086_v26, %v1086_v26  ;;  %v1091_v20 = vmul.f32 %v1087_v17, %v1087_v17 }
 0x1e4   :  { %v1092_v28 = vsel %vm86_vm4, %v1088_v27, 0.0  ;;  %v1093_v29 = vsel %vm86_vm4, %v1089_v18, 0.0  ;;  %v1095_v31 = vsel %vm86_vm4, %v1090_v19, 0.0  ;;  %v1097_v33 = vsel %vm86_vm4, %v1091_v20, 0.0 }
 0x1e5   :  { %v1094_v30 = vadd.f32 %v1093_v29, %v1092_v28 }
 0x1e7   :  { %v1096_v32 = vadd.f32 %v1095_v31, %v1094_v30 }
 0x1e9   :  { %v1098_v34 = vadd.f32 %v1097_v33, %v1096_v32 }
 0x1eb   :  { %v1099_v35 = vrot.slane %v1098_v34, 4 }
 0x1ed   :  { %v1100_v36 = vadd.f32 %v1099_v35, %v1098_v34 }
 0x1ef   :  { %v1101_v37 = vrot.slane %v1100_v36, 2 }
 0x1f1   :  { %v1102_v38 = vadd.f32 %v1101_v37, %v1100_v36 }
 0x1f3   :  { %v1103_v39 = vrot.slane %v1102_v38, 1 }
 0x1f5   :  { %v1104_v40 = vadd.f32 %v1103_v39, %v1102_v38 }
 0x1f7   :  { %v1105_v41 = vmul.f32 %v1104_v40, %v1820_v14 }
 0x1f9   :  { %v1106_v43 = vadd.f32 1e-05, %v1105_v41 }
 0x1fb   :  { %1527 = vrsqrt.f32 %v1106_v43  ;;  %vm1113_vm14 = vweird.f32 %v1106_v43 }
 0x201   :  { %v1528_v44 = vpop.eup %1527 }
 0x202   :  { %v1108_v45 = vmul.f32 %v1528_v44, %v1106_v43  ;;  %vm1114_vm13 = vweird.f32 %v1528_v44 }
 0x203   :  { %vm1115_vm15 = vmor %vm1113_vm14, %vm1114_vm13 }
 0x204   :  { %v1109_v46 = vmul.f32 %v1528_v44, %v1108_v45 }
 0x206   :  { %v1110_v47 = vmul.f32 0.5, %v1109_v46 }
 0x208   :  { %v1111_v48 = vsub.f32 1.5, %v1110_v47 }
 0x20a   :  { %v1112_v49 = vmul.f32 %v1528_v44, %v1111_v48 }
 0x20c   :  { %v1116_v51 = vsel %vm1115_vm15, %v1528_v44, %v1112_v49 }
 0x20d   :  { %v1117_v52 = vmul.f32 %v1116_v51, %v1084_v24  ;;  %v1118_v42 = vmul.f32 %v1116_v51, %v1085_v25  ;;  %v1119_v53 = vmul.f32 %v1116_v51, %v1086_v26  ;;  %v1120_v14 = vmul.f32 %v1116_v51, %v1087_v17 }
 0x20f   :  { %v1124_v55 = vmul.f32 %v1521_v50, %v1117_v52  ;;  %v1125_v56 = vmul.f32 %v1521_v50, %v1118_v42  ;;  %v1126_v57 = vmul.f32 %v1521_v50, %v1119_v53  ;;  %v1127_v58 = vmul.f32 %v1521_v50, %v1120_v14 }
 0x211   :  { %v1131_v59 = vadd.f32 %v1522_v54, %v1124_v55  ;;  %v1132_v60 = vadd.f32 %v1522_v54, %v1125_v56  ;;  %v1133_v61 = vadd.f32 %v1522_v54, %v1126_v57  ;;  %v1134_v62 = vadd.f32 %v1522_v54, %v1127_v58 }
 0x213   :  { %v1135_v63 = vmax.f32 %v1131_v59, 0.0  ;;  %v1136_v0 = vmax.f32 %v1132_v60, 0.0  ;;  %v1137_v1 = vmax.f32 %v1133_v61, 0.0  ;;  %v1138_v2 = vmax.f32 %v1134_v62, 0.0 }
 0x215   :  { %1139 = vst.msk [vmem:[%s1975_s10] sm:$0xff] %vm86_vm4, %v1135_v63 }
 0x216   :  { %1140 = vst.msk [vmem:[%s1975_s10 + $0x8] sm:$0xff] %vm86_vm4, %v1136_v0 }
 0x217   :  { %1141 = vst.msk [vmem:[%s1975_s10 + $0x10] sm:$0xff] %vm86_vm4, %v1137_v1 }
 0x218   :  { %1142 = vst.msk [vmem:[%s1975_s10 + $0x18] sm:$0xff] %vm86_vm4, %v1138_v2 }

// kernel: diffusion_unet_forward.10
= control target key start
LH: loop header
LB: loop body
LE: loop exit
PB: predicated region body
PF: predicated region fallthrough
CT: control target
= control target key end

     0   :  { %14 = vsyncpa [#allocation5], 0  ;;  %s2256_s12 = smov [#allocation4]   ;;  %s2257_s14 = smov 128   ;;  %s2748_s0 = inlined_call_operand.vmem [shape: f32[2,4,128], index: 0, kind: input, shape index: {}]   ;;  %s2749_s1 = inlined_call_operand.vmem [shape: bf16[384,256], index: 1, kind: input, shape index: {}]   ;;  %s2750_s2 = inlined_call_operand.vmem [shape: f32[1,256], index: 2, kind: input, shape index: {}]   ;;  %s2751_s3 = inlined_call_operand.vmem [shape: f32[1,256], index: 3, kind: input, shape index: {}]   ;;  %s2752_s4 = inlined_call_operand.vmem [shape: f32[1,256], index: 4, kind: input, shape index: {}]   ;;  %s2753_s5 = inlined_call_operand.hbm [shape: bf16[768,256], index: 5, kind: input, shape index: {}]   ;;  %s2754_s6 = inlined_call_operand.vmem [shape: f32[1,256], index: 6, kind: input, shape index: {}]   ;;  %s2755_s7 = inlined_call_operand.vmem [shape: f32[1,256], index: 7, kind: input, shape index: {}]   ;;  %s2756_s8 = inlined_call_operand.vmem [shape: f32[1,256], index: 8, kind: input, shape index: {}]   ;;  %s2757_s9 = inlined_call_operand.vmem [shape: f32[2,2,256], index: 9, kind: output, shape index: {}]  }
   0x1   :  { %s29_s11 = sshll.u32 %s2753_s5, 4  ;;  %s31_s13 = sshll.u32 %s2256_s12, 4  ;;  %s30_s11 = int_to_ptr.hbm [resolvable:$true] %s29_s11  ;;  %s32_s13 = int_to_ptr.vmem [resolvable:$true] %s31_s13 }
   0x2   :  { %s2258_s15 = smov 8  }
   0x3   :  { %37 = dma.hbm_to_vmem [thread:$0]  %s30_s11, 12288, %s32_s13, [#allocation5], %s2257_s14, %s2257_s14, %s2258_s15  }
   0x4   :  { %2254 = dma.done.wait [#allocation5], 12288  }
   0x5   :  { %2255 = vsyncadd [#allocation5], 4294955008  ;;  %v2259_v0 = vmov 0.0   ;;  %v1547_v1 = vld [vmem:[%s2749_s1 + $0x70] sm:$0xf]  ;;  %vm128_vm0 = vcmask 1041408  }
   0x6   :  { %48 = vst [vmem:[#allocation2] sm:$0xf] %v2259_v0  ;;  %v2086_v2 = vld [vmem:[%s2749_s1 + $0x74] sm:$0xf0]  ;;  %v1611_v3 = vld [vmem:[%s2749_s1 + $0xf0] sm:$0xf] }
   0x7   :  { %49 = vst [vmem:[#allocation2 + $0x4] sm:$0xf] %v2259_v0  ;;  %v1548_v4 = vor.u32 %v2086_v2, %v1547_v1  ;;  %v2102_v5 = vld [vmem:[%s2749_s1 + $0xf4] sm:$0xf0]  ;;  %v1675_v6 = vld [vmem:[%s2749_s1 + $0x170] sm:$0xf] }
   0x8   :  { %651 = vst [vmem:[#allocation3] sm:$0xff] %v2259_v0  ;;  %v2118_v7 = vld [vmem:[%s2749_s1 + $0x174] sm:$0xf0]  ;;  %v1612_v8 = vor.u32 %v2102_v5, %v1611_v3  ;;  %v1539_v10 = vld [vmem:[%s2749_s1 + $0x60] sm:$0xf]  ;;  %vm130_vm1 = vcmask 1043456  }
   0x9   :  { %652 = vst [vmem:[#allocation3 + $0x8] sm:$0xff] %v2259_v0  ;;  %v1676_v9 = vor.u32 %v2118_v7, %v1675_v6  ;;  %v2084_v11 = vld [vmem:[%s2749_s1 + $0x64] sm:$0xf0]  ;;  %v1603_v12 = vld [vmem:[%s2749_s1 + $0xe0] sm:$0xf]  ;;  %391 = vmatpush.bf16.msra.mxu0 %v1548_v4  ;;  %vm657_vm9 = vcmask 1043458  }
   0xa   :  { %v1540_v13 = vor.u32 %v2084_v11, %v1539_v10  ;;  %v2100_v14 = vld [vmem:[%s2749_s1 + $0xe4] sm:$0xf0]  ;;  %v1667_v15 = vld [vmem:[%s2749_s1 + $0x160] sm:$0xf]  ;;  %404 = vmatpush.bf16.msra.mxu1 %v1612_v8  ;;  %v1531_v19 = vld [vmem:[%s2749_s1 + $0x50] sm:$0xf] }
   0xb   :  { %v2116_v16 = vld [vmem:[%s2749_s1 + $0x164] sm:$0xf0]  ;;  %417 = vmatpush.bf16.msra.mxu2 %v1676_v9  ;;  %v1604_v17 = vor.u32 %v2100_v14, %v1603_v12  ;;  %v2082_v20 = vld [vmem:[%s2749_s1 + $0x54] sm:$0xf0]  ;;  %v1595_v21 = vld [vmem:[%s2749_s1 + $0xd0] sm:$0xf] }
   0xc   :  { %v1668_v18 = vor.u32 %v2116_v16, %v1667_v15  ;;  %v2098_v22 = vld [vmem:[%s2749_s1 + $0xd4] sm:$0xf0]  ;;  %v1659_v23 = vld [vmem:[%s2749_s1 + $0x150] sm:$0xf]  ;;  %v1532_v25 = vor.u32 %v2082_v20, %v1531_v19  ;;  %v1523_v26 = vld [vmem:[%s2749_s1 + $0x40] sm:$0xf] }
   0xd   :  { %v2114_v24 = vld [vmem:[%s2749_s1 + $0x154] sm:$0xf0]  ;;  %392 = vmatpush.bf16.msra.mxu0 %v1540_v13  ;;  %v2080_v27 = vld [vmem:[%s2749_s1 + $0x44] sm:$0xf0]  ;;  %v1596_v28 = vor.u32 %v2098_v22, %v1595_v21  ;;  %v1587_v30 = vld [vmem:[%s2749_s1 + $0xc0] sm:$0xf] }
   0xe   :  { %405 = vmatpush.bf16.msra.mxu1 %v1604_v17  ;;  %v1660_v29 = vor.u32 %v2114_v24, %v1659_v23  ;;  %v2085_v31 = vld [vmem:[%s2749_s1 + $0x74] sm:$0xf]  ;;  %v1549_v32 = vld [vmem:[%s2749_s1 + $0x78] sm:$0xf0]  ;;  %v2096_v33 = vld [vmem:[%s2749_s1 + $0xc4] sm:$0xf0]  ;;  %v1524_v38 = vor.u32 %v2080_v27, %v1523_v26 }
   0xf   :  { %418 = vmatpush.bf16.msra.mxu2 %v1668_v18  ;;  %v1651_v34 = vld [vmem:[%s2749_s1 + $0x140] sm:$0xf]  ;;  %v2112_v35 = vld [vmem:[%s2749_s1 + $0x144] sm:$0xf0]  ;;  %v1552_v36 = vor.u32 %v2085_v31, %v1549_v32  ;;  %v2083_v37 = vld [vmem:[%s2749_s1 + $0x64] sm:$0xf]  ;;  %v1588_v42 = vor.u32 %v2096_v33, %v1587_v30 }
  0x10   :  { %v1515_v39 = vld [vmem:[%s2749_s1 + $0x30] sm:$0xf]  ;;  %v2078_v40 = vld [vmem:[%s2749_s1 + $0x34] sm:$0xf0]  ;;  %v1541_v41 = vld [vmem:[%s2749_s1 + $0x68] sm:$0xf0]  ;;  %v1652_v43 = vor.u32 %v2112_v35, %v1651_v34 }
  0x11   :  { %393 = vmatpush.bf16.msra.mxu0 %v1532_v25  ;;  %430 = vmatpush.bf16.msra.mxu3 %v1552_v36  ;;  %v1579_v44 = vld [vmem:[%s2749_s1 + $0xb0] sm:$0xf]  ;;  %v2094_v45 = vld [vmem:[%s2749_s1 + $0xb4] sm:$0xf0]  ;;  %v1544_v47 = vor.u32 %v2083_v37, %v1541_v41  ;;  %v2081_v49 = vld [vmem:[%s2749_s1 + $0x54] sm:$0xf]  ;;  %v1516_v51 = vor.u32 %v2078_v40, %v1515_v39 }
  0x12   :  { %406 = vmatpush.bf16.msra.mxu1 %v1596_v28  ;;  %v1643_v46 = vld [vmem:[%s2749_s1 + $0x130] sm:$0xf]  ;;  %v2110_v48 = vld [vmem:[%s2749_s1 + $0x134] sm:$0xf0]  ;;  %v1533_v50 = vld [vmem:[%s2749_s1 + $0x58] sm:$0xf0]  ;;  %v1580_v55 = vor.u32 %v2094_v45, %v1579_v44 }
  0x13   :  { %419 = vmatpush.bf16.msra.mxu2 %v1660_v29  ;;  %v1507_v52 = vld [vmem:[%s2749_s1 + $0x20] sm:$0xf]  ;;  %v2076_v53 = vld [vmem:[%s2749_s1 + $0x24] sm:$0xf0]  ;;  %v1536_v54 = vor.u32 %v2081_v49, %v1533_v50  ;;  %v1644_v56 = vor.u32 %v2110_v48, %v1643_v46  ;;  %v2079_v58 = vld [vmem:[%s2749_s1 + $0x44] sm:$0xf] }
  0x14   :  { %v1571_v57 = vld [vmem:[%s2749_s1 + $0xa0] sm:$0xf]  ;;  %v1525_v59 = vld [vmem:[%s2749_s1 + $0x48] sm:$0xf0]  ;;  %v2092_v60 = vld [vmem:[%s2749_s1 + $0xa4] sm:$0xf0]  ;;  %v1508_v1 = vor.u32 %v2076_v53, %v1507_v52 }
  0x15   :  { %394 = vmatpush.bf16.msra.mxu0 %v1524_v38  ;;  %431 = vmatpush.bf16.msra.mxu3 %v1544_v47  ;;  %v1635_v61 = vld [vmem:[%s2749_s1 + $0x120] sm:$0xf]  ;;  %v2108_v62 = vld [vmem:[%s2749_s1 + $0x124] sm:$0xf0]  ;;  %v1499_v63 = vld [vmem:[%s2749_s1 + $0x10] sm:$0xf]  ;;  %v1528_v5 = vor.u32 %v2079_v58, %v1525_v59  ;;  %v1572_v6 = vor.u32 %v2092_v60, %v1571_v57 }
  0x16   :  { %407 = vmatpush.bf16.msra.mxu1 %v1588_v42  ;;  %v2074_v0 = vld [vmem:[%s2749_s1 + $0x14] sm:$0xf0]  ;;  %v1563_v2 = vld [vmem:[%s2749_s1 + $0x90] sm:$0xf]  ;;  %v1636_v7 = vor.u32 %v2108_v62, %v1635_v61  ;;  %v2077_v9 = vld [vmem:[%s2749_s1 + $0x34] sm:$0xf] }
  0x17   :  { %420 = vmatpush.bf16.msra.mxu2 %v1652_v43  ;;  %v2090_v3 = vld [vmem:[%s2749_s1 + $0x94] sm:$0xf0]  ;;  %v1627_v4 = vld [vmem:[%s2749_s1 + $0x110] sm:$0xf]  ;;  %v1517_v10 = vld [vmem:[%s2749_s1 + $0x38] sm:$0xf0]  ;;  %v1500_v13 = vor.u32 %v2074_v0, %v1499_v63 }
  0x18   :  { %v2106_v8 = vld [vmem:[%s2749_s1 + $0x114] sm:$0xf0]  ;;  %v50_v11 = vld [vmem:[%s2748_s0] ss:$2 sm:$0x3]  ;;  %v1520_v21 = vor.u32 %v2077_v9, %v1517_v10  ;;  %v1564_v24 = vor.u32 %v2090_v3, %v1563_v2  ;;  %vm721_vm10 = vcmask 1045508  }
  0x19   :  { %395 = vmatpush.bf16.msra.mxu0 %v1516_v51  ;;  %432 = vmatpush.bf16.msra.mxu3 %v1536_v54  ;;  %v1486_v12 = vld [vmem:[%s2748_s0 + $0x4] ss:$2 sm:$0x3]  ;;  %v1491_v14 = vld [vmem:[%s2749_s1] sm:$0xf]  ;;  %v1628_v25 = vor.u32 %v2106_v8, %v1627_v4 }
  0x1a   :  { %408 = vmatpush.bf16.msra.mxu1 %v1580_v55  ;;  %v2072_v15 = vld [vmem:[%s2749_s1 + $0x4] sm:$0xf0]  ;;  %v1487_v16 = vld [vmem:[%s2748_s0 + $0x1] ss:$2 sm:$0x3] }
  0x1b   :  { %421 = vmatpush.bf16.msra.mxu2 %v1644_v56  ;;  %v1488_v17 = vld [vmem:[%s2748_s0 + $0x5] ss:$2 sm:$0x3]  ;;  %v1555_v18 = vld [vmem:[%s2749_s1 + $0x80] sm:$0xf]  ;;  %v57_v22 = vmax.f32 %v50_v11, %v1487_v16  ;;  %v1492_v33 = vor.u32 %v2072_v15, %v1491_v14 }
  0x1c   :  { %v2088_v19 = vld [vmem:[%s2749_s1 + $0x84] sm:$0xf0]  ;;  %v1619_v20 = vld [vmem:[%s2749_s1 + $0x100] sm:$0xf]  ;;  %v58_v23 = vmax.f32 %v1486_v12, %v1488_v17  ;;  %v2075_v27 = vld [vmem:[%s2749_s1 + $0x24] sm:$0xf] }
  0x1d   :  { %396 = vmatpush.bf16.msra.mxu0 %v1508_v1  ;;  %433 = vmatpush.bf16.msra.mxu3 %v1528_v5  ;;  %v2104_v26 = vld [vmem:[%s2749_s1 + $0x104] sm:$0xf0]  ;;  %v1509_v28 = vld [vmem:[%s2749_s1 + $0x28] sm:$0xf0]  ;;  %v2101_v29 = vld [vmem:[%s2749_s1 + $0xf4] sm:$0xf]  ;;  %v1556_v35 = vor.u32 %v2088_v19, %v1555_v18 }
  0x1e   :  { %409 = vmatpush.bf16.msra.mxu1 %v1572_v6  ;;  %v1613_v30 = vld [vmem:[%s2749_s1 + $0xf8] sm:$0xf0]  ;;  %59 = vst [vmem:[#allocation2 + $0x1] sm:$0x3] %v57_v22  ;;  %v2117_v31 = vld [vmem:[%s2749_s1 + $0x174] sm:$0xf]  ;;  %v1512_v34 = vor.u32 %v2075_v27, %v1509_v28  ;;  %v1620_v36 = vor.u32 %v2104_v26, %v1619_v20 }
  0x1f   :  { %422 = vmatpush.bf16.msra.mxu2 %v1636_v7  ;;  %v1677_v32 = vld [vmem:[%s2749_s1 + $0x178] sm:$0xf0]  ;;  %60 = vst [vmem:[#allocation2 + $0x5] sm:$0x3] %v58_v23  ;;  %v2073_v37 = vld [vmem:[%s2749_s1 + $0x14] sm:$0xf]  ;;  %v1616_v39 = vor.u32 %v2101_v29, %v1613_v30 }
  0x20   :  { %v1501_v38 = vld [vmem:[%s2749_s1 + $0x18] sm:$0xf0]  ;;  %v1680_v40 = vor.u32 %v2117_v31, %v1677_v32  ;;  %v2099_v41 = vld [vmem:[%s2749_s1 + $0xe4] sm:$0xf]  ;;  %v1605_v42 = vld [vmem:[%s2749_s1 + $0xe8] sm:$0xf0] }
  0x21   :  { %397 = vmatpush.bf16.msra.mxu0 %v1500_v13  ;;  %434 = vmatpush.bf16.msra.mxu3 %v1520_v21  ;;  %v2115_v43 = vld [vmem:[%s2749_s1 + $0x164] sm:$0xf]  ;;  %v1669_v44 = vld [vmem:[%s2749_s1 + $0x168] sm:$0xf0]  ;;  %v1504_v45 = vor.u32 %v2073_v37, %v1501_v38  ;;  %v2097_v46 = vld [vmem:[%s2749_s1 + $0xd4] sm:$0xf]  ;;  %v1608_v57 = vor.u32 %v2099_v41, %v1605_v42 }
  0x22   :  { %410 = vmatpush.bf16.msra.mxu1 %v1564_v24  ;;  %v1597_v47 = vld [vmem:[%s2749_s1 + $0xd8] sm:$0xf0]  ;;  %v2071_v48 = vld [vmem:[%s2749_s1 + $0x4] sm:$0xf]  ;;  %v1493_v49 = vld [vmem:[%s2749_s1 + $0x8] sm:$0xf0]  ;;  %v1672_v58 = vor.u32 %v2115_v43, %v1669_v44 }
  0x23   :  { %423 = vmatpush.bf16.msra.mxu2 %v1628_v25  ;;  %v2113_v53 = vld [vmem:[%s2749_s1 + $0x154] sm:$0xf]  ;;  %v1661_v63 = vld [vmem:[%s2749_s1 + $0x158] sm:$0xf0]  ;;  %v1496_v0 = vor.u32 %v2071_v48, %v1493_v49  ;;  %v1600_v3 = vor.u32 %v2097_v46, %v1597_v47  ;;  %v2095_v7 = vld [vmem:[%s2749_s1 + $0xc4] sm:$0xf] }
  0x24   :  { %v1664_v6 = vor.u32 %v2113_v53, %v1661_v63  ;;  %v1589_v8 = vld [vmem:[%s2749_s1 + $0xc8] sm:$0xf0]  ;;  %v2111_v9 = vld [vmem:[%s2749_s1 + $0x144] sm:$0xf]  ;;  %v2093_v13 = vld [vmem:[%s2749_s1 + $0xb4] sm:$0xf] }
  0x25   :  { %398 = vmatpush.bf16.msra.mxu0 %v1492_v33  ;;  %435 = vmatpush.bf16.msra.mxu3 %v1512_v34  ;;  %v112_v50 = vld [vmem:[#allocation2] sm:$0x3]  ;;  %v116_v52 = vld [vmem:[#allocation2 + $0x2] sm:$0x3]  ;;  %v1653_v10 = vld [vmem:[%s2749_s1 + $0x148] sm:$0xf0]  ;;  %v1592_v11 = vor.u32 %v2095_v7, %v1589_v8 }
  0x26   :  { %411 = vmatpush.bf16.msra.mxu1 %v1556_v35  ;;  %v114_v51 = vld [vmem:[#allocation2 + $0x1] sm:$0x3]  ;;  %v113_v54 = vld [vmem:[#allocation2 + $0x4] sm:$0x3]  ;;  %v117_v56 = vld [vmem:[#allocation2 + $0x6] sm:$0x3]  ;;  %v1656_v12 = vor.u32 %v2111_v9, %v1653_v10 }
  0x27   :  { %424 = vmatpush.bf16.msra.mxu2 %v1620_v36  ;;  %v115_v55 = vld [vmem:[#allocation2 + $0x5] sm:$0x3]  ;;  %v124_v59 = vrot.slane %v114_v51, 6  ;;  %v125_v60 = vrot.slane %v116_v52, 4  ;;  %v127_v62 = vrot.slane %v117_v56, 4  ;;  %v2260_v44 = vmov 4.0  }
  0x28   :  { %v126_v61 = vrot.slane %v115_v55, 6  ;;  %v1581_v14 = vld [vmem:[%s2749_s1 + $0xb8] sm:$0xf0]  ;;  %v2109_v15 = vld [vmem:[%s2749_s1 + $0x134] sm:$0xf]  ;;  %2220 = vrcp.f32 %v2260_v44 }
  0x29   :  { %443 = vmatpush.bf16.msrb.mxu0 %v1616_v39  ;;  %436 = vmatpush.bf16.msra.mxu3 %v1504_v45  ;;  %v129_v1 = vsel %vm128_vm0, %v112_v50, %v124_v59  ;;  %v1645_v16 = vld [vmem:[%s2749_s1 + $0x138] sm:$0xf0]  ;;  %v1584_v22 = vor.u32 %v2093_v13, %v1581_v14  ;;  %v2091_v24 = vld [vmem:[%s2749_s1 + $0xa4] sm:$0xf]  ;;  %v1573_v26 = vld [vmem:[%s2749_s1 + $0xa8] sm:$0xf0] }
  0x2a   :  { %456 = vmatpush.bf16.msrb.mxu1 %v1680_v40  ;;  %v132_v2 = vsel %vm128_vm0, %v113_v54, %v126_v61  ;;  %v131_v4 = vsel %vm130_vm1, %v129_v1, %v125_v60  ;;  %v1648_v23 = vor.u32 %v2109_v15, %v1645_v16  ;;  %v2107_v27 = vld [vmem:[%s2749_s1 + $0x124] sm:$0xf]  ;;  %v1637_v28 = vld [vmem:[%s2749_s1 + $0x128] sm:$0xf0]  ;;  %v1576_v29 = vor.u32 %v2091_v24, %v1573_v26  ;;  %v2089_v31 = vld [vmem:[%s2749_s1 + $0x94] sm:$0xf] }
  0x2b   :  { %v133_v5 = vsel %vm130_vm1, %v132_v2, %v127_v62  ;;  %134 = vst [vmem:[#allocation1] ss:$4 sm:$0xff] %v131_v4  ;;  %v1640_v30 = vor.u32 %v2107_v27, %v1637_v28  ;;  %v1565_v32 = vld [vmem:[%s2749_s1 + $0x98] sm:$0xf0]  ;;  %v2105_v33 = vld [vmem:[%s2749_s1 + $0x114] sm:$0xf] }
  0x2c   :  { %136 = vst [vmem:[#allocation1 + $0x1] ss:$4 sm:$0xff] %v133_v5  ;;  %v1629_v34 = vld [vmem:[%s2749_s1 + $0x118] sm:$0xf0]  ;;  %v1568_v35 = vor.u32 %v2089_v31, %v1565_v32  ;;  %v2087_v37 = vld [vmem:[%s2749_s1 + $0x84] sm:$0xf] }
  0x2d   :  { %444 = vmatpush.bf16.msrb.mxu0 %v1608_v57  ;;  %437 = vmatpush.bf16.msra.mxu3 %v1496_v0  ;;  %v1632_v36 = vor.u32 %v2105_v33, %v1629_v34  ;;  %v1557_v38 = vld [vmem:[%s2749_s1 + $0x88] sm:$0xf0]  ;;  %v2103_v39 = vld [vmem:[%s2749_s1 + $0x104] sm:$0xf]  ;;  %v109_v43 = vld [vmem:[%s2750_s2] sm:$0x3] }
  0x2e   :  { %457 = vmatpush.bf16.msrb.mxu1 %v1672_v58  ;;  %v1621_v40 = vld [vmem:[%s2749_s1 + $0x108] sm:$0xf0]  ;;  %v1560_v41 = vor.u32 %v2087_v37, %v1557_v38  ;;  %v147_v45 = vperm.slane %v109_v43, 0  ;;  %v2221_v46 = vpop.eup %2220  ;;  %v148_v60 = vperm.slane %v109_v43, 1 }
  0x2f   :  { %v1624_v42 = vor.u32 %v2103_v39, %v1621_v40  ;;  %v484_v51 = vmul.f32 4.0, %v2221_v46  ;;  %vm488_vm2 = vweird.f32 %v2221_v46 }
  0x31   :  { %445 = vmatpush.bf16.msrb.mxu0 %v1600_v3  ;;  %v485_v54 = vsub.f32 1.0, %v484_v51  ;;  %v2134_v51 = vld [vmem:[#allocation4 + $0x74] sm:$0xf0] }
  0x32   :  { %458 = vmatpush.bf16.msrb.mxu1 %v1664_v6 }
  0x33   :  { %v139_v17 = vld.sshfl [vmem:[#allocation1 + $0x10] sm:$0xff pattern:$0x73625140]  ;;  %v137_v18 = vld.sshfl [vmem:[#allocation1] sm:$0xff pattern:$0x73625140]  ;;  %v486_v61 = vmul.f32 %v2221_v46, %v485_v54 }
  0x34   :  { %v145_v19 = vpack.c.bf16 %v139_v17, %v139_v17  ;;  %v143_v20 = vpack.c.bf16 %v137_v18, %v137_v18  ;;  %v138_v21 = vld.sshfl [vmem:[#allocation1 + $0x8] sm:$0xff pattern:$0x73625140]  ;;  %v2150_v54 = vld [vmem:[#allocation4 + $0xf4] sm:$0xf0] }
  0x35   :  { %446 = vmatpush.bf16.msrb.mxu0 %v1592_v11  ;;  %v144_v25 = vpack.c.bf16 %v138_v21, %v138_v21  ;;  %v487_v2 = vadd.f32 %v2221_v46, %v486_v61 }
  0x36   :  { %459 = vmatpush.bf16.msrb.mxu1 %v1656_v12  ;;  %425 = vmatmul.bf16.vlgmr.msra.gmra.mxu2 %v145_v19 }
  0x37   :  { %399 = vmatmul.bf16.vlgmr.msra.gmra.mxu0 %v143_v20  ;;  %412 = vmatmul.bf16.vlgmr.msra.gmra.mxu1 %v144_v25  ;;  %v2622_v9 = vsel %vm488_vm2, %v2221_v46, %v487_v2  ;;  %v2132_v2 = vld [vmem:[#allocation4 + $0x64] sm:$0xf0] }
  0x38   :  { %438 = vmatmul.bf16.vlgmr.msra.gmra.mxu3 %v143_v20 }
  0x39   :  { %447 = vmatpush.bf16.msrb.mxu0 %v1584_v22 }
  0x3a   :  { %460 = vmatpush.bf16.msrb.mxu1 %v1648_v23 }
  0x3d   :  { %448 = vmatpush.bf16.msrb.mxu0 %v1576_v29 }
  0x3e   :  { %461 = vmatpush.bf16.msrb.mxu1 %v1640_v30 }
  0x41   :  { %449 = vmatpush.bf16.msrb.mxu0 %v1568_v35 }
  0x42   :  { %462 = vmatpush.bf16.msrb.mxu1 %v1632_v36 }
  0x45   :  { %450 = vmatpush.bf16.msrb.mxu0 %v1560_v41 }
  0x46   :  { %463 = vmatpush.bf16.msrb.mxu1 %v1624_v42 }
  0x48   :  { %451 = vmatmul.bf16.vlgmr.msrb.gmra.mxu0 %v144_v25 }
  0x49   :  { %464 = vmatmul.bf16.vlgmr.msrb.gmra.mxu1 %v145_v19 }
  0xb4   :  { %v400_v47 = vpop.f32.mrf.mxu0  ;;  %v413_v49 = vpop.f32.mrf.mxu1 }
  0xb5   :  { %v401_v48 = vadd.f32 %v400_v47, %v147_v45 }
  0xb7   :  { %v414_v50 = vadd.f32 %v413_v49, %v401_v48 }
  0xb9   :  { %v426_v52 = vpop.f32.mrf.mxu2 }
  0xba   :  { %v427_v53 = vadd.f32 %v426_v52, %v414_v50  ;;  %v1745_v50 = vld [vmem:[#allocation4 + $0x70] sm:$0xf] }
  0xbb   :  { %v439_v55 = vpop.f32.mrf.mxu3  ;;  %v1809_v52 = vld [vmem:[#allocation4 + $0xf0] sm:$0xf] }
  0xbc   :  { %v402_v56 = vpop.f32.mrf.mxu0  ;;  %v469_v57 = vsel %vm130_vm1, %v427_v53, 0.0  ;;  %v415_v58 = vpop.f32.mrf.mxu1  ;;  %v440_v0 = vadd.f32 %v439_v55, %v148_v60  ;;  %v1873_v55 = vld [vmem:[#allocation4 + $0x170] sm:$0xf]  ;;  %v2182_v60 = vld [vmem:[#allocation4 + $0x1f4] sm:$0xf0] }
  0xbd   :  { %v470_v59 = vrot.slane %v469_v57, 4  ;;  %v2166_v56 = vld [vmem:[#allocation4 + $0x174] sm:$0xf0] }
  0xbe   :  { %v1874_v58 = vor.u32 %v2166_v56, %v1873_v55  ;;  %v1713_v56 = vld [vmem:[#allocation4 + $0x30] sm:$0xf] }
  0xbf   :  { %v471_v62 = vadd.f32 %v470_v59, %v469_v57  ;;  %v1810_v57 = vor.u32 %v2150_v54, %v1809_v52  ;;  %v1937_v59 = vld [vmem:[#allocation4 + $0x1f0] sm:$0xf] }
  0xc0   :  { %1265 = vmatpush.bf16.msra.mxu0 %v1874_v58  ;;  %v1777_v58 = vld [vmem:[#allocation4 + $0xb0] sm:$0xf] }
  0xc1   :  { %v472_v63 = vrot.slane %v471_v62, 2  ;;  %v428_v1 = vpop.f32.mrf.mxu2  ;;  %1252 = vmatpush.bf16.msrb.mxu3 %v1810_v57  ;;  %v2126_v57 = vld [vmem:[#allocation4 + $0x34] sm:$0xf0] }
  0xc2   :  { %v1737_v1 = vld [vmem:[#allocation4 + $0x60] sm:$0xf] }
  0xc3   :  { %v441_v3 = vpop.f32.mrf.mxu3  ;;  %v473_v4 = vadd.f32 %v472_v63, %v471_v62  ;;  %v1938_v62 = vor.u32 %v2182_v60, %v1937_v59  ;;  %v1714_v60 = vor.u32 %v2126_v57, %v1713_v56  ;;  %v1747_v56 = vld [vmem:[#allocation4 + $0x78] sm:$0xf0] }
  0xc4   :  { %v1801_v3 = vld [vmem:[#allocation4 + $0xe0] sm:$0xf] }
  0xc5   :  { %v452_v5 = vpop.f32.mrf.mxu0  ;;  %v474_v7 = vrot.slane %v473_v4, 1  ;;  %1278 = vmatpush.bf16.msra.mxu1 %v1938_v62  ;;  %v2142_v62 = vld [vmem:[#allocation4 + $0xb4] sm:$0xf0] }
  0xc6   :  { %v465_v6 = vpop.f32.mrf.mxu1  ;;  %v453_v8 = vadd.f32 %v452_v5, %v440_v0  ;;  %v2148_v5 = vld [vmem:[#allocation4 + $0xe4] sm:$0xf0] }
  0xc7   :  { %v475_v10 = vadd.f32 %v474_v7, %v473_v4  ;;  %v1738_v4 = vor.u32 %v2132_v2, %v1737_v1  ;;  %v1905_v2 = vld [vmem:[#allocation4 + $0x1b0] sm:$0xf] }
  0xc8   :  { %v466_v11 = vadd.f32 %v465_v6, %v453_v8  ;;  %v1865_v6 = vld [vmem:[#allocation4 + $0x160] sm:$0xf]  ;;  %v1802_v8 = vor.u32 %v2148_v5, %v1801_v3  ;;  %v2174_v3 = vld [vmem:[#allocation4 + $0x1b4] sm:$0xf0] }
  0xc9   :  { %v490_v12 = vmul.f32 %v2622_v9, %v475_v10  ;;  %v2164_v10 = vld [vmem:[#allocation4 + $0x164] sm:$0xf0]  ;;  %v1906_v5 = vor.u32 %v2174_v3, %v1905_v2 }
  0xca   :  { %v476_v13 = vsel %vm130_vm1, %v466_v11, 0.0  ;;  %1253 = vmatpush.bf16.msrb.mxu3 %v1802_v8  ;;  %v1769_v8 = vld [vmem:[#allocation4 + $0xa0] sm:$0xf]  ;;  %v2196_v2 = vld [vmem:[#allocation4 + $0x264] sm:$0xf0] }
  0xcb   :  { %v477_v14 = vrot.slane %v476_v13, 4  ;;  %v2626_v15 = vsub.f32 %v427_v53, %v490_v12  ;;  %v1746_v53 = vor.u32 %v2134_v51, %v1745_v50  ;;  %v2180_v12 = vld [vmem:[#allocation4 + $0x1e4] sm:$0xf0]  ;;  %v1913_v50 = vld [vmem:[#allocation4 + $0x1c0] sm:$0xf] }
  0xcc   :  { %v2176_v51 = vld [vmem:[#allocation4 + $0x1c4] sm:$0xf0] }
  0xcd   :  { %v478_v16 = vadd.f32 %v477_v14, %v476_v13  ;;  %v454_v17 = vpop.f32.mrf.mxu0  ;;  %v494_v19 = vmul.f32 %v2626_v15, %v2626_v15  ;;  %1239 = vmatpush.bf16.msrb.mxu2 %v1746_v53  ;;  %v110_v13 = vld [vmem:[%s2751_s3] sm:$0x3]  ;;  %v1914_v55 = vor.u32 %v2176_v51, %v1913_v50  ;;  %v2001_v50 = vld [vmem:[#allocation4 + $0x270] sm:$0xf]  ;;  %v2198_v51 = vld [vmem:[#allocation4 + $0x274] sm:$0xf0] }
  0xce   :  { %v467_v18 = vpop.f32.mrf.mxu1 }
  0xcf   :  { %v479_v20 = vrot.slane %v478_v16, 2  ;;  %v496_v21 = vsel %vm130_vm1, %v494_v19, 0.0 }
  0xd0   :  { %v497_v22 = vrot.slane %v496_v21, 4 }
  0xd1   :  { %v480_v23 = vadd.f32 %v479_v20, %v478_v16  ;;  %1240 = vmatpush.bf16.msrb.mxu2 %v1738_v4  ;;  %v1866_v16 = vor.u32 %v2164_v10, %v1865_v6  ;;  %v1729_v20 = vld [vmem:[#allocation4 + $0x50] sm:$0xf]  ;;  %v1705_v6 = vld [vmem:[#allocation4 + $0x20] sm:$0xf] }
  0xd2   :  { %v498_v24 = vadd.f32 %v497_v22, %v496_v21  ;;  %v2130_v21 = vld [vmem:[#allocation4 + $0x54] sm:$0xf0] }
  0xd3   :  { %v481_v25 = vrot.slane %v480_v23, 1  ;;  %1266 = vmatpush.bf16.msra.mxu0 %v1866_v16  ;;  %v1730_v22 = vor.u32 %v2130_v21, %v1729_v20  ;;  %v2156_v16 = vld [vmem:[#allocation4 + $0x124] sm:$0xf0] }
  0xd4   :  { %v499_v26 = vrot.slane %v498_v24, 2 }
  0xd5   :  { %v482_v27 = vadd.f32 %v481_v25, %v480_v23  ;;  %v1793_v23 = vld [vmem:[#allocation4 + $0xd0] sm:$0xf]  ;;  %1241 = vmatpush.bf16.msrb.mxu2 %v1730_v22 }
  0xd6   :  { %v500_v28 = vadd.f32 %v499_v26, %v498_v24  ;;  %v2146_v24 = vld [vmem:[#allocation4 + $0xd4] sm:$0xf0]  ;;  %v1857_v25 = vld [vmem:[#allocation4 + $0x150] sm:$0xf] }
  0xd7   :  { %v491_v29 = vmul.f32 %v2622_v9, %v482_v27  ;;  %v1794_v27 = vor.u32 %v2146_v24, %v1793_v23  ;;  %v1697_v23 = vld [vmem:[#allocation4 + $0x10] sm:$0xf]  ;;  %v2122_v24 = vld [vmem:[#allocation4 + $0x14] sm:$0xf0] }
  0xd8   :  { %v501_v30 = vrot.slane %v500_v28, 1 }
  0xd9   :  { %v2632_v31 = vsub.f32 %v466_v11, %v491_v29  ;;  %v1929_v11 = vld [vmem:[#allocation4 + $0x1e0] sm:$0xf]  ;;  %v1921_v29 = vld [vmem:[#allocation4 + $0x1d0] sm:$0xf]  ;;  %1254 = vmatpush.bf16.msrb.mxu3 %v1794_v27 }
  0xda   :  { %v502_v32 = vadd.f32 %v501_v30, %v500_v28  ;;  %v1930_v17 = vor.u32 %v2180_v12, %v1929_v11  ;;  %v2162_v28 = vld [vmem:[#allocation4 + $0x154] sm:$0xf0]  ;;  %v111_v30 = vld [vmem:[%s2752_s4] sm:$0x3]  ;;  %v2140_v12 = vld [vmem:[#allocation4 + $0xa4] sm:$0xf0] }
  0xdb   :  { %v495_v33 = vmul.f32 %v2632_v31, %v2632_v31  ;;  %v545_v54 = vperm.slane %v111_v30, 1  ;;  %v1770_v14 = vor.u32 %v2140_v12, %v1769_v8  ;;  %v1739_v8 = vld [vmem:[#allocation4 + $0x68] sm:$0xf0] }
  0xdc   :  { %v510_v34 = vmul.f32 %v502_v32, %v2622_v9  ;;  %1279 = vmatpush.bf16.msra.mxu1 %v1930_v17  ;;  %v1897_v17 = vld [vmem:[#allocation4 + $0x1a0] sm:$0xf]  ;;  %v1803_v12 = vld [vmem:[#allocation4 + $0xe8] sm:$0xf0] }
  0xdd   :  { %v503_v35 = vsel %vm130_vm1, %v495_v33, 0.0  ;;  %v537_v33 = vperm.slane %v110_v13, 0 }
  0xde   :  { %v504_v36 = vrot.slane %v503_v35, 4  ;;  %v512_v37 = vadd.f32 1e-05, %v510_v34 }
  0xe0   :  { %v505_v38 = vadd.f32 %v504_v36, %v503_v35  ;;  %2222 = vrsqrt.f32 %v512_v37  ;;  %vm520_vm4 = vweird.f32 %v512_v37  ;;  %v538_v35 = vperm.slane %v110_v13, 1  ;;  %v1833_v13 = vld [vmem:[#allocation4 + $0x120] sm:$0xf] }
  0xe1   :  { %v1858_v36 = vor.u32 %v2162_v28, %v1857_v25  ;;  %v1834_v21 = vor.u32 %v2156_v16, %v1833_v13  ;;  %v1761_v25 = vld [vmem:[#allocation4 + $0x90] sm:$0xf]  ;;  %v1698_v28 = vor.u32 %v2122_v24, %v1697_v23  ;;  %v2145_v23 = vld [vmem:[#allocation4 + $0xd4] sm:$0xf]  ;;  %v1795_v24 = vld [vmem:[#allocation4 + $0xd8] sm:$0xf0] }
  0xe2   :  { %v506_v39 = vrot.slane %v505_v38, 2  ;;  %v1985_v13 = vld [vmem:[#allocation4 + $0x250] sm:$0xf] }
  0xe3   :  { %1267 = vmatpush.bf16.msra.mxu0 %v1858_v36  ;;  %v1889_v36 = vld [vmem:[#allocation4 + $0x190] sm:$0xf] }
  0xe4   :  { %v507_v40 = vadd.f32 %v506_v39, %v505_v38 }
  0xe6   :  { %v508_v41 = vrot.slane %v507_v40, 1  ;;  %v2638_v42 = vpop.eup %2222 }
  0xe7   :  { %v515_v43 = vmul.f32 %v2638_v42, %v512_v37  ;;  %vm521_vm3 = vweird.f32 %v2638_v42  ;;  %v2178_v37 = vld [vmem:[#allocation4 + $0x1d4] sm:$0xf0] }
  0xe8   :  { %v509_v44 = vadd.f32 %v508_v41, %v507_v40  ;;  %vm2654_vm5 = vmor %vm520_vm4, %vm521_vm3  ;;  %v1922_v39 = vor.u32 %v2178_v37, %v1921_v29  ;;  %v1721_v40 = vld [vmem:[#allocation4 + $0x40] sm:$0xf]  ;;  %v2128_v41 = vld [vmem:[#allocation4 + $0x44] sm:$0xf0] }
  0xe9   :  { %v516_v45 = vmul.f32 %v2638_v42, %v515_v43  ;;  %v2144_v43 = vld [vmem:[#allocation4 + $0xc4] sm:$0xf0]  ;;  %v2138_v29 = vld [vmem:[#allocation4 + $0x94] sm:$0xf0] }
  0xea   :  { %v511_v46 = vmul.f32 %v509_v44, %v2622_v9  ;;  %v1849_v44 = vld [vmem:[#allocation4 + $0x140] sm:$0xf]  ;;  %1280 = vmatpush.bf16.msra.mxu1 %v1922_v39  ;;  %v1762_v34 = vor.u32 %v2138_v29, %v1761_v25  ;;  %v2170_v37 = vld [vmem:[#allocation4 + $0x194] sm:$0xf0] }
  0xeb   :  { %v517_v47 = vmul.f32 0.5, %v516_v45  ;;  %v2160_v45 = vld [vmem:[#allocation4 + $0x144] sm:$0xf0]  ;;  %v1689_v39 = vld [vmem:[#allocation4] sm:$0xf] }
  0xec   :  { %v513_v48 = vadd.f32 1e-05, %v511_v46  ;;  %v544_v46 = vperm.slane %v111_v30, 0  ;;  %v1825_v30 = vld [vmem:[#allocation4 + $0x110] sm:$0xf] }
  0xed   :  { %v518_v49 = vsub.f32 1.5, %v517_v47  ;;  %v2041_v29 = vld [vmem:[#allocation4 + $0x2c0] sm:$0xf] }
  0xee   :  { %2224 = vrsqrt.f32 %v513_v48  ;;  %vm530_vm7 = vweird.f32 %v513_v48  ;;  %1281 = vmatpush.bf16.msra.mxu1 %v1914_v55  ;;  %v2133_v55 = vld [vmem:[#allocation4 + $0x74] sm:$0xf] }
  0xef   :  { %v519_v63 = vmul.f32 %v2638_v42, %v518_v49  ;;  %v1850_v49 = vor.u32 %v2160_v45, %v1849_v44  ;;  %v2152_v45 = vld [vmem:[#allocation4 + $0x104] sm:$0xf0] }
  0xf1   :  { %v523_v18 = vsel %vm2654_vm5, %v2638_v42, %v519_v63  ;;  %v1785_v42 = vld [vmem:[#allocation4 + $0xc0] sm:$0xf]  ;;  %1268 = vmatpush.bf16.msra.mxu0 %v1850_v49  ;;  %v2158_v63 = vld [vmem:[#allocation4 + $0x134] sm:$0xf0] }
  0xf2   :  { %v534_v32 = vmul.f32 %v523_v18, %v2626_v15  ;;  %v1722_v15 = vor.u32 %v2128_v41, %v1721_v40  ;;  %1282 = vmatpush.bf16.msra.mxu1 %v1906_v5  ;;  %v2172_v18 = vld [vmem:[#allocation4 + $0x1a4] sm:$0xf0] }
  0xf3   :  { %v1898_v22 = vor.u32 %v2172_v18, %v1897_v17  ;;  %v2120_v40 = vld [vmem:[#allocation4 + $0x4] sm:$0xf0]  ;;  %v2049_v18 = vld [vmem:[#allocation4 + $0x2d0] sm:$0xf] }
  0xf4   :  { %v2643_v61 = vpop.eup %2224  ;;  %v541_v52 = vmul.f32 %v537_v33, %v534_v32  ;;  %1242 = vmatpush.bf16.msrb.mxu2 %v1722_v15  ;;  %v2154_v32 = vld [vmem:[#allocation4 + $0x114] sm:$0xf0]  ;;  %v1690_v41 = vor.u32 %v2120_v40, %v1689_v39  ;;  %v2136_v15 = vld [vmem:[#allocation4 + $0x84] sm:$0xf0]  ;;  %v2143_v39 = vld [vmem:[#allocation4 + $0xc4] sm:$0xf] }
  0xf5   :  { %v525_v0 = vmul.f32 %v2643_v61, %v513_v48  ;;  %vm531_vm6 = vweird.f32 %v2643_v61  ;;  %v1786_v48 = vor.u32 %v2144_v43, %v1785_v42  ;;  %v1753_v42 = vld [vmem:[#allocation4 + $0x80] sm:$0xf]  ;;  %v2212_v5 = vld [vmem:[#allocation4 + $0x2e4] sm:$0xf0]  ;;  %v1787_v40 = vld [vmem:[#allocation4 + $0xc8] sm:$0xf0] }
  0xf6   :  { %vm2668_vm8 = vmor %vm530_vm7, %vm531_vm6  ;;  %v548_v4 = vadd.f32 %v544_v46, %v541_v52  ;;  %1283 = vmatpush.bf16.msra.mxu1 %v1898_v22  ;;  %v1817_v43 = vld [vmem:[#allocation4 + $0x100] sm:$0xf]  ;;  %v1754_v44 = vor.u32 %v2136_v15, %v1753_v42  ;;  %v2065_v52 = vld [vmem:[#allocation4 + $0x2f0] sm:$0xf] }
  0xf7   :  { %v526_v7 = vmul.f32 %v2643_v61, %v525_v0  ;;  %1255 = vmatpush.bf16.msrb.mxu3 %v1786_v48  ;;  %v1778_v0 = vor.u32 %v2142_v62, %v1777_v58  ;;  %v1881_v46 = vld [vmem:[#allocation4 + $0x180] sm:$0xf]  ;;  %v1818_v48 = vor.u32 %v2152_v45, %v1817_v43  ;;  %v1731_v22 = vld [vmem:[#allocation4 + $0x58] sm:$0xf0]  ;;  %v1969_v42 = vld [vmem:[#allocation4 + $0x230] sm:$0xf] }
  0xf8   :  { %1243 = vmatpush.bf16.msrb.mxu2 %v1714_v60  ;;  %v2149_v60 = vld [vmem:[#allocation4 + $0xf4] sm:$0xf]  ;;  %v2190_v15 = vld [vmem:[#allocation4 + $0x234] sm:$0xf0]  ;;  %v2033_v43 = vld [vmem:[#allocation4 + $0x2b0] sm:$0xf] }
  0xf9   :  { %v527_v19 = vmul.f32 0.5, %v526_v7  ;;  %v2124_v7 = vld [vmem:[#allocation4 + $0x24] sm:$0xf0]  ;;  %v2206_v45 = vld [vmem:[#allocation4 + $0x2b4] sm:$0xf0] }
  0xfa   :  { %v1706_v11 = vor.u32 %v2124_v7, %v1705_v6  ;;  %v2131_v6 = vld [vmem:[#allocation4 + $0x64] sm:$0xf] }
  0xfb   :  { %v528_v26 = vsub.f32 1.5, %v527_v19  ;;  %1256 = vmatpush.bf16.msrb.mxu3 %v1778_v0  ;;  %v550_v19 = vmax.f32 %v548_v4, 0.0 }
  0xfc   :  { %1244 = vmatpush.bf16.msrb.mxu2 %v1706_v11  ;;  %v1742_v11 = vor.u32 %v2131_v6, %v1739_v8  ;;  %v2017_v8 = vld [vmem:[#allocation4 + $0x290] sm:$0xf] }
  0xfd   :  { %v529_v38 = vmul.f32 %v2643_v61, %v528_v26 }
  0xff   :  { %v533_v47 = vsel %vm2668_vm8, %v2643_v61, %v529_v38  ;;  %v1841_v61 = vld [vmem:[#allocation4 + $0x130] sm:$0xf]  ;;  %1257 = vmatpush.bf16.msrb.mxu3 %v1770_v14  ;;  %v1890_v38 = vor.u32 %v2170_v37, %v1889_v36  ;;  %v2194_v14 = vld [vmem:[#allocation4 + $0x254] sm:$0xf0]  ;;  %v1723_v36 = vld [vmem:[#allocation4 + $0x48] sm:$0xf0] }
 0x100   :  { %v535_v53 = vmul.f32 %v533_v47, %v2632_v31  ;;  %v1842_v1 = vor.u32 %v2158_v63, %v1841_v61  ;;  %1245 = vmatpush.bf16.msrb.mxu2 %v1698_v28  ;;  %v2168_v47 = vld [vmem:[#allocation4 + $0x184] sm:$0xf0]  ;;  %v1811_v61 = vld [vmem:[#allocation4 + $0xf8] sm:$0xf0]  ;;  %v1993_v63 = vld [vmem:[#allocation4 + $0x260] sm:$0xf]  ;;  %v1986_v17 = vor.u32 %v2194_v14, %v1985_v13 }
 0x101   :  { %1284 = vmatpush.bf16.msra.mxu1 %v1890_v38  ;;  %v1882_v49 = vor.u32 %v2168_v47, %v1881_v46  ;;  %v1994_v4 = vor.u32 %v2196_v2, %v1993_v63  ;;  %v2192_v28 = vld [vmem:[#allocation4 + $0x244] sm:$0xf0]  ;;  %v2125_v46 = vld [vmem:[#allocation4 + $0x34] sm:$0xf]  ;;  %v1715_v47 = vld [vmem:[#allocation4 + $0x38] sm:$0xf0] }
 0x102   :  { %v542_v59 = vmul.f32 %v538_v35, %v535_v53  ;;  %1269 = vmatpush.bf16.msra.mxu0 %v1842_v1  ;;  %v1826_v35 = vor.u32 %v2154_v32, %v1825_v30  ;;  %v2002_v53 = vor.u32 %v2198_v51, %v2001_v50  ;;  %v1814_v1 = vor.u32 %v2149_v60, %v1811_v61  ;;  %v2141_v51 = vld [vmem:[#allocation4 + $0xb4] sm:$0xf]  ;;  %v2123_v63 = vld [vmem:[#allocation4 + $0x24] sm:$0xf]  ;;  %v1707_v2 = vld [vmem:[#allocation4 + $0x28] sm:$0xf0] }
 0x103   :  { %1258 = vmatpush.bf16.msrb.mxu3 %v1762_v34  ;;  %v1718_v50 = vor.u32 %v2125_v46, %v1715_v47  ;;  %v2121_v13 = vld [vmem:[#allocation4 + $0x14] sm:$0xf]  ;;  %v1699_v14 = vld [vmem:[#allocation4 + $0x18] sm:$0xf0] }
 0x104   :  { %v549_v31 = vadd.f32 %v545_v54, %v542_v59  ;;  %1246 = vmatpush.bf16.msrb.mxu2 %v1690_v41  ;;  %v2214_v54 = vld [vmem:[#allocation4 + $0x2f4] sm:$0xf0]  ;;  %v1750_v59 = vor.u32 %v2133_v55, %v1747_v56  ;;  %v1790_v41 = vor.u32 %v2143_v39, %v1787_v40  ;;  %v2188_v55 = vld [vmem:[#allocation4 + $0x224] sm:$0xf0]  ;;  %v2025_v56 = vld [vmem:[#allocation4 + $0x2a0] sm:$0xf] }
 0x105   :  { %v2066_v58 = vor.u32 %v2214_v54, %v2065_v52  ;;  %1285 = vmatpush.bf16.msra.mxu1 %v1882_v49  ;;  %v2034_v49 = vor.u32 %v2206_v45, %v2033_v43  ;;  %v1779_v52 = vld [vmem:[#allocation4 + $0xb8] sm:$0xf0] }
 0x106   :  { %v551_v10 = vmax.f32 %v549_v31, 0.0  ;;  %1270 = vmatpush.bf16.msra.mxu0 %v1834_v21  ;;  %v2057_v31 = vld [vmem:[#allocation4 + $0x2e0] sm:$0xf]  ;;  %v1782_v54 = vor.u32 %v2141_v51, %v1779_v52 }
 0x107   :  { %1259 = vmatpush.bf16.msrb.mxu3 %v1754_v44  ;;  %v2058_v7 = vor.u32 %v2212_v5, %v2057_v31  ;;  %v1970_v44 = vor.u32 %v2190_v15, %v1969_v42  ;;  %v1771_v31 = vld [vmem:[#allocation4 + $0xa8] sm:$0xf0]  ;;  %v1953_v5 = vld [vmem:[#allocation4 + $0x210] sm:$0xf] }
 0x108   :  { %v655_v20 = vrot.slane %v551_v10, 6  ;;  %1291 = vmatpush.bf16.msra.mxu2 %v2002_v53  ;;  %v2147_v10 = vld [vmem:[#allocation4 + $0xe4] sm:$0xf]  ;;  %v1961_v53 = vld [vmem:[#allocation4 + $0x220] sm:$0xf] }
 0x109   :  { %1330 = vmatpush.bf16.msrb.mxu1 %v1814_v1  ;;  %v1806_v16 = vor.u32 %v2147_v10, %v1803_v12  ;;  %v1962_v60 = vor.u32 %v2188_v55, %v1961_v53  ;;  %v2202_v10 = vld [vmem:[#allocation4 + $0x294] sm:$0xf0]  ;;  %v1755_v42 = vld [vmem:[#allocation4 + $0x88] sm:$0xf0]  ;;  %v1875_v55 = vld [vmem:[#allocation4 + $0x178] sm:$0xf0] }
 0x10a   :  { %v656_v26 = vsel %vm128_vm0, %v550_v19, %v655_v20  ;;  %v658_v27 = vsel %vm657_vm9, %v550_v19, %v655_v20  ;;  %1271 = vmatpush.bf16.msra.mxu0 %v1826_v35  ;;  %v2210_v19 = vld [vmem:[#allocation4 + $0x2d4] sm:$0xf0]  ;;  %v2129_v20 = vld [vmem:[#allocation4 + $0x54] sm:$0xf]  ;;  %v2127_v35 = vld [vmem:[#allocation4 + $0x44] sm:$0xf]  ;;  %v2018_v12 = vor.u32 %v2202_v10, %v2017_v8 }
 0x10b   :  { %v659_v33 = vrot.slane %v658_v27, 2  ;;  %660 = vst [vmem:[#allocation1] ss:$2 sm:$0xff] %v656_v26  ;;  %1304 = vmatpush.bf16.msra.mxu3 %v2066_v58  ;;  %v2050_v21 = vor.u32 %v2210_v19, %v2049_v18  ;;  %v1734_v25 = vor.u32 %v2129_v20, %v1731_v22  ;;  %v1798_v26 = vor.u32 %v2145_v23, %v1795_v24  ;;  %v1977_v27 = vld [vmem:[#allocation4 + $0x240] sm:$0xf] }
 0x10c   :  { %1292 = vmatpush.bf16.msra.mxu2 %v1994_v4  ;;  %v1978_v32 = vor.u32 %v2192_v28, %v1977_v27  ;;  %v1726_v38 = vor.u32 %v2127_v35, %v1723_v36  ;;  %v2139_v4 = vld [vmem:[#allocation4 + $0xa4] sm:$0xf]  ;;  %v1763_v18 = vld [vmem:[#allocation4 + $0x98] sm:$0xf0]  ;;  %v1945_v20 = vld [vmem:[#allocation4 + $0x200] sm:$0xf] }
 0x10d   :  { %663 = vst [vmem:[#allocation1 + $0x10] ss:$2 sm:$0xff] %v659_v33  ;;  %1331 = vmatpush.bf16.msrb.mxu1 %v1806_v16  ;;  %v2208_v33 = vld [vmem:[#allocation4 + $0x2c4] sm:$0xf0]  ;;  %v1774_v6 = vor.u32 %v2139_v4, %v1771_v31  ;;  %v2137_v16 = vld [vmem:[#allocation4 + $0x94] sm:$0xf] }
 0x10e   :  { %1272 = vmatpush.bf16.msra.mxu0 %v1818_v48  ;;  %v2042_v34 = vor.u32 %v2208_v33, %v2041_v29  ;;  %v1766_v22 = vor.u32 %v2137_v16, %v1763_v18  ;;  %v2184_v27 = vld [vmem:[#allocation4 + $0x204] sm:$0xf0]  ;;  %v2119_v36 = vld [vmem:[#allocation4 + $0x4] sm:$0xf]  ;;  %v1995_v18 = vld [vmem:[#allocation4 + $0x268] sm:$0xf0] }
 0x10f   :  { %1305 = vmatpush.bf16.msra.mxu3 %v2058_v7  ;;  %v2186_v7 = vld [vmem:[#allocation4 + $0x214] sm:$0xf0]  ;;  %v2200_v35 = vld [vmem:[#allocation4 + $0x284] sm:$0xf0]  ;;  %v2179_v4 = vld [vmem:[#allocation4 + $0x1e4] sm:$0xf] }
 0x110   :  { %1293 = vmatpush.bf16.msra.mxu2 %v1986_v17  ;;  %v1702_v17 = vor.u32 %v2121_v13, %v1699_v14  ;;  %v1931_v13 = vld [vmem:[#allocation4 + $0x1e8] sm:$0xf0]  ;;  %v2195_v14 = vld [vmem:[#allocation4 + $0x264] sm:$0xf] }
 0x111   :  { %1332 = vmatpush.bf16.msrb.mxu1 %v1798_v26 }
 0x112   :  { %v661_v57 = vld.sshfl [vmem:[#allocation1] sm:$0xff pattern:$0x75643120]  ;;  %1317 = vmatpush.bf16.msrb.mxu0 %v1750_v59 }
 0x113   :  { %v665_v62 = vrot.slane %v661_v57, 7  ;;  %1306 = vmatpush.bf16.msra.mxu3 %v2050_v21  ;;  %v2204_v57 = vld [vmem:[#allocation4 + $0x2a4] sm:$0xf0] }
 0x114   :  { %v664_v0 = vld.sshfl [vmem:[#allocation1 + $0x10] sm:$0xff pattern:$0x75643120]  ;;  %1294 = vmatpush.bf16.msra.mxu2 %v1978_v32  ;;  %v2026_v61 = vor.u32 %v2204_v57, %v2025_v56  ;;  %v1939_v57 = vld [vmem:[#allocation4 + $0x1f8] sm:$0xf0] }
 0x115   :  { %v666_v3 = vrot.slane %v664_v0, 7  ;;  %669 = vst [vmem:[#allocation3] sm:$0x66] %v665_v62  ;;  %1333 = vmatpush.bf16.msrb.mxu1 %v1790_v41  ;;  %v2135_v41 = vld [vmem:[#allocation4 + $0x84] sm:$0xf] }
 0x116   :  { %1318 = vmatpush.bf16.msrb.mxu0 %v1742_v11  ;;  %v1954_v11 = vor.u32 %v2186_v7, %v1953_v5  ;;  %v1758_v43 = vor.u32 %v2135_v41, %v1755_v42  ;;  %v2181_v56 = vld [vmem:[#allocation4 + $0x1f4] sm:$0xf]  ;;  %v2175_v42 = vld [vmem:[#allocation4 + $0x1c4] sm:$0xf] }
 0x117   :  { %670 = vst [vmem:[#allocation3 + $0x8] sm:$0x66] %v666_v3  ;;  %1307 = vmatpush.bf16.msra.mxu3 %v2042_v34  ;;  %v1710_v3 = vor.u32 %v2123_v63, %v1707_v2  ;;  %v2009_v34 = vld [vmem:[#allocation4 + $0x280] sm:$0xf]  ;;  %v1942_v2 = vor.u32 %v2181_v56, %v1939_v57 }
 0x118   :  { %1295 = vmatpush.bf16.msra.mxu2 %v1970_v44  ;;  %v2010_v39 = vor.u32 %v2200_v35, %v2009_v34  ;;  %v2209_v34 = vld [vmem:[#allocation4 + $0x2d4] sm:$0xf]  ;;  %v2051_v35 = vld [vmem:[#allocation4 + $0x2d8] sm:$0xf0] }
 0x119   :  { %1334 = vmatpush.bf16.msrb.mxu1 %v1782_v54  ;;  %v2165_v54 = vld [vmem:[#allocation4 + $0x174] sm:$0xf]  ;;  %v2054_v41 = vor.u32 %v2209_v34, %v2051_v35  ;;  %v1883_v34 = vld [vmem:[#allocation4 + $0x188] sm:$0xf0]  ;;  %v2183_v35 = vld [vmem:[#allocation4 + $0x204] sm:$0xf] }
 0x11a   :  { %1319 = vmatpush.bf16.msrb.mxu0 %v1734_v25 }
 0x11b   :  { %1308 = vmatpush.bf16.msra.mxu3 %v2034_v49 }
 0x11c   :  { %v671_v30 = vld [vmem:[#allocation3] sm:$0x33]  ;;  %1296 = vmatpush.bf16.msra.mxu2 %v1962_v60  ;;  %v675_v19 = vld [vmem:[#allocation3] sm:$0xcc]  ;;  %v2003_v60 = vld [vmem:[#allocation4 + $0x278] sm:$0xf0] }
 0x11d   :  { %679 = vst [vmem:[#allocation1] ss:$2 sm:$0xff] %v671_v30  ;;  %v673_v48 = vld [vmem:[#allocation3] sm:$0x66]  ;;  %1335 = vmatpush.bf16.msrb.mxu1 %v1774_v6  ;;  %v1946_v30 = vor.u32 %v2184_v27, %v1945_v20  ;;  %v2059_v20 = vld [vmem:[#allocation4 + $0x2e8] sm:$0xf0] }
 0x11e   :  { %v672_v37 = vld [vmem:[#allocation3 + $0x8] sm:$0x33]  ;;  %1320 = vmatpush.bf16.msrb.mxu0 %v1726_v38  ;;  %v676_v21 = vld [vmem:[#allocation3 + $0x8] sm:$0xcc]  ;;  %v2177_v27 = vld [vmem:[#allocation4 + $0x1d4] sm:$0xf] }
 0x11f   :  { %683 = vst [vmem:[#allocation1 + $0x10] ss:$2 sm:$0xff] %v672_v37  ;;  %v674_v62 = vld [vmem:[#allocation3 + $0x8] sm:$0x66]  ;;  %1309 = vmatpush.bf16.msra.mxu3 %v2026_v61  ;;  %v1691_v37 = vld [vmem:[#allocation4 + $0x8] sm:$0xf0] }
 0x120   :  { %1297 = vmatpush.bf16.msra.mxu2 %v1954_v11  ;;  %v1694_v40 = vor.u32 %v2119_v36, %v1691_v37 }
 0x121   :  { %1336 = vmatpush.bf16.msrb.mxu1 %v1766_v22 }
 0x122   :  { %1321 = vmatpush.bf16.msrb.mxu0 %v1718_v50 }
 0x123   :  { %1310 = vmatpush.bf16.msra.mxu3 %v2018_v12 }
 0x124   :  { %v2679_v58 = vld.sshfl [vmem:[#allocation1] sm:$0xff pattern:$0x75316420]  ;;  %v2681_v59 = vld.sshfl [vmem:[#allocation1 + $0x8] sm:$0xff pattern:$0x75316420]  ;;  %1298 = vmatpush.bf16.msra.mxu2 %v1946_v30 }
 0x125   :  { %688 = vst [vmem:[#allocation1] ss:$2 sm:$0xff] %v673_v48  ;;  %v712_v38 = vrot.slane %v2681_v59, 6  ;;  %1337 = vmatpush.bf16.msrb.mxu1 %v1758_v43  ;;  %v2197_v59 = vld [vmem:[#allocation4 + $0x274] sm:$0xf] }
 0x126   :  { %v2683_v0 = vld.sshfl [vmem:[#allocation1 + $0x10] sm:$0xff pattern:$0x75316420]  ;;  %v2685_v1 = vld.sshfl [vmem:[#allocation1 + $0x18] sm:$0xff pattern:$0x75316420]  ;;  %1322 = vmatpush.bf16.msrb.mxu0 %v1710_v3  ;;  %v2006_v8 = vor.u32 %v2197_v59, %v2003_v60 }
 0x127   :  { %692 = vst [vmem:[#allocation1 + $0x10] ss:$2 sm:$0xff] %v674_v62  ;;  %v716_v15 = vrot.slane %v2685_v1, 6  ;;  %1311 = vmatpush.bf16.msra.mxu3 %v2010_v39  ;;  %v720_v46 = vsel %vm128_vm0, %v2679_v58, %v712_v38  ;;  %v2213_v58 = vld [vmem:[#allocation4 + $0x2f4] sm:$0xf]  ;;  %v1878_v1 = vor.u32 %v2165_v54, %v1875_v55 }
 0x128   :  { %v2067_v62 = vld [vmem:[#allocation4 + $0x2f8] sm:$0xf0]  ;;  %v2163_v3 = vld [vmem:[#allocation4 + $0x164] sm:$0xf]  ;;  %v1851_v39 = vld [vmem:[#allocation4 + $0x148] sm:$0xf0] }
 0x129   :  { %v725_v51 = vsel %vm128_vm0, %v2683_v0, %v716_v15  ;;  %v1867_v0 = vld [vmem:[#allocation4 + $0x168] sm:$0xf0]  ;;  %v2070_v10 = vor.u32 %v2213_v58, %v2067_v62  ;;  %v1923_v30 = vld [vmem:[#allocation4 + $0x1d8] sm:$0xf0]  ;;  %v2159_v38 = vld [vmem:[#allocation4 + $0x144] sm:$0xf] }
 0x12a   :  { %1323 = vmatpush.bf16.msrb.mxu0 %v1702_v17  ;;  %v1926_v37 = vor.u32 %v2177_v27, %v1923_v30  ;;  %v1915_v15 = vld [vmem:[#allocation4 + $0x1c8] sm:$0xf0]  ;;  %v2191_v43 = vld [vmem:[#allocation4 + $0x244] sm:$0xf]  ;;  %v1971_v59 = vld [vmem:[#allocation4 + $0x238] sm:$0xf0] }
 0x12b   :  { %v2205_v60 = vld [vmem:[#allocation4 + $0x2b4] sm:$0xf]  ;;  %v2035_v58 = vld [vmem:[#allocation4 + $0x2b8] sm:$0xf0] }
 0x12c   :  { %v689_v23 = vld.sshfl [vmem:[#allocation1] sm:$0xff pattern:$0x75316420]  ;;  %v690_v24 = vld.sshfl [vmem:[#allocation1 + $0x8] sm:$0xff pattern:$0x75316420] }
 0x12d   :  { %701 = vst [vmem:[#allocation1] ss:$2 sm:$0xff] %v675_v19  ;;  %v1681_v25 = vrot.slane %v689_v23, 5  ;;  %v1682_v26 = vrot.slane %v690_v24, 3  ;;  %v2211_v19 = vld [vmem:[#allocation4 + $0x2e4] sm:$0xf]  ;;  %v1870_v24 = vor.u32 %v2163_v3, %v1867_v0 }
 0x12e   :  { %v693_v28 = vld.sshfl [vmem:[#allocation1 + $0x10] sm:$0xff pattern:$0x75316420]  ;;  %v694_v29 = vld.sshfl [vmem:[#allocation1 + $0x18] sm:$0xff pattern:$0x75316420]  ;;  %1324 = vmatpush.bf16.msrb.mxu0 %v1694_v40 }
 0x12f   :  { %705 = vst [vmem:[#allocation1 + $0x10] ss:$2 sm:$0xff] %v676_v21  ;;  %v1684_v32 = vrot.slane %v693_v28, 5  ;;  %v1685_v33 = vrot.slane %v694_v29, 3  ;;  %v722_v44 = vsel %vm721_vm10, %v1681_v25, %v1682_v26  ;;  %v2161_v21 = vld [vmem:[#allocation4 + $0x154] sm:$0xf]  ;;  %v1934_v25 = vor.u32 %v2179_v4, %v1931_v13 }
 0x130   :  { %v723_v52 = vsel %vm130_vm1, %v720_v46, %v722_v44  ;;  %v1859_v26 = vld [vmem:[#allocation4 + $0x158] sm:$0xf0]  ;;  %v1998_v28 = vor.u32 %v2195_v14, %v1995_v18  ;;  %v2062_v29 = vor.u32 %v2211_v19, %v2059_v20  ;;  %v1979_v44 = vld [vmem:[#allocation4 + $0x248] sm:$0xf0]  ;;  %v2038_v4 = vor.u32 %v2205_v60, %v2035_v58  ;;  %v2203_v13 = vld [vmem:[#allocation4 + $0x2a4] sm:$0xf] }
 0x131   :  { %v726_v45 = vsel %vm721_vm10, %v1684_v32, %v1685_v33  ;;  %v2193_v32 = vld [vmem:[#allocation4 + $0x254] sm:$0xf]  ;;  %v1987_v33 = vld [vmem:[#allocation4 + $0x258] sm:$0xf0]  ;;  %v1862_v36 = vor.u32 %v2161_v21, %v1859_v26  ;;  %v2043_v46 = vld [vmem:[#allocation4 + $0x2c8] sm:$0xf0]  ;;  %v1982_v54 = vor.u32 %v2191_v43, %v1979_v44 }
 0x132   :  { %v727_v53 = vsel %vm130_vm1, %v725_v51, %v726_v45  ;;  %v1990_v40 = vor.u32 %v2193_v32, %v1987_v33  ;;  %v2207_v45 = vld [vmem:[#allocation4 + $0x2c4] sm:$0xf]  ;;  %v2173_v51 = vld [vmem:[#allocation4 + $0x1b4] sm:$0xf]  ;;  %v1835_v3 = vld [vmem:[#allocation4 + $0x128] sm:$0xf0] }
 0x133   :  { %v2046_v55 = vor.u32 %v2207_v45, %v2043_v46  ;;  %v2027_v14 = vld [vmem:[#allocation4 + $0x2a8] sm:$0xf0]  ;;  %v2153_v18 = vld [vmem:[#allocation4 + $0x114] sm:$0xf]  ;;  %v1827_v19 = vld [vmem:[#allocation4 + $0x118] sm:$0xf0] }
 0x134   :  { %v702_v47 = vld.sshfl [vmem:[#allocation1] sm:$0xff pattern:$0x75316420]  ;;  %v703_v48 = vld.sshfl [vmem:[#allocation1 + $0x8] sm:$0xff pattern:$0x75316420]  ;;  %v2030_v21 = vor.u32 %v2203_v13, %v2027_v14 }
 0x135   :  { %v708_v16 = vrot.slane %v702_v47, 2  ;;  %v2157_v47 = vld [vmem:[#allocation4 + $0x134] sm:$0xf]  ;;  %v2019_v27 = vld [vmem:[#allocation4 + $0x298] sm:$0xf0] }
 0x136   :  { %v706_v49 = vld.sshfl [vmem:[#allocation1 + $0x10] sm:$0xff pattern:$0x75316420]  ;;  %v707_v50 = vld.sshfl [vmem:[#allocation1 + $0x18] sm:$0xff pattern:$0x75316420] }
 0x137   :  { %729 = vst [vmem:[#allocation1] ss:$4 sm:$0xff] %v723_v52  ;;  %v710_v17 = vrot.slane %v706_v49, 2  ;;  %v724_v22 = vsel %vm128_vm0, %v708_v16, %v703_v48  ;;  %v1843_v48 = vld [vmem:[#allocation4 + $0x138] sm:$0xf0]  ;;  %v1854_v49 = vor.u32 %v2159_v38, %v1851_v39 }
 0x138   :  { %731 = vst [vmem:[#allocation1 + $0x1] ss:$4 sm:$0xff] %v727_v53  ;;  %v1907_v52 = vld [vmem:[#allocation4 + $0x1b8] sm:$0xf0]  ;;  %v2189_v53 = vld [vmem:[#allocation4 + $0x234] sm:$0xf]  ;;  %v1846_v62 = vor.u32 %v2157_v47, %v1843_v48 }
 0x139   :  { %v728_v23 = vsel %vm128_vm0, %v710_v17, %v707_v50  ;;  %733 = vst [vmem:[#allocation1 + $0x20] ss:$4 sm:$0xff] %v724_v22  ;;  %v1918_v50 = vor.u32 %v2175_v42, %v1915_v15  ;;  %v1974_v0 = vor.u32 %v2189_v53, %v1971_v59  ;;  %v2169_v22 = vld [vmem:[#allocation4 + $0x194] sm:$0xf]  ;;  %v2167_v33 = vld [vmem:[#allocation4 + $0x184] sm:$0xf] }
 0x13a   :  { %735 = vst [vmem:[#allocation1 + $0x21] ss:$4 sm:$0xff] %v728_v23  ;;  %v1891_v23 = vld [vmem:[#allocation4 + $0x198] sm:$0xf0]  ;;  %v2201_v26 = vld [vmem:[#allocation4 + $0x294] sm:$0xf] }
 0x13b   :  { %v2022_v32 = vor.u32 %v2201_v26, %v2019_v27  ;;  %v2011_v38 = vld [vmem:[#allocation4 + $0x288] sm:$0xf0]  ;;  %v648_v44 = vld [vmem:[%s2754_s6] sm:$0x3] }
 0x13c   :  { %v755_v45 = vperm.slane %v648_v44, 0 }
 0x13f   :  { %v736_v61 = vld.sshfl [vmem:[#allocation1] sm:$0xff pattern:$0x73625140]  ;;  %v737_v63 = vld.sshfl [vmem:[#allocation1 + $0x8] sm:$0xff pattern:$0x73625140] }
 0x140   :  { %v2697_v31 = vpack.c.bf16 %v736_v61, %v736_v61  ;;  %v2699_v5 = vpack.c.bf16 %v737_v63, %v737_v63  ;;  %v738_v6 = vld.sshfl [vmem:[#allocation1 + $0x10] sm:$0xff pattern:$0x73625140]  ;;  %v739_v7 = vld.sshfl [vmem:[#allocation1 + $0x18] sm:$0xff pattern:$0x73625140] }
 0x141   :  { %v2701_v11 = vpack.c.bf16 %v738_v6, %v738_v6  ;;  %v2703_v12 = vpack.c.bf16 %v739_v7, %v739_v7  ;;  %v740_v56 = vld.sshfl [vmem:[#allocation1 + $0x20] sm:$0xff pattern:$0x73625140]  ;;  %v741_v57 = vld.sshfl [vmem:[#allocation1 + $0x28] sm:$0xff pattern:$0x73625140] }
 0x142   :  { %1247 = vmatmul.bf16.vlgmr.msrb.gmra.mxu2 %v2697_v31  ;;  %1260 = vmatmul.bf16.vlgmr.msrb.gmra.mxu3 %v2699_v5  ;;  %v2711_v61 = vpack.c.bf16 %v740_v56, %v740_v56  ;;  %v2713_v63 = vpack.c.bf16 %v741_v57, %v741_v57  ;;  %v2171_v6 = vld [vmem:[#allocation4 + $0x1a4] sm:$0xf]  ;;  %v1899_v7 = vld [vmem:[#allocation4 + $0x1a8] sm:$0xf0] }
 0x143   :  { %1273 = vmatmul.bf16.vlgmr.msra.gmra.mxu0 %v2701_v11  ;;  %1286 = vmatmul.bf16.vlgmr.msra.gmra.mxu1 %v2703_v12  ;;  %v1902_v17 = vor.u32 %v2171_v6, %v1899_v7 }
 0x144   :  { %1343 = vmatpush.bf16.msrb.mxu2 %v1878_v1  ;;  %1356 = vmatpush.bf16.msrb.mxu3 %v1942_v2  ;;  %v1910_v1 = vor.u32 %v2173_v51, %v1907_v52  ;;  %v2155_v2 = vld [vmem:[#allocation4 + $0x124] sm:$0xf] }
 0x145   :  { %1369 = vmatpush.bf16.msra.mxu0 %v2006_v8  ;;  %1382 = vmatpush.bf16.msra.mxu1 %v2070_v10  ;;  %v2187_v8 = vld [vmem:[#allocation4 + $0x224] sm:$0xf]  ;;  %v1963_v10 = vld [vmem:[#allocation4 + $0x228] sm:$0xf0]  ;;  %v1838_v16 = vor.u32 %v2155_v2, %v1835_v3 }
 0x146   :  { %v1966_v20 = vor.u32 %v2187_v8, %v1963_v10 }
 0x148   :  { %1344 = vmatpush.bf16.msrb.mxu2 %v1870_v24  ;;  %1357 = vmatpush.bf16.msrb.mxu3 %v1934_v25  ;;  %v2185_v24 = vld [vmem:[#allocation4 + $0x214] sm:$0xf]  ;;  %v1955_v25 = vld [vmem:[#allocation4 + $0x218] sm:$0xf0] }
 0x149   :  { %1370 = vmatpush.bf16.msra.mxu0 %v1998_v28  ;;  %1383 = vmatpush.bf16.msra.mxu1 %v2062_v29  ;;  %v2151_v28 = vld [vmem:[#allocation4 + $0x104] sm:$0xf]  ;;  %v1819_v29 = vld [vmem:[#allocation4 + $0x108] sm:$0xf0]  ;;  %v1958_v30 = vor.u32 %v2185_v24, %v1955_v25 }
 0x14a   :  { %v1822_v39 = vor.u32 %v2151_v28, %v1819_v29 }
 0x14c   :  { %1345 = vmatpush.bf16.msrb.mxu2 %v1862_v36  ;;  %1358 = vmatpush.bf16.msrb.mxu3 %v1926_v37  ;;  %v1947_v36 = vld [vmem:[#allocation4 + $0x208] sm:$0xf0]  ;;  %v2199_v37 = vld [vmem:[#allocation4 + $0x284] sm:$0xf] }
 0x14d   :  { %1371 = vmatpush.bf16.msra.mxu0 %v1990_v40  ;;  %1384 = vmatpush.bf16.msra.mxu1 %v2054_v41  ;;  %v1886_v40 = vor.u32 %v2167_v33, %v1883_v34  ;;  %v1950_v41 = vor.u32 %v2183_v35, %v1947_v36  ;;  %v2014_v42 = vor.u32 %v2199_v37, %v2011_v38 }
 0x150   :  { %1346 = vmatpush.bf16.msrb.mxu2 %v1854_v49  ;;  %1359 = vmatpush.bf16.msrb.mxu3 %v1918_v50 }
 0x151   :  { %1372 = vmatpush.bf16.msra.mxu0 %v1982_v54  ;;  %1385 = vmatpush.bf16.msra.mxu1 %v2046_v55 }
 0x152   :  { %1299 = vmatmul.bf16.vlgmr.msra.gmra.mxu2 %v2711_v61  ;;  %1312 = vmatmul.bf16.vlgmr.msra.gmra.mxu3 %v2713_v63 }
 0x153   :  { %1325 = vmatmul.bf16.vlgmr.msrb.gmra.mxu0 %v2697_v31  ;;  %1338 = vmatmul.bf16.vlgmr.msrb.gmra.mxu1 %v2699_v5  ;;  %v1830_v31 = vor.u32 %v2153_v18, %v1827_v19  ;;  %v1894_v5 = vor.u32 %v2169_v22, %v1891_v23 }
 0x154   :  { %1347 = vmatpush.bf16.msrb.mxu2 %v1846_v62  ;;  %1360 = vmatpush.bf16.msrb.mxu3 %v1910_v1  ;;  %v756_v1 = vperm.slane %v648_v44, 1 }
 0x155   :  { %1373 = vmatpush.bf16.msra.mxu0 %v1974_v0  ;;  %1386 = vmatpush.bf16.msra.mxu1 %v2038_v4 }
 0x158   :  { %1348 = vmatpush.bf16.msrb.mxu2 %v1838_v16  ;;  %1361 = vmatpush.bf16.msrb.mxu3 %v1902_v17 }
 0x159   :  { %1374 = vmatpush.bf16.msra.mxu0 %v1966_v20  ;;  %1387 = vmatpush.bf16.msra.mxu1 %v2030_v21 }
 0x15c   :  { %1349 = vmatpush.bf16.msrb.mxu2 %v1830_v31  ;;  %1362 = vmatpush.bf16.msrb.mxu3 %v1894_v5 }
 0x15d   :  { %1375 = vmatpush.bf16.msra.mxu0 %v1958_v30  ;;  %1388 = vmatpush.bf16.msra.mxu1 %v2022_v32 }
 0x160   :  { %1350 = vmatpush.bf16.msrb.mxu2 %v1822_v39  ;;  %1363 = vmatpush.bf16.msrb.mxu3 %v1886_v40 }
 0x161   :  { %1376 = vmatpush.bf16.msra.mxu0 %v1950_v41  ;;  %1389 = vmatpush.bf16.msra.mxu1 %v2014_v42 }
 0x163   :  { %1351 = vmatmul.bf16.vlgmr.msrb.gmra.mxu2 %v2701_v11  ;;  %1364 = vmatmul.bf16.vlgmr.msrb.gmra.mxu3 %v2703_v12 }
 0x164   :  { %1377 = vmatmul.bf16.vlgmr.msra.gmra.mxu0 %v2711_v61  ;;  %1390 = vmatmul.bf16.vlgmr.msra.gmra.mxu1 %v2713_v63 }
 0x1c0   :  { %v1274_v15 = vpop.f32.mrf.mxu0  ;;  %v1287_v43 = vpop.f32.mrf.mxu1 }
 0x1c5   :  { %v1248_v46 = vpop.f32.mrf.mxu2  ;;  %v1261_v47 = vpop.f32.mrf.mxu3 }
 0x1c6   :  { %v1249_v48 = vadd.f32 %v1248_v46, %v755_v45 }
 0x1c8   :  { %v1276_v49 = vpop.f32.mrf.mxu0  ;;  %v1289_v50 = vpop.f32.mrf.mxu1  ;;  %v1262_v51 = vadd.f32 %v1261_v47, %v1249_v48 }
 0x1ca   :  { %v1275_v12 = vadd.f32 %v1274_v15, %v1262_v51 }
 0x1cc   :  { %v1288_v55 = vadd.f32 %v1287_v43, %v1275_v12 }
 0x1cd   :  { %v1250_v11 = vpop.f32.mrf.mxu2  ;;  %v1263_v52 = vpop.f32.mrf.mxu3 }
 0x1d0   :  { %v1326_v53 = vpop.f32.mrf.mxu0  ;;  %v1339_v54 = vpop.f32.mrf.mxu1 }
 0x1d1   :  { %v1327_v6 = vadd.f32 %v1326_v53, %v756_v1 }
 0x1d3   :  { %v1340_v14 = vadd.f32 %v1339_v54, %v1327_v6 }
 0x1d5   :  { %v1300_v56 = vpop.f32.mrf.mxu2  ;;  %v1313_v57 = vpop.f32.mrf.mxu3 }
 0x1d6   :  { %v1301_v59 = vadd.f32 %v1300_v56, %v1288_v55 }
 0x1d8   :  { %v1314_v60 = vadd.f32 %v1313_v57, %v1301_v59  ;;  %v1328_v58 = vpop.f32.mrf.mxu0  ;;  %v1341_v62 = vpop.f32.mrf.mxu1 }
 0x1da   :  { %v1395_v61 = vsel %vm130_vm1, %v1314_v60, 0.0 }
 0x1db   :  { %v1396_v63 = vrot.slane %v1395_v61, 4 }
 0x1dd   :  { %v1397_v2 = vadd.f32 %v1396_v63, %v1395_v61  ;;  %v1302_v3 = vpop.f32.mrf.mxu2  ;;  %v1315_v0 = vpop.f32.mrf.mxu3  ;;  %v649_v63 = vld [vmem:[%s2755_s7] sm:$0x3] }
 0x1de   :  { %v1456_v0 = vperm.slane %v649_v63, 0 }
 0x1df   :  { %v1398_v4 = vrot.slane %v1397_v2, 2 }
 0x1e1   :  { %v1399_v7 = vadd.f32 %v1398_v4, %v1397_v2  ;;  %v1378_v8 = vpop.f32.mrf.mxu0  ;;  %v1391_v10 = vpop.f32.mrf.mxu1  ;;  %v650_v4 = vld [vmem:[%s2756_s8] sm:$0x3] }
 0x1e3   :  { %v1400_v13 = vrot.slane %v1399_v7, 1 }
 0x1e5   :  { %v1401_v16 = vadd.f32 %v1400_v13, %v1399_v7  ;;  %v1457_v7 = vperm.slane %v649_v63, 1  ;;  %v1463_v13 = vperm.slane %v650_v4, 0 }
 0x1e6   :  { %v1352_v17 = vpop.f32.mrf.mxu2  ;;  %v1365_v18 = vpop.f32.mrf.mxu3 }
 0x1e7   :  { %v1409_v19 = vmul.f32 %v1401_v16, %v2622_v9  ;;  %v1353_v20 = vadd.f32 %v1352_v17, %v1340_v14  ;;  %v1464_v14 = vperm.slane %v650_v4, 1 }
 0x1e9   :  { %v1411_v21 = vsub.f32 %v1314_v60, %v1409_v19  ;;  %v1366_v22 = vadd.f32 %v1365_v18, %v1353_v20  ;;  %v1380_v23 = vpop.f32.mrf.mxu0  ;;  %v1393_v24 = vpop.f32.mrf.mxu1 }
 0x1eb   :  { %v1413_v25 = vmul.f32 %v1411_v21, %v1411_v21  ;;  %v1379_v26 = vadd.f32 %v1378_v8, %v1366_v22 }
 0x1ed   :  { %v1415_v27 = vsel %vm130_vm1, %v1413_v25, 0.0  ;;  %v1392_v31 = vadd.f32 %v1391_v10, %v1379_v26 }
 0x1ee   :  { %v1416_v5 = vrot.slane %v1415_v27, 4  ;;  %v1354_v28 = vpop.f32.mrf.mxu2  ;;  %v1367_v29 = vpop.f32.mrf.mxu3 }
 0x1ef   :  { %v1402_v30 = vsel %vm130_vm1, %v1392_v31, 0.0 }
 0x1f0   :  { %v1417_v32 = vadd.f32 %v1416_v5, %v1415_v27  ;;  %v1403_v33 = vrot.slane %v1402_v30, 4 }
 0x1f2   :  { %v1418_v34 = vrot.slane %v1417_v32, 2  ;;  %v1404_v35 = vadd.f32 %v1403_v33, %v1402_v30 }
 0x1f4   :  { %v1419_v36 = vadd.f32 %v1418_v34, %v1417_v32  ;;  %v1405_v37 = vrot.slane %v1404_v35, 2 }
 0x1f6   :  { %v1420_v38 = vrot.slane %v1419_v36, 1  ;;  %v1406_v39 = vadd.f32 %v1405_v37, %v1404_v35 }
 0x1f8   :  { %v1421_v40 = vadd.f32 %v1420_v38, %v1419_v36  ;;  %v1407_v41 = vrot.slane %v1406_v39, 1 }
 0x1fa   :  { %v1429_v42 = vmul.f32 %v1421_v40, %v2622_v9  ;;  %v1408_v15 = vadd.f32 %v1407_v41, %v1406_v39 }
 0x1fc   :  { %v1410_v43 = vmul.f32 %v1408_v15, %v2622_v9  ;;  %v1431_v44 = vadd.f32 1e-05, %v1429_v42 }
 0x1fe   :  { %v1412_v45 = vsub.f32 %v1392_v31, %v1410_v43  ;;  %2226 = vrsqrt.f32 %v1431_v44  ;;  %vm1439_vm12 = vweird.f32 %v1431_v44 }
 0x200   :  { %v1414_v46 = vmul.f32 %v1412_v45, %v1412_v45 }
 0x202   :  { %v1422_v47 = vsel %vm130_vm1, %v1414_v46, 0.0 }
 0x203   :  { %v1423_v48 = vrot.slane %v1422_v47, 4 }
 0x204   :  { %v2227_v50 = vpop.eup %2226 }
 0x205   :  { %v1424_v49 = vadd.f32 %v1423_v48, %v1422_v47  ;;  %v1434_v52 = vmul.f32 %v2227_v50, %v1431_v44  ;;  %vm1440_vm11 = vweird.f32 %v2227_v50 }
 0x206   :  { %vm1441_vm13 = vmor %vm1439_vm12, %vm1440_vm11 }
 0x207   :  { %v1425_v51 = vrot.slane %v1424_v49, 2  ;;  %v1435_v54 = vmul.f32 %v2227_v50, %v1434_v52 }
 0x209   :  { %v1426_v11 = vadd.f32 %v1425_v51, %v1424_v49  ;;  %v1436_v57 = vmul.f32 0.5, %v1435_v54 }
 0x20b   :  { %v1427_v12 = vrot.slane %v1426_v11, 1  ;;  %v1437_v59 = vsub.f32 1.5, %v1436_v57 }
 0x20d   :  { %v1428_v53 = vadd.f32 %v1427_v12, %v1426_v11  ;;  %v1438_v58 = vmul.f32 %v2227_v50, %v1437_v59 }
 0x20f   :  { %v1430_v55 = vmul.f32 %v1428_v53, %v2622_v9  ;;  %v1442_v1 = vsel %vm1441_vm13, %v2227_v50, %v1438_v58 }
 0x210   :  { %v1453_v9 = vmul.f32 %v1442_v1, %v1411_v21 }
 0x211   :  { %v1432_v56 = vadd.f32 1e-05, %v1430_v55 }
 0x212   :  { %v1460_v10 = vmul.f32 %v1456_v0, %v1453_v9 }
 0x213   :  { %2228 = vrsqrt.f32 %v1432_v56  ;;  %vm1449_vm15 = vweird.f32 %v1432_v56 }
 0x214   :  { %v1467_v18 = vadd.f32 %v1463_v13, %v1460_v10 }
 0x216   :  { %v1469_v22 = vmax.f32 %v1467_v18, 0.0 }
 0x219   :  { %v2229_v60 = vpop.eup %2228 }
 0x21a   :  { %v1444_v62 = vmul.f32 %v2229_v60, %v1432_v56  ;;  %vm1450_vm14 = vweird.f32 %v2229_v60 }
 0x21b   :  { %vm1451_vm1 = vmor %vm1449_vm15, %vm1450_vm14 }
 0x21c   :  { %v1445_v61 = vmul.f32 %v2229_v60, %v1444_v62 }
 0x21e   :  { %v1446_v2 = vmul.f32 0.5, %v1445_v61 }
 0x220   :  { %v1447_v3 = vsub.f32 1.5, %v1446_v2 }
 0x222   :  { %v1448_v6 = vmul.f32 %v2229_v60, %v1447_v3 }
 0x224   :  { %v1452_v8 = vsel %vm1451_vm1, %v2229_v60, %v1448_v6 }
 0x225   :  { %v1454_v16 = vmul.f32 %v1452_v8, %v1412_v45 }
 0x227   :  { %v1461_v17 = vmul.f32 %v1457_v7, %v1454_v16 }
 0x229   :  { %v1468_v19 = vadd.f32 %v1464_v14, %v1461_v17 }
 0x22b   :  { %v1470_v20 = vmax.f32 %v1468_v19, 0.0 }
 0x22d   :  { %v1473_v21 = vrot.slane %v1470_v20, 6 }
 0x22f   :  { %v1474_v23 = vsel %vm128_vm0, %v1469_v22, %v1473_v21  ;;  %v1475_v24 = vsel %vm657_vm9, %v1469_v22, %v1473_v21 }
 0x230   :  { %v1476_v25 = vrot.slane %v1475_v24, 2  ;;  %1479 = vst [vmem:[%s2757_s9] sm:$0xf] %v1474_v23 }
 0x232   :  { %1480 = vst [vmem:[%s2757_s9 + $0x4] sm:$0xf] %v1476_v25 }
 0x233   :  { %1485 = vsyncpa [#allocation5], 1 }

// kernel: diffusion_unet_forward.11
= control target key start
LH: loop header
LB: loop body
LE: loop exit
PB: predicated region body
PF: predicated region fallthrough
CT: control target
= control target key end

     0   :  { %16 = vsyncpa [#allocation5], 0  ;;  %s2091_s0 = inlined_call_operand.vmem [shape: f32[2,2,256], index: 0, kind: input, shape index: {}]   ;;  %s2092_s1 = inlined_call_operand.vmem [shape: f32[2,4,128], index: 1, kind: input, shape index: {}]   ;;  %s2093_s2 = inlined_call_operand.vmem [shape: f32[4,2], index: 2, kind: input, shape index: {}]   ;;  %s2094_s3 = inlined_call_operand.hbm [shape: bf16[1152,128], index: 3, kind: input, shape index: {}]   ;;  %s2095_s4 = inlined_call_operand.vmem [shape: f32[1,128], index: 4, kind: input, shape index: {}]   ;;  %s2096_s5 = inlined_call_operand.vmem [shape: f32[1,128], index: 5, kind: input, shape index: {}]   ;;  %s2097_s6 = inlined_call_operand.vmem [shape: f32[1,128], index: 6, kind: input, shape index: {}]   ;;  %s2098_s7 = inlined_call_operand.hbm [shape: bf16[384,128], index: 7, kind: input, shape index: {}]   ;;  %s2099_s8 = inlined_call_operand.vmem [shape: f32[1,128], index: 8, kind: input, shape index: {}]   ;;  %s2100_s9 = inlined_call_operand.vmem [shape: f32[1,128], index: 9, kind: input, shape index: {}]   ;;  %s2101_s10 = inlined_call_operand.vmem [shape: f32[1,128], index: 10, kind: input, shape index: {}]   ;;  %s2102_s11 = inlined_call_operand.vmem [shape: f32[2,4,128], index: 11, kind: output, shape index: {}]  }
   0x1   :  { %s28_s19 = sshll.u32 %s2094_s3, 4  ;;  %s29_s19 = int_to_ptr.hbm [resolvable:$true] %s28_s19 }
   0x2   :  { %17 = vsyncpa [#allocation7], 0  ;;  %s1951_s20 = smov [#allocation4]   ;;  %s47_s24 = sshll.u32 %s2098_s7, 4  ;;  %s48_s24 = int_to_ptr.hbm [resolvable:$true] %s47_s24 }
   0x3   :  { %s30_s21 = sshll.u32 %s1951_s20, 4  ;;  %s1952_s25 = smov 64   ;;  %s31_s21 = int_to_ptr.vmem [resolvable:$true] %s30_s21 }
   0x4   :  { %s1953_s26 = smov 4   ;;  %s1954_s27 = smov [#allocation6]  }
   0x5   :  { %36 = dma.hbm_to_vmem [thread:$0]  %s29_s19, 9216, %s31_s21, [#allocation5], %s1952_s25, %s1952_s25, %s1953_s26  }
   0x6   :  { %s49_s28 = sshll.u32 %s1954_s27, 4  ;;  %s50_s28 = int_to_ptr.vmem [resolvable:$true] %s49_s28 }
   0x7   :  { %55 = dma.hbm_to_vmem [thread:$0]  %s48_s24, 3072, %s50_s28, [#allocation7], %s1952_s25, %s1952_s25, %s1953_s26  }
   0x8   :  { %1947 = dma.done.wait [#allocation5], 9216  }
   0x9   :  { %1948 = vsyncadd [#allocation5], 4294958080 }
   0xa   :  { %1949 = dma.done.wait [#allocation7], 3072  }
   0xb   :  { %1950 = vsyncadd [#allocation7], 4294964224  ;;  %v77_v0 = vld [vmem:[%s2091_s0] sm:$0xf]  ;;  %v1389_v1 = vld [vmem:[%s2091_s0 + $0x4] sm:$0xf] }
   0xc   :  { %79 = vst [vmem:[#allocation1] ss:$4 sm:$0xff] %v77_v0  ;;  %vm86_vm0 = vcmask 1041408   ;;  %v76_v2 = vld [vmem:[%s2093_s2] sm:$0xf]  ;;  %vm82_vm1 = vcmask 15360  }
   0xd   :  { %v1792_v3 = vld [vmem:[#allocation4 + $0x38] sm:$0xff]  ;;  %v1791_v7 = vld [vmem:[#allocation4 + $0x30] sm:$0xff]  ;;  %v1955_v9 = vmov 0.0   ;;  %v1790_v10 = vld [vmem:[#allocation4 + $0x28] sm:$0xff]  ;;  %vm412_vm2 = vcmask 1043456  }
   0xe   :  { %v1800_v4 = vld [vmem:[#allocation4 + $0x78] sm:$0xff]  ;;  %v1799_v8 = vld [vmem:[#allocation4 + $0x70] sm:$0xff]  ;;  %70 = vst [vmem:[#allocation2 + $0x28] sm:$0x3f] %v1955_v9  ;;  %v1798_v13 = vld [vmem:[#allocation4 + $0x68] sm:$0xff] }
   0xf   :  { %72 = vst [vmem:[#allocation2 + $0x8] sm:$0x3f] %v1955_v9  ;;  %v1808_v11 = vld [vmem:[#allocation4 + $0xb8] sm:$0xff]  ;;  %v1789_v16 = vld [vmem:[#allocation4 + $0x20] sm:$0xff]  ;;  %v1807_v17 = vld [vmem:[#allocation4 + $0xb0] sm:$0xff] }
  0x10   :  { %75 = vst [vmem:[#allocation2 + $0x20] sm:$0x3f] %v1955_v9  ;;  %v1816_v12 = vld [vmem:[#allocation4 + $0xf8] sm:$0xff]  ;;  %v1815_v18 = vld [vmem:[#allocation4 + $0xf0] sm:$0xff]  ;;  %v1797_v19 = vld [vmem:[#allocation4 + $0x60] sm:$0xff] }
  0x11   :  { %71 = vst [vmem:[#allocation2 + $0x10] sm:$0x3f] %v1955_v9  ;;  %v1788_v20 = vld [vmem:[#allocation4 + $0x18] sm:$0xff]  ;;  %v1806_v21 = vld [vmem:[#allocation4 + $0xa8] sm:$0xff]  ;;  %v1787_v24 = vld [vmem:[#allocation4 + $0x10] sm:$0xff] }
  0x12   :  { %73 = vst [vmem:[#allocation2] sm:$0x3f] %v1955_v9  ;;  %v1814_v22 = vld [vmem:[#allocation4 + $0xe8] sm:$0xff]  ;;  %v1796_v23 = vld [vmem:[#allocation4 + $0x58] sm:$0xff]  ;;  %v1805_v25 = vld [vmem:[#allocation4 + $0xa0] sm:$0xff] }
  0x13   :  { %v80_v5 = vld.sshfl [vmem:[#allocation1] sm:$0xff pattern:$0x73625140]  ;;  %v81_v6 = vld.sshfl [vmem:[#allocation1 + $0x8] sm:$0xff pattern:$0x73625140] }
  0x14   :  { %147 = vst [vmem:[#allocation1] ss:$4 sm:$0xff] %v1389_v1  ;;  %1385 = vmatpush.msk.msra.mxu0 %vm86_vm0, %v80_v5  ;;  %1387 = vmatpush.msk.msra.mxu1 %vm86_vm0, %v81_v6  ;;  %v1813_v26 = vld [vmem:[#allocation4 + $0xe0] sm:$0xff]  ;;  %v1786_v27 = vld [vmem:[#allocation4 + $0x8] sm:$0xff]  ;;  %v1804_v28 = vld [vmem:[#allocation4 + $0x98] sm:$0xff] }
  0x15   :  { %1386 = vmatmul.msk.f32.vlgmr.msra.gmra.mxu0 %vm82_vm1, %v76_v2  ;;  %1388 = vmatmul.msk.f32.vlgmr.msra.gmra.mxu1 %vm82_vm1, %v76_v2  ;;  %74 = vst [vmem:[#allocation2 + $0x18] sm:$0x3f] %v1955_v9  ;;  %v1812_v29 = vld [vmem:[#allocation4 + $0xd8] sm:$0xff]  ;;  %v1785_v30 = vld [vmem:[#allocation4] sm:$0xff]  ;;  %v1795_v36 = vld [vmem:[#allocation4 + $0x50] sm:$0xff] }
  0x16   :  { %900 = vmatpush.bf16.msrb.mxu0 %v1792_v3  ;;  %913 = vmatpush.bf16.msrb.mxu1 %v1800_v4  ;;  %1112 = vst [vmem:[#allocation3] sm:$0x3f] %v1955_v9  ;;  %v1824_v31 = vld [vmem:[#allocation4 + $0x138] sm:$0xff]  ;;  %v1803_v37 = vld [vmem:[#allocation4 + $0x90] sm:$0xff]  ;;  %v1794_v40 = vld [vmem:[#allocation4 + $0x48] sm:$0xff] }
  0x17   :  { %1113 = vst [vmem:[#allocation3 + $0x8] sm:$0x3f] %v1955_v9  ;;  %v139_v32 = vld [vmem:[%s2092_s1] sm:$0xf]  ;;  %v1394_v33 = vld [vmem:[%s2092_s1 + $0x4] sm:$0xf] }
  0x18   :  { %v141_v34 = vrot.slane %v139_v32, 7  ;;  %v206_v35 = vrot.slane %v1394_v33, 7  ;;  %v1811_v38 = vld [vmem:[#allocation4 + $0xd0] sm:$0xff]  ;;  %v1802_v41 = vld [vmem:[#allocation4 + $0x88] sm:$0xff]  ;;  %v1793_v44 = vld [vmem:[#allocation4 + $0x40] sm:$0xff] }
  0x19   :  { %v1823_v39 = vld [vmem:[#allocation4 + $0x130] sm:$0xff]  ;;  %v1810_v42 = vld [vmem:[#allocation4 + $0xc8] sm:$0xff]  ;;  %v1801_v45 = vld [vmem:[#allocation4 + $0x80] sm:$0xff] }
  0x1a   :  { %901 = vmatpush.bf16.msrb.mxu0 %v1791_v7  ;;  %914 = vmatpush.bf16.msrb.mxu1 %v1799_v8  ;;  %143 = vst [vmem:[#allocation2 + $0x8] sm:$0x1e] %v141_v34  ;;  %v1822_v43 = vld [vmem:[#allocation4 + $0x128] sm:$0xff]  ;;  %v1809_v46 = vld [vmem:[#allocation4 + $0xc0] sm:$0xff]  ;;  %v1832_v48 = vld [vmem:[#allocation4 + $0x178] sm:$0xff] }
  0x1b   :  { %v148_v14 = vld.sshfl [vmem:[#allocation1] sm:$0xff pattern:$0x73625140]  ;;  %v149_v15 = vld.sshfl [vmem:[#allocation1 + $0x8] sm:$0xff pattern:$0x73625140] }
  0x1c   :  { %1390 = vmatpush.msk.msra.mxu2 %vm86_vm0, %v148_v14  ;;  %1392 = vmatpush.msk.msra.mxu3 %vm86_vm0, %v149_v15  ;;  %208 = vst [vmem:[#allocation2 + $0x20] sm:$0x1e] %v206_v35  ;;  %v1821_v47 = vld [vmem:[#allocation4 + $0x120] sm:$0xff]  ;;  %v1840_v49 = vld [vmem:[#allocation4 + $0x1b8] sm:$0xff]  ;;  %v1831_v52 = vld [vmem:[#allocation4 + $0x170] sm:$0xff] }
  0x1d   :  { %1391 = vmatmul.msk.f32.vlgmr.msra.gmra.mxu2 %vm82_vm1, %v76_v2  ;;  %1393 = vmatmul.msk.f32.vlgmr.msra.gmra.mxu3 %vm82_vm1, %v76_v2  ;;  %v1848_v50 = vld [vmem:[#allocation4 + $0x1f8] sm:$0xff]  ;;  %v1839_v53 = vld [vmem:[#allocation4 + $0x1b0] sm:$0xff]  ;;  %v1830_v56 = vld [vmem:[#allocation4 + $0x168] sm:$0xff] }
  0x1e   :  { %902 = vmatpush.bf16.msrb.mxu0 %v1790_v10  ;;  %926 = vmatpush.bf16.msrb.mxu2 %v1808_v11  ;;  %v1820_v51 = vld [vmem:[#allocation4 + $0x118] sm:$0xff]  ;;  %v1847_v54 = vld [vmem:[#allocation4 + $0x1f0] sm:$0xff]  ;;  %v1838_v57 = vld [vmem:[#allocation4 + $0x1a8] sm:$0xff] }
  0x1f   :  { %939 = vmatpush.bf16.msrb.mxu3 %v1816_v12  ;;  %915 = vmatpush.bf16.msrb.mxu1 %v1798_v13  ;;  %v1819_v55 = vld [vmem:[#allocation4 + $0x110] sm:$0xff]  ;;  %v1846_v58 = vld [vmem:[#allocation4 + $0x1e8] sm:$0xff]  ;;  %v1829_v0 = vld [vmem:[#allocation4 + $0x160] sm:$0xff] }
  0x20   :  { %v1818_v63 = vld [vmem:[#allocation4 + $0x108] sm:$0xff]  ;;  %v1837_v1 = vld [vmem:[#allocation4 + $0x1a0] sm:$0xff]  ;;  %v1828_v5 = vld [vmem:[#allocation4 + $0x158] sm:$0xff] }
  0x21   :  { %v1845_v2 = vld [vmem:[#allocation4 + $0x1e0] sm:$0xff]  ;;  %v364_v4 = vld [vmem:[#allocation2 + $0x8] sm:$0x1e]  ;;  %v1836_v6 = vld [vmem:[#allocation4 + $0x198] sm:$0xff] }
  0x22   :  { %903 = vmatpush.bf16.msrb.mxu0 %v1789_v16  ;;  %927 = vmatpush.bf16.msrb.mxu2 %v1807_v17  ;;  %v1817_v3 = vld [vmem:[#allocation4 + $0x100] sm:$0xff]  ;;  %v1844_v7 = vld [vmem:[#allocation4 + $0x1d8] sm:$0xff]  ;;  %v358_v8 = vld [vmem:[#allocation2 + $0x8] sm:$0xf]  ;;  %v1396_v11 = vrot.slane %v364_v4, 5 }
  0x23   :  { %940 = vmatpush.bf16.msrb.mxu3 %v1815_v18  ;;  %916 = vmatpush.bf16.msrb.mxu1 %v1797_v19  ;;  %v1827_v9 = vld [vmem:[#allocation4 + $0x150] sm:$0xff]  ;;  %v1842_v33 = vld [vmem:[#allocation4 + $0x1c8] sm:$0xff]  ;;  %v1825_v35 = vld [vmem:[#allocation4 + $0x140] sm:$0xff] }
  0x24   :  { %v1835_v10 = vld [vmem:[#allocation4 + $0x190] sm:$0xff] }
  0x25   :  { %v1843_v18 = vld [vmem:[#allocation4 + $0x1d0] sm:$0xff] }
  0x26   :  { %904 = vmatpush.bf16.msrb.mxu0 %v1788_v20  ;;  %928 = vmatpush.bf16.msrb.mxu2 %v1806_v21 }
  0x27   :  { %941 = vmatpush.bf16.msrb.mxu3 %v1814_v22  ;;  %917 = vmatpush.bf16.msrb.mxu1 %v1796_v23 }
  0x2a   :  { %905 = vmatpush.bf16.msrb.mxu0 %v1787_v24  ;;  %929 = vmatpush.bf16.msrb.mxu2 %v1805_v25 }
  0x2b   :  { %942 = vmatpush.bf16.msrb.mxu3 %v1813_v26  ;;  %918 = vmatpush.bf16.msrb.mxu1 %v1795_v36  ;;  %v1833_v36 = vld [vmem:[#allocation4 + $0x180] sm:$0xff] }
  0x2e   :  { %906 = vmatpush.bf16.msrb.mxu0 %v1786_v27  ;;  %930 = vmatpush.bf16.msrb.mxu2 %v1804_v28  ;;  %v1826_v28 = vld [vmem:[#allocation4 + $0x148] sm:$0xff] }
  0x2f   :  { %943 = vmatpush.bf16.msrb.mxu3 %v1812_v29  ;;  %919 = vmatpush.bf16.msrb.mxu1 %v1794_v40  ;;  %v1834_v29 = vld [vmem:[#allocation4 + $0x188] sm:$0xff] }
  0x32   :  { %907 = vmatpush.bf16.msrb.mxu0 %v1785_v30  ;;  %931 = vmatpush.bf16.msrb.mxu2 %v1803_v37  ;;  %v1841_v37 = vld [vmem:[#allocation4 + $0x1c0] sm:$0xff] }
  0x33   :  { %944 = vmatpush.bf16.msrb.mxu3 %v1811_v38  ;;  %920 = vmatpush.bf16.msrb.mxu1 %v1793_v44  ;;  %v367_v38 = vld [vmem:[#allocation2 + $0x20] sm:$0x1e] }
  0x34   :  { %v1399_v40 = vrot.slane %v367_v38, 5 }
  0x36   :  { %952 = vmatpush.bf16.msra.mxu0 %v1824_v31  ;;  %932 = vmatpush.bf16.msrb.mxu2 %v1802_v41 }
  0x37   :  { %945 = vmatpush.bf16.msrb.mxu3 %v1810_v42  ;;  %965 = vmatpush.bf16.msra.mxu1 %v1832_v48 }
  0x3a   :  { %953 = vmatpush.bf16.msra.mxu0 %v1823_v39  ;;  %933 = vmatpush.bf16.msrb.mxu2 %v1801_v45  ;;  %v361_v39 = vld [vmem:[#allocation2 + $0x20] sm:$0xf] }
  0x3b   :  { %946 = vmatpush.bf16.msrb.mxu3 %v1809_v46  ;;  %966 = vmatpush.bf16.msra.mxu1 %v1831_v52 }
  0x3e   :  { %954 = vmatpush.bf16.msra.mxu0 %v1822_v43  ;;  %978 = vmatpush.bf16.msra.mxu2 %v1840_v49 }
  0x3f   :  { %991 = vmatpush.bf16.msra.mxu3 %v1848_v50  ;;  %967 = vmatpush.bf16.msra.mxu1 %v1830_v56  ;;  %v370_v56 = vld [vmem:[#allocation2 + $0x8] sm:$0x3c] }
  0x42   :  { %955 = vmatpush.bf16.msra.mxu0 %v1821_v47  ;;  %979 = vmatpush.bf16.msra.mxu2 %v1839_v53 }
  0x43   :  { %992 = vmatpush.bf16.msra.mxu3 %v1847_v54  ;;  %968 = vmatpush.bf16.msra.mxu1 %v1829_v0 }
  0x46   :  { %956 = vmatpush.bf16.msra.mxu0 %v1820_v51  ;;  %980 = vmatpush.bf16.msra.mxu2 %v1838_v57  ;;  %v373_v57 = vld [vmem:[#allocation2 + $0x20] sm:$0x3c] }
  0x47   :  { %993 = vmatpush.bf16.msra.mxu3 %v1846_v58  ;;  %969 = vmatpush.bf16.msra.mxu1 %v1828_v5  ;;  %v394_v58 = vrot.slane %v370_v56, 2  ;;  %v1855_v5 = vld [vmem:[#allocation4 + $0x230] sm:$0xff] }
  0x4a   :  { %957 = vmatpush.bf16.msra.mxu0 %v1819_v55  ;;  %981 = vmatpush.bf16.msra.mxu2 %v1837_v1 }
  0x4b   :  { %994 = vmatpush.bf16.msra.mxu3 %v1845_v2  ;;  %970 = vmatpush.bf16.msra.mxu1 %v1827_v9 }
  0x4e   :  { %958 = vmatpush.bf16.msra.mxu0 %v1818_v63  ;;  %982 = vmatpush.bf16.msra.mxu2 %v1836_v6  ;;  %v1854_v6 = vld [vmem:[#allocation4 + $0x228] sm:$0xff] }
  0x4f   :  { %995 = vmatpush.bf16.msra.mxu3 %v1844_v7  ;;  %971 = vmatpush.bf16.msra.mxu1 %v1826_v28  ;;  %v1853_v7 = vld [vmem:[#allocation4 + $0x220] sm:$0xff] }
  0x52   :  { %959 = vmatpush.bf16.msra.mxu0 %v1817_v3  ;;  %983 = vmatpush.bf16.msra.mxu2 %v1835_v10 }
  0x53   :  { %996 = vmatpush.bf16.msra.mxu3 %v1843_v18  ;;  %972 = vmatpush.bf16.msra.mxu1 %v1825_v35  ;;  %v1850_v18 = vld [vmem:[#allocation4 + $0x208] sm:$0xff] }
  0x56   :  { %984 = vmatpush.bf16.msra.mxu2 %v1834_v29 }
  0x57   :  { %997 = vmatpush.bf16.msra.mxu3 %v1842_v33 }
  0x5a   :  { %985 = vmatpush.bf16.msra.mxu2 %v1833_v36 }
  0x5b   :  { %998 = vmatpush.bf16.msra.mxu3 %v1841_v37  ;;  %v1956_v37 = vmov 8.0  }
  0x5c   :  { %1893 = vrcp.f32 %v1956_v37  ;;  %v1857_v37 = vld [vmem:[#allocation6] sm:$0xff] }
  0x92   :  { %v108_v59 = vpop.f32.mrf.mxu0  ;;  %v128_v60 = vpop.f32.mrf.mxu1 }
  0x93   :  { %v133_v61 = vrot.slane %v108_v59, 7  ;;  %v134_v62 = vrot.slane %v128_v60, 7  ;;  %v397_v59 = vrot.slane %v373_v57, 2  ;;  %v1856_v60 = vld [vmem:[#allocation4 + $0x238] sm:$0xff] }
  0x95   :  { %137 = vst [vmem:[#allocation2 + $0x28] sm:$0x1e] %v133_v61 }
  0x96   :  { %138 = vst [vmem:[#allocation2 + $0x10] sm:$0x1e] %v134_v62 }
  0x9c   :  { %v356_v12 = vld [vmem:[#allocation2 + $0x28] sm:$0xf] }
  0x9d   :  { %v362_v13 = vld [vmem:[#allocation2 + $0x28] sm:$0x1e]  ;;  %v357_v16 = vld [vmem:[#allocation2 + $0x10] sm:$0xf] }
  0x9e   :  { %v368_v14 = vld [vmem:[#allocation2 + $0x28] sm:$0x3c]  ;;  %v1395_v15 = vrot.slane %v362_v13, 5  ;;  %v363_v17 = vld [vmem:[#allocation2 + $0x10] sm:$0x1e]  ;;  %v404_v22 = vrot.slane %v357_v16, 4 }
  0x9f   :  { %v392_v19 = vrot.slane %v368_v14, 2  ;;  %v369_v20 = vld [vmem:[#allocation2 + $0x10] sm:$0x3c]  ;;  %v381_v21 = vrot.slane %v363_v17, 1  ;;  %v1852_v14 = vld [vmem:[#allocation4 + $0x218] sm:$0xff] }
  0xa0   :  { %v1397_v23 = vrot.slane %v369_v20, 6  ;;  %v414_v24 = vsel %vm412_vm2, %v358_v8, %v1395_v15  ;;  %v413_v25 = vsel %vm412_vm2, %v356_v12, %v404_v22  ;;  %v171_v26 = vpop.f32.mrf.mxu2  ;;  %v191_v27 = vpop.f32.mrf.mxu3  ;;  %v1851_v17 = vld [vmem:[#allocation4 + $0x210] sm:$0xff] }
  0xa1   :  { %425 = vst [vmem:[#allocation1 + $0x10] ss:$2 sm:$0xff] %v414_v24  ;;  %v415_v30 = vsel %vm412_vm2, %v381_v21, %v1396_v11  ;;  %v196_v31 = vrot.slane %v171_v26, 7  ;;  %v197_v32 = vrot.slane %v191_v27, 7  ;;  %v1887_v24 = vld [vmem:[%s2095_s4] ss:$0 sm:$0xff] }
  0xa2   :  { %421 = vst [vmem:[#allocation1] ss:$2 sm:$0xff] %v413_v25  ;;  %v416_v34 = vsel %vm412_vm2, %v392_v19, %v1397_v23  ;;  %v1849_v19 = vld [vmem:[#allocation4 + $0x200] sm:$0xff] }
  0xa3   :  { %429 = vst [vmem:[#allocation1 + $0x20] ss:$2 sm:$0xff] %v415_v30 }
  0xa4   :  { %201 = vst [vmem:[#allocation2] sm:$0x1e] %v196_v31 }
  0xa5   :  { %202 = vst [vmem:[#allocation2 + $0x18] sm:$0x1e] %v197_v32 }
  0xa6   :  { %433 = vst [vmem:[#allocation1 + $0x30] ss:$2 sm:$0xff] %v416_v34 }
  0xab   :  { %v359_v41 = vld [vmem:[#allocation2] sm:$0xf] }
  0xac   :  { %v365_v42 = vld [vmem:[#allocation2] sm:$0x1e]  ;;  %v360_v46 = vld [vmem:[#allocation2 + $0x18] sm:$0xf] }
  0xad   :  { %v371_v43 = vld [vmem:[#allocation2] sm:$0x3c]  ;;  %v1398_v45 = vrot.slane %v365_v42, 5  ;;  %v366_v47 = vld [vmem:[#allocation2 + $0x18] sm:$0x1e]  ;;  %v408_v50 = vrot.slane %v360_v46, 4 }
  0xae   :  { %v395_v44 = vrot.slane %v371_v43, 2  ;;  %v372_v48 = vld [vmem:[#allocation2 + $0x18] sm:$0x3c]  ;;  %v384_v49 = vrot.slane %v366_v47, 1  ;;  %v1894_v43 = vpop.eup %1893 }
  0xaf   :  { %v1400_v51 = vrot.slane %v372_v48, 6  ;;  %v418_v52 = vsel %vm412_vm2, %v361_v39, %v1398_v45  ;;  %v417_v53 = vsel %vm412_vm2, %v359_v41, %v408_v50  ;;  %v1024_v46 = vmul.f32 8.0, %v1894_v43 }
  0xb0   :  { %427 = vst [vmem:[#allocation1 + $0x11] ss:$2 sm:$0xff] %v418_v52  ;;  %v419_v54 = vsel %vm412_vm2, %v384_v49, %v1399_v40  ;;  %vm1028_vm3 = vweird.f32 %v1894_v43 }
  0xb1   :  { %423 = vst [vmem:[#allocation1 + $0x1] ss:$2 sm:$0xff] %v417_v53  ;;  %v420_v55 = vsel %vm412_vm2, %v395_v44, %v1400_v51  ;;  %v1025_v51 = vsub.f32 1.0, %v1024_v46 }
  0xb2   :  { %431 = vst [vmem:[#allocation1 + $0x21] ss:$2 sm:$0xff] %v419_v54 }
  0xb3   :  { %435 = vst [vmem:[#allocation1 + $0x31] ss:$2 sm:$0xff] %v420_v55  ;;  %v1026_v54 = vmul.f32 %v1894_v43, %v1025_v51 }
  0xb5   :  { %v1027_v57 = vadd.f32 %v1894_v43, %v1026_v54 }
  0xb7   :  { %v438_v61 = vld.sshfl [vmem:[#allocation1 + $0x10] sm:$0xff pattern:$0x75316420]  ;;  %v439_v62 = vld.sshfl [vmem:[#allocation1 + $0x18] sm:$0xff pattern:$0x75316420] }
  0xb8   :  { %v436_v63 = vld.sshfl [vmem:[#allocation1] sm:$0xff pattern:$0x75316420]  ;;  %v437_v0 = vld.sshfl [vmem:[#allocation1 + $0x8] sm:$0xff pattern:$0x75316420]  ;;  %v458_v1 = vpack.c.bf16 %v438_v61, %v438_v61  ;;  %v459_v2 = vpack.c.bf16 %v439_v62, %v439_v62  ;;  %v2057_v61 = vsel %vm1028_vm3, %v1894_v43, %v1027_v57 }
  0xb9   :  { %v456_v3 = vpack.c.bf16 %v436_v63, %v436_v63  ;;  %444 = vst [vmem:[#allocation1] ss:$2 sm:$0xff] %v394_v58  ;;  %v457_v4 = vpack.c.bf16 %v437_v0, %v437_v0  ;;  %v440_v10 = vld.sshfl [vmem:[#allocation1 + $0x20] sm:$0xff pattern:$0x75316420] }
  0xba   :  { %445 = vst [vmem:[#allocation1 + $0x1] ss:$2 sm:$0xff] %v397_v59  ;;  %934 = vmatmul.bf16.vlgmr.msrb.gmra.mxu2 %v458_v1  ;;  %947 = vmatmul.bf16.vlgmr.msrb.gmra.mxu3 %v459_v2  ;;  %v442_v8 = vld.sshfl [vmem:[#allocation1 + $0x30] sm:$0xff pattern:$0x75316420]  ;;  %v460_v15 = vpack.c.bf16 %v440_v10, %v440_v10  ;;  %v1863_v10 = vld [vmem:[#allocation6 + $0x30] sm:$0xff] }
  0xbb   :  { %908 = vmatmul.bf16.vlgmr.msrb.gmra.mxu0 %v456_v3  ;;  %921 = vmatmul.bf16.vlgmr.msrb.gmra.mxu1 %v457_v4  ;;  %v443_v9 = vld.sshfl [vmem:[#allocation1 + $0x38] sm:$0xff pattern:$0x75316420]  ;;  %v441_v11 = vld.sshfl [vmem:[#allocation1 + $0x28] sm:$0xff pattern:$0x75316420]  ;;  %v462_v12 = vpack.c.bf16 %v442_v8, %v442_v8 }
  0xbc   :  { %1004 = vmatpush.bf16.msrb.mxu0 %v1856_v60  ;;  %v463_v13 = vpack.c.bf16 %v443_v9, %v443_v9  ;;  %v461_v16 = vpack.c.bf16 %v441_v11, %v441_v11  ;;  %v1880_v3 = vld [vmem:[#allocation6 + $0xb8] sm:$0xff]  ;;  %v1879_v8 = vld [vmem:[#allocation6 + $0xb0] sm:$0xff] }
  0xbd   :  { %1324 = vmatpush.bf16.msrb.mxu3 %v1880_v3  ;;  %v1871_v11 = vld [vmem:[#allocation6 + $0x70] sm:$0xff]  ;;  %v1889_v43 = vld [vmem:[%s2097_s6] ss:$0 sm:$0xff] }
  0xc0   :  { %1005 = vmatpush.bf16.msrb.mxu0 %v1855_v5  ;;  %v1864_v5 = vld [vmem:[#allocation6 + $0x38] sm:$0xff] }
  0xc1   :  { %v446_v20 = vld.sshfl [vmem:[#allocation1] sm:$0xff pattern:$0x75316420]  ;;  %1298 = vmatpush.bf16.msrb.mxu1 %v1864_v5  ;;  %1325 = vmatpush.bf16.msrb.mxu3 %v1879_v8 }
  0xc2   :  { %v464_v21 = vpack.c.bf16 %v446_v20, %v446_v20  ;;  %v1861_v20 = vld [vmem:[#allocation6 + $0x20] sm:$0xff] }
  0xc4   :  { %1006 = vmatpush.bf16.msrb.mxu0 %v1854_v6  ;;  %v1872_v6 = vld [vmem:[#allocation6 + $0x78] sm:$0xff] }
  0xc5   :  { %1311 = vmatpush.bf16.msrb.mxu2 %v1872_v6  ;;  %1299 = vmatpush.bf16.msrb.mxu1 %v1863_v10 }
  0xc8   :  { %1007 = vmatpush.bf16.msrb.mxu0 %v1853_v7 }
  0xc9   :  { %1312 = vmatpush.bf16.msrb.mxu2 %v1871_v11 }
  0xca   :  { %986 = vmatmul.bf16.vlgmr.msra.gmra.mxu2 %v462_v12  ;;  %999 = vmatmul.bf16.vlgmr.msra.gmra.mxu3 %v463_v13  ;;  %v1878_v13 = vld [vmem:[#allocation6 + $0xa8] sm:$0xff] }
  0xcb   :  { %960 = vmatmul.bf16.vlgmr.msra.gmra.mxu0 %v460_v15  ;;  %973 = vmatmul.bf16.vlgmr.msra.gmra.mxu1 %v461_v16  ;;  %v1862_v15 = vld [vmem:[#allocation6 + $0x28] sm:$0xff] }
  0xcc   :  { %1008 = vmatpush.bf16.msrb.mxu0 %v1852_v14  ;;  %1326 = vmatpush.bf16.msrb.mxu3 %v1878_v13  ;;  %v1870_v16 = vld [vmem:[#allocation6 + $0x68] sm:$0xff] }
  0xcd   :  { %1300 = vmatpush.bf16.msrb.mxu1 %v1862_v15  ;;  %1313 = vmatpush.bf16.msrb.mxu2 %v1870_v16 }
  0xd0   :  { %1009 = vmatpush.bf16.msrb.mxu0 %v1851_v17 }
  0xd1   :  { %1301 = vmatpush.bf16.msrb.mxu1 %v1861_v20 }
  0xd4   :  { %1010 = vmatpush.bf16.msrb.mxu0 %v1850_v18  ;;  %v1877_v18 = vld [vmem:[#allocation6 + $0xa0] sm:$0xff] }
  0xd5   :  { %1327 = vmatpush.bf16.msrb.mxu3 %v1877_v18 }
  0xd8   :  { %1011 = vmatpush.bf16.msrb.mxu0 %v1849_v19 }
  0xdb   :  { %1012 = vmatmul.bf16.vlgmr.msrb.gmra.mxu0 %v464_v21  ;;  %v1869_v21 = vld [vmem:[#allocation6 + $0x60] sm:$0xff] }
  0xdc   :  { %1314 = vmatpush.bf16.msrb.mxu2 %v1869_v21 }
 0x138   :  { %v909_v22 = vpop.f32.mrf.mxu0  ;;  %v922_v23 = vpop.f32.mrf.mxu1 }
 0x139   :  { %v910_v29 = vadd.f32 %v1887_v24, %v909_v22  ;;  %v1876_v22 = vld [vmem:[#allocation6 + $0x98] sm:$0xff] }
 0x13a   :  { %1328 = vmatpush.bf16.msrb.mxu3 %v1876_v22  ;;  %v1868_v24 = vld [vmem:[#allocation6 + $0x58] sm:$0xff] }
 0x13b   :  { %v923_v30 = vadd.f32 %v922_v23, %v910_v29  ;;  %v1860_v23 = vld [vmem:[#allocation6 + $0x18] sm:$0xff]  ;;  %1315 = vmatpush.bf16.msrb.mxu2 %v1868_v24  ;;  %v1867_v29 = vld [vmem:[#allocation6 + $0x50] sm:$0xff] }
 0x13c   :  { %1302 = vmatpush.bf16.msrb.mxu1 %v1860_v23 }
 0x13d   :  { %v935_v25 = vpop.f32.mrf.mxu2  ;;  %v948_v26 = vpop.f32.mrf.mxu3 }
 0x13e   :  { %v936_v33 = vadd.f32 %v935_v25, %v923_v30  ;;  %v1875_v25 = vld [vmem:[#allocation6 + $0x90] sm:$0xff]  ;;  %v1874_v30 = vld [vmem:[#allocation6 + $0x88] sm:$0xff] }
 0x13f   :  { %1329 = vmatpush.bf16.msrb.mxu3 %v1875_v25  ;;  %1316 = vmatpush.bf16.msrb.mxu2 %v1867_v29 }
 0x140   :  { %v911_v27 = vpop.f32.mrf.mxu0  ;;  %v924_v28 = vpop.f32.mrf.mxu1  ;;  %v949_v36 = vadd.f32 %v948_v26, %v936_v33  ;;  %v1866_v33 = vld [vmem:[#allocation6 + $0x48] sm:$0xff] }
 0x141   :  { %v1859_v28 = vld [vmem:[#allocation6 + $0x10] sm:$0xff] }
 0x142   :  { %1303 = vmatpush.bf16.msrb.mxu1 %v1859_v28 }
 0x143   :  { %1330 = vmatpush.bf16.msrb.mxu3 %v1874_v30  ;;  %1317 = vmatpush.bf16.msrb.mxu2 %v1866_v33 }
 0x145   :  { %v937_v31 = vpop.f32.mrf.mxu2  ;;  %v950_v32 = vpop.f32.mrf.mxu3 }
 0x146   :  { %v1858_v32 = vld [vmem:[#allocation6 + $0x8] sm:$0xff] }
 0x147   :  { %1304 = vmatpush.bf16.msrb.mxu1 %v1858_v32 }
 0x148   :  { %v961_v34 = vpop.f32.mrf.mxu0  ;;  %v974_v35 = vpop.f32.mrf.mxu1 }
 0x149   :  { %v962_v38 = vadd.f32 %v961_v34, %v949_v36  ;;  %v1873_v34 = vld [vmem:[#allocation6 + $0x80] sm:$0xff] }
 0x14a   :  { %1331 = vmatpush.bf16.msrb.mxu3 %v1873_v34  ;;  %v1891_v34 = vld [vmem:[%s2100_s9] ss:$0 sm:$0xff] }
 0x14b   :  { %v975_v44 = vadd.f32 %v974_v35, %v962_v38  ;;  %v1865_v38 = vld [vmem:[#allocation6 + $0x40] sm:$0xff]  ;;  %1305 = vmatpush.bf16.msrb.mxu1 %v1857_v37 }
 0x14c   :  { %1318 = vmatpush.bf16.msrb.mxu2 %v1865_v38 }
 0x14d   :  { %v987_v39 = vpop.f32.mrf.mxu2  ;;  %v1000_v40 = vpop.f32.mrf.mxu3 }
 0x14e   :  { %v988_v45 = vadd.f32 %v987_v39, %v975_v44 }
 0x150   :  { %v963_v41 = vpop.f32.mrf.mxu0  ;;  %v976_v42 = vpop.f32.mrf.mxu1  ;;  %v1001_v49 = vadd.f32 %v1000_v40, %v988_v45  ;;  %v1888_v40 = vld [vmem:[%s2096_s5] ss:$0 sm:$0xff] }
 0x155   :  { %v989_v47 = vpop.f32.mrf.mxu2  ;;  %v1002_v48 = vpop.f32.mrf.mxu3 }
 0x158   :  { %v1013_v50 = vpop.f32.mrf.mxu0 }
 0x159   :  { %v1014_v52 = vadd.f32 %v1013_v50, %v1001_v49 }
 0x15b   :  { %v1017_v53 = vrot.slane %v1014_v52, 4 }
 0x15d   :  { %v1018_v55 = vadd.f32 %v1017_v53, %v1014_v52 }
 0x15f   :  { %v1019_v56 = vrot.slane %v1018_v55, 2 }
 0x160   :  { %v1015_v58 = vpop.f32.mrf.mxu0 }
 0x161   :  { %v1020_v59 = vadd.f32 %v1019_v56, %v1018_v55 }
 0x163   :  { %v1021_v60 = vrot.slane %v1020_v59, 1 }
 0x165   :  { %v1022_v62 = vadd.f32 %v1021_v60, %v1020_v59 }
 0x167   :  { %v1030_v63 = vmul.f32 %v2057_v61, %v1022_v62 }
 0x169   :  { %v2060_v0 = vsub.f32 %v1014_v52, %v1030_v63 }
 0x16b   :  { %v1032_v1 = vmul.f32 %v2060_v0, %v2060_v0 }
 0x16d   :  { %v1033_v2 = vrot.slane %v1032_v1, 4 }
 0x16f   :  { %v1034_v4 = vadd.f32 %v1033_v2, %v1032_v1  ;;  %v1890_v2 = vld [vmem:[%s2099_s8] ss:$0 sm:$0xff] }
 0x171   :  { %v1035_v7 = vrot.slane %v1034_v4, 2 }
 0x173   :  { %v1036_v9 = vadd.f32 %v1035_v7, %v1034_v4 }
 0x175   :  { %v1037_v12 = vrot.slane %v1036_v9, 1 }
 0x177   :  { %v1038_v14 = vadd.f32 %v1037_v12, %v1036_v9 }
 0x179   :  { %v1039_v17 = vmul.f32 %v1038_v14, %v2057_v61 }
 0x17b   :  { %v1040_v19 = vadd.f32 1e-05, %v1039_v17 }
 0x17d   :  { %1895 = vrsqrt.f32 %v1040_v19  ;;  %vm1047_vm5 = vweird.f32 %v1040_v19 }
 0x183   :  { %v1896_v26 = vpop.eup %1895 }
 0x184   :  { %v1042_v27 = vmul.f32 %v1896_v26, %v1040_v19  ;;  %vm1048_vm4 = vweird.f32 %v1896_v26 }
 0x185   :  { %vm1049_vm6 = vmor %vm1047_vm5, %vm1048_vm4 }
 0x186   :  { %v1043_v31 = vmul.f32 %v1896_v26, %v1042_v27 }
 0x188   :  { %v1044_v35 = vmul.f32 0.5, %v1043_v31 }
 0x18a   :  { %v1045_v36 = vsub.f32 1.5, %v1044_v35 }
 0x18c   :  { %v1046_v39 = vmul.f32 %v1896_v26, %v1045_v36 }
 0x18e   :  { %v1050_v41 = vsel %vm1049_vm6, %v1896_v26, %v1046_v39 }
 0x18f   :  { %v1051_v42 = vmul.f32 %v1050_v41, %v2060_v0 }
 0x191   :  { %v1055_v44 = vmul.f32 %v1888_v40, %v1051_v42 }
 0x193   :  { %v1059_v45 = vadd.f32 %v1889_v43, %v1055_v44 }
 0x195   :  { %v1060_v46 = vmax.f32 %v1059_v45, 0.0 }
 0x197   :  { %v1115_v47 = vrot.slane %v1060_v46, 4  ;;  %1117 = vst [vmem:[#allocation3 + $0x1] sm:$0xf] %v1060_v46 }
 0x199   :  { %1118 = vst [vmem:[#allocation3 + $0x9] sm:$0xf] %v1115_v47 }
 0x19e   :  { %v1121_v48 = vld [vmem:[#allocation3 + $0x1] sm:$0xf] }
 0x19f   :  { %v1123_v49 = vld [vmem:[#allocation3 + $0x2] sm:$0xf]  ;;  %v1131_v50 = vrot.slane %v1121_v48, 4 }
 0x1a0   :  { %1139 = vst [vmem:[#allocation1 + $0x10] ss:$2 sm:$0xff] %v1123_v49  ;;  %v1119_v51 = vld [vmem:[#allocation3] sm:$0xf]  ;;  %v1122_v52 = vld [vmem:[#allocation3 + $0x9] sm:$0xf] }
 0x1a1   :  { %v1124_v53 = vld [vmem:[#allocation3 + $0xa] sm:$0xf]  ;;  %v1132_v54 = vrot.slane %v1122_v52, 4  ;;  %v1133_v55 = vsel %vm412_vm2, %v1119_v51, %v1131_v50 }
 0x1a2   :  { %1141 = vst [vmem:[#allocation1 + $0x11] ss:$2 sm:$0xff] %v1124_v53  ;;  %v1120_v56 = vld [vmem:[#allocation3 + $0x8] sm:$0xf] }
 0x1a3   :  { %1135 = vst [vmem:[#allocation1] ss:$2 sm:$0xff] %v1133_v55  ;;  %v1134_v57 = vsel %vm412_vm2, %v1120_v56, %v1132_v54 }
 0x1a4   :  { %1137 = vst [vmem:[#allocation1 + $0x1] ss:$2 sm:$0xff] %v1134_v57 }
 0x1a9   :  { %v1144_v58 = vld.sshfl [vmem:[#allocation1 + $0x10] sm:$0xff pattern:$0x75316420] }
 0x1aa   :  { %v1150_v59 = vpack.c.bf16 %v1144_v58, %v1144_v58 }
 0x1ab   :  { %v1142_v60 = vld.sshfl [vmem:[#allocation1] sm:$0xff pattern:$0x75316420]  ;;  %v1143_v62 = vld.sshfl [vmem:[#allocation1 + $0x8] sm:$0xff pattern:$0x75316420] }
 0x1ac   :  { %1332 = vmatmul.bf16.vlgmr.msrb.gmra.mxu3 %v1150_v59  ;;  %v1148_v63 = vpack.c.bf16 %v1142_v60, %v1142_v60  ;;  %v1149_v0 = vpack.c.bf16 %v1143_v62, %v1143_v62 }
 0x1ae   :  { %1306 = vmatmul.bf16.vlgmr.msrb.gmra.mxu1 %v1148_v63  ;;  %1319 = vmatmul.bf16.vlgmr.msrb.gmra.mxu2 %v1149_v0 }
 0x22b   :  { %v1307_v1 = vpop.f32.mrf.mxu1 }
 0x22c   :  { %v1308_v4 = vadd.f32 %v1890_v2, %v1307_v1 }
 0x22f   :  { %v1333_v3 = vpop.f32.mrf.mxu3 }
 0x231   :  { %v1320_v5 = vpop.f32.mrf.mxu2 }
 0x232   :  { %v1321_v6 = vadd.f32 %v1320_v5, %v1308_v4 }
 0x233   :  { %v1309_v7 = vpop.f32.mrf.mxu1 }
 0x234   :  { %v1334_v8 = vadd.f32 %v1333_v3, %v1321_v6 }
 0x236   :  { %v1337_v9 = vrot.slane %v1334_v8, 4 }
 0x237   :  { %v1335_v10 = vpop.f32.mrf.mxu3 }
 0x238   :  { %v1338_v11 = vadd.f32 %v1337_v9, %v1334_v8 }
 0x239   :  { %v1322_v12 = vpop.f32.mrf.mxu2 }
 0x23a   :  { %v1339_v13 = vrot.slane %v1338_v11, 2 }
 0x23c   :  { %v1340_v14 = vadd.f32 %v1339_v13, %v1338_v11 }
 0x23e   :  { %v1341_v15 = vrot.slane %v1340_v14, 1 }
 0x240   :  { %v1342_v16 = vadd.f32 %v1341_v15, %v1340_v14 }
 0x242   :  { %v1343_v17 = vmul.f32 %v1342_v16, %v2057_v61 }
 0x244   :  { %v1344_v18 = vsub.f32 %v1334_v8, %v1343_v17 }
 0x246   :  { %v1345_v19 = vmul.f32 %v1344_v18, %v1344_v18 }
 0x248   :  { %v1346_v20 = vrot.slane %v1345_v19, 4 }
 0x24a   :  { %v1347_v21 = vadd.f32 %v1346_v20, %v1345_v19 }
 0x24c   :  { %v1348_v22 = vrot.slane %v1347_v21, 2 }
 0x24e   :  { %v1349_v23 = vadd.f32 %v1348_v22, %v1347_v21 }
 0x250   :  { %v1350_v24 = vrot.slane %v1349_v23, 1 }
 0x252   :  { %v1351_v25 = vadd.f32 %v1350_v24, %v1349_v23 }
 0x254   :  { %v1352_v26 = vmul.f32 %v1351_v25, %v2057_v61  ;;  %v1892_v61 = vld [vmem:[%s2101_s10] ss:$0 sm:$0xff] }
 0x256   :  { %v1353_v27 = vadd.f32 1e-05, %v1352_v26 }
 0x258   :  { %1897 = vrsqrt.f32 %v1353_v27  ;;  %vm1360_vm8 = vweird.f32 %v1353_v27 }
 0x25e   :  { %v1898_v28 = vpop.eup %1897 }
 0x25f   :  { %v1355_v29 = vmul.f32 %v1898_v28, %v1353_v27  ;;  %vm1361_vm7 = vweird.f32 %v1898_v28 }
 0x260   :  { %vm1362_vm9 = vmor %vm1360_vm8, %vm1361_vm7 }
 0x261   :  { %v1356_v30 = vmul.f32 %v1898_v28, %v1355_v29 }
 0x263   :  { %v1357_v31 = vmul.f32 0.5, %v1356_v30 }
 0x265   :  { %v1358_v32 = vsub.f32 1.5, %v1357_v31 }
 0x267   :  { %v1359_v33 = vmul.f32 %v1898_v28, %v1358_v32 }
 0x269   :  { %v1363_v35 = vsel %vm1362_vm9, %v1898_v28, %v1359_v33 }
 0x26a   :  { %v1364_v36 = vmul.f32 %v1363_v35, %v1344_v18 }
 0x26c   :  { %v1368_v37 = vmul.f32 %v1891_v34, %v1364_v36 }
 0x26e   :  { %v1372_v38 = vadd.f32 %v1892_v61, %v1368_v37 }
 0x270   :  { %v1373_v39 = vmax.f32 %v1372_v38, 0.0 }
 0x272   :  { %v1375_v40 = vrot.slane %v1373_v39, 4  ;;  %1377 = vst [vmem:[%s2102_s11] sm:$0xf] %v1373_v39 }
 0x274   :  { %1378 = vst [vmem:[%s2102_s11 + $0x4] sm:$0xf] %v1375_v40 }
 0x275   :  { %1383 = vsyncpa [#allocation5], 1 }
 0x276   :  { %1384 = vsyncpa [#allocation7], 1 }

// kernel: diffusion_unet_forward.12
= control target key start
LH: loop header
LB: loop body
LE: loop exit
PB: predicated region body
PF: predicated region fallthrough
CT: control target
= control target key end

     0   :  { %vm52_vm0 = vcmask 1043456   ;;  %vm48_vm1 = vcmask 31744   ;;  %v1424_v8 = vmov 0.0   ;;  %vm85_vm2 = vcmask 523265   ;;  %s1777_s0 = inlined_call_operand.vmem [shape: f32[2,4,128], index: 0, kind: input, shape index: {}]   ;;  %s1778_s2 = inlined_call_operand.vmem [shape: f32[8,4], index: 2, kind: input, shape index: {}]   ;;  %s1779_s3 = inlined_call_operand.vmem [shape: bf16[768,64], index: 3, kind: input, shape index: {}]   ;;  %s1780_s1 = inlined_call_operand.vmem [shape: f32[2,8,64], index: 1, kind: input, shape index: {}]   ;;  %s1781_s4 = inlined_call_operand.vmem [shape: f32[1,64], index: 4, kind: input, shape index: {}]   ;;  %s1782_s5 = inlined_call_operand.vmem [shape: f32[1,64], index: 5, kind: input, shape index: {}]   ;;  %s1783_s6 = inlined_call_operand.vmem [shape: f32[1,64], index: 6, kind: input, shape index: {}]   ;;  %s1784_s8 = inlined_call_operand.vmem [shape: f32[1,64], index: 8, kind: input, shape index: {}]   ;;  %s1785_s7 = inlined_call_operand.vmem [shape: bf16[384,64], index: 7, kind: input, shape index: {}]   ;;  %s1786_s9 = inlined_call_operand.vmem [shape: f32[1,64], index: 9, kind: input, shape index: {}]   ;;  %s1787_s10 = inlined_call_operand.vmem [shape: f32[1,64], index: 10, kind: input, shape index: {}]   ;;  %s1788_s11 = inlined_call_operand.vmem [shape: f32[2,8,64], index: 11, kind: output, shape index: {}]  }
   0x1   :  { %v47_v0 = vld [vmem:[%s1777_s0] sm:$0xf]  ;;  %v1046_v1 = vld [vmem:[%s1777_s0 + $0x4] sm:$0xf]  ;;  %v1353_v3 = vld [vmem:[%s1779_s3 + $0x78] sm:$0xff]  ;;  %38 = vst [vmem:[#allocation2] sm:$0xff] %v1424_v8 }
   0x2   :  { %v46_v2 = vld [vmem:[%s1778_s2] sm:$0xff]  ;;  %1044 = vmatpush.msk.msra.mxu0 %vm52_vm0, %v47_v0  ;;  %1047 = vmatpush.msk.msra.mxu1 %vm52_vm0, %v1046_v1  ;;  %v1345_v4 = vld [vmem:[%s1779_s3 + $0x38] sm:$0xff]  ;;  %v1352_v5 = vld [vmem:[%s1779_s3 + $0x70] sm:$0xff]  ;;  %40 = vst [vmem:[#allocation2 + $0x10] sm:$0x3] %v1424_v8  ;;  %vm87_vm3 = vcmask 516096  }
   0x3   :  { %1045 = vmatmul.msk.f32.vlgmr.msra.gmra.mxu0 %vm48_vm1, %v46_v2  ;;  %1048 = vmatmul.msk.f32.vlgmr.msra.gmra.mxu1 %vm48_vm1, %v46_v2  ;;  %v1344_v6 = vld [vmem:[%s1779_s3 + $0x30] sm:$0xff]  ;;  %v1361_v7 = vld [vmem:[%s1779_s3 + $0xb8] sm:$0xff]  ;;  %v1351_v10 = vld [vmem:[%s1779_s3 + $0x68] sm:$0xff]  ;;  %39 = vst [vmem:[#allocation2 + $0x8] sm:$0xff] %v1424_v8  ;;  %vm279_vm4 = vcmask 1045504   ;;  %vm254_vm5 = vcmask 1046528  }
   0x4   :  { %607 = vmatpush.bf16.msra.mxu3 %v1353_v3  ;;  %593 = vmatpush.bf16.msra.mxu2 %v1345_v4  ;;  %v1360_v9 = vld [vmem:[%s1779_s3 + $0xb0] sm:$0xff]  ;;  %v1343_v11 = vld [vmem:[%s1779_s3 + $0x28] sm:$0xff]  ;;  %v1369_v12 = vld [vmem:[%s1779_s3 + $0xf8] sm:$0xff]  ;;  %41 = vst [vmem:[#allocation2 + $0x18] sm:$0x3] %v1424_v8  ;;  %vm677_vm6 = vcmask 523264  }
   0x5   :  { %621 = vmatpush.bf16.msrb.mxu0 %v1361_v7  ;;  %635 = vmatpush.bf16.msrb.mxu1 %v1369_v12  ;;  %v1368_v13 = vld [vmem:[%s1779_s3 + $0xf0] sm:$0xff]  ;;  %42 = vst [vmem:[#allocation2 + $0x20] sm:$0xff] %v1424_v8  ;;  %v1359_v14 = vld [vmem:[%s1779_s3 + $0xa8] sm:$0xff]  ;;  %v1350_v15 = vld [vmem:[%s1779_s3 + $0x60] sm:$0xff] }
   0x6   :  { %43 = vst [vmem:[#allocation2 + $0x28] sm:$0xff] %v1424_v8  ;;  %v1342_v16 = vld [vmem:[%s1779_s3 + $0x20] sm:$0xff]  ;;  %v1349_v18 = vld [vmem:[%s1779_s3 + $0x58] sm:$0xff]  ;;  %v1348_v20 = vld [vmem:[%s1779_s3 + $0x50] sm:$0xff] }
   0x7   :  { %44 = vst [vmem:[#allocation2 + $0x30] sm:$0x3] %v1424_v8  ;;  %v1358_v17 = vld [vmem:[%s1779_s3 + $0xa0] sm:$0xff]  ;;  %v1341_v19 = vld [vmem:[%s1779_s3 + $0x18] sm:$0xff]  ;;  %v1340_v21 = vld [vmem:[%s1779_s3 + $0x10] sm:$0xff] }
   0x8   :  { %608 = vmatpush.bf16.msra.mxu3 %v1352_v5  ;;  %594 = vmatpush.bf16.msra.mxu2 %v1344_v6  ;;  %45 = vst [vmem:[#allocation2 + $0x38] sm:$0x3] %v1424_v8  ;;  %v1347_v22 = vld [vmem:[%s1779_s3 + $0x48] sm:$0xff]  ;;  %v1346_v24 = vld [vmem:[%s1779_s3 + $0x40] sm:$0xff]  ;;  %v1385_v26 = vld [vmem:[%s1779_s3 + $0x178] sm:$0xff] }
   0x9   :  { %622 = vmatpush.bf16.msrb.mxu0 %v1360_v9  ;;  %636 = vmatpush.bf16.msrb.mxu1 %v1368_v13  ;;  %785 = vst [vmem:[#allocation3] sm:$0xff] %v1424_v8  ;;  %v1339_v23 = vld [vmem:[%s1779_s3 + $0x8] sm:$0xff]  ;;  %v1338_v25 = vld [vmem:[%s1779_s3] sm:$0xff]  ;;  %v1377_v27 = vld [vmem:[%s1779_s3 + $0x138] sm:$0xff] }
   0xa   :  { %786 = vst [vmem:[#allocation3 + $0x8] sm:$0x3] %v1424_v8  ;;  %v1384_v28 = vld [vmem:[%s1779_s3 + $0x170] sm:$0xff]  ;;  %v81_v29 = vld [vmem:[%s1780_s1] sm:$0xff]  ;;  %v1049_v30 = vld [vmem:[%s1780_s1 + $0x8] sm:$0xff] }
   0xb   :  { %787 = vst [vmem:[#allocation3 + $0x10] sm:$0xff] %v1424_v8  ;;  %v83_v31 = vrot.slane %v81_v29, 7  ;;  %v123_v32 = vrot.slane %v1049_v30, 7  ;;  %v1383_v33 = vld [vmem:[%s1779_s3 + $0x168] sm:$0xff]  ;;  %v1357_v34 = vld [vmem:[%s1779_s3 + $0x98] sm:$0xff]  ;;  %v1376_v36 = vld [vmem:[%s1779_s3 + $0x130] sm:$0xff] }
   0xc   :  { %609 = vmatpush.bf16.msra.mxu3 %v1351_v10  ;;  %595 = vmatpush.bf16.msra.mxu2 %v1343_v11  ;;  %788 = vst [vmem:[#allocation3 + $0x18] sm:$0x3] %v1424_v8  ;;  %v1367_v35 = vld [vmem:[%s1779_s3 + $0xe8] sm:$0xff]  ;;  %v1382_v37 = vld [vmem:[%s1779_s3 + $0x160] sm:$0xff]  ;;  %v1356_v38 = vld [vmem:[%s1779_s3 + $0x90] sm:$0xff] }
   0xd   :  { %623 = vmatpush.bf16.msrb.mxu0 %v1359_v14  ;;  %86 = vst.msk [vmem:[#allocation2 + $0x8] sm:$0xfe] %vm85_vm2, %v83_v31  ;;  %637 = vmatpush.bf16.msrb.mxu1 %v1367_v35  ;;  %v1366_v39 = vld [vmem:[%s1779_s3 + $0xe0] sm:$0xff]  ;;  %v1375_v40 = vld [vmem:[%s1779_s3 + $0x128] sm:$0xff]  ;;  %v1381_v43 = vld [vmem:[%s1779_s3 + $0x158] sm:$0xff] }
   0xe   :  { %125 = vst.msk [vmem:[#allocation2 + $0x28] sm:$0xfe] %vm85_vm2, %v123_v32  ;;  %v1355_v44 = vld [vmem:[%s1779_s3 + $0x88] sm:$0xff]  ;;  %v1365_v46 = vld [vmem:[%s1779_s3 + $0xd8] sm:$0xff]  ;;  %v1374_v47 = vld [vmem:[%s1779_s3 + $0x120] sm:$0xff] }
   0xf   :  { %v1380_v48 = vld [vmem:[%s1779_s3 + $0x150] sm:$0xff]  ;;  %88 = vst.msk [vmem:[#allocation2 + $0x18] sm:$0x1] %vm87_vm3, %v83_v31  ;;  %v1354_v49 = vld [vmem:[%s1779_s3 + $0x80] sm:$0xff]  ;;  %v1373_v51 = vld [vmem:[%s1779_s3 + $0x118] sm:$0xff] }
  0x10   :  { %610 = vmatpush.bf16.msra.mxu3 %v1350_v15  ;;  %596 = vmatpush.bf16.msra.mxu2 %v1342_v16  ;;  %126 = vst.msk [vmem:[#allocation2 + $0x38] sm:$0x1] %vm87_vm3, %v123_v32  ;;  %v1364_v50 = vld [vmem:[%s1779_s3 + $0xd0] sm:$0xff]  ;;  %v1379_v52 = vld [vmem:[%s1779_s3 + $0x148] sm:$0xff]  ;;  %v1378_v55 = vld [vmem:[%s1779_s3 + $0x140] sm:$0xff] }
  0x11   :  { %624 = vmatpush.bf16.msrb.mxu0 %v1358_v17  ;;  %638 = vmatpush.bf16.msrb.mxu1 %v1366_v39  ;;  %v1363_v53 = vld [vmem:[%s1779_s3 + $0xc8] sm:$0xff]  ;;  %v1372_v54 = vld [vmem:[%s1779_s3 + $0x110] sm:$0xff]  ;;  %v1362_v56 = vld [vmem:[%s1779_s3 + $0xc0] sm:$0xff] }
  0x12   :  { %v1371_v57 = vld [vmem:[%s1779_s3 + $0x108] sm:$0xff]  ;;  %v1370_v13 = vld [vmem:[%s1779_s3 + $0x100] sm:$0xff] }
  0x14   :  { %611 = vmatpush.bf16.msra.mxu3 %v1349_v18  ;;  %597 = vmatpush.bf16.msra.mxu2 %v1341_v19  ;;  %v227_v41 = vld [vmem:[#allocation2 + $0x8] sm:$0xff] }
  0x15   :  { %625 = vmatpush.bf16.msrb.mxu0 %v1357_v34  ;;  %v229_v42 = vld [vmem:[#allocation2 + $0x28] sm:$0xff]  ;;  %639 = vmatpush.bf16.msrb.mxu1 %v1365_v46 }
  0x16   :  { %v297_v45 = vpack.c.bf16 %v229_v42, %v227_v41  ;;  %v239_v58 = vld [vmem:[#allocation2 + $0x8] sm:$0xfc]  ;;  %v241_v59 = vld [vmem:[#allocation2 + $0x18] sm:$0x3] }
  0x17   :  { %v243_v60 = vld [vmem:[#allocation2 + $0x28] sm:$0xfc]  ;;  %v245_v61 = vld [vmem:[#allocation2 + $0x38] sm:$0x3]  ;;  %v283_v62 = vrot.slane %v239_v58, 2  ;;  %v284_v63 = vrot.slane %v241_v59, 2 }
  0x18   :  { %612 = vmatpush.bf16.msra.mxu3 %v1348_v20  ;;  %598 = vmatpush.bf16.msra.mxu2 %v1340_v21  ;;  %v289_v0 = vrot.slane %v243_v60, 2  ;;  %v290_v1 = vrot.slane %v245_v61, 2  ;;  %v231_v2 = vld [vmem:[#allocation2 + $0x8] sm:$0xfe]  ;;  %v233_v3 = vld [vmem:[#allocation2 + $0x18] sm:$0x1] }
  0x19   :  { %626 = vmatpush.bf16.msrb.mxu0 %v1356_v38  ;;  %640 = vmatpush.bf16.msrb.mxu1 %v1364_v50  ;;  %v235_v4 = vld [vmem:[#allocation2 + $0x28] sm:$0xfe]  ;;  %v237_v5 = vld [vmem:[#allocation2 + $0x38] sm:$0x1]  ;;  %v285_v6 = vsel %vm279_vm4, %v283_v62, %v284_v63  ;;  %v258_v8 = vrot.slane %v231_v2, 1  ;;  %v259_v9 = vrot.slane %v233_v3, 1 }
  0x1a   :  { %v291_v7 = vsel %vm279_vm4, %v289_v0, %v290_v1  ;;  %v264_v11 = vrot.slane %v235_v4, 1  ;;  %v265_v12 = vrot.slane %v237_v5, 1  ;;  %v1425_v60 = vmov 16.0  }
  0x1b   :  { %v301_v10 = vpack.c.bf16 %v291_v7, %v285_v6  ;;  %v260_v14 = vsel %vm254_vm5, %v258_v8, %v259_v9  ;;  %1418 = vrcp.f32 %v1425_v60  ;;  %v1386_v60 = vld [vmem:[%s1785_s7] sm:$0xff] }
  0x1c   :  { %613 = vmatpush.bf16.msra.mxu3 %v1347_v22  ;;  %599 = vmatpush.bf16.msra.mxu2 %v1339_v23  ;;  %v266_v15 = vsel %vm254_vm5, %v264_v11, %v265_v12 }
  0x1d   :  { %627 = vmatpush.bf16.msrb.mxu0 %v1355_v44  ;;  %641 = vmatpush.bf16.msrb.mxu1 %v1363_v53  ;;  %v299_v16 = vpack.c.bf16 %v266_v15, %v260_v14 }
  0x20   :  { %614 = vmatpush.bf16.msra.mxu3 %v1346_v24  ;;  %600 = vmatpush.bf16.msra.mxu2 %v1338_v25 }
  0x21   :  { %628 = vmatpush.bf16.msrb.mxu0 %v1354_v49  ;;  %642 = vmatpush.bf16.msrb.mxu1 %v1362_v56  ;;  %v1419_v2 = vpop.eup %1418 }
  0x22   :  { %v688_v7 = vmul.f32 16.0, %v1419_v2  ;;  %vm692_vm7 = vweird.f32 %v1419_v2 }
  0x23   :  { %615 = vmatmul.bf16.vlgmr.msra.gmra.mxu3 %v297_v45 }
  0x24   :  { %663 = vmatpush.bf16.msrb.mxu3 %v1385_v26  ;;  %649 = vmatpush.bf16.msrb.mxu2 %v1377_v27  ;;  %v689_v12 = vsub.f32 1.0, %v688_v7 }
  0x25   :  { %643 = vmatmul.bf16.vlgmr.msrb.gmra.mxu1 %v299_v16 }
  0x26   :  { %v690_v15 = vmul.f32 %v1419_v2, %v689_v12 }
  0x28   :  { %664 = vmatpush.bf16.msrb.mxu3 %v1384_v28  ;;  %650 = vmatpush.bf16.msrb.mxu2 %v1376_v36 }
  0x2c   :  { %665 = vmatpush.bf16.msrb.mxu3 %v1383_v33  ;;  %651 = vmatpush.bf16.msrb.mxu2 %v1375_v40 }
  0x30   :  { %666 = vmatpush.bf16.msrb.mxu3 %v1382_v37  ;;  %652 = vmatpush.bf16.msrb.mxu2 %v1374_v47 }
  0x34   :  { %667 = vmatpush.bf16.msrb.mxu3 %v1381_v43  ;;  %653 = vmatpush.bf16.msrb.mxu2 %v1373_v51 }
  0x38   :  { %668 = vmatpush.bf16.msrb.mxu3 %v1380_v48  ;;  %654 = vmatpush.bf16.msrb.mxu2 %v1372_v54  ;;  %v1412_v48 = vld [vmem:[%s1781_s4] ss:$0 sm:$0xff] }
  0x3c   :  { %669 = vmatpush.bf16.msrb.mxu3 %v1379_v52  ;;  %655 = vmatpush.bf16.msrb.mxu2 %v1371_v57 }
  0x40   :  { %670 = vmatpush.bf16.msrb.mxu3 %v1378_v55  ;;  %656 = vmatpush.bf16.msrb.mxu2 %v1370_v13 }
  0x43   :  { %671 = vmatmul.bf16.vlgmr.msrb.gmra.mxu3 %v301_v10 }
  0x80   :  { %v73_v17 = vpop.f32.mrf.mxu0  ;;  %v111_v18 = vpop.f32.mrf.mxu1 }
  0x81   :  { %v77_v19 = vrot.slane %v73_v17, 7  ;;  %v115_v20 = vrot.slane %v111_v18, 7  ;;  %v691_v18 = vadd.f32 %v1419_v2, %v690_v15 }
  0x83   :  { %79 = vst [vmem:[#allocation2] sm:$0xfe] %v77_v19 }
  0x84   :  { %80 = vst [vmem:[#allocation2 + $0x10] sm:$0x1] %v77_v19 }
  0x85   :  { %118 = vst [vmem:[#allocation2 + $0x20] sm:$0xfe] %v115_v20 }
  0x86   :  { %119 = vst [vmem:[#allocation2 + $0x30] sm:$0x1] %v115_v20 }
  0x8a   :  { %v226_v21 = vld [vmem:[#allocation2] sm:$0xff] }
  0x8b   :  { %v230_v22 = vld [vmem:[#allocation2] sm:$0xfe]  ;;  %v232_v23 = vld [vmem:[#allocation2 + $0x10] sm:$0x1] }
  0x8c   :  { %v255_v24 = vrot.slane %v230_v22, 1  ;;  %v228_v25 = vld [vmem:[#allocation2 + $0x20] sm:$0xff]  ;;  %v256_v27 = vrot.slane %v232_v23, 1  ;;  %v240_v36 = vld [vmem:[#allocation2 + $0x10] sm:$0x3]  ;;  %v1393_v22 = vld [vmem:[%s1785_s7 + $0x38] sm:$0xff] }
  0x8d   :  { %v234_v26 = vld [vmem:[#allocation2 + $0x20] sm:$0xfe]  ;;  %v296_v28 = vpack.c.bf16 %v228_v25, %v226_v21  ;;  %v236_v29 = vld [vmem:[#allocation2 + $0x30] sm:$0x1]  ;;  %v281_v40 = vrot.slane %v240_v36, 2  ;;  %v1658_v21 = vsel %vm692_vm7, %v1419_v2, %v691_v18  ;;  %v1401_v23 = vld [vmem:[%s1785_s7 + $0x78] sm:$0xff]  ;;  %947 = vmatpush.bf16.msra.mxu0 %v1393_v22 }
  0x8e   :  { %v261_v30 = vrot.slane %v234_v26, 1  ;;  %v257_v31 = vsel %vm254_vm5, %v255_v24, %v256_v27  ;;  %v262_v32 = vrot.slane %v236_v29, 1  ;;  %v238_v35 = vld [vmem:[#allocation2] sm:$0xfc]  ;;  %v244_v38 = vld [vmem:[#allocation2 + $0x30] sm:$0x3]  ;;  %961 = vmatpush.bf16.msra.mxu1 %v1401_v23 }
  0x8f   :  { %601 = vmatmul.bf16.vlgmr.msra.gmra.mxu2 %v296_v28  ;;  %v242_v37 = vld [vmem:[#allocation2 + $0x20] sm:$0xfc]  ;;  %v280_v39 = vrot.slane %v238_v35, 2  ;;  %v287_v42 = vrot.slane %v244_v38, 2  ;;  %v1409_v24 = vld [vmem:[%s1785_s7 + $0xb8] sm:$0xff]  ;;  %v1392_v27 = vld [vmem:[%s1785_s7 + $0x30] sm:$0xff] }
  0x90   :  { %v263_v33 = vsel %vm254_vm5, %v261_v30, %v262_v32  ;;  %v286_v41 = vrot.slane %v242_v37, 2  ;;  %975 = vmatpush.bf16.msra.mxu2 %v1409_v24  ;;  %v1400_v28 = vld [vmem:[%s1785_s7 + $0x70] sm:$0xff]  ;;  %v1399_v35 = vld [vmem:[%s1785_s7 + $0x68] sm:$0xff] }
  0x91   :  { %v298_v34 = vpack.c.bf16 %v263_v33, %v257_v31  ;;  %v282_v43 = vsel %vm279_vm4, %v280_v39, %v281_v40  ;;  %v1408_v29 = vld [vmem:[%s1785_s7 + $0xb0] sm:$0xff]  ;;  %948 = vmatpush.bf16.msra.mxu0 %v1392_v27  ;;  %v1407_v36 = vld [vmem:[%s1785_s7 + $0xa8] sm:$0xff] }
  0x92   :  { %v288_v44 = vsel %vm279_vm4, %v286_v41, %v287_v42  ;;  %962 = vmatpush.bf16.msra.mxu1 %v1400_v28  ;;  %v1390_v41 = vld [vmem:[%s1785_s7 + $0x20] sm:$0xff] }
  0x93   :  { %629 = vmatmul.bf16.vlgmr.msrb.gmra.mxu0 %v298_v34  ;;  %v300_v45 = vpack.c.bf16 %v288_v44, %v282_v43  ;;  %v1391_v34 = vld [vmem:[%s1785_s7 + $0x28] sm:$0xff]  ;;  %v1398_v42 = vld [vmem:[%s1785_s7 + $0x60] sm:$0xff] }
  0x94   :  { %976 = vmatpush.bf16.msra.mxu2 %v1408_v29  ;;  %v1406_v43 = vld [vmem:[%s1785_s7 + $0xa0] sm:$0xff] }
  0x95   :  { %949 = vmatpush.bf16.msra.mxu0 %v1391_v34  ;;  %v1415_v28 = vld [vmem:[%s1784_s8] ss:$0 sm:$0xff] }
  0x96   :  { %963 = vmatpush.bf16.msra.mxu1 %v1399_v35 }
  0x98   :  { %977 = vmatpush.bf16.msra.mxu2 %v1407_v36 }
  0x99   :  { %950 = vmatpush.bf16.msra.mxu0 %v1390_v41 }
  0x9a   :  { %964 = vmatpush.bf16.msra.mxu1 %v1398_v42 }
  0x9c   :  { %978 = vmatpush.bf16.msra.mxu2 %v1406_v43 }
  0x9f   :  { %657 = vmatmul.bf16.vlgmr.msrb.gmra.mxu2 %v300_v45 }
  0xa2   :  { %v644_v53 = vpop.f32.mrf.mxu1 }
  0xa6   :  { %v616_v46 = vpop.f32.mrf.mxu3 }
  0xaa   :  { %v646_v0 = vpop.f32.mrf.mxu1 }
  0xae   :  { %v618_v49 = vpop.f32.mrf.mxu3 }
  0xc6   :  { %v672_v58 = vpop.f32.mrf.mxu3 }
  0xce   :  { %v674_v8 = vpop.f32.mrf.mxu3 }
 0x110   :  { %v630_v51 = vpop.f32.mrf.mxu0 }
 0x112   :  { %v602_v47 = vpop.f32.mrf.mxu2 }
 0x113   :  { %v603_v50 = vadd.f32 %v1412_v48, %v602_v47  ;;  %v1397_v47 = vld [vmem:[%s1785_s7 + $0x58] sm:$0xff] }
 0x114   :  { %965 = vmatpush.bf16.msra.mxu1 %v1397_v47 }
 0x115   :  { %v617_v54 = vadd.f32 %v616_v46, %v603_v50  ;;  %v1389_v46 = vld [vmem:[%s1785_s7 + $0x18] sm:$0xff] }
 0x116   :  { %951 = vmatpush.bf16.msra.mxu0 %v1389_v46 }
 0x117   :  { %v631_v56 = vadd.f32 %v630_v51, %v617_v54  ;;  %v1388_v51 = vld [vmem:[%s1785_s7 + $0x10] sm:$0xff] }
 0x118   :  { %v632_v61 = vpop.f32.mrf.mxu0 }
 0x119   :  { %v645_v62 = vadd.f32 %v644_v53, %v631_v56  ;;  %v1404_v53 = vld [vmem:[%s1785_s7 + $0x90] sm:$0xff]  ;;  %v1395_v56 = vld [vmem:[%s1785_s7 + $0x48] sm:$0xff] }
 0x11a   :  { %v604_v52 = vpop.f32.mrf.mxu2  ;;  %952 = vmatpush.bf16.msra.mxu0 %v1388_v51 }
 0x11b   :  { %v605_v55 = vadd.f32 %v1412_v48, %v604_v52  ;;  %v1405_v48 = vld [vmem:[%s1785_s7 + $0x98] sm:$0xff]  ;;  %v1396_v52 = vld [vmem:[%s1785_s7 + $0x50] sm:$0xff] }
 0x11c   :  { %979 = vmatpush.bf16.msra.mxu2 %v1405_v48  ;;  %966 = vmatpush.bf16.msra.mxu1 %v1396_v52 }
 0x11d   :  { %v619_v57 = vadd.f32 %v618_v49, %v605_v55  ;;  %v1387_v55 = vld [vmem:[%s1785_s7 + $0x8] sm:$0xff] }
 0x11e   :  { %953 = vmatpush.bf16.msra.mxu0 %v1387_v55 }
 0x11f   :  { %v633_v63 = vadd.f32 %v632_v61, %v619_v57  ;;  %v1403_v57 = vld [vmem:[%s1785_s7 + $0x88] sm:$0xff]  ;;  %v1394_v61 = vld [vmem:[%s1785_s7 + $0x40] sm:$0xff] }
 0x120   :  { %980 = vmatpush.bf16.msra.mxu2 %v1404_v53  ;;  %967 = vmatpush.bf16.msra.mxu1 %v1395_v56 }
 0x121   :  { %v647_v3 = vadd.f32 %v646_v0, %v633_v63 }
 0x122   :  { %v658_v59 = vpop.f32.mrf.mxu2  ;;  %954 = vmatpush.bf16.msra.mxu0 %v1386_v60 }
 0x123   :  { %v659_v1 = vadd.f32 %v658_v59, %v645_v62  ;;  %v1402_v62 = vld [vmem:[%s1785_s7 + $0x80] sm:$0xff] }
 0x124   :  { %981 = vmatpush.bf16.msra.mxu2 %v1403_v57  ;;  %968 = vmatpush.bf16.msra.mxu1 %v1394_v61 }
 0x125   :  { %v673_v5 = vadd.f32 %v672_v58, %v659_v1 }
 0x127   :  { %v678_v10 = vsel %vm677_vm6, %v673_v5, 0.0 }
 0x128   :  { %982 = vmatpush.bf16.msra.mxu2 %v1402_v62 }
 0x12a   :  { %v660_v4 = vpop.f32.mrf.mxu2 }
 0x12b   :  { %v661_v6 = vadd.f32 %v660_v4, %v647_v3 }
 0x12d   :  { %v675_v9 = vadd.f32 %v674_v8, %v661_v6 }
 0x12f   :  { %v679_v11 = vsel %vm677_vm6, %v675_v9, 0.0 }
 0x130   :  { %v680_v13 = vadd.f32 %v679_v11, %v678_v10 }
 0x132   :  { %v681_v14 = vrot.slane %v680_v13, 4 }
 0x134   :  { %v682_v16 = vadd.f32 %v681_v14, %v680_v13 }
 0x136   :  { %v683_v17 = vrot.slane %v682_v16, 2 }
 0x138   :  { %v684_v19 = vadd.f32 %v683_v17, %v682_v16 }
 0x13a   :  { %v685_v20 = vrot.slane %v684_v19, 1 }
 0x13c   :  { %v686_v25 = vadd.f32 %v685_v20, %v684_v19 }
 0x13e   :  { %v694_v26 = vmul.f32 %v1658_v21, %v686_v25 }
 0x140   :  { %v1679_v30 = vsub.f32 %v673_v5, %v694_v26  ;;  %v1681_v31 = vsub.f32 %v675_v9, %v694_v26  ;;  %v1413_v5 = vld [vmem:[%s1782_s5] ss:$0 sm:$0xff] }
 0x141   :  { %v1414_v9 = vld [vmem:[%s1783_s6] ss:$0 sm:$0xff] }
 0x142   :  { %v697_v32 = vmul.f32 %v1679_v30, %v1679_v30  ;;  %v698_v33 = vmul.f32 %v1681_v31, %v1681_v31 }
 0x144   :  { %v699_v37 = vsel %vm677_vm6, %v697_v32, 0.0  ;;  %v700_v38 = vsel %vm677_vm6, %v698_v33, 0.0 }
 0x145   :  { %v701_v39 = vadd.f32 %v700_v38, %v699_v37 }
 0x147   :  { %v702_v40 = vrot.slane %v701_v39, 4 }
 0x149   :  { %v703_v44 = vadd.f32 %v702_v40, %v701_v39 }
 0x14b   :  { %v704_v45 = vrot.slane %v703_v44, 2 }
 0x14d   :  { %v705_v49 = vadd.f32 %v704_v45, %v703_v44 }
 0x14f   :  { %v706_v50 = vrot.slane %v705_v49, 1 }
 0x151   :  { %v707_v54 = vadd.f32 %v706_v50, %v705_v49 }
 0x153   :  { %v708_v58 = vmul.f32 %v707_v54, %v1658_v21 }
 0x155   :  { %v709_v59 = vadd.f32 1e-05, %v708_v58 }
 0x157   :  { %1420 = vrsqrt.f32 %v709_v59  ;;  %vm716_vm9 = vweird.f32 %v709_v59 }
 0x15d   :  { %v1421_v63 = vpop.eup %1420 }
 0x15e   :  { %v711_v0 = vmul.f32 %v1421_v63, %v709_v59  ;;  %vm717_vm8 = vweird.f32 %v1421_v63 }
 0x15f   :  { %vm718_vm10 = vmor %vm716_vm9, %vm717_vm8 }
 0x160   :  { %v712_v1 = vmul.f32 %v1421_v63, %v711_v0 }
 0x162   :  { %v713_v2 = vmul.f32 0.5, %v712_v1 }
 0x164   :  { %v714_v3 = vsub.f32 1.5, %v713_v2 }
 0x166   :  { %v715_v4 = vmul.f32 %v1421_v63, %v714_v3 }
 0x168   :  { %v719_v6 = vsel %vm718_vm10, %v1421_v63, %v715_v4 }
 0x169   :  { %v720_v7 = vmul.f32 %v719_v6, %v1679_v30  ;;  %v721_v8 = vmul.f32 %v719_v6, %v1681_v31  ;;  %v1416_v6 = vld [vmem:[%s1786_s9] ss:$0 sm:$0xff] }
 0x16b   :  { %v725_v10 = vmul.f32 %v1413_v5, %v720_v7  ;;  %v726_v11 = vmul.f32 %v1413_v5, %v721_v8 }
 0x16d   :  { %v730_v12 = vadd.f32 %v1414_v9, %v725_v10  ;;  %v731_v13 = vadd.f32 %v1414_v9, %v726_v11 }
 0x16f   :  { %v732_v14 = vmax.f32 %v730_v12, 0.0  ;;  %v733_v15 = vmax.f32 %v731_v13, 0.0 }
 0x171   :  { %789 = vst.msk [vmem:[#allocation3 + $0x1] sm:$0xff] %vm677_vm6, %v732_v14 }
 0x172   :  { %790 = vst.msk [vmem:[#allocation3 + $0x11] sm:$0xff] %vm677_vm6, %v733_v15 }
 0x178   :  { %v791_v16 = vld [vmem:[#allocation3] sm:$0xff] }
 0x179   :  { %v793_v17 = vld [vmem:[#allocation3 + $0x1] sm:$0xff]  ;;  %v792_v19 = vld [vmem:[#allocation3 + $0x10] sm:$0xff] }
 0x17a   :  { %v795_v18 = vld [vmem:[#allocation3 + $0x2] sm:$0xff]  ;;  %v794_v20 = vld [vmem:[#allocation3 + $0x11] sm:$0xff]  ;;  %v797_v23 = vpack.c.bf16 %v792_v19, %v791_v16 }
 0x17b   :  { %v796_v22 = vld [vmem:[#allocation3 + $0x12] sm:$0xff]  ;;  %v798_v24 = vpack.c.bf16 %v794_v20, %v793_v17 }
 0x17c   :  { %v799_v25 = vpack.c.bf16 %v796_v22, %v795_v18  ;;  %955 = vmatmul.bf16.vlgmr.msra.gmra.mxu0 %v797_v23 }
 0x17d   :  { %969 = vmatmul.bf16.vlgmr.msra.gmra.mxu1 %v798_v24 }
 0x17e   :  { %983 = vmatmul.bf16.vlgmr.msra.gmra.mxu2 %v799_v25 }
 0x1f9   :  { %v956_v26 = vpop.f32.mrf.mxu0 }
 0x1fa   :  { %v970_v27 = vpop.f32.mrf.mxu1  ;;  %v957_v30 = vadd.f32 %v1415_v28, %v956_v26 }
 0x1fc   :  { %v971_v33 = vadd.f32 %v970_v27, %v957_v30 }
 0x201   :  { %v984_v29 = vpop.f32.mrf.mxu2  ;;  %v958_v31 = vpop.f32.mrf.mxu0 }
 0x202   :  { %v959_v32 = vadd.f32 %v1415_v28, %v958_v31  ;;  %v972_v34 = vpop.f32.mrf.mxu1  ;;  %v985_v35 = vadd.f32 %v984_v29, %v971_v33 }
 0x204   :  { %v973_v36 = vadd.f32 %v972_v34, %v959_v32  ;;  %v989_v39 = vsel %vm677_vm6, %v985_v35, 0.0 }
 0x209   :  { %v986_v37 = vpop.f32.mrf.mxu2 }
 0x20a   :  { %v987_v38 = vadd.f32 %v986_v37, %v973_v36 }
 0x20c   :  { %v990_v40 = vsel %vm677_vm6, %v987_v38, 0.0 }
 0x20d   :  { %v991_v41 = vadd.f32 %v990_v40, %v989_v39 }
 0x20f   :  { %v992_v42 = vrot.slane %v991_v41, 4 }
 0x211   :  { %v993_v43 = vadd.f32 %v992_v42, %v991_v41 }
 0x213   :  { %v994_v44 = vrot.slane %v993_v43, 2 }
 0x215   :  { %v995_v45 = vadd.f32 %v994_v44, %v993_v43 }
 0x217   :  { %v996_v46 = vrot.slane %v995_v45, 1 }
 0x219   :  { %v997_v47 = vadd.f32 %v996_v46, %v995_v45 }
 0x21b   :  { %v998_v48 = vmul.f32 %v997_v47, %v1658_v21 }
 0x21d   :  { %v999_v49 = vsub.f32 %v985_v35, %v998_v48  ;;  %v1000_v50 = vsub.f32 %v987_v38, %v998_v48 }
 0x21f   :  { %v1001_v51 = vmul.f32 %v999_v49, %v999_v49  ;;  %v1002_v52 = vmul.f32 %v1000_v50, %v1000_v50 }
 0x221   :  { %v1003_v53 = vsel %vm677_vm6, %v1001_v51, 0.0  ;;  %v1004_v54 = vsel %vm677_vm6, %v1002_v52, 0.0 }
 0x222   :  { %v1005_v55 = vadd.f32 %v1004_v54, %v1003_v53 }
 0x224   :  { %v1006_v56 = vrot.slane %v1005_v55, 4 }
 0x226   :  { %v1007_v57 = vadd.f32 %v1006_v56, %v1005_v55 }
 0x228   :  { %v1008_v58 = vrot.slane %v1007_v57, 2 }
 0x22a   :  { %v1009_v59 = vadd.f32 %v1008_v58, %v1007_v57 }
 0x22c   :  { %v1010_v60 = vrot.slane %v1009_v59, 1 }
 0x22e   :  { %v1011_v61 = vadd.f32 %v1010_v60, %v1009_v59 }
 0x230   :  { %v1012_v62 = vmul.f32 %v1011_v61, %v1658_v21  ;;  %v1417_v21 = vld [vmem:[%s1787_s10] ss:$0 sm:$0xff] }
 0x232   :  { %v1013_v63 = vadd.f32 1e-05, %v1012_v62 }
 0x234   :  { %1422 = vrsqrt.f32 %v1013_v63  ;;  %vm1020_vm12 = vweird.f32 %v1013_v63 }
 0x23a   :  { %v1423_v0 = vpop.eup %1422 }
 0x23b   :  { %v1015_v1 = vmul.f32 %v1423_v0, %v1013_v63  ;;  %vm1021_vm11 = vweird.f32 %v1423_v0 }
 0x23c   :  { %vm1022_vm13 = vmor %vm1020_vm12, %vm1021_vm11 }
 0x23d   :  { %v1016_v2 = vmul.f32 %v1423_v0, %v1015_v1 }
 0x23f   :  { %v1017_v3 = vmul.f32 0.5, %v1016_v2 }
 0x241   :  { %v1018_v4 = vsub.f32 1.5, %v1017_v3 }
 0x243   :  { %v1019_v5 = vmul.f32 %v1423_v0, %v1018_v4 }
 0x245   :  { %v1023_v7 = vsel %vm1022_vm13, %v1423_v0, %v1019_v5 }
 0x246   :  { %v1024_v8 = vmul.f32 %v1023_v7, %v999_v49  ;;  %v1025_v9 = vmul.f32 %v1023_v7, %v1000_v50 }
 0x248   :  { %v1029_v10 = vmul.f32 %v1416_v6, %v1024_v8  ;;  %v1030_v11 = vmul.f32 %v1416_v6, %v1025_v9 }
 0x24a   :  { %v1034_v12 = vadd.f32 %v1417_v21, %v1029_v10  ;;  %v1035_v13 = vadd.f32 %v1417_v21, %v1030_v11 }
 0x24c   :  { %v1036_v14 = vmax.f32 %v1034_v12, 0.0  ;;  %v1037_v15 = vmax.f32 %v1035_v13, 0.0 }
 0x24e   :  { %1038 = vst.msk [vmem:[%s1788_s11] sm:$0xff] %vm677_vm6, %v1036_v14 }
 0x24f   :  { %1039 = vst.msk [vmem:[%s1788_s11 + $0x8] sm:$0xff] %vm677_vm6, %v1037_v15 }

// kernel: diffusion_unet_forward.13
= control target key start
LH: loop header
LB: loop body
LE: loop exit
PB: predicated region body
PF: predicated region fallthrough
CT: control target
= control target key end

     0   :  { %s2142_s0 = inlined_call_operand.vmem [shape: f32[2,8,64], index: 0, kind: input, shape index: {}]   ;;  %s2143_s1 = inlined_call_operand.vmem [shape: f32[2,16,32], index: 1, kind: input, shape index: {}]   ;;  %s2144_s2 = inlined_call_operand.vmem [shape: f32[16,8], index: 2, kind: input, shape index: {}]   ;;  %s2145_s3 = inlined_call_operand.vmem [shape: bf16[768,32], index: 3, kind: input, shape index: {}]   ;;  %s2146_s4 = inlined_call_operand.vmem [shape: f32[1,32], index: 4, kind: input, shape index: {}]   ;;  %s2147_s5 = inlined_call_operand.vmem [shape: f32[1,32], index: 5, kind: input, shape index: {}]   ;;  %s2148_s6 = inlined_call_operand.vmem [shape: f32[1,32], index: 6, kind: input, shape index: {}]   ;;  %s2149_s7 = inlined_call_operand.vmem [shape: bf16[384,32], index: 7, kind: input, shape index: {}]   ;;  %s2150_s8 = inlined_call_operand.vmem [shape: f32[1,32], index: 8, kind: input, shape index: {}]   ;;  %s2151_s9 = inlined_call_operand.vmem [shape: f32[1,32], index: 9, kind: input, shape index: {}]   ;;  %s2152_s10 = inlined_call_operand.vmem [shape: f32[1,32], index: 10, kind: input, shape index: {}]   ;;  %s2153_s11 = inlined_call_operand.vmem [shape: f32[1,32], index: 11, kind: input, shape index: {}]   ;;  %s2154_s12 = inlined_call_operand.<no memory space> [shape: f32[1,1], index: 12, kind: input, shape index: {}]   ;;  %s2155_s13 = inlined_call_operand.hbm [shape: f32[2,16], index: 13, kind: output, shape index: {}]  }
   0x1   :  { %v18_v0 = vstv %s2154_s12 }
   0x2   :  { %19 = vst [vmem:[#allocation4] sm:$0x1] %v18_v0 }
   0x3   :  { %v63_v1 = vld [vmem:[%s2142_s0] sm:$0xff]  ;;  %vm64_vm0 = vcmask 64512   ;;  %v1288_v3 = vld [vmem:[%s2142_s0 + $0x8] sm:$0xff]  ;;  %v1596_v4 = vld [vmem:[%s2145_s3 + $0x78] sm:$0xff]  ;;  %v1707_v5 = vmov 0.0  }
   0x4   :  { %v61_v2 = vld [vmem:[%s2144_s2] sm:$0xff]  ;;  %86 = vmatpush.msra.mxu0 %v63_v1  ;;  %142 = vmatpush.msra.mxu1 %v1288_v3  ;;  %49 = vst [vmem:[#allocation2] sm:$0xff] %v1707_v5  ;;  %v1588_v6 = vld [vmem:[%s2145_s3 + $0x38] sm:$0xff]  ;;  %v1595_v8 = vld [vmem:[%s2145_s3 + $0x70] sm:$0xff] }
   0x5   :  { %1286 = vmatmul.msk.f32.vlgmr.msra.gmra.mxu0 %vm64_vm0, %v61_v2  ;;  %1289 = vmatmul.msk.f32.vlgmr.msra.gmra.mxu1 %vm64_vm0, %v61_v2  ;;  %v1604_v7 = vld [vmem:[%s2145_s3 + $0xb8] sm:$0xff]  ;;  %50 = vst [vmem:[#allocation2 + $0x8] sm:$0xff] %v1707_v5  ;;  %v1587_v9 = vld [vmem:[%s2145_s3 + $0x30] sm:$0xff]  ;;  %v62_v11 = vld [vmem:[%s2144_s2 + $0x8] sm:$0xff] }
   0x6   :  { %699 = vmatpush.bf16.msra.mxu3 %v1596_v4  ;;  %51 = vst [vmem:[#allocation2 + $0x10] sm:$0xff] %v1707_v5  ;;  %680 = vmatpush.bf16.msra.mxu2 %v1588_v6  ;;  %v1603_v10 = vld [vmem:[%s2145_s3 + $0xb0] sm:$0xff]  ;;  %v1594_v12 = vld [vmem:[%s2145_s3 + $0x68] sm:$0xff] }
   0x7   :  { %718 = vmatpush.bf16.msrb.mxu0 %v1604_v7  ;;  %52 = vst [vmem:[#allocation2 + $0x18] sm:$0xff] %v1707_v5  ;;  %v1586_v13 = vld [vmem:[%s2145_s3 + $0x28] sm:$0xff] }
   0x8   :  { %53 = vst [vmem:[#allocation2 + $0x20] sm:$0x3] %v1707_v5 }
   0x9   :  { %54 = vst [vmem:[#allocation2 + $0x28] sm:$0x3] %v1707_v5 }
   0xa   :  { %700 = vmatpush.bf16.msra.mxu3 %v1595_v8  ;;  %55 = vst [vmem:[#allocation2 + $0x30] sm:$0xff] %v1707_v5  ;;  %681 = vmatpush.bf16.msra.mxu2 %v1587_v9 }
   0xb   :  { %719 = vmatpush.bf16.msrb.mxu0 %v1603_v10  ;;  %56 = vst [vmem:[#allocation2 + $0x38] sm:$0xff] %v1707_v5 }
   0xc   :  { %20 = vsyncpa [#allocation6], 0  ;;  %57 = vst [vmem:[#allocation2 + $0x40] sm:$0xff] %v1707_v5  ;;  %v1593_v14 = vld [vmem:[%s2145_s3 + $0x60] sm:$0xff]  ;;  %v1592_v15 = vld [vmem:[%s2145_s3 + $0x58] sm:$0xff]  ;;  %vm96_vm1 = vcmask 1040384  }
   0xd   :  { %1287 = vmatmul.msk.f32.gmra.mxu0 %vm64_vm0, %v62_v11  ;;  %1290 = vmatmul.msk.f32.gmra.mxu1 %vm64_vm0, %v62_v11  ;;  %58 = vst [vmem:[#allocation2 + $0x48] sm:$0xff] %v1707_v5  ;;  %v1602_v16 = vld [vmem:[%s2145_s3 + $0xa8] sm:$0xff]  ;;  %v1585_v17 = vld [vmem:[%s2145_s3 + $0x20] sm:$0xff]  ;;  %v1612_v18 = vld [vmem:[%s2145_s3 + $0xf8] sm:$0xff]  ;;  %vm119_vm2 = vcmask 261121   ;;  %vm121_vm3 = vcmask 261120  }
   0xe   :  { %701 = vmatpush.bf16.msra.mxu3 %v1594_v12  ;;  %59 = vst [vmem:[#allocation2 + $0x50] sm:$0x3] %v1707_v5  ;;  %682 = vmatpush.bf16.msra.mxu2 %v1586_v13  ;;  %v109_v19 = vld [vmem:[%s2143_s1] sm:$0xff]  ;;  %v110_v20 = vld [vmem:[%s2143_s1 + $0x8] sm:$0xff]  ;;  %v1591_v21 = vld [vmem:[%s2145_s3 + $0x50] sm:$0xff]  ;;  %vm123_vm4 = vcmask 253952  }
   0xf   :  { %60 = vst [vmem:[#allocation2 + $0x58] sm:$0x3] %v1707_v5  ;;  %720 = vmatpush.bf16.msrb.mxu0 %v1602_v16  ;;  %737 = vmatpush.bf16.msrb.mxu1 %v1612_v18  ;;  %v1601_v22 = vld [vmem:[%s2145_s3 + $0xa0] sm:$0xff]  ;;  %v113_v23 = vrot.slane %v109_v19, 7  ;;  %v114_v24 = vrot.slane %v110_v20, 7  ;;  %v1584_v25 = vld [vmem:[%s2145_s3 + $0x18] sm:$0xff] }
  0x10   :  { %921 = vst [vmem:[#allocation3] sm:$0xff] %v1707_v5  ;;  %v1611_v26 = vld [vmem:[%s2145_s3 + $0xf0] sm:$0xff]  ;;  %v1590_v28 = vld [vmem:[%s2145_s3 + $0x48] sm:$0xff]  ;;  %v1600_v29 = vld [vmem:[%s2145_s3 + $0x98] sm:$0xff]  ;;  %vm311_vm5 = vcmask 1046528   ;;  %vm103_vm6 = vcmask 523265  }
  0x11   :  { %922 = vst [vmem:[#allocation3 + $0x8] sm:$0xff] %v1707_v5  ;;  %v115_v27 = vsel %vm96_vm1, %v113_v23, %v114_v24  ;;  %v1583_v30 = vld [vmem:[%s2145_s3 + $0x10] sm:$0xff]  ;;  %v1610_v31 = vld [vmem:[%s2145_s3 + $0xe8] sm:$0xff]  ;;  %v1589_v32 = vld [vmem:[%s2145_s3 + $0x40] sm:$0xff]  ;;  %vm107_vm7 = vcmask 516096   ;;  %vm105_vm8 = vcmask 523264  }
  0x12   :  { %702 = vmatpush.bf16.msra.mxu3 %v1593_v14  ;;  %923 = vst [vmem:[#allocation3 + $0x10] sm:$0x3] %v1707_v5  ;;  %683 = vmatpush.bf16.msra.mxu2 %v1585_v17  ;;  %v1291_v33 = vld [vmem:[%s2143_s1 + $0x10] sm:$0xff]  ;;  %v1292_v34 = vld [vmem:[%s2143_s1 + $0x18] sm:$0xff]  ;;  %v1582_v38 = vld [vmem:[%s2145_s3 + $0x8] sm:$0xff]  ;;  %vm348_vm9 = vcmask 1045504  }
  0x13   :  { %924 = vst [vmem:[#allocation3 + $0x18] sm:$0xff] %v1707_v5  ;;  %721 = vmatpush.bf16.msrb.mxu0 %v1601_v22  ;;  %738 = vmatpush.bf16.msrb.mxu1 %v1611_v26  ;;  %v1599_v35 = vld [vmem:[%s2145_s3 + $0x90] sm:$0xff]  ;;  %v167_v36 = vrot.slane %v1291_v33, 7  ;;  %v168_v37 = vrot.slane %v1292_v34, 7  ;;  %v1609_v39 = vld [vmem:[%s2145_s3 + $0xe0] sm:$0xff]  ;;  %v1628_v42 = vld [vmem:[%s2145_s3 + $0x178] sm:$0xff] }
  0x14   :  { %925 = vst [vmem:[#allocation3 + $0x20] sm:$0xff] %v1707_v5  ;;  %v1598_v45 = vld [vmem:[%s2145_s3 + $0x88] sm:$0xff]  ;;  %v1581_v46 = vld [vmem:[%s2145_s3] sm:$0xff]  ;;  %v1608_v47 = vld [vmem:[%s2145_s3 + $0xd8] sm:$0xff]  ;;  %s1277_s28 = sshll.u32 %s2155_s13, 4  ;;  %s1278_s28 = int_to_ptr.hbm [resolvable:$true] %s1277_s28 }
  0x15   :  { %926 = vst [vmem:[#allocation3 + $0x28] sm:$0x3] %v1707_v5  ;;  %v169_v43 = vsel %vm96_vm1, %v167_v36, %v168_v37  ;;  %v1627_v48 = vld [vmem:[%s2145_s3 + $0x170] sm:$0xff]  ;;  %v1597_v49 = vld [vmem:[%s2145_s3 + $0x80] sm:$0xff]  ;;  %v1620_v50 = vld [vmem:[%s2145_s3 + $0x138] sm:$0xff] }
  0x16   :  { %703 = vmatpush.bf16.msra.mxu3 %v1592_v15  ;;  %120 = vst.msk [vmem:[#allocation2 + $0x8] sm:$0xfe] %vm119_vm2, %v113_v23  ;;  %684 = vmatpush.bf16.msra.mxu2 %v1584_v25  ;;  %v1607_v51 = vld [vmem:[%s2145_s3 + $0xd0] sm:$0xff]  ;;  %v1626_v52 = vld [vmem:[%s2145_s3 + $0x168] sm:$0xff]  ;;  %v1625_v55 = vld [vmem:[%s2145_s3 + $0x160] sm:$0xff] }
  0x17   :  { %122 = vst.msk [vmem:[#allocation2 + $0x18] sm:$0xff] %vm121_vm3, %v115_v27  ;;  %722 = vmatpush.bf16.msrb.mxu0 %v1600_v29  ;;  %739 = vmatpush.bf16.msrb.mxu1 %v1610_v31  ;;  %v1619_v53 = vld [vmem:[%s2145_s3 + $0x130] sm:$0xff]  ;;  %v1606_v54 = vld [vmem:[%s2145_s3 + $0xc8] sm:$0xff]  ;;  %v1605_v59 = vld [vmem:[%s2145_s3 + $0xc0] sm:$0xff] }
  0x18   :  { %124 = vst.msk [vmem:[#allocation2 + $0x28] sm:$0x1] %vm123_vm4, %v114_v24  ;;  %v1618_v57 = vld [vmem:[%s2145_s3 + $0x128] sm:$0xff]  ;;  %v1624_v2 = vld [vmem:[%s2145_s3 + $0x158] sm:$0xff]  ;;  %v1617_v5 = vld [vmem:[%s2145_s3 + $0x120] sm:$0xff] }
  0x19   :  { %173 = vst.msk [vmem:[#allocation2 + $0x38] sm:$0xfe] %vm119_vm2, %v167_v36  ;;  %v1623_v11 = vld [vmem:[%s2145_s3 + $0x150] sm:$0xff]  ;;  %v1616_v12 = vld [vmem:[%s2145_s3 + $0x118] sm:$0xff]  ;;  %v1622_v13 = vld [vmem:[%s2145_s3 + $0x148] sm:$0xff]  ;;  %vm1265_vm2 = vcmask 1041409  }
  0x1a   :  { %704 = vmatpush.bf16.msra.mxu3 %v1591_v21  ;;  %685 = vmatpush.bf16.msra.mxu2 %v1583_v30  ;;  %174 = vst.msk [vmem:[#allocation2 + $0x48] sm:$0xff] %vm121_vm3, %v169_v43  ;;  %v1615_v18 = vld [vmem:[%s2145_s3 + $0x110] sm:$0xff]  ;;  %v1621_v20 = vld [vmem:[%s2145_s3 + $0x140] sm:$0xff]  ;;  %v1614_v24 = vld [vmem:[%s2145_s3 + $0x108] sm:$0xff] }
  0x1b   :  { %723 = vmatpush.bf16.msrb.mxu0 %v1599_v35  ;;  %740 = vmatpush.bf16.msrb.mxu1 %v1609_v39  ;;  %175 = vst.msk [vmem:[#allocation2 + $0x58] sm:$0x1] %vm123_vm4, %v168_v37  ;;  %v1613_v35 = vld [vmem:[%s2145_s3 + $0x100] sm:$0xff] }
  0x1d   :  { %v276_v40 = vld [vmem:[#allocation2 + $0x8] sm:$0xff] }
  0x1e   :  { %705 = vmatpush.bf16.msra.mxu3 %v1590_v28  ;;  %v1891_v41 = vld [vmem:[#allocation2 + $0x18] sm:$0xff]  ;;  %686 = vmatpush.bf16.msra.mxu2 %v1582_v38  ;;  %v284_v61 = vld [vmem:[#allocation2 + $0x8] sm:$0xfe] }
  0x1f   :  { %v378_v44 = vpack.c.bf16 %v1891_v41, %v276_v40  ;;  %724 = vmatpush.bf16.msrb.mxu0 %v1598_v45  ;;  %741 = vmatpush.bf16.msrb.mxu1 %v1608_v47  ;;  %v316_v56 = vrot.slane %v1891_v41, 1  ;;  %v286_v62 = vld [vmem:[#allocation2 + $0x28] sm:$0x1]  ;;  %v315_v63 = vrot.slane %v284_v61, 1  ;;  %v353_v19 = vrot.slane %v1891_v41, 2 }
  0x20   :  { %v280_v58 = vld [vmem:[#allocation2 + $0x38] sm:$0xff]  ;;  %v320_v1 = vrot.slane %v286_v62, 1  ;;  %v292_v21 = vld [vmem:[#allocation2 + $0x8] sm:$0xfc]  ;;  %v294_v26 = vld [vmem:[#allocation2 + $0x28] sm:$0x3] }
  0x21   :  { %v1941_v60 = vld [vmem:[#allocation2 + $0x48] sm:$0xff]  ;;  %v317_v3 = vsel %vm311_vm5, %v315_v63, %v316_v56  ;;  %v352_v27 = vrot.slane %v292_v21, 2  ;;  %v357_v28 = vrot.slane %v294_v26, 2  ;;  %v288_v29 = vld [vmem:[#allocation2 + $0x38] sm:$0xfe] }
  0x22   :  { %706 = vmatpush.bf16.msra.mxu3 %v1589_v32  ;;  %687 = vmatpush.bf16.msra.mxu2 %v1581_v46  ;;  %v384_v0 = vpack.c.bf16 %v1941_v60, %v280_v58  ;;  %v321_v4 = vsel %vm311_vm5, %v316_v56, %v320_v1  ;;  %v326_v25 = vrot.slane %v1941_v60, 1  ;;  %v290_v30 = vld [vmem:[#allocation2 + $0x58] sm:$0x1]  ;;  %v325_v32 = vrot.slane %v288_v29, 1 }
  0x23   :  { %725 = vmatpush.bf16.msrb.mxu0 %v1597_v49  ;;  %742 = vmatpush.bf16.msrb.mxu1 %v1607_v51  ;;  %v380_v8 = vpack.c.bf16 %v321_v4, %v317_v3  ;;  %v354_v31 = vsel %vm348_vm9, %v352_v27, %v353_v19  ;;  %v330_v33 = vrot.slane %v290_v30, 1  ;;  %v358_v34 = vsel %vm348_vm9, %v353_v19, %v357_v28  ;;  %v298_v51 = vld [vmem:[#allocation2 + $0x58] sm:$0x3] }
  0x24   :  { %v382_v36 = vpack.c.bf16 %v358_v34, %v354_v31  ;;  %v327_v37 = vsel %vm311_vm5, %v325_v32, %v326_v25  ;;  %v1667_v34 = vld [vmem:[%s2146_s4] ss:$0 sm:$0xff] }
  0x25   :  { %707 = vmatmul.bf16.vlgmr.msra.gmra.mxu3 %v378_v44  ;;  %v331_v38 = vsel %vm311_vm5, %v326_v25, %v330_v33 }
  0x26   :  { %775 = vmatpush.bf16.msrb.mxu3 %v1628_v42  ;;  %756 = vmatpush.bf16.msrb.mxu2 %v1620_v50  ;;  %v386_v40 = vpack.c.bf16 %v331_v38, %v327_v37  ;;  %v296_v50 = vld [vmem:[#allocation2 + $0x38] sm:$0xfc] }
  0x27   :  { %743 = vmatpush.bf16.msrb.mxu1 %v1606_v54  ;;  %v362_v54 = vrot.slane %v296_v50, 2 }
  0x2a   :  { %776 = vmatpush.bf16.msrb.mxu3 %v1627_v48  ;;  %757 = vmatpush.bf16.msrb.mxu2 %v1619_v53  ;;  %v363_v53 = vrot.slane %v1941_v60, 2 }
  0x2b   :  { %744 = vmatpush.bf16.msrb.mxu1 %v1605_v59 }
  0x2c   :  { %v364_v56 = vsel %vm348_vm9, %v362_v54, %v363_v53 }
  0x2e   :  { %777 = vmatpush.bf16.msrb.mxu3 %v1626_v52  ;;  %758 = vmatpush.bf16.msrb.mxu2 %v1618_v57 }
  0x2f   :  { %745 = vmatmul.bf16.vlgmr.msrb.gmra.mxu1 %v380_v8 }
  0x32   :  { %778 = vmatpush.bf16.msrb.mxu3 %v1625_v55  ;;  %759 = vmatpush.bf16.msrb.mxu2 %v1617_v5  ;;  %v367_v55 = vrot.slane %v298_v51, 2 }
  0x34   :  { %v368_v57 = vsel %vm348_vm9, %v363_v53, %v367_v55 }
  0x35   :  { %712 = vmatmul.bf16.gmra.mxu3 %v384_v0  ;;  %v388_v62 = vpack.c.bf16 %v368_v57, %v364_v56 }
  0x36   :  { %779 = vmatpush.bf16.msrb.mxu3 %v1624_v2  ;;  %760 = vmatpush.bf16.msrb.mxu2 %v1616_v12 }
  0x3a   :  { %780 = vmatpush.bf16.msrb.mxu3 %v1623_v11  ;;  %761 = vmatpush.bf16.msrb.mxu2 %v1615_v18 }
  0x3e   :  { %781 = vmatpush.bf16.msrb.mxu3 %v1622_v13  ;;  %762 = vmatpush.bf16.msrb.mxu2 %v1614_v24 }
  0x3f   :  { %750 = vmatmul.bf16.gmra.mxu1 %v386_v40 }
  0x42   :  { %782 = vmatpush.bf16.msrb.mxu3 %v1621_v20  ;;  %763 = vmatpush.bf16.msrb.mxu2 %v1613_v35 }
  0x45   :  { %783 = vmatmul.bf16.vlgmr.msrb.gmra.mxu3 %v382_v36 }
  0x55   :  { %788 = vmatmul.bf16.gmra.mxu3 %v388_v62 }
  0x82   :  { %v88_v6 = vpop.f32.mrf.mxu0  ;;  %v144_v7 = vpop.f32.mrf.mxu1 }
  0x83   :  { %v97_v9 = vrot.slane %v88_v6, 7  ;;  %v152_v10 = vrot.slane %v144_v7, 7 }
  0x85   :  { %104 = vst.msk [vmem:[#allocation2] sm:$0xfe] %vm103_vm6, %v97_v9 }
  0x86   :  { %159 = vst.msk [vmem:[#allocation2 + $0x30] sm:$0xfe] %vm103_vm6, %v152_v10 }
  0x8a   :  { %v91_v14 = vpop.f32.mrf.mxu0  ;;  %v147_v15 = vpop.f32.mrf.mxu1 }
  0x8b   :  { %v98_v16 = vrot.slane %v91_v14, 7  ;;  %v153_v17 = vrot.slane %v147_v15, 7 }
  0x8c   :  { %v283_v39 = vld [vmem:[#allocation2] sm:$0xfe] }
  0x8d   :  { %v99_v22 = vsel %vm96_vm1, %v97_v9, %v98_v16  ;;  %108 = vst.msk [vmem:[#allocation2 + $0x20] sm:$0x1] %vm107_vm7, %v98_v16  ;;  %v154_v23 = vsel %vm96_vm1, %v152_v10, %v153_v17  ;;  %v275_v42 = vld [vmem:[#allocation2] sm:$0xff]  ;;  %v312_v47 = vrot.slane %v283_v39, 1  ;;  %v287_v59 = vld [vmem:[#allocation2 + $0x30] sm:$0xfe] }
  0x8e   :  { %106 = vst.msk [vmem:[#allocation2 + $0x10] sm:$0xff] %vm105_vm8, %v99_v22  ;;  %v322_v0 = vrot.slane %v287_v59, 1  ;;  %v279_v2 = vld [vmem:[#allocation2 + $0x30] sm:$0xff]  ;;  %v291_v7 = vld [vmem:[#allocation2] sm:$0xfc]  ;;  %vm1260_vm1 = vcmask 130112  }
  0x8f   :  { %160 = vst.msk [vmem:[#allocation2 + $0x40] sm:$0xff] %vm105_vm8, %v154_v23  ;;  %v349_v10 = vrot.slane %v291_v7, 2  ;;  %v295_v14 = vld [vmem:[#allocation2 + $0x30] sm:$0xfc] }
  0x90   :  { %161 = vst.msk [vmem:[#allocation2 + $0x50] sm:$0x1] %vm107_vm7, %v153_v17  ;;  %v359_v17 = vrot.slane %v295_v14, 2 }
  0x94   :  { %v285_v41 = vld [vmem:[#allocation2 + $0x20] sm:$0x1] }
  0x95   :  { %v277_v43 = vld [vmem:[#allocation2 + $0x10] sm:$0xff]  ;;  %v318_v44 = vrot.slane %v285_v41, 1  ;;  %v293_v6 = vld [vmem:[#allocation2 + $0x20] sm:$0x3] }
  0x96   :  { %v313_v45 = vrot.slane %v277_v43, 1  ;;  %v377_v46 = vpack.c.bf16 %v277_v43, %v275_v42  ;;  %v281_v58 = vld [vmem:[#allocation2 + $0x40] sm:$0xff]  ;;  %v350_v8 = vrot.slane %v277_v43, 2  ;;  %v355_v9 = vrot.slane %v293_v6, 2 }
  0x97   :  { %v289_v61 = vld [vmem:[#allocation2 + $0x50] sm:$0x1]  ;;  %v323_v63 = vrot.slane %v281_v58, 1  ;;  %v383_v3 = vpack.c.bf16 %v281_v58, %v279_v2  ;;  %v360_v16 = vrot.slane %v281_v58, 2  ;;  %v1708_v58 = vmov 32.0  }
  0x98   :  { %688 = vmatmul.bf16.vlgmr.msra.gmra.mxu2 %v377_v46  ;;  %v314_v48 = vsel %vm311_vm5, %v312_v47, %v313_v45  ;;  %v319_v49 = vsel %vm311_vm5, %v313_v45, %v318_v44  ;;  %v328_v1 = vrot.slane %v289_v61, 1  ;;  %v351_v11 = vsel %vm348_vm9, %v349_v10, %v350_v8  ;;  %v297_v15 = vld [vmem:[#allocation2 + $0x50] sm:$0x3] }
  0x99   :  { %v379_v52 = vpack.c.bf16 %v319_v49, %v314_v48  ;;  %v324_v4 = vsel %vm311_vm5, %v322_v0, %v323_v63  ;;  %v356_v12 = vsel %vm348_vm9, %v350_v8, %v355_v9  ;;  %v365_v18 = vrot.slane %v297_v15, 2 }
  0x9a   :  { %v329_v60 = vsel %vm311_vm5, %v323_v63, %v328_v1  ;;  %v381_v13 = vpack.c.bf16 %v356_v12, %v351_v11  ;;  %v361_v19 = vsel %vm348_vm9, %v359_v17, %v360_v16  ;;  %1675 = vrcp.f32 %v1708_v58 }
  0x9b   :  { %726 = vmatmul.bf16.vlgmr.msrb.gmra.mxu0 %v379_v52  ;;  %v385_v5 = vpack.c.bf16 %v329_v60, %v324_v4  ;;  %v366_v20 = vsel %vm348_vm9, %v360_v16, %v365_v18 }
  0x9c   :  { %v387_v21 = vpack.c.bf16 %v366_v20, %v361_v19 }
  0xa0   :  { %v1676_v4 = vpop.eup %1675 }
  0xa1   :  { %v808_v10 = vmul.f32 32.0, %v1676_v4  ;;  %vm812_vm10 = vweird.f32 %v1676_v4 }
  0xa3   :  { %v809_v16 = vsub.f32 1.0, %v808_v10  ;;  %v1645_v10 = vld [vmem:[%s2149_s7 + $0x80] sm:$0xff] }
  0xa5   :  { %v810_v19 = vmul.f32 %v1676_v4, %v809_v16 }
  0xa8   :  { %693 = vmatmul.bf16.gmra.mxu2 %v383_v3  ;;  %v708_v22 = vpop.f32.mrf.mxu3 }
  0xab   :  { %731 = vmatmul.bf16.gmra.mxu0 %v385_v5 }
  0xac   :  { %v746_v30 = vpop.f32.mrf.mxu1 }
  0xb0   :  { %v710_v23 = vpop.f32.mrf.mxu3 }
  0xb4   :  { %v748_v35 = vpop.f32.mrf.mxu1 }
  0xb8   :  { %764 = vmatmul.bf16.vlgmr.msrb.gmra.mxu2 %v381_v13  ;;  %v713_v26 = vpop.f32.mrf.mxu3 }
  0xbc   :  { %v751_v47 = vpop.f32.mrf.mxu1 }
  0xc0   :  { %v715_v28 = vpop.f32.mrf.mxu3 }
  0xc4   :  { %v753_v1 = vpop.f32.mrf.mxu1 }
  0xc8   :  { %769 = vmatmul.bf16.gmra.mxu2 %v387_v21  ;;  %v784_v32 = vpop.f32.mrf.mxu3 }
  0xd0   :  { %v786_v41 = vpop.f32.mrf.mxu3 }
  0xd8   :  { %v789_v56 = vpop.f32.mrf.mxu3 }
  0xe0   :  { %v791_v12 = vpop.f32.mrf.mxu3 }
 0x118   :  { %v727_v29 = vpop.f32.mrf.mxu0 }
 0x11b   :  { %v689_v24 = vpop.f32.mrf.mxu2 }
 0x11c   :  { %v690_v38 = vadd.f32 %v1667_v34, %v689_v24 }
 0x11e   :  { %v709_v42 = vadd.f32 %v708_v22, %v690_v38  ;;  %v811_v22 = vadd.f32 %v1676_v4, %v810_v19 }
 0x120   :  { %v729_v33 = vpop.f32.mrf.mxu0  ;;  %v728_v48 = vadd.f32 %v727_v29, %v709_v42 }
 0x122   :  { %v747_v52 = vadd.f32 %v746_v30, %v728_v48 }
 0x123   :  { %v691_v25 = vpop.f32.mrf.mxu2 }
 0x124   :  { %v692_v37 = vadd.f32 %v1667_v34, %v691_v25  ;;  %v2003_v25 = vsel %vm812_vm10, %v1676_v4, %v811_v22 }
 0x126   :  { %v711_v40 = vadd.f32 %v710_v23, %v692_v37  ;;  %v1652_v37 = vld [vmem:[%s2149_s7 + $0xb8] sm:$0xff] }
 0x127   :  { %1134 = vmatpush.bf16.msra.mxu2 %v1652_v37  ;;  %1653 = vmatpush.bf16.msra.mxu3 %v1652_v37 }
 0x128   :  { %v732_v44 = vpop.f32.mrf.mxu0  ;;  %v730_v46 = vadd.f32 %v729_v33, %v711_v40 }
 0x12a   :  { %v749_v51 = vadd.f32 %v748_v35, %v730_v46  ;;  %v1636_v35 = vld [vmem:[%s2149_s7 + $0x38] sm:$0xff] }
 0x12b   :  { %v694_v27 = vpop.f32.mrf.mxu2  ;;  %1096 = vmatpush.bf16.msra.mxu0 %v1636_v35 }
 0x12c   :  { %v695_v39 = vadd.f32 %v1667_v34, %v694_v27 }
 0x12e   :  { %v714_v43 = vadd.f32 %v713_v26, %v695_v39 }
 0x130   :  { %v733_v49 = vadd.f32 %v732_v44, %v714_v43  ;;  %v734_v62 = vpop.f32.mrf.mxu0  ;;  %v1635_v43 = vld [vmem:[%s2149_s7 + $0x30] sm:$0xff] }
 0x131   :  { %v1643_v44 = vld [vmem:[%s2149_s7 + $0x70] sm:$0xff]  ;;  %1097 = vmatpush.bf16.msra.mxu0 %v1635_v43 }
 0x132   :  { %v752_v53 = vadd.f32 %v751_v47, %v733_v49  ;;  %v1634_v49 = vld [vmem:[%s2149_s7 + $0x28] sm:$0xff] }
 0x133   :  { %v696_v31 = vpop.f32.mrf.mxu2 }
 0x134   :  { %v697_v50 = vadd.f32 %v1667_v34, %v696_v31 }
 0x135   :  { %1098 = vmatpush.bf16.msra.mxu0 %v1634_v49 }
 0x136   :  { %v716_v54 = vadd.f32 %v715_v28, %v697_v50  ;;  %v1642_v50 = vld [vmem:[%s2149_s7 + $0x68] sm:$0xff] }
 0x138   :  { %v735_v63 = vadd.f32 %v734_v62, %v716_v54  ;;  %v1633_v54 = vld [vmem:[%s2149_s7 + $0x20] sm:$0xff]  ;;  %v1648_v62 = vld [vmem:[%s2149_s7 + $0x98] sm:$0xff] }
 0x139   :  { %1099 = vmatpush.bf16.msra.mxu0 %v1633_v54 }
 0x13a   :  { %v754_v60 = vadd.f32 %v753_v1, %v735_v63  ;;  %v1631_v1 = vld [vmem:[%s2149_s7 + $0x10] sm:$0xff] }
 0x13b   :  { %v765_v36 = vpop.f32.mrf.mxu2 }
 0x13c   :  { %v766_v59 = vadd.f32 %v765_v36, %v747_v52  ;;  %v1644_v36 = vld [vmem:[%s2149_s7 + $0x78] sm:$0xff] }
 0x13d   :  { %1115 = vmatpush.bf16.msra.mxu1 %v1644_v36 }
 0x13e   :  { %v785_v2 = vadd.f32 %v784_v32, %v766_v59  ;;  %v1632_v59 = vld [vmem:[%s2149_s7 + $0x18] sm:$0xff] }
 0x13f   :  { %1100 = vmatpush.bf16.msra.mxu0 %v1632_v59 }
 0x140   :  { %v794_v7 = vsel %vm121_vm3, %v785_v2, 0.0 }
 0x141   :  { %1116 = vmatpush.bf16.msra.mxu1 %v1643_v44 }
 0x143   :  { %v767_v45 = vpop.f32.mrf.mxu2  ;;  %1101 = vmatpush.bf16.msra.mxu0 %v1631_v1 }
 0x144   :  { %v768_v55 = vadd.f32 %v767_v45, %v749_v51  ;;  %v1651_v45 = vld [vmem:[%s2149_s7 + $0xb0] sm:$0xff]  ;;  %v1650_v51 = vld [vmem:[%s2149_s7 + $0xa8] sm:$0xff] }
 0x145   :  { %1135 = vmatpush.bf16.msra.mxu2 %v1651_v45  ;;  %1654 = vmatpush.bf16.msra.mxu3 %v1651_v45 }
 0x146   :  { %v787_v0 = vadd.f32 %v786_v41, %v768_v55  ;;  %1117 = vmatpush.bf16.msra.mxu1 %v1642_v50  ;;  %v1641_v55 = vld [vmem:[%s2149_s7 + $0x60] sm:$0xff] }
 0x148   :  { %v795_v5 = vsel %vm121_vm3, %v787_v0, 0.0 }
 0x149   :  { %v796_v11 = vadd.f32 %v795_v5, %v794_v7  ;;  %1136 = vmatpush.bf16.msra.mxu2 %v1650_v51  ;;  %1655 = vmatpush.bf16.msra.mxu3 %v1650_v51  ;;  %v1638_v5 = vld [vmem:[%s2149_s7 + $0x48] sm:$0xff] }
 0x14a   :  { %1118 = vmatpush.bf16.msra.mxu1 %v1641_v55  ;;  %v1646_v7 = vld [vmem:[%s2149_s7 + $0x88] sm:$0xff] }
 0x14b   :  { %v770_v57 = vpop.f32.mrf.mxu2 }
 0x14c   :  { %v771_v61 = vadd.f32 %v770_v57, %v752_v53 }
 0x14e   :  { %v790_v3 = vadd.f32 %v789_v56, %v771_v61  ;;  %v1649_v56 = vld [vmem:[%s2149_s7 + $0xa0] sm:$0xff]  ;;  %v1640_v61 = vld [vmem:[%s2149_s7 + $0x58] sm:$0xff] }
 0x14f   :  { %1137 = vmatpush.bf16.msra.mxu2 %v1649_v56  ;;  %1656 = vmatpush.bf16.msra.mxu3 %v1649_v56 }
 0x150   :  { %v797_v8 = vsel %vm121_vm3, %v790_v3, 0.0  ;;  %1119 = vmatpush.bf16.msra.mxu1 %v1640_v61  ;;  %v1670_v61 = vld [vmem:[%s2150_s8] ss:$0 sm:$0xff] }
 0x151   :  { %v798_v14 = vadd.f32 %v797_v8, %v796_v11  ;;  %v1629_v8 = vld [vmem:[%s2149_s7] sm:$0xff] }
 0x153   :  { %v772_v6 = vpop.f32.mrf.mxu2  ;;  %1138 = vmatpush.bf16.msra.mxu2 %v1648_v62  ;;  %1657 = vmatpush.bf16.msra.mxu3 %v1648_v62 }
 0x154   :  { %v773_v9 = vadd.f32 %v772_v6, %v754_v60  ;;  %v1630_v60 = vld [vmem:[%s2149_s7 + $0x8] sm:$0xff] }
 0x155   :  { %1102 = vmatpush.bf16.msra.mxu0 %v1630_v60 }
 0x156   :  { %v792_v13 = vadd.f32 %v791_v12, %v773_v9  ;;  %v1637_v9 = vld [vmem:[%s2149_s7 + $0x40] sm:$0xff] }
 0x158   :  { %v799_v15 = vsel %vm121_vm3, %v792_v13, 0.0 }
 0x159   :  { %v800_v17 = vadd.f32 %v799_v15, %v798_v14  ;;  %1103 = vmatpush.bf16.msra.mxu0 %v1629_v8 }
 0x15b   :  { %v801_v18 = vrot.slane %v800_v17, 4 }
 0x15d   :  { %v802_v20 = vadd.f32 %v801_v18, %v800_v17  ;;  %v1668_v17 = vld [vmem:[%s2147_s5] ss:$0 sm:$0xff] }
 0x15f   :  { %v803_v21 = vrot.slane %v802_v20, 2 }
 0x161   :  { %v804_v23 = vadd.f32 %v803_v21, %v802_v20 }
 0x163   :  { %v805_v24 = vrot.slane %v804_v23, 1 }
 0x165   :  { %v806_v26 = vadd.f32 %v805_v24, %v804_v23  ;;  %v1669_v23 = vld [vmem:[%s2148_s6] ss:$0 sm:$0xff] }
 0x167   :  { %v814_v27 = vmul.f32 %v2003_v25, %v806_v26 }
 0x169   :  { %v2006_v28 = vsub.f32 %v785_v2, %v814_v27  ;;  %v2008_v29 = vsub.f32 %v787_v0, %v814_v27  ;;  %v2010_v30 = vsub.f32 %v790_v3, %v814_v27  ;;  %v2012_v31 = vsub.f32 %v792_v13, %v814_v27  ;;  %v1639_v2 = vld [vmem:[%s2149_s7 + $0x50] sm:$0xff] }
 0x16a   :  { %v1647_v3 = vld [vmem:[%s2149_s7 + $0x90] sm:$0xff]  ;;  %1120 = vmatpush.bf16.msra.mxu1 %v1639_v2 }
 0x16b   :  { %v819_v32 = vmul.f32 %v2006_v28, %v2006_v28  ;;  %v820_v33 = vmul.f32 %v2008_v29, %v2008_v29  ;;  %v821_v34 = vmul.f32 %v2010_v30, %v2010_v30  ;;  %v822_v38 = vmul.f32 %v2012_v31, %v2012_v31  ;;  %1139 = vmatpush.bf16.msra.mxu2 %v1647_v3 }
 0x16c   :  { %1658 = vmatpush.bf16.msra.mxu3 %v1647_v3 }
 0x16d   :  { %v823_v39 = vsel %vm121_vm3, %v819_v32, 0.0  ;;  %v824_v40 = vsel %vm121_vm3, %v820_v33, 0.0  ;;  %v826_v42 = vsel %vm121_vm3, %v821_v34, 0.0  ;;  %v828_v47 = vsel %vm121_vm3, %v822_v38, 0.0 }
 0x16e   :  { %v825_v41 = vadd.f32 %v824_v40, %v823_v39  ;;  %1121 = vmatpush.bf16.msra.mxu1 %v1638_v5 }
 0x16f   :  { %1140 = vmatpush.bf16.msra.mxu2 %v1646_v7 }
 0x170   :  { %v827_v46 = vadd.f32 %v826_v42, %v825_v41  ;;  %1659 = vmatpush.bf16.msra.mxu3 %v1646_v7 }
 0x172   :  { %v829_v48 = vadd.f32 %v828_v47, %v827_v46  ;;  %1122 = vmatpush.bf16.msra.mxu1 %v1637_v9 }
 0x173   :  { %1141 = vmatpush.bf16.msra.mxu2 %v1645_v10 }
 0x174   :  { %v830_v52 = vrot.slane %v829_v48, 4  ;;  %1660 = vmatpush.bf16.msra.mxu3 %v1645_v10 }
 0x176   :  { %v831_v53 = vadd.f32 %v830_v52, %v829_v48 }
 0x178   :  { %v832_v57 = vrot.slane %v831_v53, 2 }
 0x17a   :  { %v833_v58 = vadd.f32 %v832_v57, %v831_v53 }
 0x17c   :  { %v834_v63 = vrot.slane %v833_v58, 1 }
 0x17e   :  { %v835_v0 = vadd.f32 %v834_v63, %v833_v58 }
 0x180   :  { %v836_v4 = vmul.f32 %v835_v0, %v2003_v25 }
 0x182   :  { %v837_v6 = vadd.f32 1e-05, %v836_v4 }
 0x184   :  { %1677 = vrsqrt.f32 %v837_v6  ;;  %vm844_vm12 = vweird.f32 %v837_v6 }
 0x18a   :  { %v1678_v11 = vpop.eup %1677 }
 0x18b   :  { %v839_v12 = vmul.f32 %v1678_v11, %v837_v6  ;;  %vm845_vm11 = vweird.f32 %v1678_v11 }
 0x18c   :  { %vm846_vm13 = vmor %vm844_vm12, %vm845_vm11 }
 0x18d   :  { %v840_v13 = vmul.f32 %v1678_v11, %v839_v12 }
 0x18f   :  { %v841_v14 = vmul.f32 0.5, %v840_v13 }
 0x191   :  { %v842_v15 = vsub.f32 1.5, %v841_v14 }
 0x193   :  { %v843_v16 = vmul.f32 %v1678_v11, %v842_v15 }
 0x195   :  { %v847_v18 = vsel %vm846_vm13, %v1678_v11, %v843_v16 }
 0x196   :  { %v848_v19 = vmul.f32 %v847_v18, %v2006_v28  ;;  %v849_v20 = vmul.f32 %v847_v18, %v2008_v29  ;;  %v850_v21 = vmul.f32 %v847_v18, %v2010_v30  ;;  %v851_v22 = vmul.f32 %v847_v18, %v2012_v31 }
 0x198   :  { %v855_v24 = vmul.f32 %v1668_v17, %v848_v19  ;;  %v856_v26 = vmul.f32 %v1668_v17, %v849_v20  ;;  %v857_v27 = vmul.f32 %v1668_v17, %v850_v21  ;;  %v858_v32 = vmul.f32 %v1668_v17, %v851_v22 }
 0x19a   :  { %v862_v33 = vadd.f32 %v1669_v23, %v855_v24  ;;  %v863_v34 = vadd.f32 %v1669_v23, %v856_v26  ;;  %v864_v35 = vadd.f32 %v1669_v23, %v857_v27  ;;  %v865_v36 = vadd.f32 %v1669_v23, %v858_v32 }
 0x19c   :  { %v866_v37 = vmax.f32 %v862_v33, 0.0  ;;  %v867_v28 = vmax.f32 %v863_v34, 0.0  ;;  %v868_v38 = vmax.f32 %v864_v35, 0.0  ;;  %v869_v29 = vmax.f32 %v865_v36, 0.0 }
 0x19e   :  { %927 = vst.msk [vmem:[#allocation3 + $0x1] sm:$0xff] %vm121_vm3, %v866_v37 }
 0x19f   :  { %928 = vst.msk [vmem:[#allocation3 + $0x9] sm:$0xff] %vm121_vm3, %v867_v28 }
 0x1a0   :  { %929 = vst.msk [vmem:[#allocation3 + $0x19] sm:$0xff] %vm121_vm3, %v868_v38 }
 0x1a1   :  { %930 = vst.msk [vmem:[#allocation3 + $0x21] sm:$0xff] %vm121_vm3, %v869_v29 }
 0x1a5   :  { %v931_v30 = vld [vmem:[#allocation3] sm:$0xff] }
 0x1a6   :  { %v935_v31 = vld [vmem:[#allocation3 + $0x1] sm:$0xff]  ;;  %v936_v40 = vld [vmem:[#allocation3 + $0x9] sm:$0xff] }
 0x1a7   :  { %v932_v39 = vld [vmem:[#allocation3 + $0x8] sm:$0xff]  ;;  %v944_v43 = vpack.c.bf16 %v936_v40, %v935_v31  ;;  %v933_v49 = vld [vmem:[#allocation3 + $0x18] sm:$0xff] }
 0x1a8   :  { %v939_v41 = vld [vmem:[#allocation3 + $0x2] sm:$0xff]  ;;  %v943_v42 = vpack.c.bf16 %v932_v39, %v931_v30  ;;  %v940_v44 = vld [vmem:[#allocation3 + $0xa] sm:$0xff]  ;;  %v941_v46 = vld [vmem:[#allocation3 + $0x1a] sm:$0xff] }
 0x1a9   :  { %v945_v45 = vpack.c.bf16 %v940_v44, %v939_v41  ;;  %v942_v47 = vld [vmem:[#allocation3 + $0x22] sm:$0xff]  ;;  %1123 = vmatmul.bf16.vlgmr.msra.gmra.mxu1 %v944_v43  ;;  %v937_v51 = vld [vmem:[#allocation3 + $0x19] sm:$0xff] }
 0x1aa   :  { %1104 = vmatmul.bf16.vlgmr.msra.gmra.mxu0 %v943_v42  ;;  %v948_v48 = vpack.c.bf16 %v942_v47, %v941_v46  ;;  %v934_v50 = vld [vmem:[#allocation3 + $0x20] sm:$0xff] }
 0x1ab   :  { %1142 = vmatmul.bf16.vlgmr.msra.gmra.mxu2 %v945_v45  ;;  %v938_v52 = vld [vmem:[#allocation3 + $0x21] sm:$0xff]  ;;  %v946_v53 = vpack.c.bf16 %v934_v50, %v933_v49 }
 0x1ac   :  { %1147 = vmatmul.bf16.vlgmr.msra.gmra.mxu3 %v948_v48  ;;  %v947_v54 = vpack.c.bf16 %v938_v52, %v937_v51 }
 0x1b9   :  { %1128 = vmatmul.bf16.gmra.mxu1 %v947_v54  ;;  %v1674_v54 = vld [vmem:[#allocation4] ss:$0 sm:$0xff] }
 0x1ba   :  { %1109 = vmatmul.bf16.gmra.mxu0 %v946_v53 }
 0x226   :  { %v1124_v56 = vpop.f32.mrf.mxu1 }
 0x227   :  { %v1105_v55 = vpop.f32.mrf.mxu0 }
 0x228   :  { %v1106_v0 = vadd.f32 %v1670_v61, %v1105_v55 }
 0x22a   :  { %v1125_v6 = vadd.f32 %v1124_v56, %v1106_v0  ;;  %v1709_v56 = vmov 0  }
 0x22b   :  { %1665 = vset.pattern.permute.xlu2 %v1709_v56  ;;  %1666 = vset.pattern.permute.xlu0 %v1709_v56 }
 0x22c   :  { %1244 = vperm.xlu2 %1665, %v1674_v54  }
 0x22e   :  { %v1143_v57 = vpop.f32.mrf.mxu2  ;;  %v1126_v59 = vpop.f32.mrf.mxu1 }
 0x22f   :  { %v1107_v58 = vpop.f32.mrf.mxu0  ;;  %v1148_v3 = vpop.f32.mrf.mxu3  ;;  %v1144_v8 = vadd.f32 %v1143_v57, %v1125_v6 }
 0x230   :  { %v1108_v62 = vadd.f32 %v1670_v61, %v1107_v58 }
 0x231   :  { %v1153_v14 = vsel %vm121_vm3, %v1144_v8, 0.0 }
 0x232   :  { %v1127_v60 = vadd.f32 %v1126_v59, %v1108_v62 }
 0x236   :  { %v1129_v2 = vpop.f32.mrf.mxu1  ;;  %v1145_v4 = vpop.f32.mrf.mxu2 }
 0x237   :  { %v1110_v63 = vpop.f32.mrf.mxu0  ;;  %v1146_v7 = vadd.f32 %v1145_v4, %v1127_v60  ;;  %v1150_v18 = vpop.f32.mrf.mxu3 }
 0x238   :  { %v1111_v1 = vadd.f32 %v1670_v61, %v1110_v63 }
 0x239   :  { %v1154_v11 = vsel %vm121_vm3, %v1146_v7, 0.0 }
 0x23a   :  { %v1130_v5 = vadd.f32 %v1129_v2, %v1111_v1  ;;  %v1155_v17 = vadd.f32 %v1154_v11, %v1153_v14  ;;  %v1672_v2 = vld [vmem:[%s2152_s10] ss:$0 sm:$0xff] }
 0x23c   :  { %v1149_v9 = vadd.f32 %v1148_v3, %v1130_v5 }
 0x23e   :  { %v1131_v13 = vpop.f32.mrf.mxu1  ;;  %v1156_v15 = vsel %vm121_vm3, %v1149_v9, 0.0 }
 0x23f   :  { %v1112_v10 = vpop.f32.mrf.mxu0  ;;  %v1157_v20 = vadd.f32 %v1156_v15, %v1155_v17 }
 0x240   :  { %v1113_v12 = vadd.f32 %v1670_v61, %v1112_v10 }
 0x242   :  { %v1132_v16 = vadd.f32 %v1131_v13, %v1113_v12 }
 0x244   :  { %v1151_v19 = vadd.f32 %v1150_v18, %v1132_v16 }
 0x246   :  { %v1158_v21 = vsel %vm121_vm3, %v1151_v19, 0.0 }
 0x247   :  { %v1159_v22 = vadd.f32 %v1158_v21, %v1157_v20 }
 0x249   :  { %v1160_v23 = vrot.slane %v1159_v22, 4 }
 0x24b   :  { %v1161_v24 = vadd.f32 %v1160_v23, %v1159_v22 }
 0x24d   :  { %v1162_v26 = vrot.slane %v1161_v24, 2 }
 0x24f   :  { %v1163_v27 = vadd.f32 %v1162_v26, %v1161_v24 }
 0x251   :  { %v1164_v32 = vrot.slane %v1163_v27, 1 }
 0x253   :  { %v1165_v33 = vadd.f32 %v1164_v32, %v1163_v27  ;;  %v1255_v32 = vlaneseq }
 0x255   :  { %v1166_v34 = vmul.f32 %v1165_v33, %v2003_v25 }
 0x257   :  { %v1167_v35 = vsub.f32 %v1144_v8, %v1166_v34  ;;  %v1168_v36 = vsub.f32 %v1146_v7, %v1166_v34  ;;  %v1169_v37 = vsub.f32 %v1149_v9, %v1166_v34  ;;  %v1170_v28 = vsub.f32 %v1151_v19, %v1166_v34  ;;  %v1673_v9 = vld [vmem:[%s2153_s11] ss:$0 sm:$0xff] }
 0x258   :  { %v1256_v34 = vand.u32 127, %v1255_v32 }
 0x259   :  { %v1171_v38 = vmul.f32 %v1167_v35, %v1167_v35  ;;  %v1172_v29 = vmul.f32 %v1168_v36, %v1168_v36  ;;  %v1173_v30 = vmul.f32 %v1169_v37, %v1169_v37  ;;  %v1174_v31 = vmul.f32 %v1170_v28, %v1170_v28 }
 0x25b   :  { %v1175_v39 = vsel %vm121_vm3, %v1171_v38, 0.0  ;;  %v1176_v40 = vsel %vm121_vm3, %v1172_v29, 0.0  ;;  %v1178_v42 = vsel %vm121_vm3, %v1173_v30, 0.0  ;;  %v1180_v44 = vsel %vm121_vm3, %v1174_v31, 0.0 }
 0x25c   :  { %v1177_v41 = vadd.f32 %v1176_v40, %v1175_v39 }
 0x25e   :  { %v1179_v43 = vadd.f32 %v1178_v42, %v1177_v41 }
 0x260   :  { %v1181_v45 = vadd.f32 %v1180_v44, %v1179_v43 }
 0x262   :  { %v1182_v46 = vrot.slane %v1181_v45, 4 }
 0x264   :  { %v1183_v47 = vadd.f32 %v1182_v46, %v1181_v45 }
 0x266   :  { %v1184_v48 = vrot.slane %v1183_v47, 2 }
 0x268   :  { %v1185_v49 = vadd.f32 %v1184_v48, %v1183_v47 }
 0x26a   :  { %v1186_v50 = vrot.slane %v1185_v49, 1 }
 0x26c   :  { %v1187_v51 = vadd.f32 %v1186_v50, %v1185_v49 }
 0x26e   :  { %v1188_v52 = vmul.f32 %v1187_v51, %v2003_v25  ;;  %v1671_v25 = vld [vmem:[%s2151_s9] ss:$0 sm:$0xff]  ;;  %s1710_s9 = smov [#allocation5]  }
 0x26f   :  { %s1275_s10 = sshll.u32 %s1710_s9, 4  ;;  %s1276_s10 = int_to_ptr.vmem [resolvable:$true] %s1275_s10 }
 0x270   :  { %v1189_v53 = vadd.f32 1e-05, %v1188_v52 }
 0x272   :  { %1679 = vrsqrt.f32 %v1189_v53  ;;  %vm1196_vm15 = vweird.f32 %v1189_v53 }
 0x278   :  { %v1680_v55 = vpop.eup %1679 }
 0x279   :  { %v1191_v57 = vmul.f32 %v1680_v55, %v1189_v53  ;;  %vm1197_vm14 = vweird.f32 %v1680_v55 }
 0x27a   :  { %vm1198_vm0 = vmor %vm1196_vm15, %vm1197_vm14 }
 0x27b   :  { %v1192_v58 = vmul.f32 %v1680_v55, %v1191_v57 }
 0x27d   :  { %v1193_v59 = vmul.f32 0.5, %v1192_v58 }
 0x27f   :  { %v1194_v61 = vsub.f32 1.5, %v1193_v59 }
 0x281   :  { %v1195_v62 = vmul.f32 %v1680_v55, %v1194_v61 }
 0x283   :  { %v1199_v63 = vsel %vm1198_vm0, %v1680_v55, %v1195_v62 }
 0x284   :  { %v1203_v0 = vmul.f32 %v1199_v63, %v1170_v28  ;;  %v1202_v1 = vmul.f32 %v1199_v63, %v1169_v37  ;;  %v1200_v3 = vmul.f32 %v1199_v63, %v1167_v35  ;;  %v1201_v4 = vmul.f32 %v1199_v63, %v1168_v36 }
 0x285   :  { %v1258_v37 = vadd.s32 4294967288, %v1256_v34 }
 0x286   :  { %v1209_v60 = vmul.f32 %v1671_v25, %v1202_v1  ;;  %v1207_v5 = vmul.f32 %v1671_v25, %v1200_v3  ;;  %v1210_v6 = vmul.f32 %v1671_v25, %v1203_v0  ;;  %v1208_v7 = vmul.f32 %v1671_v25, %v1201_v4  ;;  %v1245_v33 = vpop.permute.xlu2 %1244 }
 0x288   :  { %v1216_v8 = vadd.f32 %v1672_v2, %v1209_v60  ;;  %v1214_v10 = vadd.f32 %v1672_v2, %v1207_v5  ;;  %v1217_v13 = vadd.f32 %v1672_v2, %v1210_v6  ;;  %v1215_v14 = vadd.f32 %v1672_v2, %v1208_v7 }
 0x28a   :  { %v1220_v11 = vmax.f32 %v1216_v8, 0.0  ;;  %v1218_v12 = vmax.f32 %v1214_v10, 0.0  ;;  %v1221_v19 = vmax.f32 %v1217_v13, 0.0  ;;  %v1219_v20 = vmax.f32 %v1215_v14, 0.0 }
 0x28c   :  { %v1227_v15 = vmul.f32 %v1673_v9, %v1220_v11  ;;  %v1225_v16 = vmul.f32 %v1673_v9, %v1218_v12  ;;  %v1228_v21 = vmul.f32 %v1673_v9, %v1221_v19  ;;  %v1226_v22 = vmul.f32 %v1673_v9, %v1219_v20 }
 0x28e   :  { %v1235_v17 = vsel %vm121_vm3, %v1227_v15, 0.0  ;;  %v1229_v18 = vsel %vm121_vm3, %v1225_v16, 0.0  ;;  %v1238_v23 = vsel %vm121_vm3, %v1228_v21, 0.0  ;;  %v1232_v24 = vsel %vm121_vm3, %v1226_v22, 0.0 }
 0x28f   :  { %1236 = vadd.xlane.f32.xlu1 %v1235_v17  ;;  %1230 = vadd.xlane.f32.xlu0 %v1229_v18  ;;  %vm1268_vm3 = vcmask 123904  }
 0x297   :  { %1239 = vadd.xlane.f32.xlu1 %v1238_v23  ;;  %1233 = vadd.xlane.f32.xlu0 %v1232_v24 }
 0x302   :  { %v1237_v26 = vpop.xlane.xlu1 %1236  ;;  %v1231_v27 = vpop.xlane.xlu0 %1230 }
 0x303   :  { %v1249_v35 = vadd.f32 %v1245_v33, %v1237_v26  ;;  %v1247_v36 = vadd.f32 %v1245_v33, %v1231_v27 }
 0x305   :  { %v1262_v31 = vperm.slane %v1249_v35, %v1256_v34  ;;  %v1257_v39 = vperm.slane %v1247_v36, %v1256_v34 }
 0x30a   :  { %v1240_v28 = vpop.xlane.xlu1 %1239  ;;  %v1234_v38 = vpop.xlane.xlu0 %1233 }
 0x30b   :  { %v1250_v29 = vadd.f32 %v1245_v33, %v1240_v28  ;;  %v1248_v30 = vadd.f32 %v1245_v33, %v1234_v38 }
 0x30d   :  { %v1263_v40 = vperm.slane %v1250_v29, %v1258_v37  ;;  %v1259_v41 = vperm.slane %v1248_v30, %v1258_v37 }
 0x30f   :  { %v1261_v42 = vsel %vm1260_vm1, %v1259_v41, %v1257_v39  ;;  %v1264_v43 = vsel %vm1260_vm1, %v1263_v40, %v1262_v31 }
 0x310   :  { %v1266_v44 = vsel %vm1265_vm2, %v1264_v43, %v1261_v42 }
 0x311   :  { %1269 = vst.msk [vmem:[#allocation5] sm:$0x3] %vm1268_vm3, %v1266_v44 }
 0x312   :  { %1280 = dma.vmem_to_hbm [thread:$0]  %s1276_s10, 32, %s1278_s28, [#allocation6]  }
 0x313   :  { %1705 = dma.done.wait [#allocation6], 32  }
 0x314   :  { %1706 = vsyncadd [#allocation6], 4294967264 }
 0x315   :  { %1285 = vsyncpa [#allocation6], 1 }

</bundles_post_ra>
